<compile_context>
chip_gen: v7x
topology: tpu7x:2x2x1
jax: 0.10.0
libtpu: 0.0.40
codegen_flags: <defaults>
</compile_context>

<pallas_src>
import functools

import numpy as np

import jax
import jax.numpy as jnp
from jax import lax
from jax.experimental import pallas as pl
from jax.experimental.pallas import tpu as pltpu


R_PER_IMG = 4  # super-rows per image == final feature-map height (AvgPool2d(4))


# ----------------------------------------------------------------------------
# Fused whole-network kernel
# ----------------------------------------------------------------------------
def _resnet9_kernel(plan, x_ref, *refs):
    """refs = (*consts, out).  x_ref: [NT*R, (S1+1)*W*Cin] bf16 (with top halo)."""
    c_refs = refs[:-1]
    o_ref = refs[-1]
    r_img = plan["r_per_img"]
    m_rows = x_ref.shape[0]

    def ld(handle):
        return c_refs[handle][...]

    def neighbor(x, wc, below):
        """Row from the adjacent super-row (prev's last / next's first), zero at
        image boundaries.  roll is XLU, the mask is VPU -- no MXU work."""
        blk = x[:, x.shape[1] - wc:] if below else x[:, :wc]
        rolled = pltpu.roll(blk, 1 if below else m_rows - 1, 0)
        pos = lax.broadcasted_iota(jnp.int32, rolled.shape, 0) % r_img
        edge = (pos == 0) if below else (pos == r_img - 1)
        return jnp.where(edge, jnp.zeros_like(rolled), rolled)

    def conv(x, spec, relu):
        """One conv (+ folded BN) == one MXU dot on the halo-augmented operand."""
        parts = []
        if spec["below"]:
            parts.append(neighbor(x, spec["wc_in"], True))
        parts.append(x)
        if spec["above"]:
            parts.append(neighbor(x, spec["wc_in"], False))
        z = parts[0] if len(parts) == 1 else jnp.concatenate(parts, axis=1)
        y = jnp.dot(z.astype(jnp.bfloat16), ld(spec["w"]),
                    preferred_element_type=jnp.float32) + ld(spec["bias"])
        return jnp.maximum(y, 0.0) if relu else y

    # conv1 + BN1 + ReLU: the wrapper pre-assembled the halo, so it is one dot.
    y = jnp.dot(x_ref[...], ld(plan["conv1"]["w"]),
                preferred_element_type=jnp.float32) + ld(plan["conv1"]["bias"])
    x = jnp.maximum(y, 0.0)

    # BasicBlocks: relu(bn2(conv2(relu(bn1(conv1(x))))) + shortcut(x))
    for blk in plan["blocks"]:
        h = conv(x, blk["conv1"], relu=True)
        h = conv(h, blk["conv2"], relu=False)
        sc = conv(x, blk["shortcut"], relu=False) if blk["shortcut"] is not None else x
        x = jnp.maximum(h + sc, 0.0)

    # AvgPool2d(4) + Linear: per-image mean over the R super-rows via a tiny
    # pooling matmul (1/R baked in), then the (1/W-scaled, class-padded) weight.
    xb = x.astype(jnp.bfloat16)
    pooled = jnp.dot(ld(plan["head"]["pool"]), xb, preferred_element_type=jnp.float32)
    logits = jnp.dot(pooled.astype(jnp.bfloat16), ld(plan["head"]["w"]),
                     preferred_element_type=jnp.float32) + ld(plan["head"]["bias"])
    o_ref[0] = logits.astype(o_ref.dtype)


# ----------------------------------------------------------------------------
# Trace-time preparation: fold conv/BN/pool/linear into 2-D matmul operands
# ----------------------------------------------------------------------------
def prepare_operands(params, *, batch_tile, height, width, cin_pad=4):
    """Build the fused kernel's constant operands + a static `plan`."""
    assert batch_tile % 2 == 0, "batch_tile must be even (8-row tiles)"
    assert height % R_PER_IMG == 0
    r = R_PER_IMG
    consts = []

    def add(a):
        consts.append(a)
        return len(consts) - 1

    def conv_spec(p, *, stride, pad, s_in, w_in, pad_cin_to=None):
        wt = p["w"]
        if pad_cin_to is not None and pad_cin_to > wt.shape[1]:
            wt = jnp.pad(wt, ((0, 0), (0, pad_cin_to - wt.shape[1]), (0, 0), (0, 0)))
        cout, cin, kh, kw = map(int, wt.shape)
        assert s_in % stride == 0
        s_out = s_in // stride
        wo = (w_in + 2 * pad - kw) // stride + 1
        need_below = pad > 0                      # 3x3 convs need prev row
        need_above = pad > 0 and stride == 1      # stride-1 also needs next row
        off = 1 if need_below else 0
        n_blocks = s_in + off + (1 if need_above else 0)

        # H-tap selection: block u of the fused operand holds image row r*S+u-off.
        ht = np.zeros((kh, n_blocks, s_out), np.float32)
        for di in range(kh):
            for qp in range(s_out):
                u = qp * stride + di - pad + off
                if 0 <= u < n_blocks:
                    ht[di, u, qp] = 1.0
        # W-tap selection (stride + zero pad along W).
        wtap = np.zeros((kw, w_in, wo), np.float32)
        for dj in range(kw):
            for wv in range(wo):
                w = wv * stride + dj - pad
                if 0 <= w < w_in:
                    wtap[dj, w, wv] = 1.0
        # OIHW -> [kh, kw, cin, cout]; fold the BN scale into the output channels.
        kmat = jnp.transpose(wt, (2, 3, 1, 0)) * p["scale"][None, None, None, :]
        wbig = jnp.einsum("iuq,jwv,ijco->uwcqvo", ht, wtap, kmat)
        wbig = wbig.reshape(n_blocks * w_in * cin, s_out * wo * cout)
        bias = jnp.tile(p["shift"], s_out * wo)[None, :].astype(jnp.float32)
        spec = {"w": add(wbig.astype(jnp.bfloat16)), "bias": add(bias),
                "below": need_below, "above": need_above, "wc_in": w_in * cin}
        return spec, (s_out, wo, cout)

    plan = {"cin_pad": cin_pad, "r_per_img": r, "batch_tile": batch_tile}
    s1 = height // r
    plan["s1"] = s1
    plan["conv1"], (s, w, c) = conv_spec(params["conv1"], stride=2, pad=1,
                                         s_in=s1, w_in=width, pad_cin_to=cin_pad)

    blocks = []
    for layer in ("layer1", "layer2"):
        for bp in params[layer]:
            st = bp["stride"]
            c1, (so, wo, co) = conv_spec(bp["conv1"], stride=st, pad=1, s_in=s, w_in=w)
            c2, _ = conv_spec(bp["conv2"], stride=1, pad=1, s_in=so, w_in=wo)
            blk = {"conv1": c1, "conv2": c2, "shortcut": None}
            if "shortcut" in bp:
                blk["shortcut"], _ = conv_spec(bp["shortcut"], stride=st, pad=0,
                                               s_in=s, w_in=w)
            blocks.append(blk)
            s, w, c = so, wo, co
    plan["blocks"] = tuple(blocks)
    assert s == 1, "final feature map must collapse to one row per super-row"

    # AvgPool2d over the final r x w map + Linear.
    num_classes = int(params["linear_w"].shape[1])
    out_lanes = 128
    assert num_classes <= out_lanes
    m_tile = batch_tile * r
    pool = np.kron(np.eye(batch_tile, dtype=np.float32),
                   np.ones((1, r), np.float32)) / r                    # [NT, NT*R]
    wlin = jnp.tile(params["linear_w"] / w, (w, 1))                    # [w*C, classes]
    wlin = jnp.pad(wlin, ((0, 0), (0, out_lanes - num_classes)))
    bhead = jnp.pad(params["linear_b"], (0, out_lanes - num_classes))[None, :]
    plan["head"] = {"pool": add(jnp.asarray(pool, jnp.bfloat16)),
                    "w": add(wlin.astype(jnp.bfloat16)),
                    "bias": add(bhead.astype(jnp.float32))}
    plan["num_classes"] = num_classes
    plan["out_lanes"] = out_lanes
    plan["m_tile"] = m_tile
    return plan, consts


def resnet9_forward(plan, consts, x_nchw):
    """Whole ResNet9 forward (NCHW input -> [N, classes] logits), one pallas_call."""
    n, cin, height, width = x_nchw.shape
    nt = plan["batch_tile"]
    r = plan["r_per_img"]
    s1 = plan["s1"]
    cpad = plan["cin_pad"]
    assert n % nt == 0 and height == r * s1

    # NCHW -> NHWC, pad channels 3 -> 4, fold into super-row layout and attach
    # conv1's top halo row; cast to bf16 so the input DMA is half-width.
    x = jnp.transpose(x_nchw, (0, 2, 3, 1))
    x = jnp.pad(x, ((0, 0), (0, 0), (0, 0), (0, cpad - cin)))
    x5 = x.reshape(n, r, s1, width, cpad)
    halo = jnp.pad(x5[:, :-1, -1:], ((0, 0), (1, 0), (0, 0), (0, 0), (0, 0)))
    z1 = jnp.concatenate([halo, x5], axis=2)
    z1 = z1.reshape(n * r, (s1 + 1) * width * cpad).astype(jnp.bfloat16)

    m_tile = nt * r
    num_tiles = n // nt
    out_lanes = plan["out_lanes"]

    # Advisory cost estimate for XLA's scheduler.
    conv_specs = [plan["conv1"]] + [sp for blk in plan["blocks"]
                                    for sp in (blk["conv1"], blk["conv2"], blk["shortcut"])
                                    if sp is not None]
    flops = sum(2 * m_tile * consts[sp["w"]].shape[0] * consts[sp["w"]].shape[1]
                for sp in conv_specs)
    flops += 2 * nt * m_tile * out_lanes + 2 * nt * out_lanes * out_lanes
    flops *= num_tiles
    const_bytes = sum(int(np.prod(c.shape)) * c.dtype.itemsize for c in consts)
    bytes_accessed = const_bytes + z1.size * 2 + n * out_lanes * 4

    kernel = functools.partial(_resnet9_kernel, plan)
    out = pl.pallas_call(
        kernel,
        out_shape=jax.ShapeDtypeStruct((num_tiles, nt, out_lanes), jnp.float32),
        grid=(num_tiles,),
        in_specs=[pl.BlockSpec((m_tile, z1.shape[1]), lambda b: (b, 0))]
                 + [pl.BlockSpec(c.shape, lambda b: (0, 0)) for c in consts],
        out_specs=pl.BlockSpec((1, nt, out_lanes), lambda b: (b, 0, 0)),
        compiler_params=pltpu.CompilerParams(
            dimension_semantics=("parallel",),
            vmem_limit_bytes=48 * 1024 * 1024),
        cost_estimate=pl.CostEstimate(flops=int(flops), transcendentals=0,
                                      bytes_accessed=int(bytes_accessed)),
    )(z1, *consts)
    return out.reshape(n, out_lanes)[:, :plan["num_classes"]]


# ----------------------------------------------------------------------------
# Deterministic parameter construction (synthetic, no checkpoint)
# ----------------------------------------------------------------------------
def _conv_bn_params(key, cin, cout, k):
    kw_, kg, kb, km, kv = jax.random.split(key, 5)
    w = 0.1 * jax.random.normal(kw_, (cout, cin, k, k), jnp.float32)
    gamma = 1.0 + 0.1 * jax.random.normal(kg, (cout,), jnp.float32)
    beta = 0.1 * jax.random.normal(kb, (cout,), jnp.float32)
    mean = 0.1 * jax.random.normal(km, (cout,), jnp.float32)
    var = jnp.abs(jax.random.normal(kv, (cout,), jnp.float32)) + 0.5
    eps = 1e-5
    scale = gamma / jnp.sqrt(var + eps)
    shift = beta - mean * scale
    return {"w": w, "scale": scale, "shift": shift}


def init_params(key, in_planes=16, num_blocks=2, num_classes=10):
    keys = iter(jax.random.split(key, 16))
    params = {"conv1": _conv_bn_params(next(keys), 3, in_planes, 3)}
    planes = in_planes * 2  # both layer1 and layer2 use in_planes*2 (ctor-local arg)

    def make_layer(cin, planes, num_blocks, stride):
        blocks, cur = [], cin
        for s in [stride] + [1] * (num_blocks - 1):
            blk = {
                "stride": s,
                "conv1": _conv_bn_params(next(keys), cur, planes, 3),
                "conv2": _conv_bn_params(next(keys), planes, planes, 3),
            }
            if s != 1 or cur != planes:  # BasicBlock projection shortcut (1x1 conv + BN)
                blk["shortcut"] = _conv_bn_params(next(keys), cur, planes, 1)
            blocks.append(blk)
            cur = planes
        return blocks, cur

    params["layer1"], cur = make_layer(in_planes, planes, num_blocks, stride=2)
    params["layer2"], cur = make_layer(cur, planes, num_blocks, stride=2)
    kl1, kl2 = jax.random.split(next(keys), 2)
    params["linear_w"] = 0.1 * jax.random.normal(kl1, (planes, num_classes), jnp.float32)
    params["linear_b"] = 0.1 * jax.random.normal(kl2, (num_classes,), jnp.float32)
    return params


# ----------------------------------------------------------------------------
# Pure-JAX f32 reference (for a tolerance check of the bf16 kernel)
# ----------------------------------------------------------------------------
def _ref_conv_bn(x, p, stride, pad):
    w = jnp.transpose(p["w"], (2, 3, 1, 0))  # OIHW -> HWIO
    y = lax.conv_general_dilated(
        x, w, window_strides=(stride, stride),
        padding=((pad, pad), (pad, pad)),
        dimension_numbers=("NHWC", "HWIO", "NHWC"),
        precision=lax.Precision.HIGHEST)
    return y * p["scale"] + p["shift"]


def resnet9_reference(params, x_nchw):
    x = jnp.transpose(x_nchw, (0, 2, 3, 1))
    x = jax.nn.relu(_ref_conv_bn(x, params["conv1"], 2, 1))
    for layer in ("layer1", "layer2"):
        for bp in params[layer]:
            s = bp["stride"]
            h = jax.nn.relu(_ref_conv_bn(x, bp["conv1"], s, 1))
            h = _ref_conv_bn(h, bp["conv2"], 1, 1)
            sc = _ref_conv_bn(x, bp["shortcut"], s, 0) if "shortcut" in bp else x
            x = jax.nn.relu(h + sc)
    x = jnp.mean(x, axis=(1, 2))  # AvgPool2d(4) on a 4x4 map == global average
    return jnp.dot(x, params["linear_w"], precision=lax.Precision.HIGHEST) + params["linear_b"]


if __name__ == "__main__":
    key = jax.random.PRNGKey(0)
    kp, kx = jax.random.split(key)
    params = init_params(kp, in_planes=16, num_blocks=2, num_classes=10)
    # 3-channel 32x32 images (CIFAR-sized; ends at 4x4 for AvgPool2d(4)).
    batch, batch_tile = 8, 4
    x = jax.random.normal(kx, (batch, 3, 32, 32), jnp.float32)

    plan, consts = prepare_operands(params, batch_tile=batch_tile, height=32, width=32)
    fwd = jax.jit(functools.partial(resnet9_forward, plan))
    out = jax.block_until_ready(fwd(consts, x))
    assert out.shape == (batch, 10), out.shape
    assert bool(jnp.all(jnp.isfinite(out)))

    ref = resnet9_reference(params, x)
    err = float(jnp.max(jnp.abs(out - ref)) / jnp.maximum(1.0, jnp.max(jnp.abs(ref))))
    assert err < 0.05, f"kernel deviates from f32 reference: {err}"
    print("KERNEL_OK")
</pallas_src>

<mosaic_0001>
module attributes {stable_mosaic.version = 11 : i64} {
  func.func @_resnet9_kernel(%arg0: i32, %arg1: memref<16x1152xbf16, #tpu.memory_space<vmem>>, %arg2: memref<1152x1024xbf16, #tpu.memory_space<vmem>>, %arg3: memref<1x1024xf32, #tpu.memory_space<vmem>>, %arg4: memref<1280x512xbf16, #tpu.memory_space<vmem>>, %arg5: memref<1x512xf32, #tpu.memory_space<vmem>>, %arg6: memref<1024x512xbf16, #tpu.memory_space<vmem>>, %arg7: memref<1x512xf32, #tpu.memory_space<vmem>>, %arg8: memref<1024x512xbf16, #tpu.memory_space<vmem>>, %arg9: memref<1x512xf32, #tpu.memory_space<vmem>>, %arg10: memref<1024x512xbf16, #tpu.memory_space<vmem>>, %arg11: memref<1x512xf32, #tpu.memory_space<vmem>>, %arg12: memref<1024x512xbf16, #tpu.memory_space<vmem>>, %arg13: memref<1x512xf32, #tpu.memory_space<vmem>>, %arg14: memref<768x128xbf16, #tpu.memory_space<vmem>>, %arg15: memref<1x128xf32, #tpu.memory_space<vmem>>, %arg16: memref<384x128xbf16, #tpu.memory_space<vmem>>, %arg17: memref<1x128xf32, #tpu.memory_space<vmem>>, %arg18: memref<512x128xbf16, #tpu.memory_space<vmem>>, %arg19: memref<1x128xf32, #tpu.memory_space<vmem>>, %arg20: memref<384x128xbf16, #tpu.memory_space<vmem>>, %arg21: memref<1x128xf32, #tpu.memory_space<vmem>>, %arg22: memref<384x128xbf16, #tpu.memory_space<vmem>>, %arg23: memref<1x128xf32, #tpu.memory_space<vmem>>, %arg24: memref<4x16xbf16, #tpu.memory_space<vmem>>, %arg25: memref<128x128xbf16, #tpu.memory_space<vmem>>, %arg26: memref<1x128xf32, #tpu.memory_space<vmem>>, %arg27: memref<1x4x128xf32, #tpu.memory_space<vmem>>) attributes {dimension_semantics = [#tpu.dimension_semantics<parallel>], iteration_bounds = array<i64: 2>, scalar_prefetch = 0 : i64, scratch_operands = 0 : i64, tpu.core_type = #tpu.core_type<tc>, window_params = [{transform_indices = @transform_0, window_bounds = array<i64: 16, 1152>}, {pipeline_mode = #tpu.pipeline_mode<synchronous>, transform_indices = @transform_1, window_bounds = array<i64: 1152, 1024>}, {pipeline_mode = #tpu.pipeline_mode<synchronous>, transform_indices = @transform_2, window_bounds = array<i64: 1, 1024>}, {pipeline_mode = #tpu.pipeline_mode<synchronous>, transform_indices = @transform_3, window_bounds = array<i64: 1280, 512>}, {pipeline_mode = #tpu.pipeline_mode<synchronous>, transform_indices = @transform_4, window_bounds = array<i64: 1, 512>}, {pipeline_mode = #tpu.pipeline_mode<synchronous>, transform_indices = @transform_5, window_bounds = array<i64: 1024, 512>}, {pipeline_mode = #tpu.pipeline_mode<synchronous>, transform_indices = @transform_6, window_bounds = array<i64: 1, 512>}, {pipeline_mode = #tpu.pipeline_mode<synchronous>, transform_indices = @transform_7, window_bounds = array<i64: 1024, 512>}, {pipeline_mode = #tpu.pipeline_mode<synchronous>, transform_indices = @transform_8, window_bounds = array<i64: 1, 512>}, {pipeline_mode = #tpu.pipeline_mode<synchronous>, transform_indices = @transform_9, window_bounds = array<i64: 1024, 512>}, {pipeline_mode = #tpu.pipeline_mode<synchronous>, transform_indices = @transform_10, window_bounds = array<i64: 1, 512>}, {pipeline_mode = #tpu.pipeline_mode<synchronous>, transform_indices = @transform_11, window_bounds = array<i64: 1024, 512>}, {pipeline_mode = #tpu.pipeline_mode<synchronous>, transform_indices = @transform_12, window_bounds = array<i64: 1, 512>}, {pipeline_mode = #tpu.pipeline_mode<synchronous>, transform_indices = @transform_13, window_bounds = array<i64: 768, 128>}, {pipeline_mode = #tpu.pipeline_mode<synchronous>, transform_indices = @transform_14, window_bounds = array<i64: 1, 128>}, {pipeline_mode = #tpu.pipeline_mode<synchronous>, transform_indices = @transform_15, window_bounds = array<i64: 384, 128>}, {pipeline_mode = #tpu.pipeline_mode<synchronous>, transform_indices = @transform_16, window_bounds = array<i64: 1, 128>}, {pipeline_mode = #tpu.pipeline_mode<synchronous>, transform_indices = @transform_17, window_bounds = array<i64: 512, 128>}, {pipeline_mode = #tpu.pipeline_mode<synchronous>, transform_indices = @transform_18, window_bounds = array<i64: 1, 128>}, {pipeline_mode = #tpu.pipeline_mode<synchronous>, transform_indices = @transform_19, window_bounds = array<i64: 384, 128>}, {pipeline_mode = #tpu.pipeline_mode<synchronous>, transform_indices = @transform_20, window_bounds = array<i64: 1, 128>}, {pipeline_mode = #tpu.pipeline_mode<synchronous>, transform_indices = @transform_21, window_bounds = array<i64: 384, 128>}, {pipeline_mode = #tpu.pipeline_mode<synchronous>, transform_indices = @transform_22, window_bounds = array<i64: 1, 128>}, {pipeline_mode = #tpu.pipeline_mode<synchronous>, transform_indices = @transform_23, window_bounds = array<i64: 4, 16>}, {pipeline_mode = #tpu.pipeline_mode<synchronous>, transform_indices = @transform_24, window_bounds = array<i64: 128, 128>}, {pipeline_mode = #tpu.pipeline_mode<synchronous>, transform_indices = @transform_25, window_bounds = array<i64: 1, 128>}, {transform_indices = @transform_26, window_bounds = array<i64: 1, 4, 128>}]} {
    %c0 = arith.constant 0 : index
    %c0_0 = arith.constant 0 : index
    %0 = vector.load %arg1[%c0, %c0_0] : memref<16x1152xbf16, #tpu.memory_space<vmem>>, vector<16x1152xbf16>
    %c0_1 = arith.constant 0 : index
    %c0_2 = arith.constant 0 : index
    %1 = vector.load %arg2[%c0_1, %c0_2] : memref<1152x1024xbf16, #tpu.memory_space<vmem>>, vector<1152x1024xbf16>
    %cst = arith.constant dense<0.000000e+00> : vector<16x1024xf32>
    %2 = tpu.matmul %0, %1, %cst {dimension_numbers = #tpu.dot_dimension_numbers<[1], [0], [0], [1], [0, 0, 1, 1], [], []>} : vector<16x1152xbf16>, vector<1152x1024xbf16>, vector<16x1024xf32> -> vector<16x1024xf32>
    %c0_3 = arith.constant 0 : index
    %c0_4 = arith.constant 0 : index
    %3 = vector.load %arg3[%c0_3, %c0_4] : memref<1x1024xf32, #tpu.memory_space<vmem>>, vector<1x1024xf32>
    %4 = vector.broadcast %3 : vector<1x1024xf32> to vector<16x1024xf32>
    %5 = arith.addf %2, %4 : vector<16x1024xf32>
    %cst_5 = arith.constant 0.000000e+00 : f32
    %6 = vector.broadcast %cst_5 : f32 to vector<16x1024xf32>
    %7 = arith.maximumf %5, %6 : vector<16x1024xf32>
    %8 = vector.extract_strided_slice %7 {offsets = [0, 768], sizes = [16, 256], strides = [1, 1]} : vector<16x1024xf32> to vector<16x256xf32>
    %c1_i32 = arith.constant 1 : i32
    %9 = tpu.dynamic_rotate %8 by %c1_i32 dim 0 : vector<16x256xf32>, i32 -> vector<16x256xf32>
    %10 = tpu.iota {dimensions = array<i32: 0>} : vector<16x256xi32>
    %c4_i32 = arith.constant 4 : i32
    %c0_i32 = arith.constant 0 : i32
    %11 = arith.cmpi eq, %c4_i32, %c0_i32 : i32
    %c1_i32_6 = arith.constant 1 : i32
    %12 = arith.select %11, %c1_i32_6, %c4_i32 : i32
    %13 = vector.broadcast %12 : i32 to vector<16x256xi32>
    %14 = arith.remsi %10, %13 : vector<16x256xi32>
    %c0_i32_7 = arith.constant 0 : i32
    %15 = vector.broadcast %c0_i32_7 : i32 to vector<16x256xi32>
    %16 = arith.cmpi ne, %14, %15 : vector<16x256xi32>
    %c0_i32_8 = arith.constant 0 : i32
    %17 = vector.broadcast %c0_i32_8 : i32 to vector<16x256xi32>
    %18 = arith.cmpi slt, %14, %17 : vector<16x256xi32>
    %c0_i32_9 = arith.constant 0 : i32
    %19 = arith.cmpi slt, %12, %c0_i32_9 : i32
    %20 = vector.broadcast %19 : i1 to vector<16x256xi1>
    %21 = vector.broadcast %20 : vector<16x256xi1> to vector<16x256xi1>
    %22 = arith.xori %18, %21 : vector<16x256xi1>
    %23 = arith.andi %22, %16 : vector<16x256xi1>
    %24 = vector.broadcast %12 : i32 to vector<16x256xi32>
    %25 = arith.addi %14, %24 : vector<16x256xi32>
    %26 = arith.select %23, %25, %14 : vector<16x256xi1>, vector<16x256xi32>
    %c0_i32_10 = arith.constant 0 : i32
    %27 = vector.broadcast %c0_i32_10 : i32 to vector<16x256xi32>
    %28 = arith.cmpi eq, %26, %27 : vector<16x256xi32>
    %cst_11 = arith.constant 0.000000e+00 : f32
    %29 = vector.broadcast %cst_11 : f32 to vector<16x256xf32>
    %30 = arith.select %28, %29, %9 : vector<16x256xi1>, vector<16x256xf32>
    %31 = tpu.concatenate %30, %7 in 1 : vector<16x256xf32>, vector<16x1024xf32> -> vector<16x1280xf32>
    %32 = arith.truncf %31 : vector<16x1280xf32> to vector<16x1280xbf16>
    %c0_12 = arith.constant 0 : index
    %c0_13 = arith.constant 0 : index
    %33 = vector.load %arg4[%c0_12, %c0_13] : memref<1280x512xbf16, #tpu.memory_space<vmem>>, vector<1280x512xbf16>
    %cst_14 = arith.constant dense<0.000000e+00> : vector<16x512xf32>
    %34 = tpu.matmul %32, %33, %cst_14 {dimension_numbers = #tpu.dot_dimension_numbers<[1], [0], [0], [1], [0, 0, 1, 1], [], []>} : vector<16x1280xbf16>, vector<1280x512xbf16>, vector<16x512xf32> -> vector<16x512xf32>
    %c0_15 = arith.constant 0 : index
    %c0_16 = arith.constant 0 : index
    %35 = vector.load %arg5[%c0_15, %c0_16] : memref<1x512xf32, #tpu.memory_space<vmem>>, vector<1x512xf32>
    %36 = vector.broadcast %35 : vector<1x512xf32> to vector<16x512xf32>
    %37 = arith.addf %34, %36 : vector<16x512xf32>
    %cst_17 = arith.constant 0.000000e+00 : f32
    %38 = vector.broadcast %cst_17 : f32 to vector<16x512xf32>
    %39 = arith.maximumf %37, %38 : vector<16x512xf32>
    %40 = vector.extract_strided_slice %39 {offsets = [0, 256], sizes = [16, 256], strides = [1, 1]} : vector<16x512xf32> to vector<16x256xf32>
    %c1_i32_18 = arith.constant 1 : i32
    %41 = tpu.dynamic_rotate %40 by %c1_i32_18 dim 0 : vector<16x256xf32>, i32 -> vector<16x256xf32>
    %42 = tpu.iota {dimensions = array<i32: 0>} : vector<16x256xi32>
    %c4_i32_19 = arith.constant 4 : i32
    %c0_i32_20 = arith.constant 0 : i32
    %43 = arith.cmpi eq, %c4_i32_19, %c0_i32_20 : i32
    %c1_i32_21 = arith.constant 1 : i32
    %44 = arith.select %43, %c1_i32_21, %c4_i32_19 : i32
    %45 = vector.broadcast %44 : i32 to vector<16x256xi32>
    %46 = arith.remsi %42, %45 : vector<16x256xi32>
    %c0_i32_22 = arith.constant 0 : i32
    %47 = vector.broadcast %c0_i32_22 : i32 to vector<16x256xi32>
    %48 = arith.cmpi ne, %46, %47 : vector<16x256xi32>
    %c0_i32_23 = arith.constant 0 : i32
    %49 = vector.broadcast %c0_i32_23 : i32 to vector<16x256xi32>
    %50 = arith.cmpi slt, %46, %49 : vector<16x256xi32>
    %c0_i32_24 = arith.constant 0 : i32
    %51 = arith.cmpi slt, %44, %c0_i32_24 : i32
    %52 = vector.broadcast %51 : i1 to vector<16x256xi1>
    %53 = vector.broadcast %52 : vector<16x256xi1> to vector<16x256xi1>
    %54 = arith.xori %50, %53 : vector<16x256xi1>
    %55 = arith.andi %54, %48 : vector<16x256xi1>
    %56 = vector.broadcast %44 : i32 to vector<16x256xi32>
    %57 = arith.addi %46, %56 : vector<16x256xi32>
    %58 = arith.select %55, %57, %46 : vector<16x256xi1>, vector<16x256xi32>
    %c0_i32_25 = arith.constant 0 : i32
    %59 = vector.broadcast %c0_i32_25 : i32 to vector<16x256xi32>
    %60 = arith.cmpi eq, %58, %59 : vector<16x256xi32>
    %cst_26 = arith.constant 0.000000e+00 : f32
    %61 = vector.broadcast %cst_26 : f32 to vector<16x256xf32>
    %62 = arith.select %60, %61, %41 : vector<16x256xi1>, vector<16x256xf32>
    %63 = vector.extract_strided_slice %39 {offsets = [0, 0], sizes = [16, 256], strides = [1, 1]} : vector<16x512xf32> to vector<16x256xf32>
    %c15_i32 = arith.constant 15 : i32
    %64 = tpu.dynamic_rotate %63 by %c15_i32 dim 0 : vector<16x256xf32>, i32 -> vector<16x256xf32>
    %65 = tpu.iota {dimensions = array<i32: 0>} : vector<16x256xi32>
    %c4_i32_27 = arith.constant 4 : i32
    %c0_i32_28 = arith.constant 0 : i32
    %66 = arith.cmpi eq, %c4_i32_27, %c0_i32_28 : i32
    %c1_i32_29 = arith.constant 1 : i32
    %67 = arith.select %66, %c1_i32_29, %c4_i32_27 : i32
    %68 = vector.broadcast %67 : i32 to vector<16x256xi32>
    %69 = arith.remsi %65, %68 : vector<16x256xi32>
    %c0_i32_30 = arith.constant 0 : i32
    %70 = vector.broadcast %c0_i32_30 : i32 to vector<16x256xi32>
    %71 = arith.cmpi ne, %69, %70 : vector<16x256xi32>
    %c0_i32_31 = arith.constant 0 : i32
    %72 = vector.broadcast %c0_i32_31 : i32 to vector<16x256xi32>
    %73 = arith.cmpi slt, %69, %72 : vector<16x256xi32>
    %c0_i32_32 = arith.constant 0 : i32
    %74 = arith.cmpi slt, %67, %c0_i32_32 : i32
    %75 = vector.broadcast %74 : i1 to vector<16x256xi1>
    %76 = vector.broadcast %75 : vector<16x256xi1> to vector<16x256xi1>
    %77 = arith.xori %73, %76 : vector<16x256xi1>
    %78 = arith.andi %77, %71 : vector<16x256xi1>
    %79 = vector.broadcast %67 : i32 to vector<16x256xi32>
    %80 = arith.addi %69, %79 : vector<16x256xi32>
    %81 = arith.select %78, %80, %69 : vector<16x256xi1>, vector<16x256xi32>
    %c3_i32 = arith.constant 3 : i32
    %82 = vector.broadcast %c3_i32 : i32 to vector<16x256xi32>
    %83 = arith.cmpi eq, %81, %82 : vector<16x256xi32>
    %cst_33 = arith.constant 0.000000e+00 : f32
    %84 = vector.broadcast %cst_33 : f32 to vector<16x256xf32>
    %85 = arith.select %83, %84, %64 : vector<16x256xi1>, vector<16x256xf32>
    %86 = tpu.concatenate %62, %39, %85 in 1 : vector<16x256xf32>, vector<16x512xf32>, vector<16x256xf32> -> vector<16x1024xf32>
    %87 = arith.truncf %86 : vector<16x1024xf32> to vector<16x1024xbf16>
    %c0_34 = arith.constant 0 : index
    %c0_35 = arith.constant 0 : index
    %88 = vector.load %arg6[%c0_34, %c0_35] : memref<1024x512xbf16, #tpu.memory_space<vmem>>, vector<1024x512xbf16>
    %cst_36 = arith.constant dense<0.000000e+00> : vector<16x512xf32>
    %89 = tpu.matmul %87, %88, %cst_36 {dimension_numbers = #tpu.dot_dimension_numbers<[1], [0], [0], [1], [0, 0, 1, 1], [], []>} : vector<16x1024xbf16>, vector<1024x512xbf16>, vector<16x512xf32> -> vector<16x512xf32>
    %c0_37 = arith.constant 0 : index
    %c0_38 = arith.constant 0 : index
    %90 = vector.load %arg7[%c0_37, %c0_38] : memref<1x512xf32, #tpu.memory_space<vmem>>, vector<1x512xf32>
    %91 = vector.broadcast %90 : vector<1x512xf32> to vector<16x512xf32>
    %92 = arith.addf %89, %91 : vector<16x512xf32>
    %93 = arith.truncf %7 : vector<16x1024xf32> to vector<16x1024xbf16>
    %c0_39 = arith.constant 0 : index
    %c0_40 = arith.constant 0 : index
    %94 = vector.load %arg8[%c0_39, %c0_40] : memref<1024x512xbf16, #tpu.memory_space<vmem>>, vector<1024x512xbf16>
    %cst_41 = arith.constant dense<0.000000e+00> : vector<16x512xf32>
    %95 = tpu.matmul %93, %94, %cst_41 {dimension_numbers = #tpu.dot_dimension_numbers<[1], [0], [0], [1], [0, 0, 1, 1], [], []>} : vector<16x1024xbf16>, vector<1024x512xbf16>, vector<16x512xf32> -> vector<16x512xf32>
    %c0_42 = arith.constant 0 : index
    %c0_43 = arith.constant 0 : index
    %96 = vector.load %arg9[%c0_42, %c0_43] : memref<1x512xf32, #tpu.memory_space<vmem>>, vector<1x512xf32>
    %97 = vector.broadcast %96 : vector<1x512xf32> to vector<16x512xf32>
    %98 = arith.addf %95, %97 : vector<16x512xf32>
    %99 = arith.addf %92, %98 : vector<16x512xf32>
    %cst_44 = arith.constant 0.000000e+00 : f32
    %100 = vector.broadcast %cst_44 : f32 to vector<16x512xf32>
    %101 = arith.maximumf %99, %100 : vector<16x512xf32>
    %102 = vector.extract_strided_slice %101 {offsets = [0, 256], sizes = [16, 256], strides = [1, 1]} : vector<16x512xf32> to vector<16x256xf32>
    %c1_i32_45 = arith.constant 1 : i32
    %103 = tpu.dynamic_rotate %102 by %c1_i32_45 dim 0 : vector<16x256xf32>, i32 -> vector<16x256xf32>
    %104 = tpu.iota {dimensions = array<i32: 0>} : vector<16x256xi32>
    %c4_i32_46 = arith.constant 4 : i32
    %c0_i32_47 = arith.constant 0 : i32
    %105 = arith.cmpi eq, %c4_i32_46, %c0_i32_47 : i32
    %c1_i32_48 = arith.constant 1 : i32
    %106 = arith.select %105, %c1_i32_48, %c4_i32_46 : i32
    %107 = vector.broadcast %106 : i32 to vector<16x256xi32>
    %108 = arith.remsi %104, %107 : vector<16x256xi32>
    %c0_i32_49 = arith.constant 0 : i32
    %109 = vector.broadcast %c0_i32_49 : i32 to vector<16x256xi32>
    %110 = arith.cmpi ne, %108, %109 : vector<16x256xi32>
    %c0_i32_50 = arith.constant 0 : i32
    %111 = vector.broadcast %c0_i32_50 : i32 to vector<16x256xi32>
    %112 = arith.cmpi slt, %108, %111 : vector<16x256xi32>
    %c0_i32_51 = arith.constant 0 : i32
    %113 = arith.cmpi slt, %106, %c0_i32_51 : i32
    %114 = vector.broadcast %113 : i1 to vector<16x256xi1>
    %115 = vector.broadcast %114 : vector<16x256xi1> to vector<16x256xi1>
    %116 = arith.xori %112, %115 : vector<16x256xi1>
    %117 = arith.andi %116, %110 : vector<16x256xi1>
    %118 = vector.broadcast %106 : i32 to vector<16x256xi32>
    %119 = arith.addi %108, %118 : vector<16x256xi32>
    %120 = arith.select %117, %119, %108 : vector<16x256xi1>, vector<16x256xi32>
    %c0_i32_52 = arith.constant 0 : i32
    %121 = vector.broadcast %c0_i32_52 : i32 to vector<16x256xi32>
    %122 = arith.cmpi eq, %120, %121 : vector<16x256xi32>
    %cst_53 = arith.constant 0.000000e+00 : f32
    %123 = vector.broadcast %cst_53 : f32 to vector<16x256xf32>
    %124 = arith.select %122, %123, %103 : vector<16x256xi1>, vector<16x256xf32>
    %125 = vector.extract_strided_slice %101 {offsets = [0, 0], sizes = [16, 256], strides = [1, 1]} : vector<16x512xf32> to vector<16x256xf32>
    %c15_i32_54 = arith.constant 15 : i32
    %126 = tpu.dynamic_rotate %125 by %c15_i32_54 dim 0 : vector<16x256xf32>, i32 -> vector<16x256xf32>
    %127 = tpu.iota {dimensions = array<i32: 0>} : vector<16x256xi32>
    %c4_i32_55 = arith.constant 4 : i32
    %c0_i32_56 = arith.constant 0 : i32
    %128 = arith.cmpi eq, %c4_i32_55, %c0_i32_56 : i32
    %c1_i32_57 = arith.constant 1 : i32
    %129 = arith.select %128, %c1_i32_57, %c4_i32_55 : i32
    %130 = vector.broadcast %129 : i32 to vector<16x256xi32>
    %131 = arith.remsi %127, %130 : vector<16x256xi32>
    %c0_i32_58 = arith.constant 0 : i32
    %132 = vector.broadcast %c0_i32_58 : i32 to vector<16x256xi32>
    %133 = arith.cmpi ne, %131, %132 : vector<16x256xi32>
    %c0_i32_59 = arith.constant 0 : i32
    %134 = vector.broadcast %c0_i32_59 : i32 to vector<16x256xi32>
    %135 = arith.cmpi slt, %131, %134 : vector<16x256xi32>
    %c0_i32_60 = arith.constant 0 : i32
    %136 = arith.cmpi slt, %129, %c0_i32_60 : i32
    %137 = vector.broadcast %136 : i1 to vector<16x256xi1>
    %138 = vector.broadcast %137 : vector<16x256xi1> to vector<16x256xi1>
    %139 = arith.xori %135, %138 : vector<16x256xi1>
    %140 = arith.andi %139, %133 : vector<16x256xi1>
    %141 = vector.broadcast %129 : i32 to vector<16x256xi32>
    %142 = arith.addi %131, %141 : vector<16x256xi32>
    %143 = arith.select %140, %142, %131 : vector<16x256xi1>, vector<16x256xi32>
    %c3_i32_61 = arith.constant 3 : i32
    %144 = vector.broadcast %c3_i32_61 : i32 to vector<16x256xi32>
    %145 = arith.cmpi eq, %143, %144 : vector<16x256xi32>
    %cst_62 = arith.constant 0.000000e+00 : f32
    %146 = vector.broadcast %cst_62 : f32 to vector<16x256xf32>
    %147 = arith.select %145, %146, %126 : vector<16x256xi1>, vector<16x256xf32>
    %148 = tpu.concatenate %124, %101, %147 in 1 : vector<16x256xf32>, vector<16x512xf32>, vector<16x256xf32> -> vector<16x1024xf32>
    %149 = arith.truncf %148 : vector<16x1024xf32> to vector<16x1024xbf16>
    %c0_63 = arith.constant 0 : index
    %c0_64 = arith.constant 0 : index
    %150 = vector.load %arg10[%c0_63, %c0_64] : memref<1024x512xbf16, #tpu.memory_space<vmem>>, vector<1024x512xbf16>
    %cst_65 = arith.constant dense<0.000000e+00> : vector<16x512xf32>
    %151 = tpu.matmul %149, %150, %cst_65 {dimension_numbers = #tpu.dot_dimension_numbers<[1], [0], [0], [1], [0, 0, 1, 1], [], []>} : vector<16x1024xbf16>, vector<1024x512xbf16>, vector<16x512xf32> -> vector<16x512xf32>
    %c0_66 = arith.constant 0 : index
    %c0_67 = arith.constant 0 : index
    %152 = vector.load %arg11[%c0_66, %c0_67] : memref<1x512xf32, #tpu.memory_space<vmem>>, vector<1x512xf32>
    %153 = vector.broadcast %152 : vector<1x512xf32> to vector<16x512xf32>
    %154 = arith.addf %151, %153 : vector<16x512xf32>
    %cst_68 = arith.constant 0.000000e+00 : f32
    %155 = vector.broadcast %cst_68 : f32 to vector<16x512xf32>
    %156 = arith.maximumf %154, %155 : vector<16x512xf32>
    %157 = vector.extract_strided_slice %156 {offsets = [0, 256], sizes = [16, 256], strides = [1, 1]} : vector<16x512xf32> to vector<16x256xf32>
    %c1_i32_69 = arith.constant 1 : i32
    %158 = tpu.dynamic_rotate %157 by %c1_i32_69 dim 0 : vector<16x256xf32>, i32 -> vector<16x256xf32>
    %159 = tpu.iota {dimensions = array<i32: 0>} : vector<16x256xi32>
    %c4_i32_70 = arith.constant 4 : i32
    %c0_i32_71 = arith.constant 0 : i32
    %160 = arith.cmpi eq, %c4_i32_70, %c0_i32_71 : i32
    %c1_i32_72 = arith.constant 1 : i32
    %161 = arith.select %160, %c1_i32_72, %c4_i32_70 : i32
    %162 = vector.broadcast %161 : i32 to vector<16x256xi32>
    %163 = arith.remsi %159, %162 : vector<16x256xi32>
    %c0_i32_73 = arith.constant 0 : i32
    %164 = vector.broadcast %c0_i32_73 : i32 to vector<16x256xi32>
    %165 = arith.cmpi ne, %163, %164 : vector<16x256xi32>
    %c0_i32_74 = arith.constant 0 : i32
    %166 = vector.broadcast %c0_i32_74 : i32 to vector<16x256xi32>
    %167 = arith.cmpi slt, %163, %166 : vector<16x256xi32>
    %c0_i32_75 = arith.constant 0 : i32
    %168 = arith.cmpi slt, %161, %c0_i32_75 : i32
    %169 = vector.broadcast %168 : i1 to vector<16x256xi1>
    %170 = vector.broadcast %169 : vector<16x256xi1> to vector<16x256xi1>
    %171 = arith.xori %167, %170 : vector<16x256xi1>
    %172 = arith.andi %171, %165 : vector<16x256xi1>
    %173 = vector.broadcast %161 : i32 to vector<16x256xi32>
    %174 = arith.addi %163, %173 : vector<16x256xi32>
    %175 = arith.select %172, %174, %163 : vector<16x256xi1>, vector<16x256xi32>
    %c0_i32_76 = arith.constant 0 : i32
    %176 = vector.broadcast %c0_i32_76 : i32 to vector<16x256xi32>
    %177 = arith.cmpi eq, %175, %176 : vector<16x256xi32>
    %cst_77 = arith.constant 0.000000e+00 : f32
    %178 = vector.broadcast %cst_77 : f32 to vector<16x256xf32>
    %179 = arith.select %177, %178, %158 : vector<16x256xi1>, vector<16x256xf32>
    %180 = vector.extract_strided_slice %156 {offsets = [0, 0], sizes = [16, 256], strides = [1, 1]} : vector<16x512xf32> to vector<16x256xf32>
    %c15_i32_78 = arith.constant 15 : i32
    %181 = tpu.dynamic_rotate %180 by %c15_i32_78 dim 0 : vector<16x256xf32>, i32 -> vector<16x256xf32>
    %182 = tpu.iota {dimensions = array<i32: 0>} : vector<16x256xi32>
    %c4_i32_79 = arith.constant 4 : i32
    %c0_i32_80 = arith.constant 0 : i32
    %183 = arith.cmpi eq, %c4_i32_79, %c0_i32_80 : i32
    %c1_i32_81 = arith.constant 1 : i32
    %184 = arith.select %183, %c1_i32_81, %c4_i32_79 : i32
    %185 = vector.broadcast %184 : i32 to vector<16x256xi32>
    %186 = arith.remsi %182, %185 : vector<16x256xi32>
    %c0_i32_82 = arith.constant 0 : i32
    %187 = vector.broadcast %c0_i32_82 : i32 to vector<16x256xi32>
    %188 = arith.cmpi ne, %186, %187 : vector<16x256xi32>
    %c0_i32_83 = arith.constant 0 : i32
    %189 = vector.broadcast %c0_i32_83 : i32 to vector<16x256xi32>
    %190 = arith.cmpi slt, %186, %189 : vector<16x256xi32>
    %c0_i32_84 = arith.constant 0 : i32
    %191 = arith.cmpi slt, %184, %c0_i32_84 : i32
    %192 = vector.broadcast %191 : i1 to vector<16x256xi1>
    %193 = vector.broadcast %192 : vector<16x256xi1> to vector<16x256xi1>
    %194 = arith.xori %190, %193 : vector<16x256xi1>
    %195 = arith.andi %194, %188 : vector<16x256xi1>
    %196 = vector.broadcast %184 : i32 to vector<16x256xi32>
    %197 = arith.addi %186, %196 : vector<16x256xi32>
    %198 = arith.select %195, %197, %186 : vector<16x256xi1>, vector<16x256xi32>
    %c3_i32_85 = arith.constant 3 : i32
    %199 = vector.broadcast %c3_i32_85 : i32 to vector<16x256xi32>
    %200 = arith.cmpi eq, %198, %199 : vector<16x256xi32>
    %cst_86 = arith.constant 0.000000e+00 : f32
    %201 = vector.broadcast %cst_86 : f32 to vector<16x256xf32>
    %202 = arith.select %200, %201, %181 : vector<16x256xi1>, vector<16x256xf32>
    %203 = tpu.concatenate %179, %156, %202 in 1 : vector<16x256xf32>, vector<16x512xf32>, vector<16x256xf32> -> vector<16x1024xf32>
    %204 = arith.truncf %203 : vector<16x1024xf32> to vector<16x1024xbf16>
    %c0_87 = arith.constant 0 : index
    %c0_88 = arith.constant 0 : index
    %205 = vector.load %arg12[%c0_87, %c0_88] : memref<1024x512xbf16, #tpu.memory_space<vmem>>, vector<1024x512xbf16>
    %cst_89 = arith.constant dense<0.000000e+00> : vector<16x512xf32>
    %206 = tpu.matmul %204, %205, %cst_89 {dimension_numbers = #tpu.dot_dimension_numbers<[1], [0], [0], [1], [0, 0, 1, 1], [], []>} : vector<16x1024xbf16>, vector<1024x512xbf16>, vector<16x512xf32> -> vector<16x512xf32>
    %c0_90 = arith.constant 0 : index
    %c0_91 = arith.constant 0 : index
    %207 = vector.load %arg13[%c0_90, %c0_91] : memref<1x512xf32, #tpu.memory_space<vmem>>, vector<1x512xf32>
    %208 = vector.broadcast %207 : vector<1x512xf32> to vector<16x512xf32>
    %209 = arith.addf %206, %208 : vector<16x512xf32>
    %210 = arith.addf %209, %101 : vector<16x512xf32>
    %cst_92 = arith.constant 0.000000e+00 : f32
    %211 = vector.broadcast %cst_92 : f32 to vector<16x512xf32>
    %212 = arith.maximumf %210, %211 : vector<16x512xf32>
    %213 = vector.extract_strided_slice %212 {offsets = [0, 256], sizes = [16, 256], strides = [1, 1]} : vector<16x512xf32> to vector<16x256xf32>
    %c1_i32_93 = arith.constant 1 : i32
    %214 = tpu.dynamic_rotate %213 by %c1_i32_93 dim 0 : vector<16x256xf32>, i32 -> vector<16x256xf32>
    %215 = tpu.iota {dimensions = array<i32: 0>} : vector<16x256xi32>
    %c4_i32_94 = arith.constant 4 : i32
    %c0_i32_95 = arith.constant 0 : i32
    %216 = arith.cmpi eq, %c4_i32_94, %c0_i32_95 : i32
    %c1_i32_96 = arith.constant 1 : i32
    %217 = arith.select %216, %c1_i32_96, %c4_i32_94 : i32
    %218 = vector.broadcast %217 : i32 to vector<16x256xi32>
    %219 = arith.remsi %215, %218 : vector<16x256xi32>
    %c0_i32_97 = arith.constant 0 : i32
    %220 = vector.broadcast %c0_i32_97 : i32 to vector<16x256xi32>
    %221 = arith.cmpi ne, %219, %220 : vector<16x256xi32>
    %c0_i32_98 = arith.constant 0 : i32
    %222 = vector.broadcast %c0_i32_98 : i32 to vector<16x256xi32>
    %223 = arith.cmpi slt, %219, %222 : vector<16x256xi32>
    %c0_i32_99 = arith.constant 0 : i32
    %224 = arith.cmpi slt, %217, %c0_i32_99 : i32
    %225 = vector.broadcast %224 : i1 to vector<16x256xi1>
    %226 = vector.broadcast %225 : vector<16x256xi1> to vector<16x256xi1>
    %227 = arith.xori %223, %226 : vector<16x256xi1>
    %228 = arith.andi %227, %221 : vector<16x256xi1>
    %229 = vector.broadcast %217 : i32 to vector<16x256xi32>
    %230 = arith.addi %219, %229 : vector<16x256xi32>
    %231 = arith.select %228, %230, %219 : vector<16x256xi1>, vector<16x256xi32>
    %c0_i32_100 = arith.constant 0 : i32
    %232 = vector.broadcast %c0_i32_100 : i32 to vector<16x256xi32>
    %233 = arith.cmpi eq, %231, %232 : vector<16x256xi32>
    %cst_101 = arith.constant 0.000000e+00 : f32
    %234 = vector.broadcast %cst_101 : f32 to vector<16x256xf32>
    %235 = arith.select %233, %234, %214 : vector<16x256xi1>, vector<16x256xf32>
    %236 = tpu.concatenate %235, %212 in 1 : vector<16x256xf32>, vector<16x512xf32> -> vector<16x768xf32>
    %237 = arith.truncf %236 : vector<16x768xf32> to vector<16x768xbf16>
    %c0_102 = arith.constant 0 : index
    %c0_103 = arith.constant 0 : index
    %238 = vector.load %arg14[%c0_102, %c0_103] : memref<768x128xbf16, #tpu.memory_space<vmem>>, vector<768x128xbf16>
    %cst_104 = arith.constant dense<0.000000e+00> : vector<16x128xf32>
    %239 = tpu.matmul %237, %238, %cst_104 {dimension_numbers = #tpu.dot_dimension_numbers<[1], [0], [0], [1], [0, 0, 1, 1], [], []>} : vector<16x768xbf16>, vector<768x128xbf16>, vector<16x128xf32> -> vector<16x128xf32>
    %c0_105 = arith.constant 0 : index
    %c0_106 = arith.constant 0 : index
    %240 = vector.load %arg15[%c0_105, %c0_106] : memref<1x128xf32, #tpu.memory_space<vmem>>, vector<1x128xf32>
    %241 = vector.broadcast %240 : vector<1x128xf32> to vector<16x128xf32>
    %242 = arith.addf %239, %241 : vector<16x128xf32>
    %cst_107 = arith.constant 0.000000e+00 : f32
    %243 = vector.broadcast %cst_107 : f32 to vector<16x128xf32>
    %244 = arith.maximumf %242, %243 : vector<16x128xf32>
    %c1_i32_108 = arith.constant 1 : i32
    %245 = tpu.dynamic_rotate %244 by %c1_i32_108 dim 0 : vector<16x128xf32>, i32 -> vector<16x128xf32>
    %246 = tpu.iota {dimensions = array<i32: 0>} : vector<16x128xi32>
    %c4_i32_109 = arith.constant 4 : i32
    %c0_i32_110 = arith.constant 0 : i32
    %247 = arith.cmpi eq, %c4_i32_109, %c0_i32_110 : i32
    %c1_i32_111 = arith.constant 1 : i32
    %248 = arith.select %247, %c1_i32_111, %c4_i32_109 : i32
    %249 = vector.broadcast %248 : i32 to vector<16x128xi32>
    %250 = arith.remsi %246, %249 : vector<16x128xi32>
    %c0_i32_112 = arith.constant 0 : i32
    %251 = vector.broadcast %c0_i32_112 : i32 to vector<16x128xi32>
    %252 = arith.cmpi ne, %250, %251 : vector<16x128xi32>
    %c0_i32_113 = arith.constant 0 : i32
    %253 = vector.broadcast %c0_i32_113 : i32 to vector<16x128xi32>
    %254 = arith.cmpi slt, %250, %253 : vector<16x128xi32>
    %c0_i32_114 = arith.constant 0 : i32
    %255 = arith.cmpi slt, %248, %c0_i32_114 : i32
    %256 = vector.broadcast %255 : i1 to vector<16x128xi1>
    %257 = vector.broadcast %256 : vector<16x128xi1> to vector<16x128xi1>
    %258 = arith.xori %254, %257 : vector<16x128xi1>
    %259 = arith.andi %258, %252 : vector<16x128xi1>
    %260 = vector.broadcast %248 : i32 to vector<16x128xi32>
    %261 = arith.addi %250, %260 : vector<16x128xi32>
    %262 = arith.select %259, %261, %250 : vector<16x128xi1>, vector<16x128xi32>
    %c0_i32_115 = arith.constant 0 : i32
    %263 = vector.broadcast %c0_i32_115 : i32 to vector<16x128xi32>
    %264 = arith.cmpi eq, %262, %263 : vector<16x128xi32>
    %cst_116 = arith.constant 0.000000e+00 : f32
    %265 = vector.broadcast %cst_116 : f32 to vector<16x128xf32>
    %266 = arith.select %264, %265, %245 : vector<16x128xi1>, vector<16x128xf32>
    %c15_i32_117 = arith.constant 15 : i32
    %267 = tpu.dynamic_rotate %244 by %c15_i32_117 dim 0 : vector<16x128xf32>, i32 -> vector<16x128xf32>
    %268 = tpu.iota {dimensions = array<i32: 0>} : vector<16x128xi32>
    %c4_i32_118 = arith.constant 4 : i32
    %c0_i32_119 = arith.constant 0 : i32
    %269 = arith.cmpi eq, %c4_i32_118, %c0_i32_119 : i32
    %c1_i32_120 = arith.constant 1 : i32
    %270 = arith.select %269, %c1_i32_120, %c4_i32_118 : i32
    %271 = vector.broadcast %270 : i32 to vector<16x128xi32>
    %272 = arith.remsi %268, %271 : vector<16x128xi32>
    %c0_i32_121 = arith.constant 0 : i32
    %273 = vector.broadcast %c0_i32_121 : i32 to vector<16x128xi32>
    %274 = arith.cmpi ne, %272, %273 : vector<16x128xi32>
    %c0_i32_122 = arith.constant 0 : i32
    %275 = vector.broadcast %c0_i32_122 : i32 to vector<16x128xi32>
    %276 = arith.cmpi slt, %272, %275 : vector<16x128xi32>
    %c0_i32_123 = arith.constant 0 : i32
    %277 = arith.cmpi slt, %270, %c0_i32_123 : i32
    %278 = vector.broadcast %277 : i1 to vector<16x128xi1>
    %279 = vector.broadcast %278 : vector<16x128xi1> to vector<16x128xi1>
    %280 = arith.xori %276, %279 : vector<16x128xi1>
    %281 = arith.andi %280, %274 : vector<16x128xi1>
    %282 = vector.broadcast %270 : i32 to vector<16x128xi32>
    %283 = arith.addi %272, %282 : vector<16x128xi32>
    %284 = arith.select %281, %283, %272 : vector<16x128xi1>, vector<16x128xi32>
    %c3_i32_124 = arith.constant 3 : i32
    %285 = vector.broadcast %c3_i32_124 : i32 to vector<16x128xi32>
    %286 = arith.cmpi eq, %284, %285 : vector<16x128xi32>
    %cst_125 = arith.constant 0.000000e+00 : f32
    %287 = vector.broadcast %cst_125 : f32 to vector<16x128xf32>
    %288 = arith.select %286, %287, %267 : vector<16x128xi1>, vector<16x128xf32>
    %289 = tpu.concatenate %266, %244, %288 in 1 : vector<16x128xf32>, vector<16x128xf32>, vector<16x128xf32> -> vector<16x384xf32>
    %290 = arith.truncf %289 : vector<16x384xf32> to vector<16x384xbf16>
    %c0_126 = arith.constant 0 : index
    %c0_127 = arith.constant 0 : index
    %291 = vector.load %arg16[%c0_126, %c0_127] : memref<384x128xbf16, #tpu.memory_space<vmem>>, vector<384x128xbf16>
    %cst_128 = arith.constant dense<0.000000e+00> : vector<16x128xf32>
    %292 = tpu.matmul %290, %291, %cst_128 {dimension_numbers = #tpu.dot_dimension_numbers<[1], [0], [0], [1], [0, 0, 1, 1], [], []>} : vector<16x384xbf16>, vector<384x128xbf16>, vector<16x128xf32> -> vector<16x128xf32>
    %c0_129 = arith.constant 0 : index
    %c0_130 = arith.constant 0 : index
    %293 = vector.load %arg17[%c0_129, %c0_130] : memref<1x128xf32, #tpu.memory_space<vmem>>, vector<1x128xf32>
    %294 = vector.broadcast %293 : vector<1x128xf32> to vector<16x128xf32>
    %295 = arith.addf %292, %294 : vector<16x128xf32>
    %296 = arith.truncf %212 : vector<16x512xf32> to vector<16x512xbf16>
    %c0_131 = arith.constant 0 : index
    %c0_132 = arith.constant 0 : index
    %297 = vector.load %arg18[%c0_131, %c0_132] : memref<512x128xbf16, #tpu.memory_space<vmem>>, vector<512x128xbf16>
    %cst_133 = arith.constant dense<0.000000e+00> : vector<16x128xf32>
    %298 = tpu.matmul %296, %297, %cst_133 {dimension_numbers = #tpu.dot_dimension_numbers<[1], [0], [0], [1], [0, 0, 1, 1], [], []>} : vector<16x512xbf16>, vector<512x128xbf16>, vector<16x128xf32> -> vector<16x128xf32>
    %c0_134 = arith.constant 0 : index
    %c0_135 = arith.constant 0 : index
    %299 = vector.load %arg19[%c0_134, %c0_135] : memref<1x128xf32, #tpu.memory_space<vmem>>, vector<1x128xf32>
    %300 = vector.broadcast %299 : vector<1x128xf32> to vector<16x128xf32>
    %301 = arith.addf %298, %300 : vector<16x128xf32>
    %302 = arith.addf %295, %301 : vector<16x128xf32>
    %cst_136 = arith.constant 0.000000e+00 : f32
    %303 = vector.broadcast %cst_136 : f32 to vector<16x128xf32>
    %304 = arith.maximumf %302, %303 : vector<16x128xf32>
    %c1_i32_137 = arith.constant 1 : i32
    %305 = tpu.dynamic_rotate %304 by %c1_i32_137 dim 0 : vector<16x128xf32>, i32 -> vector<16x128xf32>
    %306 = tpu.iota {dimensions = array<i32: 0>} : vector<16x128xi32>
    %c4_i32_138 = arith.constant 4 : i32
    %c0_i32_139 = arith.constant 0 : i32
    %307 = arith.cmpi eq, %c4_i32_138, %c0_i32_139 : i32
    %c1_i32_140 = arith.constant 1 : i32
    %308 = arith.select %307, %c1_i32_140, %c4_i32_138 : i32
    %309 = vector.broadcast %308 : i32 to vector<16x128xi32>
    %310 = arith.remsi %306, %309 : vector<16x128xi32>
    %c0_i32_141 = arith.constant 0 : i32
    %311 = vector.broadcast %c0_i32_141 : i32 to vector<16x128xi32>
    %312 = arith.cmpi ne, %310, %311 : vector<16x128xi32>
    %c0_i32_142 = arith.constant 0 : i32
    %313 = vector.broadcast %c0_i32_142 : i32 to vector<16x128xi32>
    %314 = arith.cmpi slt, %310, %313 : vector<16x128xi32>
    %c0_i32_143 = arith.constant 0 : i32
    %315 = arith.cmpi slt, %308, %c0_i32_143 : i32
    %316 = vector.broadcast %315 : i1 to vector<16x128xi1>
    %317 = vector.broadcast %316 : vector<16x128xi1> to vector<16x128xi1>
    %318 = arith.xori %314, %317 : vector<16x128xi1>
    %319 = arith.andi %318, %312 : vector<16x128xi1>
    %320 = vector.broadcast %308 : i32 to vector<16x128xi32>
    %321 = arith.addi %310, %320 : vector<16x128xi32>
    %322 = arith.select %319, %321, %310 : vector<16x128xi1>, vector<16x128xi32>
    %c0_i32_144 = arith.constant 0 : i32
    %323 = vector.broadcast %c0_i32_144 : i32 to vector<16x128xi32>
    %324 = arith.cmpi eq, %322, %323 : vector<16x128xi32>
    %cst_145 = arith.constant 0.000000e+00 : f32
    %325 = vector.broadcast %cst_145 : f32 to vector<16x128xf32>
    %326 = arith.select %324, %325, %305 : vector<16x128xi1>, vector<16x128xf32>
    %c15_i32_146 = arith.constant 15 : i32
    %327 = tpu.dynamic_rotate %304 by %c15_i32_146 dim 0 : vector<16x128xf32>, i32 -> vector<16x128xf32>
    %328 = tpu.iota {dimensions = array<i32: 0>} : vector<16x128xi32>
    %c4_i32_147 = arith.constant 4 : i32
    %c0_i32_148 = arith.constant 0 : i32
    %329 = arith.cmpi eq, %c4_i32_147, %c0_i32_148 : i32
    %c1_i32_149 = arith.constant 1 : i32
    %330 = arith.select %329, %c1_i32_149, %c4_i32_147 : i32
    %331 = vector.broadcast %330 : i32 to vector<16x128xi32>
    %332 = arith.remsi %328, %331 : vector<16x128xi32>
    %c0_i32_150 = arith.constant 0 : i32
    %333 = vector.broadcast %c0_i32_150 : i32 to vector<16x128xi32>
    %334 = arith.cmpi ne, %332, %333 : vector<16x128xi32>
    %c0_i32_151 = arith.constant 0 : i32
    %335 = vector.broadcast %c0_i32_151 : i32 to vector<16x128xi32>
    %336 = arith.cmpi slt, %332, %335 : vector<16x128xi32>
    %c0_i32_152 = arith.constant 0 : i32
    %337 = arith.cmpi slt, %330, %c0_i32_152 : i32
    %338 = vector.broadcast %337 : i1 to vector<16x128xi1>
    %339 = vector.broadcast %338 : vector<16x128xi1> to vector<16x128xi1>
    %340 = arith.xori %336, %339 : vector<16x128xi1>
    %341 = arith.andi %340, %334 : vector<16x128xi1>
    %342 = vector.broadcast %330 : i32 to vector<16x128xi32>
    %343 = arith.addi %332, %342 : vector<16x128xi32>
    %344 = arith.select %341, %343, %332 : vector<16x128xi1>, vector<16x128xi32>
    %c3_i32_153 = arith.constant 3 : i32
    %345 = vector.broadcast %c3_i32_153 : i32 to vector<16x128xi32>
    %346 = arith.cmpi eq, %344, %345 : vector<16x128xi32>
    %cst_154 = arith.constant 0.000000e+00 : f32
    %347 = vector.broadcast %cst_154 : f32 to vector<16x128xf32>
    %348 = arith.select %346, %347, %327 : vector<16x128xi1>, vector<16x128xf32>
    %349 = tpu.concatenate %326, %304, %348 in 1 : vector<16x128xf32>, vector<16x128xf32>, vector<16x128xf32> -> vector<16x384xf32>
    %350 = arith.truncf %349 : vector<16x384xf32> to vector<16x384xbf16>
    %c0_155 = arith.constant 0 : index
    %c0_156 = arith.constant 0 : index
    %351 = vector.load %arg20[%c0_155, %c0_156] : memref<384x128xbf16, #tpu.memory_space<vmem>>, vector<384x128xbf16>
    %cst_157 = arith.constant dense<0.000000e+00> : vector<16x128xf32>
    %352 = tpu.matmul %350, %351, %cst_157 {dimension_numbers = #tpu.dot_dimension_numbers<[1], [0], [0], [1], [0, 0, 1, 1], [], []>} : vector<16x384xbf16>, vector<384x128xbf16>, vector<16x128xf32> -> vector<16x128xf32>
    %c0_158 = arith.constant 0 : index
    %c0_159 = arith.constant 0 : index
    %353 = vector.load %arg21[%c0_158, %c0_159] : memref<1x128xf32, #tpu.memory_space<vmem>>, vector<1x128xf32>
    %354 = vector.broadcast %353 : vector<1x128xf32> to vector<16x128xf32>
    %355 = arith.addf %352, %354 : vector<16x128xf32>
    %cst_160 = arith.constant 0.000000e+00 : f32
    %356 = vector.broadcast %cst_160 : f32 to vector<16x128xf32>
    %357 = arith.maximumf %355, %356 : vector<16x128xf32>
    %c1_i32_161 = arith.constant 1 : i32
    %358 = tpu.dynamic_rotate %357 by %c1_i32_161 dim 0 : vector<16x128xf32>, i32 -> vector<16x128xf32>
    %359 = tpu.iota {dimensions = array<i32: 0>} : vector<16x128xi32>
    %c4_i32_162 = arith.constant 4 : i32
    %c0_i32_163 = arith.constant 0 : i32
    %360 = arith.cmpi eq, %c4_i32_162, %c0_i32_163 : i32
    %c1_i32_164 = arith.constant 1 : i32
    %361 = arith.select %360, %c1_i32_164, %c4_i32_162 : i32
    %362 = vector.broadcast %361 : i32 to vector<16x128xi32>
    %363 = arith.remsi %359, %362 : vector<16x128xi32>
    %c0_i32_165 = arith.constant 0 : i32
    %364 = vector.broadcast %c0_i32_165 : i32 to vector<16x128xi32>
    %365 = arith.cmpi ne, %363, %364 : vector<16x128xi32>
    %c0_i32_166 = arith.constant 0 : i32
    %366 = vector.broadcast %c0_i32_166 : i32 to vector<16x128xi32>
    %367 = arith.cmpi slt, %363, %366 : vector<16x128xi32>
    %c0_i32_167 = arith.constant 0 : i32
    %368 = arith.cmpi slt, %361, %c0_i32_167 : i32
    %369 = vector.broadcast %368 : i1 to vector<16x128xi1>
    %370 = vector.broadcast %369 : vector<16x128xi1> to vector<16x128xi1>
    %371 = arith.xori %367, %370 : vector<16x128xi1>
    %372 = arith.andi %371, %365 : vector<16x128xi1>
    %373 = vector.broadcast %361 : i32 to vector<16x128xi32>
    %374 = arith.addi %363, %373 : vector<16x128xi32>
    %375 = arith.select %372, %374, %363 : vector<16x128xi1>, vector<16x128xi32>
    %c0_i32_168 = arith.constant 0 : i32
    %376 = vector.broadcast %c0_i32_168 : i32 to vector<16x128xi32>
    %377 = arith.cmpi eq, %375, %376 : vector<16x128xi32>
    %cst_169 = arith.constant 0.000000e+00 : f32
    %378 = vector.broadcast %cst_169 : f32 to vector<16x128xf32>
    %379 = arith.select %377, %378, %358 : vector<16x128xi1>, vector<16x128xf32>
    %c15_i32_170 = arith.constant 15 : i32
    %380 = tpu.dynamic_rotate %357 by %c15_i32_170 dim 0 : vector<16x128xf32>, i32 -> vector<16x128xf32>
    %381 = tpu.iota {dimensions = array<i32: 0>} : vector<16x128xi32>
    %c4_i32_171 = arith.constant 4 : i32
    %c0_i32_172 = arith.constant 0 : i32
    %382 = arith.cmpi eq, %c4_i32_171, %c0_i32_172 : i32
    %c1_i32_173 = arith.constant 1 : i32
    %383 = arith.select %382, %c1_i32_173, %c4_i32_171 : i32
    %384 = vector.broadcast %383 : i32 to vector<16x128xi32>
    %385 = arith.remsi %381, %384 : vector<16x128xi32>
    %c0_i32_174 = arith.constant 0 : i32
    %386 = vector.broadcast %c0_i32_174 : i32 to vector<16x128xi32>
    %387 = arith.cmpi ne, %385, %386 : vector<16x128xi32>
    %c0_i32_175 = arith.constant 0 : i32
    %388 = vector.broadcast %c0_i32_175 : i32 to vector<16x128xi32>
    %389 = arith.cmpi slt, %385, %388 : vector<16x128xi32>
    %c0_i32_176 = arith.constant 0 : i32
    %390 = arith.cmpi slt, %383, %c0_i32_176 : i32
    %391 = vector.broadcast %390 : i1 to vector<16x128xi1>
    %392 = vector.broadcast %391 : vector<16x128xi1> to vector<16x128xi1>
    %393 = arith.xori %389, %392 : vector<16x128xi1>
    %394 = arith.andi %393, %387 : vector<16x128xi1>
    %395 = vector.broadcast %383 : i32 to vector<16x128xi32>
    %396 = arith.addi %385, %395 : vector<16x128xi32>
    %397 = arith.select %394, %396, %385 : vector<16x128xi1>, vector<16x128xi32>
    %c3_i32_177 = arith.constant 3 : i32
    %398 = vector.broadcast %c3_i32_177 : i32 to vector<16x128xi32>
    %399 = arith.cmpi eq, %397, %398 : vector<16x128xi32>
    %cst_178 = arith.constant 0.000000e+00 : f32
    %400 = vector.broadcast %cst_178 : f32 to vector<16x128xf32>
    %401 = arith.select %399, %400, %380 : vector<16x128xi1>, vector<16x128xf32>
    %402 = tpu.concatenate %379, %357, %401 in 1 : vector<16x128xf32>, vector<16x128xf32>, vector<16x128xf32> -> vector<16x384xf32>
    %403 = arith.truncf %402 : vector<16x384xf32> to vector<16x384xbf16>
    %c0_179 = arith.constant 0 : index
    %c0_180 = arith.constant 0 : index
    %404 = vector.load %arg22[%c0_179, %c0_180] : memref<384x128xbf16, #tpu.memory_space<vmem>>, vector<384x128xbf16>
    %cst_181 = arith.constant dense<0.000000e+00> : vector<16x128xf32>
    %405 = tpu.matmul %403, %404, %cst_181 {dimension_numbers = #tpu.dot_dimension_numbers<[1], [0], [0], [1], [0, 0, 1, 1], [], []>} : vector<16x384xbf16>, vector<384x128xbf16>, vector<16x128xf32> -> vector<16x128xf32>
    %c0_182 = arith.constant 0 : index
    %c0_183 = arith.constant 0 : index
    %406 = vector.load %arg23[%c0_182, %c0_183] : memref<1x128xf32, #tpu.memory_space<vmem>>, vector<1x128xf32>
    %407 = vector.broadcast %406 : vector<1x128xf32> to vector<16x128xf32>
    %408 = arith.addf %405, %407 : vector<16x128xf32>
    %409 = arith.addf %408, %304 : vector<16x128xf32>
    %cst_184 = arith.constant 0.000000e+00 : f32
    %410 = vector.broadcast %cst_184 : f32 to vector<16x128xf32>
    %411 = arith.maximumf %409, %410 : vector<16x128xf32>
    %412 = arith.truncf %411 : vector<16x128xf32> to vector<16x128xbf16>
    %c0_185 = arith.constant 0 : index
    %c0_186 = arith.constant 0 : index
    %413 = vector.load %arg24[%c0_185, %c0_186] : memref<4x16xbf16, #tpu.memory_space<vmem>>, vector<4x16xbf16>
    %cst_187 = arith.constant dense<0.000000e+00> : vector<4x128xf32>
    %414 = tpu.matmul %413, %412, %cst_187 {dimension_numbers = #tpu.dot_dimension_numbers<[1], [0], [0], [1], [0, 0, 1, 1], [], []>} : vector<4x16xbf16>, vector<16x128xbf16>, vector<4x128xf32> -> vector<4x128xf32>
    %415 = arith.truncf %414 : vector<4x128xf32> to vector<4x128xbf16>
    %c0_188 = arith.constant 0 : index
    %c0_189 = arith.constant 0 : index
    %416 = vector.load %arg25[%c0_188, %c0_189] : memref<128x128xbf16, #tpu.memory_space<vmem>>, vector<128x128xbf16>
    %cst_190 = arith.constant dense<0.000000e+00> : vector<4x128xf32>
    %417 = tpu.matmul %415, %416, %cst_190 {dimension_numbers = #tpu.dot_dimension_numbers<[1], [0], [0], [1], [0, 0, 1, 1], [], []>} : vector<4x128xbf16>, vector<128x128xbf16>, vector<4x128xf32> -> vector<4x128xf32>
    %c0_191 = arith.constant 0 : index
    %c0_192 = arith.constant 0 : index
    %418 = vector.load %arg26[%c0_191, %c0_192] : memref<1x128xf32, #tpu.memory_space<vmem>>, vector<1x128xf32>
    %419 = vector.broadcast %418 : vector<1x128xf32> to vector<4x128xf32>
    %420 = arith.addf %417, %419 : vector<4x128xf32>
    %c0_193 = arith.constant 0 : index
    %c0_194 = arith.constant 0 : index
    %c0_195 = arith.constant 0 : index
    %421 = vector.load %arg27[%c0_193, %c0_194, %c0_195] : memref<1x4x128xf32, #tpu.memory_space<vmem>>, vector<1x4x128xf32>
    %422 = vector.shape_cast %421 : vector<1x4x128xf32> to vector<4x128xf32>
    %423 = vector.shape_cast %420 : vector<4x128xf32> to vector<1x4x128xf32>
    tpu.vector_store %arg27[%c0_193, %c0_194, %c0_195], %423 {strides = array<i32>} : memref<1x4x128xf32, #tpu.memory_space<vmem>>, vector<1x4x128xf32>,
    return
  }
  func.func @transform_0(%arg0: i32) -> (i32, i32) {
    %c0_i32 = arith.constant 0 : i32
    %c0_i32_0 = arith.constant 0 : i32
    return %arg0, %c0_i32 : i32, i32
  }
  func.func @transform_1(%arg0: i32) -> (i32, i32) {
    %c0_i32 = arith.constant 0 : i32
    %c0_i32_0 = arith.constant 0 : i32
    %c0_i32_1 = arith.constant 0 : i32
    return %c0_i32, %c0_i32_0 : i32, i32
  }
  func.func @transform_2(%arg0: i32) -> (i32, i32) {
    %c0_i32 = arith.constant 0 : i32
    %c0_i32_0 = arith.constant 0 : i32
    %c0_i32_1 = arith.constant 0 : i32
    return %c0_i32, %c0_i32_0 : i32, i32
  }
  func.func @transform_3(%arg0: i32) -> (i32, i32) {
    %c0_i32 = arith.constant 0 : i32
    %c0_i32_0 = arith.constant 0 : i32
    %c0_i32_1 = arith.constant 0 : i32
    return %c0_i32, %c0_i32_0 : i32, i32
  }
  func.func @transform_4(%arg0: i32) -> (i32, i32) {
    %c0_i32 = arith.constant 0 : i32
    %c0_i32_0 = arith.constant 0 : i32
    %c0_i32_1 = arith.constant 0 : i32
    return %c0_i32, %c0_i32_0 : i32, i32
  }
  func.func @transform_5(%arg0: i32) -> (i32, i32) {
    %c0_i32 = arith.constant 0 : i32
    %c0_i32_0 = arith.constant 0 : i32
    %c0_i32_1 = arith.constant 0 : i32
    return %c0_i32, %c0_i32_0 : i32, i32
  }
  func.func @transform_6(%arg0: i32) -> (i32, i32) {
    %c0_i32 = arith.constant 0 : i32
    %c0_i32_0 = arith.constant 0 : i32
    %c0_i32_1 = arith.constant 0 : i32
    return %c0_i32, %c0_i32_0 : i32, i32
  }
  func.func @transform_7(%arg0: i32) -> (i32, i32) {
    %c0_i32 = arith.constant 0 : i32
    %c0_i32_0 = arith.constant 0 : i32
    %c0_i32_1 = arith.constant 0 : i32
    return %c0_i32, %c0_i32_0 : i32, i32
  }
  func.func @transform_8(%arg0: i32) -> (i32, i32) {
    %c0_i32 = arith.constant 0 : i32
    %c0_i32_0 = arith.constant 0 : i32
    %c0_i32_1 = arith.constant 0 : i32
    return %c0_i32, %c0_i32_0 : i32, i32
  }
  func.func @transform_9(%arg0: i32) -> (i32, i32) {
    %c0_i32 = arith.constant 0 : i32
    %c0_i32_0 = arith.constant 0 : i32
    %c0_i32_1 = arith.constant 0 : i32
    return %c0_i32, %c0_i32_0 : i32, i32
  }
  func.func @transform_10(%arg0: i32) -> (i32, i32) {
    %c0_i32 = arith.constant 0 : i32
    %c0_i32_0 = arith.constant 0 : i32
    %c0_i32_1 = arith.constant 0 : i32
    return %c0_i32, %c0_i32_0 : i32, i32
  }
  func.func @transform_11(%arg0: i32) -> (i32, i32) {
    %c0_i32 = arith.constant 0 : i32
    %c0_i32_0 = arith.constant 0 : i32
    %c0_i32_1 = arith.constant 0 : i32
    return %c0_i32, %c0_i32_0 : i32, i32
  }
  func.func @transform_12(%arg0: i32) -> (i32, i32) {
    %c0_i32 = arith.constant 0 : i32
    %c0_i32_0 = arith.constant 0 : i32
    %c0_i32_1 = arith.constant 0 : i32
    return %c0_i32, %c0_i32_0 : i32, i32
  }
  func.func @transform_13(%arg0: i32) -> (i32, i32) {
    %c0_i32 = arith.constant 0 : i32
    %c0_i32_0 = arith.constant 0 : i32
    %c0_i32_1 = arith.constant 0 : i32
    return %c0_i32, %c0_i32_0 : i32, i32
  }
  func.func @transform_14(%arg0: i32) -> (i32, i32) {
    %c0_i32 = arith.constant 0 : i32
    %c0_i32_0 = arith.constant 0 : i32
    %c0_i32_1 = arith.constant 0 : i32
    return %c0_i32, %c0_i32_0 : i32, i32
  }
  func.func @transform_15(%arg0: i32) -> (i32, i32) {
    %c0_i32 = arith.constant 0 : i32
    %c0_i32_0 = arith.constant 0 : i32
    %c0_i32_1 = arith.constant 0 : i32
    return %c0_i32, %c0_i32_0 : i32, i32
  }
  func.func @transform_16(%arg0: i32) -> (i32, i32) {
    %c0_i32 = arith.constant 0 : i32
    %c0_i32_0 = arith.constant 0 : i32
    %c0_i32_1 = arith.constant 0 : i32
    return %c0_i32, %c0_i32_0 : i32, i32
  }
  func.func @transform_17(%arg0: i32) -> (i32, i32) {
    %c0_i32 = arith.constant 0 : i32
    %c0_i32_0 = arith.constant 0 : i32
    %c0_i32_1 = arith.constant 0 : i32
    return %c0_i32, %c0_i32_0 : i32, i32
  }
  func.func @transform_18(%arg0: i32) -> (i32, i32) {
    %c0_i32 = arith.constant 0 : i32
    %c0_i32_0 = arith.constant 0 : i32
    %c0_i32_1 = arith.constant 0 : i32
    return %c0_i32, %c0_i32_0 : i32, i32
  }
  func.func @transform_19(%arg0: i32) -> (i32, i32) {
    %c0_i32 = arith.constant 0 : i32
    %c0_i32_0 = arith.constant 0 : i32
    %c0_i32_1 = arith.constant 0 : i32
    return %c0_i32, %c0_i32_0 : i32, i32
  }
  func.func @transform_20(%arg0: i32) -> (i32, i32) {
    %c0_i32 = arith.constant 0 : i32
    %c0_i32_0 = arith.constant 0 : i32
    %c0_i32_1 = arith.constant 0 : i32
    return %c0_i32, %c0_i32_0 : i32, i32
  }
  func.func @transform_21(%arg0: i32) -> (i32, i32) {
    %c0_i32 = arith.constant 0 : i32
    %c0_i32_0 = arith.constant 0 : i32
    %c0_i32_1 = arith.constant 0 : i32
    return %c0_i32, %c0_i32_0 : i32, i32
  }
  func.func @transform_22(%arg0: i32) -> (i32, i32) {
    %c0_i32 = arith.constant 0 : i32
    %c0_i32_0 = arith.constant 0 : i32
    %c0_i32_1 = arith.constant 0 : i32
    return %c0_i32, %c0_i32_0 : i32, i32
  }
  func.func @transform_23(%arg0: i32) -> (i32, i32) {
    %c0_i32 = arith.constant 0 : i32
    %c0_i32_0 = arith.constant 0 : i32
    %c0_i32_1 = arith.constant 0 : i32
    return %c0_i32, %c0_i32_0 : i32, i32
  }
  func.func @transform_24(%arg0: i32) -> (i32, i32) {
    %c0_i32 = arith.constant 0 : i32
    %c0_i32_0 = arith.constant 0 : i32
    %c0_i32_1 = arith.constant 0 : i32
    return %c0_i32, %c0_i32_0 : i32, i32
  }
  func.func @transform_25(%arg0: i32) -> (i32, i32) {
    %c0_i32 = arith.constant 0 : i32
    %c0_i32_0 = arith.constant 0 : i32
    %c0_i32_1 = arith.constant 0 : i32
    return %c0_i32, %c0_i32_0 : i32, i32
  }
  func.func @transform_26(%arg0: i32) -> (i32, i32, i32) {
    %c0_i32 = arith.constant 0 : i32
    %c0_i32_0 = arith.constant 0 : i32
    %c0_i32_1 = arith.constant 0 : i32
    return %arg0, %c0_i32, %c0_i32_0 : i32, i32, i32
  }
}

</mosaic_0001>

<bundles_post_ra>
// kernel: resnet9_forward.1
= control target key start
LH: loop header
LB: loop body
LE: loop exit
PB: predicated region body
PF: predicated region fallthrough
CT: control target
= control target key end

     0   :  { %s28935_s0 = inlined_call_operand.vmem [shape: bf16[32,1152], index: 0, kind: input, shape index: {}]   ;;  %s28936_s1 = inlined_call_operand.vmem [shape: bf16[1152,1024], index: 1, kind: input, shape index: {}]   ;;  %s28937_s2 = inlined_call_operand.vmem [shape: f32[1,1024], index: 2, kind: input, shape index: {}]   ;;  %s28938_s3 = inlined_call_operand.vmem [shape: bf16[1280,512], index: 3, kind: input, shape index: {}]   ;;  %s28939_s4 = inlined_call_operand.vmem [shape: f32[1,512], index: 4, kind: input, shape index: {}]   ;;  %s28940_s5 = inlined_call_operand.vmem [shape: bf16[1024,512], index: 5, kind: input, shape index: {}]   ;;  %s28941_s6 = inlined_call_operand.vmem [shape: f32[1,512], index: 6, kind: input, shape index: {}]   ;;  %s28942_s7 = inlined_call_operand.vmem [shape: bf16[1024,512], index: 7, kind: input, shape index: {}]   ;;  %s28943_s8 = inlined_call_operand.vmem [shape: f32[1,512], index: 8, kind: input, shape index: {}]   ;;  %s28944_s9 = inlined_call_operand.vmem [shape: bf16[1024,512], index: 9, kind: input, shape index: {}]   ;;  %s28945_s10 = inlined_call_operand.vmem [shape: f32[1,512], index: 10, kind: input, shape index: {}]   ;;  %s28946_s11 = inlined_call_operand.hbm [shape: bf16[1024,512], index: 11, kind: input, shape index: {}]   ;;  %s28947_s12 = inlined_call_operand.vmem [shape: f32[1,512], index: 12, kind: input, shape index: {}]   ;;  %s28948_s13 = inlined_call_operand.hbm [shape: bf16[768,128], index: 13, kind: input, shape index: {}]   ;;  %s28949_s14 = inlined_call_operand.vmem [shape: f32[1,128], index: 14, kind: input, shape index: {}]   ;;  %s28950_s15 = inlined_call_operand.hbm [shape: bf16[384,128], index: 15, kind: input, shape index: {}]   ;;  %s28951_s16 = inlined_call_operand.vmem [shape: f32[1,128], index: 16, kind: input, shape index: {}]   ;;  %s28952_s17 = inlined_call_operand.hbm [shape: bf16[512,128], index: 17, kind: input, shape index: {}]   ;;  %s28953_s18 = inlined_call_operand.vmem [shape: f32[1,128], index: 18, kind: input, shape index: {}]   ;;  %s28954_s19 = inlined_call_operand.hbm [shape: bf16[384,128], index: 19, kind: input, shape index: {}]   ;;  %s28955_s20 = inlined_call_operand.vmem [shape: f32[1,128], index: 20, kind: input, shape index: {}]   ;;  %s28956_s21 = inlined_call_operand.hbm [shape: bf16[384,128], index: 21, kind: input, shape index: {}]   ;;  %s28957_s22 = inlined_call_operand.vmem [shape: f32[1,128], index: 22, kind: input, shape index: {}]   ;;  %s28958_s23 = inlined_call_operand.vmem [shape: bf16[4,16], index: 23, kind: input, shape index: {}]   ;;  %s28959_s24 = inlined_call_operand.vmem [shape: bf16[128,128], index: 24, kind: input, shape index: {}]   ;;  %s28960_s25 = inlined_call_operand.vmem [shape: f32[1,128], index: 25, kind: input, shape index: {}]   ;;  %s28961_s26 = inlined_call_operand.hbm [shape: f32[2,4,128], index: 26, kind: output, shape index: {}]  }
   0x1   :  { %28988 = sst [smem:[#allocation27_spill]] %s28935_s0 }
   0x2   :  { %28989 = sst [smem:[#allocation28_spill]] %s28936_s1 }
   0x3   :  { %28990 = sst [smem:[#allocation29_spill]] %s28937_s2 }
   0x4   :  { %28991 = sst [smem:[#allocation30_spill]] %s28938_s3 }
   0x5   :  { %28992 = sst [smem:[#allocation31_spill]] %s28939_s4 }
   0x6   :  { %28993 = sst [smem:[#allocation32_spill]] %s28940_s5 }
   0x7   :  { %28994 = sst [smem:[#allocation33_spill]] %s28941_s6 }
   0x8   :  { %28995 = sst [smem:[#allocation34_spill]] %s28942_s7 }
   0x9   :  { %28996 = sst [smem:[#allocation35_spill]] %s28943_s8 }
   0xa   :  { %28997 = sst [smem:[#allocation36_spill]] %s28944_s9 }
   0xb   :  { %28998 = sst [smem:[#allocation37_spill]] %s28945_s10 }
   0xc   :  { %28999 = sst [smem:[#allocation38_spill]] %s28948_s13 }
   0xd   :  { %29000 = sst [smem:[#allocation39_spill]] %s28952_s17 }
   0xe   :  { %29001 = sst [smem:[#allocation40_spill]] %s28959_s24 }
   0xf   :  { %29002 = sst [smem:[#allocation41_spill]] %s28960_s25 }
  0x10   :  { %29003 = sst [smem:[#allocation42_spill]] %s28961_s26 }
  0x11   :  { %31 = vsyncpa [#allocation3], 0 }
  0x12   :  { %32 = vsyncpa [#allocation6], 0 }
  0x13   :  { %33 = vsyncpa [#allocation9], 0 }
  0x14   :  { %34 = vsyncpa [#allocation12], 0 }
  0x15   :  { %35 = vsyncpa [#allocation4], 0 }
  0x16   :  { %37 = vsyncpa [#allocation4 + $0x1], 0  ;;  %s23125_s27 = smov 0   ;;  %s23127_s3 = smov 0  }
  0x17   :  { %s23129_s7 = smov 0   ;;  %s23131_s28 = smov 0  }
  0x18 LB: > { %29004 = sst [smem:[#allocation19_spill]] %s22962_s27  ;;  %s23146_s8 = sadd.s32 4294967295, %s22974_s28   ;;  %s22974_s28 = sphi %s23131_s28, %s29059_s28   ;;  %s22970_s7 = sphi %s23129_s7, %s29062_s7   ;;  %s22966_s3 = sphi %s23127_s3, %s29061_s3   ;;  %s22962_s27 = sphi %s23125_s27, %s29060_s27  }
  0x19   : > { %29005 = sst [smem:[#allocation20_spill]] %s22966_s3  ;;  %s17562_s4 = sadd.s32 4294967294, %s22974_s28  }
  0x1a   : > { %29006 = sst [smem:[#allocation21_spill]] %s22970_s7  ;;  %s23150_s29 = sadd.s32 1, %s22974_s28  }
  0x1b   : > { %29007 = sst [smem:[#allocation22_spill]] %s22974_s28  ;;  %s601_s0 = sadd.s32 1, %s22970_s7 }
  0x1c   : > { %29008 = sst [smem:[#allocation23_spill]] %s23150_s29  ;;  %s598_s9 = ssub.s32 %s22974_s28, %s23150_s29 }
  0x1d   : > { %p611_p0 = scmp.ne.s32.totalorder %s22970_s7, %s22966_s3  ;;  %p599_p1 = scmp.eq.s32.totalorder %s598_s9, 0 }
  0x1e   : > { %p612_p2 = scmp.eq.s32.totalorder %s23146_s8, 1  ;;  %p617_p3 = scmp.ne.s32.totalorder %s22966_s3, %s22962_s27 }
  0x1f   : > { %p618_p4 = scmp.eq.s32.totalorder %s17562_s4, 1  ;;  %p17563_p7 = scmp.ge.s32.totalorder %s22974_s28, 1 }
  0x20   : > { %s23161_s30 = scalar_select %p599_p1, %s22970_s7, %s601_s0  }
  0x21   : > { %p23163_p5 = por %p612_p2, %p611_p0  ;;  %p23167_p6 = por %p618_p4, %p617_p3 }
  0x22   : > { %29009 = sst [smem:[#allocation24_spill]] %s23161_s30  ;;  %p625_p8 = scmp.lt.s32.totalorder %s22974_s28, 3 }
  0x23   : > { %s29010_s2 = scalar_select %p23163_p5, 1, 0 }
  0x24   : > { %s29012_s5 = scalar_select %p23167_p6, 1, 0 }
  0x25   : > { %29011 = sst [smem:[#allocation25_spill]] %s29010_s2  ;;  %p28975_p9 = scmp.eq.s32.totalorder %s23146_s8, 0 }
  0x26   : > { %29013 = sst [smem:[#allocation26_spill]] %s29012_s5  ;;  %p23174_p10 = pnand %p17563_p7, %p625_p8 }
  0x27   : > { %s22976_s6 = smov [#allocation5]   ;;  %s22977_s0 = smov [#allocation8]  }
  0x28   : > { %s29014_s10 = scalar_select %p23174_p10, 1, 0 }
  0x29   : > { %s683_s1 = sshll.u32 %s22976_s6, 4  ;;  %p20448_p11 = pneg %p23174_p10  ;;  %s23180_s1 = int_to_ptr.vmem [resolvable:$true] %s683_s1 }
  0x2a   : > { %s715_s9 = sshll.u32 %s22977_s0, 4  ;;  %s22978_s30 = smov [#allocation2]   ;;  %s23188_s9 = int_to_ptr.vmem [resolvable:$true] %s715_s9 }
  0x2b   : > { %p23184_p12 = pnand %p28975_p9, %p20448_p11  ;;  %s23190_s7 = sshll.u32 %s22978_s30, 4  ;;  %s668_s7 = int_to_ptr.vmem [resolvable:$true] %s23190_s7 }
  0x2c   : > { %s29016_s13 = sld [smem:[#allocation38_spill]] }
  0x2d   : > { %p23200_p0 = pneg %p23184_p12 }
  0x32   : > { %s22728_s6 = scalar_lea.hbm %s29016_s13, 6144 }
  0x33   : > { %p22729_p13 = scmp.ne.s32.totalorder %s29016_s13, %s22728_s6  ;;  %p22735_p3 = scmp.lt.u32.totalorder %s22728_s6, %s29016_s13 }
  0x35   : > { %p22731_p1 = pnand %p23200_p0, %p22729_p13 }
  0x37   : > { %p22732_p2 = pneg %p22731_p1 }
  0x39   : > { %p22737_p4 = pnand %p22735_p3, %p22732_p2 }
  0x3b   : > { %22740 = shalt.err (!%p22737_p4)
}
  0x3c   : > { %s22741_s27 = scalar_lea.vmem %s23180_s1, 6144  ;;  %p22749_p9 = scmp.lt.s32.totalorder %s23180_s1, %s23180_s1 }
  0x3d   : > { %p22742_p7 = scmp.ne.s32.totalorder %s23180_s1, %s22741_s27  ;;  %p22750_p6 = scmp.lt.s32.totalorder %s22741_s27, %s22741_s27 }
  0x3f   : > { %p22744_p8 = pnand %p22742_p7, %p23200_p0  ;;  %p22751_p13 = por %p22750_p6, %p22749_p9 }
  0x41   : > { %p22745_p11 = pneg %p22744_p8 }
  0x43   : > { %p22752_p1 = pnand %p22751_p13, %p22745_p11 }
  0x45   : > { %22755 = shalt.err (!%p22752_p1)
}
  0x46   : > { %s28982_s28 = smov 64   ;;  %s28984_s29 = smov 4  }
  0x47   : > { %20454 = dma.hbm_to_vmem [thread:$0]  (!%p23184_p12), %s29016_s13, 6144, %s23180_s1, [#allocation6], %s28982_s28, %s28982_s28, %s28984_s29  }
  0x48   : > { %s29018_s17 = sld [smem:[#allocation39_spill]] }
  0x4e   : > { %s22756_s27 = scalar_lea.hbm %s29018_s17, 4096 }
  0x4f   : > { %p22757_p6 = scmp.ne.s32.totalorder %s29018_s17, %s22756_s27  ;;  %p22763_p3 = scmp.lt.u32.totalorder %s22756_s27, %s29018_s17 }
  0x51   : > { %p22759_p9 = pnand %p22757_p6, %p23200_p0 }
  0x53   : > { %p22760_p2 = pneg %p22759_p9 }
  0x55   : > { %p22765_p4 = pnand %p22763_p3, %p22760_p2 }
  0x57   : > { %22768 = shalt.err (!%p22765_p4)
}
  0x58   : > { %s22769_s1 = scalar_lea.vmem %s23188_s9, 4096  ;;  %p22777_p13 = scmp.lt.s32.totalorder %s23188_s9, %s23188_s9 }
  0x59   : > { %p22770_p7 = scmp.ne.s32.totalorder %s23188_s9, %s22769_s1  ;;  %p22778_p1 = scmp.lt.s32.totalorder %s22769_s1, %s22769_s1 }
  0x5b   : > { %p22772_p8 = pnand %p22770_p7, %p23200_p0  ;;  %p22779_p6 = por %p22778_p1, %p22777_p13 }
  0x5d   : > { %p22773_p11 = pneg %p22772_p8 }
  0x5f   : > { %p22780_p9 = pnand %p22779_p6, %p22773_p11 }
  0x61   : > { %22783 = shalt.err (!%p22780_p9)
}
  0x62   : > { %20460 = dma.hbm_to_vmem [thread:$0]  (!%p23184_p12), %s29018_s17, 4096, %s23188_s9, [#allocation9], %s28982_s28, %s28982_s28, %s28984_s29  }
  0x63   : > { %s22784_s5 = scalar_lea.hbm %s28946_s11, 32768 }
  0x64   : > { %p22785_p2 = scmp.ne.s32.totalorder %s28946_s11, %s22784_s5  ;;  %p22791_p7 = scmp.lt.u32.totalorder %s22784_s5, %s28946_s11 }
  0x66   : > { %p22787_p3 = pnand %p22785_p2, %p23200_p0 }
  0x68   : > { %p22788_p4 = pneg %p22787_p3 }
  0x6a   : > { %p22793_p8 = pnand %p22791_p7, %p22788_p4 }
  0x6c   : > { %22796 = shalt.err (!%p22793_p8)
}
  0x6d   : > { %s22797_s1 = scalar_lea.vmem %s668_s7, 32768  ;;  %p22805_p6 = scmp.lt.s32.totalorder %s668_s7, %s668_s7 }
  0x6e   : > { %p22798_p11 = scmp.ne.s32.totalorder %s668_s7, %s22797_s1  ;;  %p22806_p9 = scmp.lt.s32.totalorder %s22797_s1, %s22797_s1 }
  0x70   : > { %p22800_p13 = pnand %p22798_p11, %p23200_p0  ;;  %p22807_p5 = por %p22806_p9, %p22805_p6 }
  0x72   : > { %p22801_p1 = pneg %p22800_p13 }
  0x74   : > { %p22808_p10 = pnand %p22807_p5, %p22801_p1 }
  0x76   : > { %22811 = shalt.err (!%p22808_p10)
}
  0x77   : > { %s22981_s9 = smov 256   ;;  %s22982_s24 = smov 16  }
  0x78   : > { %20451 = dma.hbm_to_vmem [thread:$0]  (!%p23184_p12), %s28946_s11, 32768, %s668_s7, [#allocation3], %s22981_s9, %s22981_s9, %s22982_s24  }
  0x79   : > { %s22983_s2 = smov [#allocation7]   ;;  %s22984_s6 = smov [#allocation10]  }
  0x7a   : > { %s699_s5 = sshll.u32 %s22983_s2, 4  ;;  %s731_s0 = sshll.u32 %s22984_s6, 4  ;;  %s700_s5 = int_to_ptr.vmem [resolvable:$true] %s699_s5  ;;  %s732_s0 = int_to_ptr.vmem [resolvable:$true] %s731_s0 }
  0x7b   : > { %s22812_s1 = scalar_lea.hbm %s28950_s15, 3072 }
  0x7c   : > { %p22813_p5 = scmp.ne.s32.totalorder %s28950_s15, %s22812_s1  ;;  %p22819_p3 = scmp.lt.u32.totalorder %s22812_s1, %s28950_s15 }
  0x7e   : > { %p22815_p10 = pnand %p22813_p5, %p23200_p0 }
  0x80   : > { %p22816_p2 = pneg %p22815_p10 }
  0x82   : > { %p22821_p4 = pnand %p22819_p3, %p22816_p2 }
  0x84   : > { %22824 = shalt.err (!%p22821_p4)
}
  0x85   : > { %s22825_s7 = scalar_lea.vmem %s700_s5, 3072  ;;  %p22833_p13 = scmp.lt.s32.totalorder %s700_s5, %s700_s5 }
  0x86   : > { %p22826_p7 = scmp.ne.s32.totalorder %s700_s5, %s22825_s7  ;;  %p22834_p1 = scmp.lt.s32.totalorder %s22825_s7, %s22825_s7 }
  0x88   : > { %p22828_p8 = pnand %p22826_p7, %p23200_p0  ;;  %p22835_p6 = por %p22834_p1, %p22833_p13 }
  0x8a   : > { %p22829_p11 = pneg %p22828_p8 }
  0x8c   : > { %p22836_p9 = pnand %p22835_p6, %p22829_p11 }
  0x8e   : > { %22839 = shalt.err (!%p22836_p9)
}
  0x8f   : > { %s29019_s28 = smov 4   ;;  %s29020_s29 = smov 64  }
  0x90   : > { %20457 = dma.hbm_to_vmem [thread:$0]  (!%p23184_p12), %s28950_s15, 3072, %s700_s5, [#allocation6], %s29020_s29, %s29020_s29, %s29019_s28  }
  0x91   : > { %s22840_s25 = scalar_lea.hbm %s28954_s19, 3072 }
  0x92   : > { %p22841_p5 = scmp.ne.s32.totalorder %s28954_s19, %s22840_s25  ;;  %p22847_p3 = scmp.lt.u32.totalorder %s22840_s25, %s28954_s19 }
  0x94   : > { %p22843_p10 = pnand %p22841_p5, %p23200_p0 }
  0x96   : > { %p22844_p2 = pneg %p22843_p10 }
  0x98   : > { %p22849_p4 = pnand %p22847_p3, %p22844_p2 }
  0x9a   : > { %22852 = shalt.err (!%p22849_p4)
}
  0x9b   : > { %s22853_s27 = scalar_lea.vmem %s732_s0, 3072  ;;  %p22861_p13 = scmp.lt.s32.totalorder %s732_s0, %s732_s0 }
  0x9c   : > { %p22854_p7 = scmp.ne.s32.totalorder %s732_s0, %s22853_s27  ;;  %p22862_p1 = scmp.lt.s32.totalorder %s22853_s27, %s22853_s27 }
  0x9e   : > { %p22856_p8 = pnand %p22854_p7, %p23200_p0  ;;  %p22863_p6 = por %p22862_p1, %p22861_p13 }
  0xa0   : > { %p22857_p11 = pneg %p22856_p8 }
  0xa2   : > { %p22864_p9 = pnand %p22863_p6, %p22857_p11 }
  0xa4   : > { %22867 = shalt.err (!%p22864_p9)
}
  0xa5   : > { %20463 = dma.hbm_to_vmem [thread:$0]  (!%p23184_p12), %s28954_s19, 3072, %s732_s0, [#allocation9], %s29020_s29, %s29020_s29, %s29019_s28  }
  0xa6   : > { %s22985_s7 = smov [#allocation11]   ;;  %s22868_s24 = scalar_lea.hbm %s28956_s21, 3072 }
  0xa7   : > { %s747_s13 = sshll.u32 %s22985_s7, 4  ;;  %p22869_p5 = scmp.ne.s32.totalorder %s28956_s21, %s22868_s24  ;;  %s748_s13 = int_to_ptr.vmem [resolvable:$true] %s747_s13 }
  0xa8   : > { %p22875_p3 = scmp.lt.u32.totalorder %s22868_s24, %s28956_s21 }
  0xa9   : > { %p22871_p10 = pnand %p22869_p5, %p23200_p0 }
  0xab   : > { %p22872_p2 = pneg %p22871_p10 }
  0xad   : > { %p22877_p4 = pnand %p22875_p3, %p22872_p2 }
  0xaf   : > { %22880 = shalt.err (!%p22877_p4)
}
  0xb0   : > { %s22881_s0 = scalar_lea.vmem %s748_s13, 3072  ;;  %p22889_p13 = scmp.lt.s32.totalorder %s748_s13, %s748_s13 }
  0xb1   : > { %p22882_p7 = scmp.ne.s32.totalorder %s748_s13, %s22881_s0  ;;  %p22890_p1 = scmp.lt.s32.totalorder %s22881_s0, %s22881_s0 }
  0xb3   : > { %p22884_p8 = pnand %p22882_p7, %p23200_p0  ;;  %p22891_p6 = por %p22890_p1, %p22889_p13 }
  0xb5   : > { %p22885_p11 = pneg %p22884_p8 }
  0xb7   : > { %p22892_p9 = pnand %p22891_p6, %p22885_p11 }
  0xb9   : > { %22895 = shalt.err (!%p22892_p9)
}
  0xba   : > { %20466 = dma.hbm_to_vmem [thread:$0]  (!%p23184_p12), %s28956_s21, 3072, %s748_s13, [#allocation12], %s29020_s29, %s29020_s29, %s29019_s28  }
  0xbb   : > { %p29021_p5 = scmp.ne.s32.totalorder %s29014_s10, 0 }
  0xbc   : > { %p29022_p0 = scmp.eq.s32.totalorder (!%p29021_p5), %s23146_s8, 0 }
  0xbd   : > { %785 = sbr.rel (%p29021_p5) target bundleno = 4431 (0x114f), region = 124 }
  0xc4   : > { %22941 = dma.done.wait (%p29022_p0), [#allocation3], 32768   ;;  %p29023_p10 = pmov %p29022_p0 }
  0xc5   : > { %p29024_p2 = pmov %p29022_p0 }
  0xc6   : > { %22943 = vsyncadd (%p29023_p10), [#allocation3], 4294934528 }
  0xc7   : > { %22945 = dma.done.wait (%p29024_p2), [#allocation6], 9216   ;;  %p29025_p3 = pmov %p29022_p0 }
  0xc8   : > { %p29026_p4 = pmov %p29022_p0 }
  0xc9   : > { %22947 = vsyncadd (%p29025_p3), [#allocation6], 4294958080 }
  0xca   : > { %22949 = dma.done.wait (%p29026_p4), [#allocation9], 7168   ;;  %p29027_p12 = pmov %p29022_p0 }
  0xcb   : > { %p29028_p7 = pmov %p29022_p0 }
  0xcc   : > { %22951 = vsyncadd (%p29027_p12), [#allocation9], 4294960128 }
  0xcd   : > { %22953 = dma.done.wait (%p29028_p7), [#allocation12], 3072   ;;  %p29029_p8 = pmov %p29022_p0 }
  0xce   : > { %s29030_s4 = sld [smem:[#allocation28_spill]]  ;;  %s17579_s7 = sshll.u32 %s23146_s8, 1  ;;  %vm22988_vm8 = vmmov 0   ;;  %vm17272_vm9 = vcmask 130048  }
  0xcf   : > { %22955 = vsyncadd (%p29029_p8), [#allocation12], 4294964224  ;;  %p877_p11 = scmp.lt.s32.totalorder %s17579_s7, 3  ;;  %s29031_s13 = sld [smem:[#allocation27_spill]] }
  0xd0   : > { %s29032_s9 = sld [smem:[#allocation29_spill]]  ;;  %s29038_s26 = sld [smem:[#allocation32_spill]] }
  0xd1   : > { %s29064_s7 = smov (!%p877_p11, %s17579_s7), 3  ;;  %s29039_s0 = sld [smem:[#allocation31_spill]] }
  0xd2   : > { %s20421_s6 = smul.u32 36, %s29064_s7  ;;  %s29042_s5 = sld [smem:[#allocation34_spill]] }
  0xd3   : > { %s29043_s27 = sld [smem:[#allocation36_spill]]  ;;  %s29045_s7 = sld [smem:[#allocation33_spill]] }
  0xd4   : > { %v894_v0 = vld [vmem:[%s29030_s4] sm:$0xff]  ;;  %v895_v2 = vld [vmem:[%s29030_s4 + $0x8] sm:$0xff]  ;;  %s29047_s30 = sld [smem:[#allocation37_spill]]  ;;  %s29050_s28 = sld [smem:[#allocation20_spill]] }
  0xd5   : > { %v898_v1 = vld [vmem:[%s29030_s4 + $0x20] sm:$0xff]  ;;  %v899_v4 = vld [vmem:[%s29030_s4 + $0x28] sm:$0xff]  ;;  %s23438_s17 = scalar_lea.vmem %s29031_s13, %s20421_s6  ;;  %s29033_s6 = sld [smem:[#allocation30_spill]] }
  0xd6   : > { %v17591_v3 = vcombine.high %v894_v0, %v898_v1  ;;  %v17590_v5 = vcombine.low %v894_v0, %v898_v1  ;;  %v902_v6 = vld [vmem:[%s29030_s4 + $0x40] sm:$0xff]  ;;  %v17593_v8 = vcombine.high %v895_v2, %v899_v4  ;;  %v17592_v9 = vcombine.low %v895_v2, %v899_v4  ;;  %v903_v11 = vld [vmem:[%s29030_s4 + $0x48] sm:$0xff]  ;;  %s29046_s13 = sld [smem:[#allocation35_spill]]  ;;  %s19858_s10 = sshll.u32 %s23146_s8, 6 }
  0xd7   : > { %v906_v7 = vld [vmem:[%s29030_s4 + $0x60] sm:$0xff]  ;;  %v907_v12 = vld [vmem:[%s29030_s4 + $0x68] sm:$0xff] }
  0xd8   : > { %v17599_v10 = vcombine.high %v902_v6, %v906_v7  ;;  %v910_v13 = vld [vmem:[%s29030_s4 + $0x80] sm:$0xff]  ;;  %4438 = vmatprep.subr.bf16.mxu0 %v17591_v3  ;;  %v17601_v14 = vcombine.high %v903_v11, %v907_v12  ;;  %v911_v16 = vld [vmem:[%s29030_s4 + $0x88] sm:$0xff]  ;;  %4653 = vmatprep.subr.bf16.mxu1 %v17593_v8  ;;  %v17598_v18 = vcombine.low %v902_v6, %v906_v7 }
  0xd9   : > { %v914_v15 = vld [vmem:[%s29030_s4 + $0xa0] sm:$0xff]  ;;  %v915_v17 = vld [vmem:[%s29030_s4 + $0xa8] sm:$0xff]  ;;  %4439 = vmatpush1.bf16.msra.mxu0 %v17590_v5  ;;  %4654 = vmatpush1.bf16.msra.mxu1 %v17592_v9  ;;  %v17600_v19 = vcombine.low %v903_v11, %v907_v12 }
  0xda   : > { %4440 = vmatprep.subr.bf16.mxu0 %v17599_v10  ;;  %v17607_v20 = vcombine.high %v910_v13, %v914_v15  ;;  %4655 = vmatprep.subr.bf16.mxu1 %v17601_v14  ;;  %v17609_v21 = vcombine.high %v911_v16, %v915_v17  ;;  %v918_v22 = vld [vmem:[%s29030_s4 + $0xc0] sm:$0xff]  ;;  %v919_v24 = vld [vmem:[%s29030_s4 + $0xc8] sm:$0xff]  ;;  %v17606_v26 = vcombine.low %v910_v13, %v914_v15  ;;  %s873_s25 = sand.u32 1, %s29050_s28  }
  0xdb   : > { %v922_v23 = vld [vmem:[%s29030_s4 + $0xe0] sm:$0xff]  ;;  %v923_v25 = vld [vmem:[%s29030_s4 + $0xe8] sm:$0xff]  ;;  %v17608_v27 = vcombine.low %v911_v16, %v915_v17  ;;  %s17578_s3 = sshll.u32 %s873_s25, 2  ;;  %s17430_s28 = scalar_lea.sflag [#allocation4], %s873_s25 }
  0xdc   : > { %v17615_v28 = vcombine.high %v918_v22, %v922_v23  ;;  %v17617_v29 = vcombine.high %v919_v24, %v923_v25  ;;  %v926_v30 = vld [vmem:[%s29030_s4 + $0x100] sm:$0xff]  ;;  %v927_v32 = vld [vmem:[%s29030_s4 + $0x108] sm:$0xff]  ;;  %v17614_v34 = vcombine.low %v918_v22, %v922_v23  ;;  %v17616_v35 = vcombine.low %v919_v24, %v923_v25 }
  0xdd   : > { %4441 = vmatpush1.bf16.msra.mxu0 %v17598_v18  ;;  %4656 = vmatpush1.bf16.msra.mxu1 %v17600_v19  ;;  %v930_v31 = vld [vmem:[%s29030_s4 + $0x120] sm:$0xff]  ;;  %v931_v33 = vld [vmem:[%s29030_s4 + $0x128] sm:$0xff] }
  0xde   : > { %4442 = vmatprep.subr.bf16.mxu0 %v17607_v20  ;;  %4657 = vmatprep.subr.bf16.mxu1 %v17609_v21  ;;  %v17623_v36 = vcombine.high %v926_v30, %v930_v31  ;;  %v17625_v37 = vcombine.high %v927_v32, %v931_v33  ;;  %v934_v38 = vld [vmem:[%s29030_s4 + $0x140] sm:$0xff]  ;;  %v935_v40 = vld [vmem:[%s29030_s4 + $0x148] sm:$0xff]  ;;  %v17622_v42 = vcombine.low %v926_v30, %v930_v31 }
  0xdf   : > { %v938_v39 = vld [vmem:[%s29030_s4 + $0x160] sm:$0xff]  ;;  %v939_v41 = vld [vmem:[%s29030_s4 + $0x168] sm:$0xff]  ;;  %v17624_v43 = vcombine.low %v927_v32, %v931_v33 }
  0xe0   : > { %v17631_v44 = vcombine.high %v934_v38, %v938_v39  ;;  %v17633_v45 = vcombine.high %v935_v40, %v939_v41  ;;  %v942_v46 = vld [vmem:[%s29030_s4 + $0x180] sm:$0xff]  ;;  %v943_v48 = vld [vmem:[%s29030_s4 + $0x188] sm:$0xff]  ;;  %v17630_v50 = vcombine.low %v934_v38, %v938_v39  ;;  %v17632_v51 = vcombine.low %v935_v40, %v939_v41 }
  0xe1   : > { %4443 = vmatpush1.bf16.msra.mxu0 %v17606_v26  ;;  %4658 = vmatpush1.bf16.msra.mxu1 %v17608_v27  ;;  %v946_v47 = vld [vmem:[%s29030_s4 + $0x1a0] sm:$0xff]  ;;  %v947_v49 = vld [vmem:[%s29030_s4 + $0x1a8] sm:$0xff] }
  0xe2   : > { %4444 = vmatprep.subr.bf16.mxu0 %v17615_v28  ;;  %4659 = vmatprep.subr.bf16.mxu1 %v17617_v29  ;;  %v17639_v52 = vcombine.high %v942_v46, %v946_v47  ;;  %v17641_v53 = vcombine.high %v943_v48, %v947_v49  ;;  %v950_v54 = vld [vmem:[%s29030_s4 + $0x1c0] sm:$0xff]  ;;  %v951_v57 = vld [vmem:[%s29030_s4 + $0x1c8] sm:$0xff]  ;;  %v17638_v59 = vcombine.low %v942_v46, %v946_v47 }
  0xe3   : > { %v954_v55 = vld [vmem:[%s29030_s4 + $0x1e0] sm:$0xff]  ;;  %v955_v58 = vld [vmem:[%s29030_s4 + $0x1e8] sm:$0xff]  ;;  %v17640_v60 = vcombine.low %v943_v48, %v947_v49 }
  0xe4   : > { %v20529_v56 = vld [vmem:[%s23438_s17 + $0x4] ss:$36 sps:$4 sm:$0xff]   ;;  %v17647_v61 = vcombine.high %v950_v54, %v954_v55  ;;  %v17649_v62 = vcombine.high %v951_v57, %v955_v58  ;;  %v17646_v3 = vcombine.low %v950_v54, %v954_v55  ;;  %v17648_v4 = vcombine.low %v951_v57, %v955_v58 }
  0xe5   : > { %4445 = vmatpush1.bf16.msra.mxu0 %v17614_v34  ;;  %4660 = vmatpush1.bf16.msra.mxu1 %v17616_v35  ;;  %v958_v63 = vld [vmem:[%s29030_s4 + $0x200] sm:$0xff]  ;;  %v959_v1 = vld [vmem:[%s29030_s4 + $0x208] sm:$0xff] }
  0xe6   : > { %4446 = vmatprep.subr.bf16.mxu0 %v17623_v36  ;;  %4661 = vmatprep.subr.bf16.mxu1 %v17625_v37  ;;  %v962_v0 = vld [vmem:[%s29030_s4 + $0x220] sm:$0xff]  ;;  %v963_v2 = vld [vmem:[%s29030_s4 + $0x228] sm:$0xff] }
  0xe7   : > { %4470 = vmatprep.mubr.bf16.mxu0 %v20529_v56  ;;  %4685 = vmatprep.mubr.bf16.mxu1 %v20529_v56  ;;  %v17655_v5 = vcombine.high %v958_v63, %v962_v0  ;;  %v17657_v6 = vcombine.high %v959_v1, %v963_v2  ;;  %v966_v7 = vld [vmem:[%s29030_s4 + $0x240] sm:$0xff]  ;;  %v967_v9 = vld [vmem:[%s29030_s4 + $0x248] sm:$0xff]  ;;  %v17654_v11 = vcombine.low %v958_v63, %v962_v0 }
  0xe8   : > { %v970_v8 = vld [vmem:[%s29030_s4 + $0x260] sm:$0xff]  ;;  %v971_v10 = vld [vmem:[%s29030_s4 + $0x268] sm:$0xff]  ;;  %v17656_v12 = vcombine.low %v959_v1, %v963_v2 }
  0xe9   : > { %4447 = vmatpush1.bf16.msra.mxu0 %v17622_v42  ;;  %4662 = vmatpush1.bf16.msra.mxu1 %v17624_v43  ;;  %v17663_v13 = vcombine.high %v966_v7, %v970_v8  ;;  %v17665_v14 = vcombine.high %v967_v9, %v971_v10  ;;  %v974_v15 = vld [vmem:[%s29030_s4 + $0x280] sm:$0xff]  ;;  %v975_v17 = vld [vmem:[%s29030_s4 + $0x288] sm:$0xff]  ;;  %v17662_v19 = vcombine.low %v966_v7, %v970_v8 }
  0xea   : > { %4448 = vmatprep.subr.bf16.mxu0 %v17631_v44  ;;  %4663 = vmatprep.subr.bf16.mxu1 %v17633_v45  ;;  %v978_v16 = vld [vmem:[%s29030_s4 + $0x2a0] sm:$0xff]  ;;  %v979_v18 = vld [vmem:[%s29030_s4 + $0x2a8] sm:$0xff]  ;;  %v17664_v20 = vcombine.low %v967_v9, %v971_v10 }
  0xeb   : > { %v17671_v21 = vcombine.high %v974_v15, %v978_v16  ;;  %v17673_v22 = vcombine.high %v975_v17, %v979_v18  ;;  %v982_v23 = vld [vmem:[%s29030_s4 + $0x2c0] sm:$0xff]  ;;  %v983_v25 = vld [vmem:[%s29030_s4 + $0x2c8] sm:$0xff]  ;;  %v17670_v27 = vcombine.low %v974_v15, %v978_v16  ;;  %v17672_v28 = vcombine.low %v975_v17, %v979_v18 }
  0xec   : > { %v986_v24 = vld [vmem:[%s29030_s4 + $0x2e0] sm:$0xff]  ;;  %v987_v26 = vld [vmem:[%s29030_s4 + $0x2e8] sm:$0xff] }
  0xed   : > { %4449 = vmatpush1.bf16.msra.mxu0 %v17630_v50  ;;  %4664 = vmatpush1.bf16.msra.mxu1 %v17632_v51  ;;  %v17679_v29 = vcombine.high %v982_v23, %v986_v24  ;;  %v17681_v30 = vcombine.high %v983_v25, %v987_v26  ;;  %v990_v31 = vld [vmem:[%s29030_s4 + $0x300] sm:$0xff]  ;;  %v991_v33 = vld [vmem:[%s29030_s4 + $0x308] sm:$0xff]  ;;  %v17678_v35 = vcombine.low %v982_v23, %v986_v24 }
  0xee   : > { %4450 = vmatprep.subr.bf16.mxu0 %v17639_v52  ;;  %4665 = vmatprep.subr.bf16.mxu1 %v17641_v53  ;;  %v994_v32 = vld [vmem:[%s29030_s4 + $0x320] sm:$0xff]  ;;  %v995_v34 = vld [vmem:[%s29030_s4 + $0x328] sm:$0xff]  ;;  %v17680_v36 = vcombine.low %v983_v25, %v987_v26 }
  0xef   : > { %v17687_v37 = vcombine.high %v990_v31, %v994_v32  ;;  %v17689_v38 = vcombine.high %v991_v33, %v995_v34  ;;  %v998_v39 = vld [vmem:[%s29030_s4 + $0x340] sm:$0xff]  ;;  %v999_v41 = vld [vmem:[%s29030_s4 + $0x348] sm:$0xff]  ;;  %v17686_v43 = vcombine.low %v990_v31, %v994_v32  ;;  %v17688_v44 = vcombine.low %v991_v33, %v995_v34 }
  0xf0   : > { %v1002_v40 = vld [vmem:[%s29030_s4 + $0x360] sm:$0xff]  ;;  %v1003_v42 = vld [vmem:[%s29030_s4 + $0x368] sm:$0xff] }
  0xf1   : > { %4451 = vmatpush1.bf16.msra.mxu0 %v17638_v59  ;;  %4666 = vmatpush1.bf16.msra.mxu1 %v17640_v60  ;;  %v17695_v45 = vcombine.high %v998_v39, %v1002_v40  ;;  %v17697_v46 = vcombine.high %v999_v41, %v1003_v42  ;;  %v1006_v47 = vld [vmem:[%s29030_s4 + $0x380] sm:$0xff]  ;;  %v1007_v49 = vld [vmem:[%s29030_s4 + $0x388] sm:$0xff]  ;;  %v17694_v51 = vcombine.low %v998_v39, %v1002_v40 }
  0xf2   : > { %4452 = vmatprep.subr.bf16.mxu0 %v17647_v61  ;;  %4667 = vmatprep.subr.bf16.mxu1 %v17649_v62  ;;  %v1010_v48 = vld [vmem:[%s29030_s4 + $0x3a0] sm:$0xff]  ;;  %v1011_v50 = vld [vmem:[%s29030_s4 + $0x3a8] sm:$0xff]  ;;  %v17696_v52 = vcombine.low %v999_v41, %v1003_v42 }
  0xf3   : > { %v17703_v53 = vcombine.high %v1006_v47, %v1010_v48  ;;  %v17705_v54 = vcombine.high %v1007_v49, %v1011_v50  ;;  %v1014_v55 = vld [vmem:[%s29030_s4 + $0x3c0] sm:$0xff]  ;;  %v1015_v57 = vld [vmem:[%s29030_s4 + $0x3c8] sm:$0xff]  ;;  %v17702_v59 = vcombine.low %v1006_v47, %v1010_v48  ;;  %v17704_v60 = vcombine.low %v1007_v49, %v1011_v50 }
  0xf4   : > { %v1018_v56 = vld [vmem:[%s29030_s4 + $0x3e0] sm:$0xff]  ;;  %v1019_v58 = vld [vmem:[%s29030_s4 + $0x3e8] sm:$0xff] }
  0xf5   : > { %4453 = vmatpush1.bf16.msra.mxu0 %v17646_v3  ;;  %4668 = vmatpush1.bf16.msra.mxu1 %v17648_v4  ;;  %v17711_v61 = vcombine.high %v1014_v55, %v1018_v56  ;;  %v17713_v62 = vcombine.high %v1015_v57, %v1019_v58  ;;  %v1022_v63 = vld [vmem:[%s29030_s4 + $0x400] sm:$0xff]  ;;  %v1023_v1 = vld [vmem:[%s29030_s4 + $0x408] sm:$0xff]  ;;  %v17710_v3 = vcombine.low %v1014_v55, %v1018_v56 }
  0xf6   : > { %4454 = vmatprep.subr.bf16.mxu0 %v17655_v5  ;;  %4669 = vmatprep.subr.bf16.mxu1 %v17657_v6  ;;  %v1026_v0 = vld [vmem:[%s29030_s4 + $0x420] sm:$0xff]  ;;  %v1027_v2 = vld [vmem:[%s29030_s4 + $0x428] sm:$0xff]  ;;  %v17712_v4 = vcombine.low %v1015_v57, %v1019_v58 }
  0xf7   : > { %v17719_v5 = vcombine.high %v1022_v63, %v1026_v0  ;;  %v17721_v6 = vcombine.high %v1023_v1, %v1027_v2  ;;  %v1030_v7 = vld [vmem:[%s29030_s4 + $0x440] sm:$0xff]  ;;  %v1031_v10 = vld [vmem:[%s29030_s4 + $0x448] sm:$0xff] }
  0xf8   : > { %v1034_v8 = vld [vmem:[%s29030_s4 + $0x460] sm:$0xff]  ;;  %v20532_v18 = vld [vmem:[%s23438_s17 + $0xc] ss:$36 sps:$4 sm:$0xff]  }
  0xf9   : > { %4455 = vmatpush1.bf16.msra.mxu0 %v17654_v11  ;;  %4670 = vmatpush1.bf16.msra.mxu1 %v17656_v12  ;;  %v20531_v9 = vld [vmem:[%s23438_s17] ss:$36 sps:$4 sm:$0xff]   ;;  %v1035_v11 = vld [vmem:[%s29030_s4 + $0x468] sm:$0xff]  ;;  %v17718_v12 = vcombine.low %v1022_v63, %v1026_v0 }
  0xfa   : > { %4456 = vmatprep.subr.bf16.mxu0 %v17663_v13  ;;  %4671 = vmatprep.subr.bf16.mxu1 %v17665_v14  ;;  %v17720_v13 = vcombine.low %v1023_v1, %v1027_v2  ;;  %v17727_v14 = vcombine.high %v1030_v7, %v1034_v8  ;;  %v1038_v15 = vld [vmem:[%s29030_s4 + $0x480] sm:$0xff]  ;;  %v17729_v16 = vcombine.high %v1031_v10, %v1035_v11  ;;  %v1055_v34 = vld [vmem:[%s29030_s4 + $0x508] sm:$0xff] }
  0xfb   : > { %v1042_v17 = vld [vmem:[%s29030_s4 + $0x4a0] sm:$0xff]  ;;  %v1063_v42 = vld [vmem:[%s29030_s4 + $0x548] sm:$0xff] }
  0xfc   : > { %v17735_v23 = vcombine.high %v1038_v15, %v1042_v17  ;;  %v1046_v24 = vld [vmem:[%s29030_s4 + $0x4c0] sm:$0xff]  ;;  %v1071_v50 = vld [vmem:[%s29030_s4 + $0x588] sm:$0xff] }
  0xfd   : > { %4457 = vmatpush1.bf16.msra.mxu0 %v17662_v19  ;;  %4672 = vmatpush1.bf16.msra.mxu1 %v17664_v20  ;;  %v1039_v19 = vld [vmem:[%s29030_s4 + $0x488] sm:$0xff]  ;;  %v1050_v25 = vld [vmem:[%s29030_s4 + $0x4e0] sm:$0xff] }
  0xfe   : > { %4458 = vmatprep.subr.bf16.mxu0 %v17671_v21  ;;  %4673 = vmatprep.subr.bf16.mxu1 %v17673_v22  ;;  %v1043_v20 = vld [vmem:[%s29030_s4 + $0x4a8] sm:$0xff]  ;;  %v17726_v21 = vcombine.low %v1030_v7, %v1034_v8  ;;  %v17728_v22 = vcombine.low %v1031_v10, %v1035_v11  ;;  %v17743_v31 = vcombine.high %v1046_v24, %v1050_v25  ;;  %v1054_v32 = vld [vmem:[%s29030_s4 + $0x500] sm:$0xff] }
  0xff   : > { %v17737_v26 = vcombine.high %v1039_v19, %v1043_v20  ;;  %v1058_v33 = vld [vmem:[%s29030_s4 + $0x520] sm:$0xff]  ;;  %v1079_v58 = vld [vmem:[%s29030_s4 + $0x5c8] sm:$0xff] }
 0x100   : > { %v17751_v39 = vcombine.high %v1054_v32, %v1058_v33  ;;  %v1062_v40 = vld [vmem:[%s29030_s4 + $0x540] sm:$0xff]  ;;  %v1087_v2 = vld [vmem:[%s29030_s4 + $0x608] sm:$0xff] }
 0x101   : > { %4459 = vmatpush1.bf16.msra.mxu0 %v17670_v27  ;;  %4674 = vmatpush1.bf16.msra.mxu1 %v17672_v28  ;;  %v1047_v27 = vld [vmem:[%s29030_s4 + $0x4c8] sm:$0xff]  ;;  %v1066_v41 = vld [vmem:[%s29030_s4 + $0x560] sm:$0xff] }
 0x102   : > { %4460 = vmatprep.subr.bf16.mxu0 %v17679_v29  ;;  %4675 = vmatprep.subr.bf16.mxu1 %v17681_v30  ;;  %v1051_v28 = vld [vmem:[%s29030_s4 + $0x4e8] sm:$0xff]  ;;  %v17734_v29 = vcombine.low %v1038_v15, %v1042_v17  ;;  %v17736_v30 = vcombine.low %v1039_v19, %v1043_v20  ;;  %v17759_v47 = vcombine.high %v1062_v40, %v1066_v41  ;;  %v1070_v48 = vld [vmem:[%s29030_s4 + $0x580] sm:$0xff] }
 0x103   : > { %v1074_v49 = vld [vmem:[%s29030_s4 + $0x5a0] sm:$0xff]  ;;  %v1095_v10 = vld [vmem:[%s29030_s4 + $0x648] sm:$0xff] }
 0x104   : > { %v17767_v55 = vcombine.high %v1070_v48, %v1074_v49  ;;  %v1078_v56 = vld [vmem:[%s29030_s4 + $0x5c0] sm:$0xff]  ;;  %v1107_v20 = vld [vmem:[%s29030_s4 + $0x6a8] sm:$0xff] }
 0x105   : > { %4461 = vmatpush1.bf16.msra.mxu0 %v17678_v35  ;;  %4676 = vmatpush1.bf16.msra.mxu1 %v17680_v36  ;;  %v17745_v35 = vcombine.high %v1047_v27, %v1051_v28  ;;  %v1059_v36 = vld [vmem:[%s29030_s4 + $0x528] sm:$0xff]  ;;  %v1082_v57 = vld [vmem:[%s29030_s4 + $0x5e0] sm:$0xff] }
 0x106   : > { %4462 = vmatprep.subr.bf16.mxu0 %v17687_v37  ;;  %4677 = vmatprep.subr.bf16.mxu1 %v17689_v38  ;;  %v17742_v37 = vcombine.low %v1046_v24, %v1050_v25  ;;  %v17744_v38 = vcombine.low %v1047_v27, %v1051_v28  ;;  %v17775_v63 = vcombine.high %v1078_v56, %v1082_v57  ;;  %v1086_v0 = vld [vmem:[%s29030_s4 + $0x600] sm:$0xff]  ;;  %v1115_v28 = vld [vmem:[%s29030_s4 + $0x6e8] sm:$0xff] }
 0x107   : > { %v1090_v1 = vld [vmem:[%s29030_s4 + $0x620] sm:$0xff] }
 0x108   : > { %v17783_v7 = vcombine.high %v1086_v0, %v1090_v1  ;;  %v1094_v8 = vld [vmem:[%s29030_s4 + $0x640] sm:$0xff] }
 0x109   : > { %4463 = vmatpush1.bf16.msra.mxu0 %v17686_v43  ;;  %4678 = vmatpush1.bf16.msra.mxu1 %v17688_v44  ;;  %v17753_v43 = vcombine.high %v1055_v34, %v1059_v36  ;;  %v1067_v44 = vld [vmem:[%s29030_s4 + $0x568] sm:$0xff]  ;;  %v1106_v17 = vld [vmem:[%s29030_s4 + $0x6a0] sm:$0xff] }
 0x10a   : > { %4464 = vmatprep.subr.bf16.mxu0 %v17695_v45  ;;  %4679 = vmatprep.subr.bf16.mxu1 %v17697_v46  ;;  %v17750_v45 = vcombine.low %v1054_v32, %v1058_v33  ;;  %v17752_v46 = vcombine.low %v1055_v34, %v1059_v36  ;;  %v1110_v24 = vld [vmem:[%s29030_s4 + $0x6c0] sm:$0xff]  ;;  %v1119_v34 = vld [vmem:[%s29030_s4 + $0x708] sm:$0xff] }
 0x10b   : > { %v1114_v25 = vld [vmem:[%s29030_s4 + $0x6e0] sm:$0xff]  ;;  %v1123_v36 = vld [vmem:[%s29030_s4 + $0x728] sm:$0xff] }
 0x10c   : > { %v1118_v32 = vld [vmem:[%s29030_s4 + $0x700] sm:$0xff] }
 0x10d   : > { %4465 = vmatpush1.bf16.msra.mxu0 %v17694_v51  ;;  %4680 = vmatpush1.bf16.msra.mxu1 %v17696_v52  ;;  %v17761_v51 = vcombine.high %v1063_v42, %v1067_v44  ;;  %v1075_v52 = vld [vmem:[%s29030_s4 + $0x5a8] sm:$0xff]  ;;  %v1122_v33 = vld [vmem:[%s29030_s4 + $0x720] sm:$0xff] }
 0x10e   : > { %4466 = vmatprep.subr.bf16.mxu0 %v17703_v53  ;;  %4681 = vmatprep.subr.bf16.mxu1 %v17705_v54  ;;  %v17758_v53 = vcombine.low %v1062_v40, %v1066_v41  ;;  %v17760_v54 = vcombine.low %v1063_v42, %v1067_v44  ;;  %v1126_v40 = vld [vmem:[%s29030_s4 + $0x740] sm:$0xff]  ;;  %v1127_v42 = vld [vmem:[%s29030_s4 + $0x748] sm:$0xff] }
 0x10f   : > { %v1130_v41 = vld [vmem:[%s29030_s4 + $0x760] sm:$0xff]  ;;  %v1131_v44 = vld [vmem:[%s29030_s4 + $0x768] sm:$0xff] }
 0x111   : > { %4467 = vmatpush1.bf16.msra.mxu0 %v17702_v59  ;;  %4682 = vmatpush1.bf16.msra.mxu1 %v17704_v60  ;;  %v17769_v59 = vcombine.high %v1071_v50, %v1075_v52  ;;  %v1083_v60 = vld [vmem:[%s29030_s4 + $0x5e8] sm:$0xff] }
 0x112   : > { %4468 = vmatprep.subr.bf16.mxu0 %v17711_v61  ;;  %4683 = vmatprep.subr.bf16.mxu1 %v17713_v62  ;;  %v17766_v61 = vcombine.low %v1070_v48, %v1074_v49  ;;  %v17768_v62 = vcombine.low %v1071_v50, %v1075_v52  ;;  %v1134_v48 = vld [vmem:[%s29030_s4 + $0x780] sm:$0xff]  ;;  %v1135_v50 = vld [vmem:[%s29030_s4 + $0x788] sm:$0xff] }
 0x113   : > { %v1138_v49 = vld [vmem:[%s29030_s4 + $0x7a0] sm:$0xff]  ;;  %v1139_v52 = vld [vmem:[%s29030_s4 + $0x7a8] sm:$0xff] }
 0x115   : > { %4469 = vmatpush1.bf16.msra.mxu0 %v17710_v3  ;;  %4684 = vmatpush1.bf16.msra.mxu1 %v17712_v4  ;;  %v17777_v3 = vcombine.high %v1079_v58, %v1083_v60  ;;  %v1091_v4 = vld [vmem:[%s29030_s4 + $0x628] sm:$0xff] }
 0x116   : > { %4481 = vmatprep.subr.bf16.mxu0 %v17719_v5  ;;  %4696 = vmatprep.subr.bf16.mxu1 %v17721_v6  ;;  %v17774_v5 = vcombine.low %v1078_v56, %v1082_v57  ;;  %v17776_v6 = vcombine.low %v1079_v58, %v1083_v60  ;;  %v17785_v11 = vcombine.high %v1087_v2, %v1091_v4  ;;  %v1142_v56 = vld [vmem:[%s29030_s4 + $0x7c0] sm:$0xff]  ;;  %v1143_v58 = vld [vmem:[%s29030_s4 + $0x7c8] sm:$0xff] }
 0x117   : > { %v1146_v57 = vld [vmem:[%s29030_s4 + $0x7e0] sm:$0xff]  ;;  %v1147_v60 = vld [vmem:[%s29030_s4 + $0x7e8] sm:$0xff] }
 0x118   : > { %4471 = vmatmul.mubr.bf16.vlgmr.msra.gmra.mrb[0].mxu0 %v20531_v9  ;;  %4686 = vmatmul.mubr.bf16.vlgmr.msra.gmra.mrb[0].mxu1 %v20531_v9  ;;  %v1098_v9 = vld [vmem:[%s29030_s4 + $0x660] sm:$0xff] }
 0x119   : > { %4482 = vmatpush1.bf16.msra.mxu0 %v17718_v12  ;;  %4697 = vmatpush1.bf16.msra.mxu1 %v17720_v13  ;;  %v1099_v12 = vld [vmem:[%s29030_s4 + $0x668] sm:$0xff]  ;;  %v17782_v13 = vcombine.low %v1086_v0, %v1090_v1  ;;  %v17791_v15 = vcombine.high %v1094_v8, %v1098_v9  ;;  %v1150_v0 = vld [vmem:[%s29030_s4 + $0x800] sm:$0xff] }
 0x11a   : > { %4483 = vmatprep.subr.bf16.mxu0 %v17727_v14  ;;  %4698 = vmatprep.subr.bf16.mxu1 %v17729_v16  ;;  %v17784_v14 = vcombine.low %v1087_v2, %v1091_v4  ;;  %v1102_v16 = vld [vmem:[%s29030_s4 + $0x680] sm:$0xff]  ;;  %v17793_v19 = vcombine.high %v1095_v10, %v1099_v12  ;;  %v1151_v2 = vld [vmem:[%s29030_s4 + $0x808] sm:$0xff] }
 0x11b   : > { %4513 = vmatprep.mubr.bf16.mxu0 %v20532_v18  ;;  %4728 = vmatprep.mubr.bf16.mxu1 %v20532_v18  ;;  %v1103_v18 = vld [vmem:[%s29030_s4 + $0x688] sm:$0xff]  ;;  %v1154_v1 = vld [vmem:[%s29030_s4 + $0x820] sm:$0xff] }
 0x11c   : > { %v17801_v27 = vcombine.high %v1103_v18, %v1107_v20  ;;  %v1155_v4 = vld [vmem:[%s29030_s4 + $0x828] sm:$0xff] }
 0x11d   : > { %4484 = vmatpush1.bf16.msra.mxu0 %v17726_v21  ;;  %4699 = vmatpush1.bf16.msra.mxu1 %v17728_v22  ;;  %v17790_v21 = vcombine.low %v1094_v8, %v1098_v9  ;;  %v17792_v22 = vcombine.low %v1095_v10, %v1099_v12  ;;  %v20534_v8 = vld [vmem:[%s23438_s17 + $0x8] ss:$36 sps:$4 sm:$0xff]   ;;  %v1158_v9 = vld [vmem:[%s29030_s4 + $0x840] sm:$0xff]  ;;  %v17849_v12 = vcombine.high %v1151_v2, %v1155_v4 }
 0x11e   : > { %4485 = vmatprep.subr.bf16.mxu0 %v17735_v23  ;;  %4700 = vmatprep.subr.bf16.mxu1 %v17737_v26  ;;  %v17799_v23 = vcombine.high %v1102_v16, %v1106_v17  ;;  %v1111_v26 = vld [vmem:[%s29030_s4 + $0x6c8] sm:$0xff]  ;;  %v1162_v10 = vld [vmem:[%s29030_s4 + $0x860] sm:$0xff] }
 0x121   : > { %4486 = vmatpush1.bf16.msra.mxu0 %v17734_v29  ;;  %4701 = vmatpush1.bf16.msra.mxu1 %v17736_v30  ;;  %v17798_v29 = vcombine.low %v1102_v16, %v1106_v17  ;;  %v17800_v30 = vcombine.low %v1103_v18, %v1107_v20  ;;  %v17855_v16 = vcombine.high %v1158_v9, %v1162_v10  ;;  %v1166_v17 = vld [vmem:[%s29030_s4 + $0x880] sm:$0xff]  ;;  %v1167_v20 = vld [vmem:[%s29030_s4 + $0x888] sm:$0xff] }
 0x122   : > { %4487 = vmatprep.subr.bf16.mxu0 %v17743_v31  ;;  %4702 = vmatprep.subr.bf16.mxu1 %v17745_v35  ;;  %v17807_v31 = vcombine.high %v1110_v24, %v1114_v25  ;;  %v17809_v35 = vcombine.high %v1111_v26, %v1115_v28  ;;  %v1170_v18 = vld [vmem:[%s29030_s4 + $0x8a0] sm:$0xff] }
 0x125   : > { %4488 = vmatpush1.bf16.msra.mxu0 %v17742_v37  ;;  %4703 = vmatpush1.bf16.msra.mxu1 %v17744_v38  ;;  %v17806_v37 = vcombine.low %v1110_v24, %v1114_v25  ;;  %v17808_v38 = vcombine.low %v1111_v26, %v1115_v28  ;;  %v17863_v25 = vcombine.high %v1166_v17, %v1170_v18  ;;  %v1174_v26 = vld [vmem:[%s29030_s4 + $0x8c0] sm:$0xff]  ;;  %v1175_v28 = vld [vmem:[%s29030_s4 + $0x8c8] sm:$0xff] }
 0x126   : > { %4489 = vmatprep.subr.bf16.mxu0 %v17751_v39  ;;  %4704 = vmatprep.subr.bf16.mxu1 %v17753_v43  ;;  %v17815_v39 = vcombine.high %v1118_v32, %v1122_v33  ;;  %v17817_v43 = vcombine.high %v1119_v34, %v1123_v36 }
 0x129   : > { %4490 = vmatpush1.bf16.msra.mxu0 %v17750_v45  ;;  %4705 = vmatpush1.bf16.msra.mxu1 %v17752_v46  ;;  %v17814_v45 = vcombine.low %v1118_v32, %v1122_v33  ;;  %v17816_v46 = vcombine.low %v1119_v34, %v1123_v36  ;;  %v1182_v34 = vld [vmem:[%s29030_s4 + $0x900] sm:$0xff]  ;;  %v1183_v36 = vld [vmem:[%s29030_s4 + $0x908] sm:$0xff] }
 0x12a   : > { %4491 = vmatprep.subr.bf16.mxu0 %v17759_v47  ;;  %4706 = vmatprep.subr.bf16.mxu1 %v17761_v51  ;;  %v17823_v47 = vcombine.high %v1126_v40, %v1130_v41  ;;  %v17825_v51 = vcombine.high %v1127_v42, %v1131_v44 }
 0x12d   : > { %4492 = vmatpush1.bf16.msra.mxu0 %v17758_v53  ;;  %4707 = vmatpush1.bf16.msra.mxu1 %v17760_v54  ;;  %v17822_v53 = vcombine.low %v1126_v40, %v1130_v41  ;;  %v17824_v54 = vcombine.low %v1127_v42, %v1131_v44  ;;  %v1190_v42 = vld [vmem:[%s29030_s4 + $0x940] sm:$0xff]  ;;  %v1191_v44 = vld [vmem:[%s29030_s4 + $0x948] sm:$0xff] }
 0x12e   : > { %4493 = vmatprep.subr.bf16.mxu0 %v17767_v55  ;;  %4708 = vmatprep.subr.bf16.mxu1 %v17769_v59  ;;  %v17831_v55 = vcombine.high %v1134_v48, %v1138_v49  ;;  %v17833_v59 = vcombine.high %v1135_v50, %v1139_v52 }
 0x131   : > { %4494 = vmatpush1.bf16.msra.mxu0 %v17766_v61  ;;  %4709 = vmatpush1.bf16.msra.mxu1 %v17768_v62  ;;  %v17830_v61 = vcombine.low %v1134_v48, %v1138_v49  ;;  %v17832_v62 = vcombine.low %v1135_v50, %v1139_v52  ;;  %v1198_v50 = vld [vmem:[%s29030_s4 + $0x980] sm:$0xff]  ;;  %v1199_v52 = vld [vmem:[%s29030_s4 + $0x988] sm:$0xff] }
 0x132   : > { %4495 = vmatprep.subr.bf16.mxu0 %v17775_v63  ;;  %4710 = vmatprep.subr.bf16.mxu1 %v17777_v3  ;;  %v17839_v63 = vcombine.high %v1142_v56, %v1146_v57  ;;  %v17841_v3 = vcombine.high %v1143_v58, %v1147_v60 }
 0x135   : > { %4496 = vmatpush1.bf16.msra.mxu0 %v17774_v5  ;;  %4711 = vmatpush1.bf16.msra.mxu1 %v17776_v6  ;;  %v17838_v5 = vcombine.low %v1142_v56, %v1146_v57  ;;  %v17840_v6 = vcombine.low %v1143_v58, %v1147_v60  ;;  %v1206_v58 = vld [vmem:[%s29030_s4 + $0x9c0] sm:$0xff]  ;;  %v1207_v60 = vld [vmem:[%s29030_s4 + $0x9c8] sm:$0xff] }
 0x136   : > { %4497 = vmatprep.subr.bf16.mxu0 %v17783_v7  ;;  %4712 = vmatprep.subr.bf16.mxu1 %v17785_v11  ;;  %v17847_v7 = vcombine.high %v1150_v0, %v1154_v1  ;;  %v1159_v11 = vld [vmem:[%s29030_s4 + $0x848] sm:$0xff] }
 0x139   : > { %4498 = vmatpush1.bf16.msra.mxu0 %v17782_v13  ;;  %4713 = vmatpush1.bf16.msra.mxu1 %v17784_v14  ;;  %v1163_v13 = vld [vmem:[%s29030_s4 + $0x868] sm:$0xff]  ;;  %v17846_v14 = vcombine.low %v1150_v0, %v1154_v1 }
 0x13a   : > { %4499 = vmatprep.subr.bf16.mxu0 %v17791_v15  ;;  %4714 = vmatprep.subr.bf16.mxu1 %v17793_v19  ;;  %v17848_v15 = vcombine.low %v1151_v2, %v1155_v4  ;;  %v17857_v19 = vcombine.high %v1159_v11, %v1163_v13  ;;  %v17856_v24 = vcombine.low %v1159_v11, %v1163_v13  ;;  %v1214_v2 = vld [vmem:[%s29030_s4 + $0xa00] sm:$0xff]  ;;  %v1215_v4 = vld [vmem:[%s29030_s4 + $0xa08] sm:$0xff] }
 0x13b   : > { %v1226_v11 = vld [vmem:[%s29030_s4 + $0xa60] sm:$0xff] }
 0x13d   : > { %4500 = vmatpush1.bf16.msra.mxu0 %v17790_v21  ;;  %4715 = vmatpush1.bf16.msra.mxu1 %v17792_v22  ;;  %v1171_v21 = vld [vmem:[%s29030_s4 + $0x8a8] sm:$0xff]  ;;  %v20535_v22 = vld [vmem:[%s23438_s17 + $0x14] ss:$36 sps:$4 sm:$0xff]  }
 0x13e   : > { %4501 = vmatprep.subr.bf16.mxu0 %v17799_v23  ;;  %4716 = vmatprep.subr.bf16.mxu1 %v17801_v27  ;;  %v17854_v23 = vcombine.low %v1158_v9, %v1162_v10  ;;  %v1178_v27 = vld [vmem:[%s29030_s4 + $0x8e0] sm:$0xff]  ;;  %v17864_v32 = vcombine.low %v1167_v20, %v1171_v21 }
 0x13f   : > { %v17871_v33 = vcombine.high %v1174_v26, %v1178_v27  ;;  %v1222_v10 = vld [vmem:[%s29030_s4 + $0xa40] sm:$0xff] }
 0x141   : > { %4502 = vmatpush1.bf16.msra.mxu0 %v17798_v29  ;;  %4717 = vmatpush1.bf16.msra.mxu1 %v17800_v30  ;;  %v17865_v29 = vcombine.high %v1167_v20, %v1171_v21  ;;  %v1179_v30 = vld [vmem:[%s29030_s4 + $0x8e8] sm:$0xff] }
 0x142   : > { %4503 = vmatprep.subr.bf16.mxu0 %v17807_v31  ;;  %4718 = vmatprep.subr.bf16.mxu1 %v17809_v35  ;;  %v17862_v31 = vcombine.low %v1166_v17, %v1170_v18  ;;  %v1186_v35 = vld [vmem:[%s29030_s4 + $0x920] sm:$0xff]  ;;  %v17872_v40 = vcombine.low %v1175_v28, %v1179_v30  ;;  %v17919_v17 = vcombine.high %v1222_v10, %v1226_v11  ;;  %v1231_v21 = vld [vmem:[%s29030_s4 + $0xa88] sm:$0xff] }
 0x143   : > { %v17879_v41 = vcombine.high %v1182_v34, %v1186_v35  ;;  %v1230_v18 = vld [vmem:[%s29030_s4 + $0xa80] sm:$0xff] }
 0x145   : > { %4504 = vmatpush1.bf16.msra.mxu0 %v17806_v37  ;;  %4719 = vmatpush1.bf16.msra.mxu1 %v17808_v38  ;;  %v17873_v37 = vcombine.high %v1175_v28, %v1179_v30  ;;  %v1187_v38 = vld [vmem:[%s29030_s4 + $0x928] sm:$0xff] }
 0x146   : > { %4505 = vmatprep.subr.bf16.mxu0 %v17815_v39  ;;  %4720 = vmatprep.subr.bf16.mxu1 %v17817_v43  ;;  %v17870_v39 = vcombine.low %v1174_v26, %v1178_v27  ;;  %v1194_v43 = vld [vmem:[%s29030_s4 + $0x960] sm:$0xff]  ;;  %v17880_v48 = vcombine.low %v1183_v36, %v1187_v38  ;;  %v1239_v28 = vld [vmem:[%s29030_s4 + $0xac8] sm:$0xff] }
 0x147   : > { %v17887_v49 = vcombine.high %v1190_v42, %v1194_v43  ;;  %v1238_v26 = vld [vmem:[%s29030_s4 + $0xac0] sm:$0xff]  ;;  %v1243_v30 = vld [vmem:[%s29030_s4 + $0xae8] sm:$0xff] }
 0x148   : > { %v1242_v27 = vld [vmem:[%s29030_s4 + $0xae0] sm:$0xff] }
 0x149   : > { %4506 = vmatpush1.bf16.msra.mxu0 %v17814_v45  ;;  %4721 = vmatpush1.bf16.msra.mxu1 %v17816_v46  ;;  %v17881_v45 = vcombine.high %v1183_v36, %v1187_v38  ;;  %v1195_v46 = vld [vmem:[%s29030_s4 + $0x968] sm:$0xff] }
 0x14a   : > { %4507 = vmatprep.subr.bf16.mxu0 %v17823_v47  ;;  %4722 = vmatprep.subr.bf16.mxu1 %v17825_v51  ;;  %v17878_v47 = vcombine.low %v1182_v34, %v1186_v35  ;;  %v1202_v51 = vld [vmem:[%s29030_s4 + $0x9a0] sm:$0xff]  ;;  %v17888_v56 = vcombine.low %v1191_v44, %v1195_v46  ;;  %v1247_v36 = vld [vmem:[%s29030_s4 + $0xb08] sm:$0xff] }
 0x14b   : > { %v17895_v57 = vcombine.high %v1198_v50, %v1202_v51  ;;  %v1246_v34 = vld [vmem:[%s29030_s4 + $0xb00] sm:$0xff]  ;;  %v1251_v38 = vld [vmem:[%s29030_s4 + $0xb28] sm:$0xff] }
 0x14c   : > { %v1250_v35 = vld [vmem:[%s29030_s4 + $0xb20] sm:$0xff] }
 0x14d   : > { %4508 = vmatpush1.bf16.msra.mxu0 %v17822_v53  ;;  %4723 = vmatpush1.bf16.msra.mxu1 %v17824_v54  ;;  %v17889_v53 = vcombine.high %v1191_v44, %v1195_v46  ;;  %v1203_v54 = vld [vmem:[%s29030_s4 + $0x9a8] sm:$0xff] }
 0x14e   : > { %4509 = vmatprep.subr.bf16.mxu0 %v17831_v55  ;;  %4724 = vmatprep.subr.bf16.mxu1 %v17833_v59  ;;  %v17886_v55 = vcombine.low %v1190_v42, %v1194_v43  ;;  %v1210_v59 = vld [vmem:[%s29030_s4 + $0x9e0] sm:$0xff]  ;;  %v17896_v0 = vcombine.low %v1199_v52, %v1203_v54  ;;  %v1255_v44 = vld [vmem:[%s29030_s4 + $0xb48] sm:$0xff] }
 0x14f   : > { %v17903_v1 = vcombine.high %v1206_v58, %v1210_v59  ;;  %v1254_v42 = vld [vmem:[%s29030_s4 + $0xb40] sm:$0xff]  ;;  %v1259_v46 = vld [vmem:[%s29030_s4 + $0xb68] sm:$0xff] }
 0x150   : > { %v1258_v43 = vld [vmem:[%s29030_s4 + $0xb60] sm:$0xff] }
 0x151   : > { %4510 = vmatpush1.bf16.msra.mxu0 %v17830_v61  ;;  %4725 = vmatpush1.bf16.msra.mxu1 %v17832_v62  ;;  %v17897_v61 = vcombine.high %v1199_v52, %v1203_v54  ;;  %v1211_v62 = vld [vmem:[%s29030_s4 + $0x9e8] sm:$0xff] }
 0x152   : > { %4511 = vmatprep.subr.bf16.mxu0 %v17839_v63  ;;  %4726 = vmatprep.subr.bf16.mxu1 %v17841_v3  ;;  %v17894_v63 = vcombine.low %v1198_v50, %v1202_v51  ;;  %v1218_v3 = vld [vmem:[%s29030_s4 + $0xa20] sm:$0xff]  ;;  %v1263_v52 = vld [vmem:[%s29030_s4 + $0xb88] sm:$0xff] }
 0x153   : > { %v17911_v9 = vcombine.high %v1214_v2, %v1218_v3  ;;  %v1262_v50 = vld [vmem:[%s29030_s4 + $0xb80] sm:$0xff]  ;;  %v1267_v54 = vld [vmem:[%s29030_s4 + $0xba8] sm:$0xff] }
 0x154   : > { %v1266_v51 = vld [vmem:[%s29030_s4 + $0xba0] sm:$0xff] }
 0x155   : > { %4512 = vmatpush1.bf16.msra.mxu0 %v17838_v5  ;;  %4727 = vmatpush1.bf16.msra.mxu1 %v17840_v6  ;;  %v17905_v5 = vcombine.high %v1207_v60, %v1211_v62  ;;  %v1219_v6 = vld [vmem:[%s29030_s4 + $0xa28] sm:$0xff] }
 0x156   : > { %4524 = vmatprep.subr.bf16.mxu0 %v17847_v7  ;;  %4739 = vmatprep.subr.bf16.mxu1 %v17849_v12  ;;  %v17902_v7 = vcombine.low %v1206_v58, %v1210_v59  ;;  %v1223_v12 = vld [vmem:[%s29030_s4 + $0xa48] sm:$0xff]  ;;  %v17913_v13 = vcombine.high %v1215_v4, %v1219_v6  ;;  %v1270_v58 = vld [vmem:[%s29030_s4 + $0xbc0] sm:$0xff] }
 0x157   : > { %v1274_v59 = vld [vmem:[%s29030_s4 + $0xbe0] sm:$0xff] }
 0x158   : > { %4514 = vmatmul.mubr.bf16.vlgmr.msra.gmra.mrb[0].mxu0 %v20534_v8  ;;  %4729 = vmatmul.mubr.bf16.vlgmr.msra.gmra.mrb[0].mxu1 %v20534_v8  ;;  %v17904_v8 = vcombine.low %v1207_v60, %v1211_v62  ;;  %v1271_v60 = vld [vmem:[%s29030_s4 + $0xbc8] sm:$0xff] }
 0x159   : > { %4525 = vmatpush1.bf16.msra.mxu0 %v17846_v14  ;;  %4740 = vmatpush1.bf16.msra.mxu1 %v17848_v15  ;;  %v1227_v14 = vld [vmem:[%s29030_s4 + $0xa68] sm:$0xff]  ;;  %v17910_v15 = vcombine.low %v1214_v2, %v1218_v3  ;;  %v1278_v2 = vld [vmem:[%s29030_s4 + $0xc00] sm:$0xff] }
 0x15a   : > { %4526 = vmatprep.subr.bf16.mxu0 %v17855_v16  ;;  %4741 = vmatprep.subr.bf16.mxu1 %v17857_v19  ;;  %v17912_v16 = vcombine.low %v1215_v4, %v1219_v6  ;;  %v1234_v19 = vld [vmem:[%s29030_s4 + $0xaa0] sm:$0xff]  ;;  %v17921_v20 = vcombine.high %v1223_v12, %v1227_v14  ;;  %v1275_v62 = vld [vmem:[%s29030_s4 + $0xbe8] sm:$0xff] }
 0x15b   : > { %4556 = vmatprep.mubr.bf16.mxu0 %v20535_v22  ;;  %4771 = vmatprep.mubr.bf16.mxu1 %v20535_v22  ;;  %v1235_v22 = vld [vmem:[%s29030_s4 + $0xaa8] sm:$0xff]  ;;  %v1282_v3 = vld [vmem:[%s29030_s4 + $0xc20] sm:$0xff] }
 0x15c   : > { %v1279_v4 = vld [vmem:[%s29030_s4 + $0xc08] sm:$0xff] }
 0x15d   : > { %4527 = vmatpush1.bf16.msra.mxu0 %v17854_v23  ;;  %4742 = vmatpush1.bf16.msra.mxu1 %v17856_v24  ;;  %v17918_v23 = vcombine.low %v1222_v10, %v1226_v11  ;;  %v17920_v24 = vcombine.low %v1223_v12, %v1227_v14  ;;  %v1283_v6 = vld [vmem:[%s29030_s4 + $0xc28] sm:$0xff]  ;;  %v20537_v10 = vld [vmem:[%s23438_s17 + $0x10] ss:$36 sps:$4 sm:$0xff]   ;;  %v1286_v11 = vld [vmem:[%s29030_s4 + $0xc40] sm:$0xff] }
 0x15e   : > { %4528 = vmatprep.subr.bf16.mxu0 %v17863_v25  ;;  %4743 = vmatprep.subr.bf16.mxu1 %v17865_v29  ;;  %v17927_v25 = vcombine.high %v1230_v18, %v1234_v19  ;;  %v17929_v29 = vcombine.high %v1231_v21, %v1235_v22  ;;  %v1290_v12 = vld [vmem:[%s29030_s4 + $0xc60] sm:$0xff]  ;;  %v17977_v14 = vcombine.high %v1279_v4, %v1283_v6 }
 0x161   : > { %4529 = vmatpush1.bf16.msra.mxu0 %v17862_v31  ;;  %4744 = vmatpush1.bf16.msra.mxu1 %v17864_v32  ;;  %v17926_v31 = vcombine.low %v1230_v18, %v1234_v19  ;;  %v17928_v32 = vcombine.low %v1231_v21, %v1235_v22  ;;  %v17976_v18 = vcombine.low %v1279_v4, %v1283_v6  ;;  %v1295_v21 = vld [vmem:[%s29030_s4 + $0xc88] sm:$0xff]  ;;  %v1342_v4 = vld [vmem:[%s29030_s4 + $0xe00] sm:$0xff] }
 0x162   : > { %4530 = vmatprep.subr.bf16.mxu0 %v17871_v33  ;;  %4745 = vmatprep.subr.bf16.mxu1 %v17873_v37  ;;  %v17935_v33 = vcombine.high %v1238_v26, %v1242_v27  ;;  %v17937_v37 = vcombine.high %v1239_v28, %v1243_v30  ;;  %v17983_v19 = vcombine.high %v1286_v11, %v1290_v12  ;;  %v1299_v22 = vld [vmem:[%s29030_s4 + $0xca8] sm:$0xff] }
 0x163   : > { %v1343_v6 = vld [vmem:[%s29030_s4 + $0xe08] sm:$0xff] }
 0x165   : > { %4531 = vmatpush1.bf16.msra.mxu0 %v17870_v39  ;;  %4746 = vmatpush1.bf16.msra.mxu1 %v17872_v40  ;;  %v17934_v39 = vcombine.low %v1238_v26, %v1242_v27  ;;  %v17936_v40 = vcombine.low %v1239_v28, %v1243_v30  ;;  %v1302_v28 = vld [vmem:[%s29030_s4 + $0xcc0] sm:$0xff]  ;;  %v1303_v30 = vld [vmem:[%s29030_s4 + $0xcc8] sm:$0xff] }
 0x166   : > { %4532 = vmatprep.subr.bf16.mxu0 %v17879_v41  ;;  %4747 = vmatprep.subr.bf16.mxu1 %v17881_v45  ;;  %v17943_v41 = vcombine.high %v1246_v34, %v1250_v35  ;;  %v17945_v45 = vcombine.high %v1247_v36, %v1251_v38 }
 0x169   : > { %4533 = vmatpush1.bf16.msra.mxu0 %v17878_v47  ;;  %4748 = vmatpush1.bf16.msra.mxu1 %v17880_v48  ;;  %v17942_v47 = vcombine.low %v1246_v34, %v1250_v35  ;;  %v17944_v48 = vcombine.low %v1247_v36, %v1251_v38  ;;  %v17992_v34 = vcombine.low %v1295_v21, %v1299_v22  ;;  %v1310_v36 = vld [vmem:[%s29030_s4 + $0xd00] sm:$0xff]  ;;  %v1311_v38 = vld [vmem:[%s29030_s4 + $0xd08] sm:$0xff] }
 0x16a   : > { %4534 = vmatprep.subr.bf16.mxu0 %v17887_v49  ;;  %4749 = vmatprep.subr.bf16.mxu1 %v17889_v53  ;;  %v17951_v49 = vcombine.high %v1254_v42, %v1258_v43  ;;  %v17953_v53 = vcombine.high %v1255_v44, %v1259_v46 }
 0x16d   : > { %4535 = vmatpush1.bf16.msra.mxu0 %v17886_v55  ;;  %4750 = vmatpush1.bf16.msra.mxu1 %v17888_v56  ;;  %v17950_v55 = vcombine.low %v1254_v42, %v1258_v43  ;;  %v17952_v56 = vcombine.low %v1255_v44, %v1259_v46  ;;  %v1318_v44 = vld [vmem:[%s29030_s4 + $0xd40] sm:$0xff]  ;;  %v1319_v46 = vld [vmem:[%s29030_s4 + $0xd48] sm:$0xff] }
 0x16e   : > { %4536 = vmatprep.subr.bf16.mxu0 %v17895_v57  ;;  %4751 = vmatprep.subr.bf16.mxu1 %v17897_v61  ;;  %v17959_v57 = vcombine.high %v1262_v50, %v1266_v51  ;;  %v17961_v61 = vcombine.high %v1263_v52, %v1267_v54 }
 0x171   : > { %4537 = vmatpush1.bf16.msra.mxu0 %v17894_v63  ;;  %4752 = vmatpush1.bf16.msra.mxu1 %v17896_v0  ;;  %v17958_v63 = vcombine.low %v1262_v50, %v1266_v51  ;;  %v17960_v0 = vcombine.low %v1263_v52, %v1267_v54  ;;  %v1326_v52 = vld [vmem:[%s29030_s4 + $0xd80] sm:$0xff]  ;;  %v1327_v54 = vld [vmem:[%s29030_s4 + $0xd88] sm:$0xff] }
 0x172   : > { %4538 = vmatprep.subr.bf16.mxu0 %v17903_v1  ;;  %4753 = vmatprep.subr.bf16.mxu1 %v17905_v5  ;;  %v17967_v1 = vcombine.high %v1270_v58, %v1274_v59  ;;  %v17969_v5 = vcombine.high %v1271_v60, %v1275_v62 }
 0x175   : > { %4539 = vmatpush1.bf16.msra.mxu0 %v17902_v7  ;;  %4754 = vmatpush1.bf16.msra.mxu1 %v17904_v8  ;;  %v17966_v7 = vcombine.low %v1270_v58, %v1274_v59  ;;  %v17968_v8 = vcombine.low %v1271_v60, %v1275_v62  ;;  %v1334_v60 = vld [vmem:[%s29030_s4 + $0xdc0] sm:$0xff]  ;;  %v1335_v62 = vld [vmem:[%s29030_s4 + $0xdc8] sm:$0xff] }
 0x176   : > { %4540 = vmatprep.subr.bf16.mxu0 %v17911_v9  ;;  %4755 = vmatprep.subr.bf16.mxu1 %v17913_v13  ;;  %v17975_v9 = vcombine.high %v1278_v2, %v1282_v3  ;;  %v1287_v13 = vld [vmem:[%s29030_s4 + $0xc48] sm:$0xff] }
 0x179   : > { %4541 = vmatpush1.bf16.msra.mxu0 %v17910_v15  ;;  %4756 = vmatpush1.bf16.msra.mxu1 %v17912_v16  ;;  %v1291_v15 = vld [vmem:[%s29030_s4 + $0xc68] sm:$0xff]  ;;  %v17974_v16 = vcombine.low %v1278_v2, %v1282_v3 }
 0x17a   : > { %4542 = vmatprep.subr.bf16.mxu0 %v17919_v17  ;;  %4757 = vmatprep.subr.bf16.mxu1 %v17921_v20  ;;  %v1294_v17 = vld [vmem:[%s29030_s4 + $0xc80] sm:$0xff]  ;;  %v17984_v26 = vcombine.low %v1287_v13, %v1291_v15 }
 0x17b   : > { %v1298_v20 = vld [vmem:[%s29030_s4 + $0xca0] sm:$0xff] }
 0x17c   : > { %v17991_v27 = vcombine.high %v1294_v17, %v1298_v20 }
 0x17d   : > { %4543 = vmatpush1.bf16.msra.mxu0 %v17918_v23  ;;  %4758 = vmatpush1.bf16.msra.mxu1 %v17920_v24  ;;  %v17985_v23 = vcombine.high %v1287_v13, %v1291_v15  ;;  %v20538_v24 = vld [vmem:[%s23438_s17 + $0x1c] ss:$36 sps:$4 sm:$0xff]  }
 0x17e   : > { %4544 = vmatprep.subr.bf16.mxu0 %v17927_v25  ;;  %4759 = vmatprep.subr.bf16.mxu1 %v17929_v29  ;;  %v17982_v25 = vcombine.low %v1286_v11, %v1290_v12  ;;  %v1306_v29 = vld [vmem:[%s29030_s4 + $0xce0] sm:$0xff] }
 0x17f   : > { %v17999_v35 = vcombine.high %v1302_v28, %v1306_v29  ;;  %v1350_v12 = vld [vmem:[%s29030_s4 + $0xe40] sm:$0xff] }
 0x180   : > { %v1354_v13 = vld [vmem:[%s29030_s4 + $0xe60] sm:$0xff] }
 0x181   : > { %4545 = vmatpush1.bf16.msra.mxu0 %v17926_v31  ;;  %4760 = vmatpush1.bf16.msra.mxu1 %v17928_v32  ;;  %v17993_v31 = vcombine.high %v1295_v21, %v1299_v22  ;;  %v1307_v32 = vld [vmem:[%s29030_s4 + $0xce8] sm:$0xff]  ;;  %v1362_v21 = vld [vmem:[%s29030_s4 + $0xea0] sm:$0xff] }
 0x182   : > { %4546 = vmatprep.subr.bf16.mxu0 %v17935_v33  ;;  %4761 = vmatprep.subr.bf16.mxu1 %v17937_v37  ;;  %v17990_v33 = vcombine.low %v1294_v17, %v1298_v20  ;;  %v1314_v37 = vld [vmem:[%s29030_s4 + $0xd20] sm:$0xff]  ;;  %v18000_v42 = vcombine.low %v1303_v30, %v1307_v32  ;;  %v1359_v22 = vld [vmem:[%s29030_s4 + $0xe88] sm:$0xff] }
 0x183   : > { %v18007_v43 = vcombine.high %v1310_v36, %v1314_v37  ;;  %v1358_v20 = vld [vmem:[%s29030_s4 + $0xe80] sm:$0xff] }
 0x185   : > { %4547 = vmatpush1.bf16.msra.mxu0 %v17934_v39  ;;  %4762 = vmatpush1.bf16.msra.mxu1 %v17936_v40  ;;  %v18001_v39 = vcombine.high %v1303_v30, %v1307_v32  ;;  %v1315_v40 = vld [vmem:[%s29030_s4 + $0xd28] sm:$0xff] }
 0x186   : > { %4548 = vmatprep.subr.bf16.mxu0 %v17943_v41  ;;  %4763 = vmatprep.subr.bf16.mxu1 %v17945_v45  ;;  %v17998_v41 = vcombine.low %v1302_v28, %v1306_v29  ;;  %v1322_v45 = vld [vmem:[%s29030_s4 + $0xd60] sm:$0xff]  ;;  %v18008_v50 = vcombine.low %v1311_v38, %v1315_v40  ;;  %v1367_v30 = vld [vmem:[%s29030_s4 + $0xec8] sm:$0xff] }
 0x187   : > { %v18015_v51 = vcombine.high %v1318_v44, %v1322_v45  ;;  %v1366_v28 = vld [vmem:[%s29030_s4 + $0xec0] sm:$0xff]  ;;  %v1371_v32 = vld [vmem:[%s29030_s4 + $0xee8] sm:$0xff] }
 0x188   : > { %v1370_v29 = vld [vmem:[%s29030_s4 + $0xee0] sm:$0xff] }
 0x189   : > { %4549 = vmatpush1.bf16.msra.mxu0 %v17942_v47  ;;  %4764 = vmatpush1.bf16.msra.mxu1 %v17944_v48  ;;  %v18009_v47 = vcombine.high %v1311_v38, %v1315_v40  ;;  %v1323_v48 = vld [vmem:[%s29030_s4 + $0xd68] sm:$0xff] }
 0x18a   : > { %4550 = vmatprep.subr.bf16.mxu0 %v17951_v49  ;;  %4765 = vmatprep.subr.bf16.mxu1 %v17953_v53  ;;  %v18006_v49 = vcombine.low %v1310_v36, %v1314_v37  ;;  %v1330_v53 = vld [vmem:[%s29030_s4 + $0xda0] sm:$0xff]  ;;  %v18016_v58 = vcombine.low %v1319_v46, %v1323_v48  ;;  %v1375_v38 = vld [vmem:[%s29030_s4 + $0xf08] sm:$0xff] }
 0x18b   : > { %v18023_v59 = vcombine.high %v1326_v52, %v1330_v53  ;;  %v1374_v36 = vld [vmem:[%s29030_s4 + $0xf00] sm:$0xff]  ;;  %v1379_v40 = vld [vmem:[%s29030_s4 + $0xf28] sm:$0xff] }
 0x18c   : > { %v1378_v37 = vld [vmem:[%s29030_s4 + $0xf20] sm:$0xff] }
 0x18d   : > { %4551 = vmatpush1.bf16.msra.mxu0 %v17950_v55  ;;  %4766 = vmatpush1.bf16.msra.mxu1 %v17952_v56  ;;  %v18017_v55 = vcombine.high %v1319_v46, %v1323_v48  ;;  %v1331_v56 = vld [vmem:[%s29030_s4 + $0xda8] sm:$0xff] }
 0x18e   : > { %4552 = vmatprep.subr.bf16.mxu0 %v17959_v57  ;;  %4767 = vmatprep.subr.bf16.mxu1 %v17961_v61  ;;  %v18014_v57 = vcombine.low %v1318_v44, %v1322_v45  ;;  %v1338_v61 = vld [vmem:[%s29030_s4 + $0xde0] sm:$0xff]  ;;  %v18024_v2 = vcombine.low %v1327_v54, %v1331_v56  ;;  %v1383_v46 = vld [vmem:[%s29030_s4 + $0xf48] sm:$0xff] }
 0x18f   : > { %v18031_v3 = vcombine.high %v1334_v60, %v1338_v61  ;;  %v1382_v44 = vld [vmem:[%s29030_s4 + $0xf40] sm:$0xff]  ;;  %v1387_v48 = vld [vmem:[%s29030_s4 + $0xf68] sm:$0xff] }
 0x190   : > { %v1386_v45 = vld [vmem:[%s29030_s4 + $0xf60] sm:$0xff] }
 0x191   : > { %4553 = vmatpush1.bf16.msra.mxu0 %v17958_v63  ;;  %4768 = vmatpush1.bf16.msra.mxu1 %v17960_v0  ;;  %v18025_v63 = vcombine.high %v1327_v54, %v1331_v56  ;;  %v1339_v0 = vld [vmem:[%s29030_s4 + $0xde8] sm:$0xff] }
 0x192   : > { %4554 = vmatprep.subr.bf16.mxu0 %v17967_v1  ;;  %4769 = vmatprep.subr.bf16.mxu1 %v17969_v5  ;;  %v18022_v1 = vcombine.low %v1326_v52, %v1330_v53  ;;  %v1346_v5 = vld [vmem:[%s29030_s4 + $0xe20] sm:$0xff]  ;;  %v1391_v54 = vld [vmem:[%s29030_s4 + $0xf88] sm:$0xff] }
 0x193   : > { %v18039_v11 = vcombine.high %v1342_v4, %v1346_v5  ;;  %v18038_v17 = vcombine.low %v1342_v4, %v1346_v5  ;;  %v1390_v52 = vld [vmem:[%s29030_s4 + $0xf80] sm:$0xff]  ;;  %v1395_v56 = vld [vmem:[%s29030_s4 + $0xfa8] sm:$0xff] }
 0x194   : > { %v1394_v53 = vld [vmem:[%s29030_s4 + $0xfa0] sm:$0xff] }
 0x195   : > { %4555 = vmatpush1.bf16.msra.mxu0 %v17966_v7  ;;  %4770 = vmatpush1.bf16.msra.mxu1 %v17968_v8  ;;  %v18033_v7 = vcombine.high %v1335_v62, %v1339_v0  ;;  %v1347_v8 = vld [vmem:[%s29030_s4 + $0xe28] sm:$0xff]  ;;  %v1406_v4 = vld [vmem:[%s29030_s4 + $0x1000] sm:$0xff] }
 0x196   : > { %4567 = vmatprep.subr.bf16.mxu0 %v17975_v9  ;;  %4782 = vmatprep.subr.bf16.mxu1 %v17977_v14  ;;  %v18030_v9 = vcombine.low %v1334_v60, %v1338_v61  ;;  %v1351_v14 = vld [vmem:[%s29030_s4 + $0xe48] sm:$0xff]  ;;  %v18041_v15 = vcombine.high %v1343_v6, %v1347_v8  ;;  %v1398_v60 = vld [vmem:[%s29030_s4 + $0xfc0] sm:$0xff] }
 0x197   : > { %v1402_v61 = vld [vmem:[%s29030_s4 + $0xfe0] sm:$0xff] }
 0x198   : > { %4557 = vmatmul.mubr.bf16.vlgmr.msra.gmra.mrb[0].mxu0 %v20537_v10  ;;  %4772 = vmatmul.mubr.bf16.vlgmr.msra.gmra.mrb[0].mxu1 %v20537_v10  ;;  %v18032_v10 = vcombine.low %v1335_v62, %v1339_v0  ;;  %v1399_v62 = vld [vmem:[%s29030_s4 + $0xfc8] sm:$0xff]  ;;  %v1410_v5 = vld [vmem:[%s29030_s4 + $0x1020] sm:$0xff] }
 0x199   : > { %4568 = vmatpush1.bf16.msra.mxu0 %v17974_v16  ;;  %4783 = vmatpush1.bf16.msra.mxu1 %v17976_v18  ;;  %v1355_v16 = vld [vmem:[%s29030_s4 + $0xe68] sm:$0xff]  ;;  %v18040_v18 = vcombine.low %v1343_v6, %v1347_v8 }
 0x19a   : > { %4569 = vmatprep.subr.bf16.mxu0 %v17983_v19  ;;  %4784 = vmatprep.subr.bf16.mxu1 %v17985_v23  ;;  %v18047_v19 = vcombine.high %v1350_v12, %v1354_v13  ;;  %v18049_v23 = vcombine.high %v1351_v14, %v1355_v16  ;;  %v1403_v0 = vld [vmem:[%s29030_s4 + $0xfe8] sm:$0xff] }
 0x19b   : > { %4599 = vmatprep.mubr.bf16.mxu0 %v20538_v24  ;;  %4814 = vmatprep.mubr.bf16.mxu1 %v20538_v24  ;;  %v1363_v24 = vld [vmem:[%s29030_s4 + $0xea8] sm:$0xff] }
 0x19c   : > { %v1407_v6 = vld [vmem:[%s29030_s4 + $0x1008] sm:$0xff] }
 0x19d   : > { %4570 = vmatpush1.bf16.msra.mxu0 %v17982_v25  ;;  %4785 = vmatpush1.bf16.msra.mxu1 %v17984_v26  ;;  %v18046_v25 = vcombine.low %v1350_v12, %v1354_v13  ;;  %v18048_v26 = vcombine.low %v1351_v14, %v1355_v16  ;;  %v1411_v8 = vld [vmem:[%s29030_s4 + $0x1028] sm:$0xff]  ;;  %v20540_v12 = vld [vmem:[%s23438_s17 + $0x18] ss:$36 sps:$4 sm:$0xff]   ;;  %v1414_v13 = vld [vmem:[%s29030_s4 + $0x1040] sm:$0xff] }
 0x19e   : > { %4571 = vmatprep.subr.bf16.mxu0 %v17991_v27  ;;  %4786 = vmatprep.subr.bf16.mxu1 %v17993_v31  ;;  %v18055_v27 = vcombine.high %v1358_v20, %v1362_v21  ;;  %v18057_v31 = vcombine.high %v1359_v22, %v1363_v24  ;;  %v1418_v14 = vld [vmem:[%s29030_s4 + $0x1060] sm:$0xff]  ;;  %v18105_v16 = vcombine.high %v1407_v6, %v1411_v8 }
 0x1a1   : > { %4572 = vmatpush1.bf16.msra.mxu0 %v17990_v33  ;;  %4787 = vmatpush1.bf16.msra.mxu1 %v17992_v34  ;;  %v18054_v33 = vcombine.low %v1358_v20, %v1362_v21  ;;  %v18056_v34 = vcombine.low %v1359_v22, %v1363_v24  ;;  %v18111_v20 = vcombine.high %v1414_v13, %v1418_v14  ;;  %v1422_v21 = vld [vmem:[%s29030_s4 + $0x1080] sm:$0xff] }
 0x1a2   : > { %4573 = vmatprep.subr.bf16.mxu0 %v17999_v35  ;;  %4788 = vmatprep.subr.bf16.mxu1 %v18001_v39  ;;  %v18063_v35 = vcombine.high %v1366_v28, %v1370_v29  ;;  %v18065_v39 = vcombine.high %v1367_v30, %v1371_v32  ;;  %v1426_v22 = vld [vmem:[%s29030_s4 + $0x10a0] sm:$0xff] }
 0x1a5   : > { %4574 = vmatpush1.bf16.msra.mxu0 %v17998_v41  ;;  %4789 = vmatpush1.bf16.msra.mxu1 %v18000_v42  ;;  %v18062_v41 = vcombine.low %v1366_v28, %v1370_v29  ;;  %v18064_v42 = vcombine.low %v1367_v30, %v1371_v32  ;;  %v18119_v28 = vcombine.high %v1422_v21, %v1426_v22  ;;  %v1430_v29 = vld [vmem:[%s29030_s4 + $0x10c0] sm:$0xff] }
 0x1a6   : > { %4575 = vmatprep.subr.bf16.mxu0 %v18007_v43  ;;  %4790 = vmatprep.subr.bf16.mxu1 %v18009_v47  ;;  %v18071_v43 = vcombine.high %v1374_v36, %v1378_v37  ;;  %v18073_v47 = vcombine.high %v1375_v38, %v1379_v40  ;;  %v1434_v30 = vld [vmem:[%s29030_s4 + $0x10e0] sm:$0xff] }
 0x1a9   : > { %4576 = vmatpush1.bf16.msra.mxu0 %v18006_v49  ;;  %4791 = vmatpush1.bf16.msra.mxu1 %v18008_v50  ;;  %v18070_v49 = vcombine.low %v1374_v36, %v1378_v37  ;;  %v18072_v50 = vcombine.low %v1375_v38, %v1379_v40  ;;  %v18127_v37 = vcombine.high %v1430_v29, %v1434_v30  ;;  %v1438_v38 = vld [vmem:[%s29030_s4 + $0x1100] sm:$0xff]  ;;  %v1439_v40 = vld [vmem:[%s29030_s4 + $0x1108] sm:$0xff] }
 0x1aa   : > { %4577 = vmatprep.subr.bf16.mxu0 %v18015_v51  ;;  %4792 = vmatprep.subr.bf16.mxu1 %v18017_v55  ;;  %v18079_v51 = vcombine.high %v1382_v44, %v1386_v45  ;;  %v18081_v55 = vcombine.high %v1383_v46, %v1387_v48 }
 0x1ad   : > { %4578 = vmatpush1.bf16.msra.mxu0 %v18014_v57  ;;  %4793 = vmatpush1.bf16.msra.mxu1 %v18016_v58  ;;  %v18078_v57 = vcombine.low %v1382_v44, %v1386_v45  ;;  %v18080_v58 = vcombine.low %v1383_v46, %v1387_v48  ;;  %v1446_v46 = vld [vmem:[%s29030_s4 + $0x1140] sm:$0xff]  ;;  %v1447_v48 = vld [vmem:[%s29030_s4 + $0x1148] sm:$0xff] }
 0x1ae   : > { %4579 = vmatprep.subr.bf16.mxu0 %v18023_v59  ;;  %4794 = vmatprep.subr.bf16.mxu1 %v18025_v63  ;;  %v18087_v59 = vcombine.high %v1390_v52, %v1394_v53  ;;  %v18089_v63 = vcombine.high %v1391_v54, %v1395_v56 }
 0x1b1   : > { %4580 = vmatpush1.bf16.msra.mxu0 %v18022_v1  ;;  %4795 = vmatpush1.bf16.msra.mxu1 %v18024_v2  ;;  %v18086_v1 = vcombine.low %v1390_v52, %v1394_v53  ;;  %v18088_v2 = vcombine.low %v1391_v54, %v1395_v56  ;;  %v1454_v54 = vld [vmem:[%s29030_s4 + $0x1180] sm:$0xff]  ;;  %v1455_v56 = vld [vmem:[%s29030_s4 + $0x1188] sm:$0xff] }
 0x1b2   : > { %4581 = vmatprep.subr.bf16.mxu0 %v18031_v3  ;;  %4796 = vmatprep.subr.bf16.mxu1 %v18033_v7  ;;  %v18095_v3 = vcombine.high %v1398_v60, %v1402_v61  ;;  %v18097_v7 = vcombine.high %v1399_v62, %v1403_v0 }
 0x1b5   : > { %4582 = vmatpush1.bf16.msra.mxu0 %v18030_v9  ;;  %4797 = vmatpush1.bf16.msra.mxu1 %v18032_v10  ;;  %v18094_v9 = vcombine.low %v1398_v60, %v1402_v61  ;;  %v18096_v10 = vcombine.low %v1399_v62, %v1403_v0  ;;  %v1462_v62 = vld [vmem:[%s29030_s4 + $0x11c0] sm:$0xff]  ;;  %v1463_v0 = vld [vmem:[%s29030_s4 + $0x11c8] sm:$0xff] }
 0x1b6   : > { %4583 = vmatprep.subr.bf16.mxu0 %v18039_v11  ;;  %4798 = vmatprep.subr.bf16.mxu1 %v18041_v15  ;;  %v18103_v11 = vcombine.high %v1406_v4, %v1410_v5  ;;  %v1415_v15 = vld [vmem:[%s29030_s4 + $0x1048] sm:$0xff] }
 0x1b9   : > { %4584 = vmatpush1.bf16.msra.mxu0 %v18038_v17  ;;  %4799 = vmatpush1.bf16.msra.mxu1 %v18040_v18  ;;  %v1419_v17 = vld [vmem:[%s29030_s4 + $0x1068] sm:$0xff]  ;;  %v18102_v18 = vcombine.low %v1406_v4, %v1410_v5 }
 0x1ba   : > { %4585 = vmatprep.subr.bf16.mxu0 %v18047_v19  ;;  %4800 = vmatprep.subr.bf16.mxu1 %v18049_v23  ;;  %v18104_v19 = vcombine.low %v1407_v6, %v1411_v8  ;;  %v1423_v23 = vld [vmem:[%s29030_s4 + $0x1088] sm:$0xff]  ;;  %v18113_v24 = vcombine.high %v1415_v15, %v1419_v17  ;;  %v896_v6 = vld [vmem:[%s29030_s4 + $0x10] sm:$0xff]  ;;  %v897_v8 = vld [vmem:[%s29030_s4 + $0x18] sm:$0xff] }
 0x1bd   : > { %4586 = vmatpush1.bf16.msra.mxu0 %v18046_v25  ;;  %4801 = vmatpush1.bf16.msra.mxu1 %v18048_v26  ;;  %v1427_v25 = vld [vmem:[%s29030_s4 + $0x10a8] sm:$0xff]  ;;  %v18110_v26 = vcombine.low %v1414_v13, %v1418_v14  ;;  %v20541_v13 = vld [vmem:[%s23438_s17 + $0x20] ss:$36 sps:$4 sm:$0xff]  }
 0x1be   : > { %4587 = vmatprep.subr.bf16.mxu0 %v18055_v27  ;;  %4802 = vmatprep.subr.bf16.mxu1 %v18057_v31  ;;  %v18112_v27 = vcombine.low %v1415_v15, %v1419_v17  ;;  %v1431_v31 = vld [vmem:[%s29030_s4 + $0x10c8] sm:$0xff]  ;;  %v18121_v32 = vcombine.high %v1423_v23, %v1427_v25  ;;  %v18120_v36 = vcombine.low %v1423_v23, %v1427_v25  ;;  %v904_v15 = vld [vmem:[%s29030_s4 + $0x50] sm:$0xff]  ;;  %v905_v17 = vld [vmem:[%s29030_s4 + $0x58] sm:$0xff] }
 0x1bf   : > { %v912_v23 = vld [vmem:[%s29030_s4 + $0x90] sm:$0xff]  ;;  %v913_v25 = vld [vmem:[%s29030_s4 + $0x98] sm:$0xff] }
 0x1c1   : > { %4588 = vmatpush1.bf16.msra.mxu0 %v18054_v33  ;;  %4803 = vmatpush1.bf16.msra.mxu1 %v18056_v34  ;;  %v1435_v33 = vld [vmem:[%s29030_s4 + $0x10e8] sm:$0xff]  ;;  %v22986_v34 = vmov 0  }
 0x1c2   : > { %4589 = vmatprep.subr.bf16.mxu0 %v18063_v35  ;;  %4804 = vmatprep.subr.bf16.mxu1 %v18065_v39  ;;  %v18118_v35 = vcombine.low %v1422_v21, %v1426_v22  ;;  %v1442_v39 = vld [vmem:[%s29030_s4 + $0x1120] sm:$0xff]  ;;  %v18128_v44 = vcombine.low %v1431_v31, %v1435_v33 }
 0x1c3   : > { %v18135_v45 = vcombine.high %v1438_v38, %v1442_v39 }
 0x1c5   : > { %4590 = vmatpush1.bf16.msra.mxu0 %v18062_v41  ;;  %4805 = vmatpush1.bf16.msra.mxu1 %v18064_v42  ;;  %v18129_v41 = vcombine.high %v1431_v31, %v1435_v33  ;;  %v1443_v42 = vld [vmem:[%s29030_s4 + $0x1128] sm:$0xff]  ;;  %v920_v31 = vld [vmem:[%s29030_s4 + $0xd0] sm:$0xff]  ;;  %v921_v33 = vld [vmem:[%s29030_s4 + $0xd8] sm:$0xff] }
 0x1c6   : > { %4591 = vmatprep.subr.bf16.mxu0 %v18071_v43  ;;  %4806 = vmatprep.subr.bf16.mxu1 %v18073_v47  ;;  %v18126_v43 = vcombine.low %v1430_v29, %v1434_v30  ;;  %v1450_v47 = vld [vmem:[%s29030_s4 + $0x1160] sm:$0xff]  ;;  %v18136_v52 = vcombine.low %v1439_v40, %v1443_v42 }
 0x1c7   : > { %v18143_v53 = vcombine.high %v1446_v46, %v1450_v47 }
 0x1c9   : > { %4592 = vmatpush1.bf16.msra.mxu0 %v18070_v49  ;;  %4807 = vmatpush1.bf16.msra.mxu1 %v18072_v50  ;;  %v18137_v49 = vcombine.high %v1439_v40, %v1443_v42  ;;  %v1451_v50 = vld [vmem:[%s29030_s4 + $0x1168] sm:$0xff]  ;;  %v932_v42 = vld [vmem:[%s29030_s4 + $0x130] sm:$0xff] }
 0x1ca   : > { %4593 = vmatprep.subr.bf16.mxu0 %v18079_v51  ;;  %4808 = vmatprep.subr.bf16.mxu1 %v18081_v55  ;;  %v18134_v51 = vcombine.low %v1438_v38, %v1442_v39  ;;  %v1458_v55 = vld [vmem:[%s29030_s4 + $0x11a0] sm:$0xff]  ;;  %v18144_v60 = vcombine.low %v1447_v48, %v1451_v50 }
 0x1cb   : > { %v18151_v61 = vcombine.high %v1454_v54, %v1458_v55 }
 0x1cd   : > { %4594 = vmatpush1.bf16.msra.mxu0 %v18078_v57  ;;  %4809 = vmatpush1.bf16.msra.mxu1 %v18080_v58  ;;  %v18145_v57 = vcombine.high %v1447_v48, %v1451_v50  ;;  %v1459_v58 = vld [vmem:[%s29030_s4 + $0x11a8] sm:$0xff]  ;;  %v940_v50 = vld [vmem:[%s29030_s4 + $0x170] sm:$0xff] }
 0x1ce   : > { %4595 = vmatprep.subr.bf16.mxu0 %v18087_v59  ;;  %4810 = vmatprep.subr.bf16.mxu1 %v18089_v63  ;;  %v18142_v59 = vcombine.low %v1446_v46, %v1450_v47  ;;  %v1466_v63 = vld [vmem:[%s29030_s4 + $0x11e0] sm:$0xff]  ;;  %v18152_v4 = vcombine.low %v1455_v56, %v1459_v58 }
 0x1cf   : > { %v18159_v5 = vcombine.high %v1462_v62, %v1466_v63 }
 0x1d1   : > { %4596 = vmatpush1.bf16.msra.mxu0 %v18086_v1  ;;  %4811 = vmatpush1.bf16.msra.mxu1 %v18088_v2  ;;  %v18153_v1 = vcombine.high %v1455_v56, %v1459_v58  ;;  %v1467_v2 = vld [vmem:[%s29030_s4 + $0x11e8] sm:$0xff]  ;;  %v948_v58 = vld [vmem:[%s29030_s4 + $0x1b0] sm:$0xff] }
 0x1d2   : > { %4597 = vmatprep.subr.bf16.mxu0 %v18095_v3  ;;  %4812 = vmatprep.subr.bf16.mxu1 %v18097_v7  ;;  %v18150_v3 = vcombine.low %v1454_v54, %v1458_v55  ;;  %v900_v7 = vld [vmem:[%s29030_s4 + $0x30] sm:$0xff] }
 0x1d3   : > { %v17595_v14 = vcombine.high %v896_v6, %v900_v7 }
 0x1d5   : > { %4598 = vmatpush1.bf16.msra.mxu0 %v18094_v9  ;;  %4813 = vmatpush1.bf16.msra.mxu1 %v18096_v10  ;;  %v18161_v9 = vcombine.high %v1463_v0, %v1467_v2  ;;  %v901_v10 = vld [vmem:[%s29030_s4 + $0x38] sm:$0xff] }
 0x1d6   : > { %4610 = vmatprep.subr.bf16.mxu0 %v18103_v11  ;;  %4825 = vmatprep.subr.bf16.mxu1 %v18105_v16  ;;  %v18158_v11 = vcombine.low %v1462_v62, %v1466_v63  ;;  %v908_v16 = vld [vmem:[%s29030_s4 + $0x70] sm:$0xff]  ;;  %v17596_v21 = vcombine.low %v897_v8, %v901_v10 }
 0x1d7   : > { %v17603_v22 = vcombine.high %v904_v15, %v908_v16 }
 0x1d8   : > { %4600 = vmatmul.mubr.bf16.vlgmr.msra.gmra.mrb[0].mxu0 %v20540_v12  ;;  %4815 = vmatmul.mubr.bf16.vlgmr.msra.gmra.mrb[0].mxu1 %v20540_v12  ;;  %v18160_v12 = vcombine.low %v1463_v0, %v1467_v2  ;;  %v956_v2 = vld [vmem:[%s29030_s4 + $0x1f0] sm:$0xff] }
 0x1d9   : > { %4611 = vmatpush1.bf16.msra.mxu0 %v18102_v18  ;;  %4826 = vmatpush1.bf16.msra.mxu1 %v18104_v19  ;;  %v17597_v18 = vcombine.high %v897_v8, %v901_v10  ;;  %v909_v19 = vld [vmem:[%s29030_s4 + $0x78] sm:$0xff]  ;;  %v964_v10 = vld [vmem:[%s29030_s4 + $0x230] sm:$0xff] }
 0x1da   : > { %4612 = vmatprep.subr.bf16.mxu0 %v18111_v20  ;;  %4827 = vmatprep.subr.bf16.mxu1 %v18113_v24  ;;  %v17594_v20 = vcombine.low %v896_v6, %v900_v7  ;;  %v916_v24 = vld [vmem:[%s29030_s4 + $0xb0] sm:$0xff]  ;;  %v17604_v29 = vcombine.low %v905_v17, %v909_v19 }
 0x1db   : > { %4642 = vmatprep.mubr.bf16.mxu0 %v22986_v34  ;;  %4857 = vmatprep.mubr.bf16.mxu1 %v22986_v34  ;;  %v17611_v30 = vcombine.high %v912_v23, %v916_v24  ;;  %v17610_v38 = vcombine.low %v912_v23, %v916_v24 }
 0x1dd   : > { %4613 = vmatpush1.bf16.msra.mxu0 %v18110_v26  ;;  %4828 = vmatpush1.bf16.msra.mxu1 %v18112_v27  ;;  %v17605_v26 = vcombine.high %v905_v17, %v909_v19  ;;  %v917_v27 = vld [vmem:[%s29030_s4 + $0xb8] sm:$0xff]  ;;  %v968_v17 = vld [vmem:[%s29030_s4 + $0x250] sm:$0xff] }
 0x1de   : > { %4614 = vmatprep.subr.bf16.mxu0 %v18119_v28  ;;  %4829 = vmatprep.subr.bf16.mxu1 %v18121_v32  ;;  %v17602_v28 = vcombine.low %v904_v15, %v908_v16  ;;  %v924_v32 = vld [vmem:[%s29030_s4 + $0xf0] sm:$0xff]  ;;  %v17612_v39 = vcombine.low %v913_v25, %v917_v27  ;;  %v969_v19 = vld [vmem:[%s29030_s4 + $0x258] sm:$0xff] }
 0x1df   : > { %v17619_v40 = vcombine.high %v920_v31, %v924_v32  ;;  %v17618_v46 = vcombine.low %v920_v31, %v924_v32 }
 0x1e1   : > { %4615 = vmatpush1.bf16.msra.mxu0 %v18118_v35  ;;  %4830 = vmatpush1.bf16.msra.mxu1 %v18120_v36  ;;  %v17613_v35 = vcombine.high %v913_v25, %v917_v27  ;;  %v925_v36 = vld [vmem:[%s29030_s4 + $0xf8] sm:$0xff]  ;;  %v976_v25 = vld [vmem:[%s29030_s4 + $0x290] sm:$0xff] }
 0x1e2   : > { %4616 = vmatprep.subr.bf16.mxu0 %v18127_v37  ;;  %4831 = vmatprep.subr.bf16.mxu1 %v18129_v41  ;;  %v22718_v37 = vld [vmem:[%s23438_s17 + $0x4] ss:$36 sps:$4 sm:$0xff]   ;;  %v928_v41 = vld [vmem:[%s29030_s4 + $0x110] sm:$0xff]  ;;  %v17620_v47 = vcombine.low %v921_v33, %v925_v36  ;;  %v977_v27 = vld [vmem:[%s29030_s4 + $0x298] sm:$0xff] }
 0x1e3   : > { %v17627_v48 = vcombine.high %v928_v41, %v932_v42  ;;  %v17626_v54 = vcombine.low %v928_v41, %v932_v42  ;;  %v992_v42 = vld [vmem:[%s29030_s4 + $0x310] sm:$0xff] }
 0x1e5   : > { %4617 = vmatpush1.bf16.msra.mxu0 %v18126_v43  ;;  %4832 = vmatpush1.bf16.msra.mxu1 %v18128_v44  ;;  %v929_v43 = vld [vmem:[%s29030_s4 + $0x118] sm:$0xff]  ;;  %v17621_v44 = vcombine.high %v921_v33, %v925_v36  ;;  %v984_v33 = vld [vmem:[%s29030_s4 + $0x2d0] sm:$0xff] }
 0x1e6   : > { %4618 = vmatprep.subr.bf16.mxu0 %v18135_v45  ;;  %4833 = vmatprep.subr.bf16.mxu1 %v18137_v49  ;;  %v933_v45 = vld [vmem:[%s29030_s4 + $0x138] sm:$0xff]  ;;  %v936_v49 = vld [vmem:[%s29030_s4 + $0x150] sm:$0xff] }
 0x1e7   : > { %v17628_v55 = vcombine.low %v929_v43, %v933_v45  ;;  %v17635_v56 = vcombine.high %v936_v49, %v940_v50  ;;  %v17634_v62 = vcombine.low %v936_v49, %v940_v50  ;;  %v985_v36 = vld [vmem:[%s29030_s4 + $0x2d8] sm:$0xff]  ;;  %v1000_v50 = vld [vmem:[%s29030_s4 + $0x350] sm:$0xff] }
 0x1e9   : > { %4619 = vmatpush1.bf16.msra.mxu0 %v18134_v51  ;;  %4834 = vmatpush1.bf16.msra.mxu1 %v18136_v52  ;;  %v937_v51 = vld [vmem:[%s29030_s4 + $0x158] sm:$0xff]  ;;  %v17629_v52 = vcombine.high %v929_v43, %v933_v45  ;;  %v996_v43 = vld [vmem:[%s29030_s4 + $0x330] sm:$0xff] }
 0x1ea   : > { %4620 = vmatprep.subr.bf16.mxu0 %v18143_v53  ;;  %4835 = vmatprep.subr.bf16.mxu1 %v18145_v57  ;;  %v941_v53 = vld [vmem:[%s29030_s4 + $0x178] sm:$0xff]  ;;  %v944_v57 = vld [vmem:[%s29030_s4 + $0x190] sm:$0xff]  ;;  %v17691_v49 = vcombine.high %v992_v42, %v996_v43 }
 0x1eb   : > { %v17636_v63 = vcombine.low %v937_v51, %v941_v53  ;;  %v17643_v0 = vcombine.high %v944_v57, %v948_v58  ;;  %v17642_v6 = vcombine.low %v944_v57, %v948_v58  ;;  %v1008_v58 = vld [vmem:[%s29030_s4 + $0x390] sm:$0xff] }
 0x1ed   : > { %4621 = vmatpush1.bf16.msra.mxu0 %v18142_v59  ;;  %4836 = vmatpush1.bf16.msra.mxu1 %v18144_v60  ;;  %v945_v59 = vld [vmem:[%s29030_s4 + $0x198] sm:$0xff]  ;;  %v17637_v60 = vcombine.high %v937_v51, %v941_v53  ;;  %v1004_v51 = vld [vmem:[%s29030_s4 + $0x370] sm:$0xff] }
 0x1ee   : > { %4622 = vmatprep.subr.bf16.mxu0 %v18151_v61  ;;  %4837 = vmatprep.subr.bf16.mxu1 %v18153_v1  ;;  %v949_v61 = vld [vmem:[%s29030_s4 + $0x1b8] sm:$0xff]  ;;  %v952_v1 = vld [vmem:[%s29030_s4 + $0x1d0] sm:$0xff]  ;;  %v17699_v57 = vcombine.high %v1000_v50, %v1004_v51 }
 0x1ef   : > { %v17644_v7 = vcombine.low %v945_v59, %v949_v61  ;;  %v17651_v8 = vcombine.high %v952_v1, %v956_v2 }
 0x1f1   : > { %4623 = vmatpush1.bf16.msra.mxu0 %v18150_v3  ;;  %4838 = vmatpush1.bf16.msra.mxu1 %v18152_v4  ;;  %v953_v3 = vld [vmem:[%s29030_s4 + $0x1d8] sm:$0xff]  ;;  %v17645_v4 = vcombine.high %v945_v59, %v949_v61  ;;  %v1012_v59 = vld [vmem:[%s29030_s4 + $0x3b0] sm:$0xff] }
 0x1f2   : > { %4624 = vmatprep.subr.bf16.mxu0 %v18159_v5  ;;  %4839 = vmatprep.subr.bf16.mxu1 %v18161_v9  ;;  %v957_v5 = vld [vmem:[%s29030_s4 + $0x1f8] sm:$0xff]  ;;  %v960_v9 = vld [vmem:[%s29030_s4 + $0x210] sm:$0xff] }
 0x1f3   : > { %v17652_v15 = vcombine.low %v953_v3, %v957_v5  ;;  %v17659_v16 = vcombine.high %v960_v9, %v964_v10 }
 0x1f5   : > { %4625 = vmatpush1.bf16.msra.mxu0 %v18158_v11  ;;  %4840 = vmatpush1.bf16.msra.mxu1 %v18160_v12  ;;  %v961_v11 = vld [vmem:[%s29030_s4 + $0x218] sm:$0xff]  ;;  %v17653_v12 = vcombine.high %v953_v3, %v957_v5  ;;  %v1020_v3 = vld [vmem:[%s29030_s4 + $0x3f0] sm:$0xff] }
 0x1f6   : > { %4868 = vmatprep.subr.bf16.mxu0 %v17595_v14  ;;  %5083 = vmatprep.subr.bf16.mxu1 %v17597_v18  ;;  %v17650_v14 = vcombine.low %v952_v1, %v956_v2  ;;  %v972_v18 = vld [vmem:[%s29030_s4 + $0x270] sm:$0xff]  ;;  %v17707_v1 = vcombine.high %v1008_v58, %v1012_v59 }
 0x1f7   : > { %v17667_v24 = vcombine.high %v968_v17, %v972_v18  ;;  %v1016_v2 = vld [vmem:[%s29030_s4 + $0x3d0] sm:$0xff] }
 0x1f8   : > { %4643 = vmatmul.mubr.bf16.vlgmr.msra.gmra.mrb[0].mxu0 %v20541_v13  ;;  %4858 = vmatmul.mubr.bf16.vlgmr.msra.gmra.mrb[0].mxu1 %v20541_v13  ;;  %v965_v13 = vld [vmem:[%s29030_s4 + $0x238] sm:$0xff] }
 0x1f9   : > { %4869 = vmatpush1.bf16.msra.mxu0 %v17594_v20  ;;  %5084 = vmatpush1.bf16.msra.mxu1 %v17596_v21  ;;  %v17661_v20 = vcombine.high %v961_v11, %v965_v13  ;;  %v973_v21 = vld [vmem:[%s29030_s4 + $0x278] sm:$0xff]  ;;  %v17660_v23 = vcombine.low %v961_v11, %v965_v13  ;;  %v1028_v11 = vld [vmem:[%s29030_s4 + $0x430] sm:$0xff] }
 0x1fa   : > { %4870 = vmatprep.subr.bf16.mxu0 %v17603_v22  ;;  %5085 = vmatprep.subr.bf16.mxu1 %v17605_v26  ;;  %v17658_v22 = vcombine.low %v960_v9, %v964_v10  ;;  %v980_v26 = vld [vmem:[%s29030_s4 + $0x2b0] sm:$0xff]  ;;  %v17668_v31 = vcombine.low %v969_v19, %v973_v21  ;;  %v17715_v9 = vcombine.high %v1016_v2, %v1020_v3 }
 0x1fb   : > { %4900 = vmatprep.mubr.bf16.mxu0 %v22718_v37  ;;  %5115 = vmatprep.mubr.bf16.mxu1 %v22718_v37  ;;  %v17675_v32 = vcombine.high %v976_v25, %v980_v26  ;;  %v1024_v10 = vld [vmem:[%s29030_s4 + $0x410] sm:$0xff] }
 0x1fd   : > { %4871 = vmatpush1.bf16.msra.mxu0 %v17602_v28  ;;  %5086 = vmatpush1.bf16.msra.mxu1 %v17604_v29  ;;  %v17669_v28 = vcombine.high %v969_v19, %v973_v21  ;;  %v981_v29 = vld [vmem:[%s29030_s4 + $0x2b8] sm:$0xff]  ;;  %v1036_v19 = vld [vmem:[%s29030_s4 + $0x470] sm:$0xff] }
 0x1fe   : > { %4872 = vmatprep.subr.bf16.mxu0 %v17611_v30  ;;  %5087 = vmatprep.subr.bf16.mxu1 %v17613_v35  ;;  %v17666_v30 = vcombine.low %v968_v17, %v972_v18  ;;  %v988_v35 = vld [vmem:[%s29030_s4 + $0x2f0] sm:$0xff]  ;;  %v17677_v37 = vcombine.high %v977_v27, %v981_v29  ;;  %v17723_v17 = vcombine.high %v1024_v10, %v1028_v11 }
 0x1ff   : > { %v17683_v41 = vcombine.high %v984_v33, %v988_v35  ;;  %v1032_v18 = vld [vmem:[%s29030_s4 + $0x450] sm:$0xff] }
 0x201   : > { %4873 = vmatpush1.bf16.msra.mxu0 %v17610_v38  ;;  %5088 = vmatpush1.bf16.msra.mxu1 %v17612_v39  ;;  %v989_v38 = vld [vmem:[%s29030_s4 + $0x2f8] sm:$0xff]  ;;  %v17674_v39 = vcombine.low %v976_v25, %v980_v26  ;;  %v17731_v25 = vcombine.high %v1032_v18, %v1036_v19  ;;  %v1040_v26 = vld [vmem:[%s29030_s4 + $0x490] sm:$0xff] }
 0x202   : > { %4874 = vmatprep.subr.bf16.mxu0 %v17619_v40  ;;  %5089 = vmatprep.subr.bf16.mxu1 %v17621_v44  ;;  %v17676_v40 = vcombine.low %v977_v27, %v981_v29  ;;  %v993_v44 = vld [vmem:[%s29030_s4 + $0x318] sm:$0xff]  ;;  %v17685_v45 = vcombine.high %v985_v36, %v989_v38  ;;  %v1044_v27 = vld [vmem:[%s29030_s4 + $0x4b0] sm:$0xff] }
 0x205   : > { %4875 = vmatpush1.bf16.msra.mxu0 %v17618_v46  ;;  %5090 = vmatpush1.bf16.msra.mxu1 %v17620_v47  ;;  %v997_v46 = vld [vmem:[%s29030_s4 + $0x338] sm:$0xff]  ;;  %v17682_v47 = vcombine.low %v984_v33, %v988_v35  ;;  %v17739_v35 = vcombine.high %v1040_v26, %v1044_v27 }
 0x206   : > { %4876 = vmatprep.subr.bf16.mxu0 %v17627_v48  ;;  %5091 = vmatprep.subr.bf16.mxu1 %v17629_v52  ;;  %v17684_v48 = vcombine.low %v985_v36, %v989_v38  ;;  %v1001_v52 = vld [vmem:[%s29030_s4 + $0x358] sm:$0xff]  ;;  %v17693_v53 = vcombine.high %v993_v44, %v997_v46  ;;  %v1048_v36 = vld [vmem:[%s29030_s4 + $0x4d0] sm:$0xff] }
 0x207   : > { %v1049_v38 = vld [vmem:[%s29030_s4 + $0x4d8] sm:$0xff] }
 0x209   : > { %4877 = vmatpush1.bf16.msra.mxu0 %v17626_v54  ;;  %5092 = vmatpush1.bf16.msra.mxu1 %v17628_v55  ;;  %v1005_v54 = vld [vmem:[%s29030_s4 + $0x378] sm:$0xff]  ;;  %v17690_v55 = vcombine.low %v992_v42, %v996_v43  ;;  %v17738_v42 = vcombine.low %v1040_v26, %v1044_v27 }
 0x20a   : > { %4878 = vmatprep.subr.bf16.mxu0 %v17635_v56  ;;  %5093 = vmatprep.subr.bf16.mxu1 %v17637_v60  ;;  %v17692_v56 = vcombine.low %v993_v44, %v997_v46  ;;  %v1009_v60 = vld [vmem:[%s29030_s4 + $0x398] sm:$0xff]  ;;  %v17701_v61 = vcombine.high %v1001_v52, %v1005_v54  ;;  %v1060_v46 = vld [vmem:[%s29030_s4 + $0x530] sm:$0xff] }
 0x20d   : > { %4879 = vmatpush1.bf16.msra.mxu0 %v17634_v62  ;;  %5094 = vmatpush1.bf16.msra.mxu1 %v17636_v63  ;;  %v1013_v62 = vld [vmem:[%s29030_s4 + $0x3b8] sm:$0xff]  ;;  %v17698_v63 = vcombine.low %v1000_v50, %v1004_v51 }
 0x20e   : > { %4880 = vmatprep.subr.bf16.mxu0 %v17643_v0  ;;  %5095 = vmatprep.subr.bf16.mxu1 %v17645_v4  ;;  %v17700_v0 = vcombine.low %v1001_v52, %v1005_v54  ;;  %v1017_v4 = vld [vmem:[%s29030_s4 + $0x3d8] sm:$0xff]  ;;  %v17709_v5 = vcombine.high %v1009_v60, %v1013_v62  ;;  %v1068_v54 = vld [vmem:[%s29030_s4 + $0x570] sm:$0xff] }
 0x211   : > { %4881 = vmatpush1.bf16.msra.mxu0 %v17642_v6  ;;  %5096 = vmatpush1.bf16.msra.mxu1 %v17644_v7  ;;  %v1021_v6 = vld [vmem:[%s29030_s4 + $0x3f8] sm:$0xff]  ;;  %v17706_v7 = vcombine.low %v1008_v58, %v1012_v59 }
 0x212   : > { %4882 = vmatprep.subr.bf16.mxu0 %v17651_v8  ;;  %5097 = vmatprep.subr.bf16.mxu1 %v17653_v12  ;;  %v17708_v8 = vcombine.low %v1009_v60, %v1013_v62  ;;  %v1025_v12 = vld [vmem:[%s29030_s4 + $0x418] sm:$0xff]  ;;  %v17717_v13 = vcombine.high %v1017_v4, %v1021_v6  ;;  %v1076_v62 = vld [vmem:[%s29030_s4 + $0x5b0] sm:$0xff] }
 0x215   : > { %4883 = vmatpush1.bf16.msra.mxu0 %v17650_v14  ;;  %5098 = vmatpush1.bf16.msra.mxu1 %v17652_v15  ;;  %v1029_v14 = vld [vmem:[%s29030_s4 + $0x438] sm:$0xff]  ;;  %v17714_v15 = vcombine.low %v1016_v2, %v1020_v3 }
 0x216   : > { %4884 = vmatprep.subr.bf16.mxu0 %v17659_v16  ;;  %5099 = vmatprep.subr.bf16.mxu1 %v17661_v20  ;;  %v17716_v16 = vcombine.low %v1017_v4, %v1021_v6  ;;  %v1033_v20 = vld [vmem:[%s29030_s4 + $0x458] sm:$0xff]  ;;  %v17725_v21 = vcombine.high %v1025_v12, %v1029_v14  ;;  %v1084_v6 = vld [vmem:[%s29030_s4 + $0x5f0] sm:$0xff] }
 0x219   : > { %4885 = vmatpush1.bf16.msra.mxu0 %v17658_v22  ;;  %5100 = vmatpush1.bf16.msra.mxu1 %v17660_v23  ;;  %v1037_v22 = vld [vmem:[%s29030_s4 + $0x478] sm:$0xff]  ;;  %v17722_v23 = vcombine.low %v1024_v10, %v1028_v11 }
 0x21a   : > { %4886 = vmatprep.subr.bf16.mxu0 %v17667_v24  ;;  %5101 = vmatprep.subr.bf16.mxu1 %v17669_v28  ;;  %v17724_v24 = vcombine.low %v1025_v12, %v1029_v14  ;;  %v1041_v28 = vld [vmem:[%s29030_s4 + $0x498] sm:$0xff]  ;;  %v17733_v29 = vcombine.high %v1033_v20, %v1037_v22  ;;  %v17732_v33 = vcombine.low %v1033_v20, %v1037_v22  ;;  %v1092_v14 = vld [vmem:[%s29030_s4 + $0x630] sm:$0xff] }
 0x21b   : > { %v1100_v22 = vld [vmem:[%s29030_s4 + $0x670] sm:$0xff] }
 0x21d   : > { %4887 = vmatpush1.bf16.msra.mxu0 %v17666_v30  ;;  %5102 = vmatpush1.bf16.msra.mxu1 %v17668_v31  ;;  %v1045_v30 = vld [vmem:[%s29030_s4 + $0x4b8] sm:$0xff]  ;;  %v22719_v31 = vld [vmem:[%s23438_s17] ss:$36 sps:$4 sm:$0xff]  }
 0x21e   : > { %4888 = vmatprep.subr.bf16.mxu0 %v17675_v32  ;;  %5103 = vmatprep.subr.bf16.mxu1 %v17677_v37  ;;  %v17730_v32 = vcombine.low %v1032_v18, %v1036_v19  ;;  %v1052_v37 = vld [vmem:[%s29030_s4 + $0x4f0] sm:$0xff]  ;;  %v17740_v43 = vcombine.low %v1041_v28, %v1045_v30 }
 0x21f   : > { %v17747_v44 = vcombine.high %v1048_v36, %v1052_v37  ;;  %v17746_v50 = vcombine.low %v1048_v36, %v1052_v37 }
 0x221   : > { %4889 = vmatpush1.bf16.msra.mxu0 %v17674_v39  ;;  %5104 = vmatpush1.bf16.msra.mxu1 %v17676_v40  ;;  %v17741_v39 = vcombine.high %v1041_v28, %v1045_v30  ;;  %v1053_v40 = vld [vmem:[%s29030_s4 + $0x4f8] sm:$0xff]  ;;  %v1108_v30 = vld [vmem:[%s29030_s4 + $0x6b0] sm:$0xff] }
 0x222   : > { %4890 = vmatprep.subr.bf16.mxu0 %v17683_v41  ;;  %5105 = vmatprep.subr.bf16.mxu1 %v17685_v45  ;;  %v22720_v41 = vld [vmem:[%s23438_s17 + $0xc] ss:$36 sps:$4 sm:$0xff]   ;;  %v17748_v51 = vcombine.low %v1049_v38, %v1053_v40 }
 0x223   : > { %v1056_v45 = vld [vmem:[%s29030_s4 + $0x510] sm:$0xff] }
 0x224   : > { %v17755_v52 = vcombine.high %v1056_v45, %v1060_v46  ;;  %v17754_v58 = vcombine.low %v1056_v45, %v1060_v46  ;;  %v1120_v46 = vld [vmem:[%s29030_s4 + $0x710] sm:$0xff] }
 0x225   : > { %4891 = vmatpush1.bf16.msra.mxu0 %v17682_v47  ;;  %5106 = vmatpush1.bf16.msra.mxu1 %v17684_v48  ;;  %v1057_v47 = vld [vmem:[%s29030_s4 + $0x518] sm:$0xff]  ;;  %v17749_v48 = vcombine.high %v1049_v38, %v1053_v40  ;;  %v1112_v38 = vld [vmem:[%s29030_s4 + $0x6d0] sm:$0xff] }
 0x226   : > { %4892 = vmatprep.subr.bf16.mxu0 %v17691_v49  ;;  %5107 = vmatprep.subr.bf16.mxu1 %v17693_v53  ;;  %v1061_v49 = vld [vmem:[%s29030_s4 + $0x538] sm:$0xff]  ;;  %v1064_v53 = vld [vmem:[%s29030_s4 + $0x550] sm:$0xff] }
 0x227   : > { %v17756_v59 = vcombine.low %v1057_v47, %v1061_v49  ;;  %v17763_v60 = vcombine.high %v1064_v53, %v1068_v54  ;;  %v17762_v2 = vcombine.low %v1064_v53, %v1068_v54  ;;  %v1113_v40 = vld [vmem:[%s29030_s4 + $0x6d8] sm:$0xff]  ;;  %v1128_v54 = vld [vmem:[%s29030_s4 + $0x750] sm:$0xff] }
 0x229   : > { %4893 = vmatpush1.bf16.msra.mxu0 %v17690_v55  ;;  %5108 = vmatpush1.bf16.msra.mxu1 %v17692_v56  ;;  %v1065_v55 = vld [vmem:[%s29030_s4 + $0x558] sm:$0xff]  ;;  %v17757_v56 = vcombine.high %v1057_v47, %v1061_v49  ;;  %v1124_v47 = vld [vmem:[%s29030_s4 + $0x730] sm:$0xff] }
 0x22a   : > { %4894 = vmatprep.subr.bf16.mxu0 %v17699_v57  ;;  %5109 = vmatprep.subr.bf16.mxu1 %v17701_v61  ;;  %v1069_v57 = vld [vmem:[%s29030_s4 + $0x578] sm:$0xff]  ;;  %v1072_v61 = vld [vmem:[%s29030_s4 + $0x590] sm:$0xff]  ;;  %v17819_v53 = vcombine.high %v1120_v46, %v1124_v47 }
 0x22b   : > { %v17764_v3 = vcombine.low %v1065_v55, %v1069_v57  ;;  %v17771_v4 = vcombine.high %v1072_v61, %v1076_v62  ;;  %v17770_v10 = vcombine.low %v1072_v61, %v1076_v62  ;;  %v1136_v62 = vld [vmem:[%s29030_s4 + $0x790] sm:$0xff] }
 0x22d   : > { %4895 = vmatpush1.bf16.msra.mxu0 %v17698_v63  ;;  %5110 = vmatpush1.bf16.msra.mxu1 %v17700_v0  ;;  %v1073_v63 = vld [vmem:[%s29030_s4 + $0x598] sm:$0xff]  ;;  %v17765_v0 = vcombine.high %v1065_v55, %v1069_v57  ;;  %v1132_v55 = vld [vmem:[%s29030_s4 + $0x770] sm:$0xff] }
 0x22e   : > { %4896 = vmatprep.subr.bf16.mxu0 %v17707_v1  ;;  %5111 = vmatprep.subr.bf16.mxu1 %v17709_v5  ;;  %v1077_v1 = vld [vmem:[%s29030_s4 + $0x5b8] sm:$0xff]  ;;  %v1080_v5 = vld [vmem:[%s29030_s4 + $0x5d0] sm:$0xff]  ;;  %v17827_v61 = vcombine.high %v1128_v54, %v1132_v55 }
 0x22f   : > { %v17772_v11 = vcombine.low %v1073_v63, %v1077_v1  ;;  %v17779_v12 = vcombine.high %v1080_v5, %v1084_v6  ;;  %v17778_v18 = vcombine.low %v1080_v5, %v1084_v6  ;;  %v1144_v6 = vld [vmem:[%s29030_s4 + $0x7d0] sm:$0xff] }
 0x231   : > { %4897 = vmatpush1.bf16.msra.mxu0 %v17706_v7  ;;  %5112 = vmatpush1.bf16.msra.mxu1 %v17708_v8  ;;  %v17773_v7 = vcombine.high %v1073_v63, %v1077_v1  ;;  %v1081_v8 = vld [vmem:[%s29030_s4 + $0x5d8] sm:$0xff]  ;;  %v1140_v63 = vld [vmem:[%s29030_s4 + $0x7b0] sm:$0xff] }
 0x232   : > { %4898 = vmatprep.subr.bf16.mxu0 %v17715_v9  ;;  %5113 = vmatprep.subr.bf16.mxu1 %v17717_v13  ;;  %v1085_v9 = vld [vmem:[%s29030_s4 + $0x5f8] sm:$0xff]  ;;  %v1088_v13 = vld [vmem:[%s29030_s4 + $0x610] sm:$0xff]  ;;  %v17835_v5 = vcombine.high %v1136_v62, %v1140_v63 }
 0x233   : > { %v17780_v19 = vcombine.low %v1081_v8, %v1085_v9  ;;  %v17787_v20 = vcombine.high %v1088_v13, %v1092_v14  ;;  %v17786_v26 = vcombine.low %v1088_v13, %v1092_v14  ;;  %v1152_v14 = vld [vmem:[%s29030_s4 + $0x810] sm:$0xff] }
 0x235   : > { %4899 = vmatpush1.bf16.msra.mxu0 %v17714_v15  ;;  %5114 = vmatpush1.bf16.msra.mxu1 %v17716_v16  ;;  %v1089_v15 = vld [vmem:[%s29030_s4 + $0x618] sm:$0xff]  ;;  %v17781_v16 = vcombine.high %v1081_v8, %v1085_v9 }
 0x236   : > { %4911 = vmatprep.subr.bf16.mxu0 %v17723_v17  ;;  %5126 = vmatprep.subr.bf16.mxu1 %v17725_v21  ;;  %v1093_v17 = vld [vmem:[%s29030_s4 + $0x638] sm:$0xff]  ;;  %v1096_v21 = vld [vmem:[%s29030_s4 + $0x650] sm:$0xff] }
 0x237   : > { %v17788_v27 = vcombine.low %v1089_v15, %v1093_v17  ;;  %v17795_v28 = vcombine.high %v1096_v21, %v1100_v22  ;;  %v1145_v8 = vld [vmem:[%s29030_s4 + $0x7d8] sm:$0xff] }
 0x238   : > { %4901 = vmatmul.mubr.bf16.vlgmr.msra.gmra.mrb[4].mxu0 %v22719_v31  ;;  %5116 = vmatmul.mubr.bf16.vlgmr.msra.gmra.mrb[4].mxu1 %v22719_v31  ;;  %v1105_v31 = vld [vmem:[%s29030_s4 + $0x698] sm:$0xff] }
 0x239   : > { %4912 = vmatpush1.bf16.msra.mxu0 %v17722_v23  ;;  %5127 = vmatpush1.bf16.msra.mxu1 %v17724_v24  ;;  %v1097_v23 = vld [vmem:[%s29030_s4 + $0x658] sm:$0xff]  ;;  %v17789_v24 = vcombine.high %v1089_v15, %v1093_v17  ;;  %v1156_v15 = vld [vmem:[%s29030_s4 + $0x830] sm:$0xff] }
 0x23a   : > { %4913 = vmatprep.subr.bf16.mxu0 %v17731_v25  ;;  %5128 = vmatprep.subr.bf16.mxu1 %v17733_v29  ;;  %v1101_v25 = vld [vmem:[%s29030_s4 + $0x678] sm:$0xff]  ;;  %v1104_v29 = vld [vmem:[%s29030_s4 + $0x690] sm:$0xff] }
 0x23b   : > { %4943 = vmatprep.mubr.bf16.mxu0 %v22720_v41  ;;  %5158 = vmatprep.mubr.bf16.mxu1 %v22720_v41  ;;  %v17796_v36 = vcombine.low %v1097_v23, %v1101_v25  ;;  %v17803_v37 = vcombine.high %v1104_v29, %v1108_v30 }
 0x23d   : > { %4914 = vmatpush1.bf16.msra.mxu0 %v17730_v32  ;;  %5129 = vmatpush1.bf16.msra.mxu1 %v17732_v33  ;;  %v17797_v32 = vcombine.high %v1097_v23, %v1101_v25  ;;  %v1109_v33 = vld [vmem:[%s29030_s4 + $0x6b8] sm:$0xff]  ;;  %v1164_v23 = vld [vmem:[%s29030_s4 + $0x870] sm:$0xff] }
 0x23e   : > { %4915 = vmatprep.subr.bf16.mxu0 %v17739_v35  ;;  %5130 = vmatprep.subr.bf16.mxu1 %v17741_v39  ;;  %v17794_v35 = vcombine.low %v1096_v21, %v1100_v22  ;;  %v1116_v39 = vld [vmem:[%s29030_s4 + $0x6f0] sm:$0xff]  ;;  %v17805_v41 = vcombine.high %v1105_v31, %v1109_v33  ;;  %v17851_v21 = vcombine.high %v1152_v14, %v1156_v15 }
 0x23f   : > { %v17811_v45 = vcombine.high %v1112_v38, %v1116_v39  ;;  %v1160_v22 = vld [vmem:[%s29030_s4 + $0x850] sm:$0xff] }
 0x241   : > { %4916 = vmatpush1.bf16.msra.mxu0 %v17738_v42  ;;  %5131 = vmatpush1.bf16.msra.mxu1 %v17740_v43  ;;  %v1117_v42 = vld [vmem:[%s29030_s4 + $0x6f8] sm:$0xff]  ;;  %v17802_v43 = vcombine.low %v1104_v29, %v1108_v30  ;;  %v17859_v29 = vcombine.high %v1160_v22, %v1164_v23  ;;  %v1168_v30 = vld [vmem:[%s29030_s4 + $0x890] sm:$0xff] }
 0x242   : > { %4917 = vmatprep.subr.bf16.mxu0 %v17747_v44  ;;  %5132 = vmatprep.subr.bf16.mxu1 %v17749_v48  ;;  %v17804_v44 = vcombine.low %v1105_v31, %v1109_v33  ;;  %v1121_v48 = vld [vmem:[%s29030_s4 + $0x718] sm:$0xff]  ;;  %v17813_v49 = vcombine.high %v1113_v40, %v1117_v42  ;;  %v1172_v31 = vld [vmem:[%s29030_s4 + $0x8b0] sm:$0xff] }
 0x245   : > { %4918 = vmatpush1.bf16.msra.mxu0 %v17746_v50  ;;  %5133 = vmatpush1.bf16.msra.mxu1 %v17748_v51  ;;  %v1125_v50 = vld [vmem:[%s29030_s4 + $0x738] sm:$0xff]  ;;  %v17810_v51 = vcombine.low %v1112_v38, %v1116_v39  ;;  %v17867_v39 = vcombine.high %v1168_v30, %v1172_v31 }
 0x246   : > { %4919 = vmatprep.subr.bf16.mxu0 %v17755_v52  ;;  %5134 = vmatprep.subr.bf16.mxu1 %v17757_v56  ;;  %v17812_v52 = vcombine.low %v1113_v40, %v1117_v42  ;;  %v1129_v56 = vld [vmem:[%s29030_s4 + $0x758] sm:$0xff]  ;;  %v17821_v57 = vcombine.high %v1121_v48, %v1125_v50  ;;  %v1176_v40 = vld [vmem:[%s29030_s4 + $0x8d0] sm:$0xff] }
 0x247   : > { %v1177_v42 = vld [vmem:[%s29030_s4 + $0x8d8] sm:$0xff] }
 0x249   : > { %4920 = vmatpush1.bf16.msra.mxu0 %v17754_v58  ;;  %5135 = vmatpush1.bf16.msra.mxu1 %v17756_v59  ;;  %v1133_v58 = vld [vmem:[%s29030_s4 + $0x778] sm:$0xff]  ;;  %v17818_v59 = vcombine.low %v1120_v46, %v1124_v47  ;;  %v17866_v46 = vcombine.low %v1168_v30, %v1172_v31  ;;  %v1232_v31 = vld [vmem:[%s29030_s4 + $0xa90] sm:$0xff] }
 0x24a   : > { %4921 = vmatprep.subr.bf16.mxu0 %v17763_v60  ;;  %5136 = vmatprep.subr.bf16.mxu1 %v17765_v0  ;;  %v17820_v60 = vcombine.low %v1121_v48, %v1125_v50  ;;  %v1137_v0 = vld [vmem:[%s29030_s4 + $0x798] sm:$0xff]  ;;  %v17829_v1 = vcombine.high %v1129_v56, %v1133_v58  ;;  %v1188_v50 = vld [vmem:[%s29030_s4 + $0x930] sm:$0xff] }
 0x24d   : > { %4922 = vmatpush1.bf16.msra.mxu0 %v17762_v2  ;;  %5137 = vmatpush1.bf16.msra.mxu1 %v17764_v3  ;;  %v1141_v2 = vld [vmem:[%s29030_s4 + $0x7b8] sm:$0xff]  ;;  %v17826_v3 = vcombine.low %v1128_v54, %v1132_v55 }
 0x24e   : > { %4923 = vmatprep.subr.bf16.mxu0 %v17771_v4  ;;  %5138 = vmatprep.subr.bf16.mxu1 %v17773_v7  ;;  %v17828_v4 = vcombine.low %v1129_v56, %v1133_v58  ;;  %v1148_v7 = vld [vmem:[%s29030_s4 + $0x7f0] sm:$0xff]  ;;  %v17837_v9 = vcombine.high %v1137_v0, %v1141_v2 }
 0x24f   : > { %v17843_v13 = vcombine.high %v1144_v6, %v1148_v7  ;;  %v1196_v58 = vld [vmem:[%s29030_s4 + $0x970] sm:$0xff] }
 0x251   : > { %4924 = vmatpush1.bf16.msra.mxu0 %v17770_v10  ;;  %5139 = vmatpush1.bf16.msra.mxu1 %v17772_v11  ;;  %v1149_v10 = vld [vmem:[%s29030_s4 + $0x7f8] sm:$0xff]  ;;  %v17834_v11 = vcombine.low %v1136_v62, %v1140_v63 }
 0x252   : > { %4925 = vmatprep.subr.bf16.mxu0 %v17779_v12  ;;  %5140 = vmatprep.subr.bf16.mxu1 %v17781_v16  ;;  %v17836_v12 = vcombine.low %v1137_v0, %v1141_v2  ;;  %v1153_v16 = vld [vmem:[%s29030_s4 + $0x818] sm:$0xff]  ;;  %v17845_v17 = vcombine.high %v1145_v8, %v1149_v10  ;;  %v1204_v2 = vld [vmem:[%s29030_s4 + $0x9b0] sm:$0xff] }
 0x255   : > { %4926 = vmatpush1.bf16.msra.mxu0 %v17778_v18  ;;  %5141 = vmatpush1.bf16.msra.mxu1 %v17780_v19  ;;  %v1157_v18 = vld [vmem:[%s29030_s4 + $0x838] sm:$0xff]  ;;  %v17842_v19 = vcombine.low %v1144_v6, %v1148_v7 }
 0x256   : > { %4927 = vmatprep.subr.bf16.mxu0 %v17787_v20  ;;  %5142 = vmatprep.subr.bf16.mxu1 %v17789_v24  ;;  %v17844_v20 = vcombine.low %v1145_v8, %v1149_v10  ;;  %v1161_v24 = vld [vmem:[%s29030_s4 + $0x858] sm:$0xff]  ;;  %v17853_v25 = vcombine.high %v1153_v16, %v1157_v18  ;;  %v1212_v10 = vld [vmem:[%s29030_s4 + $0x9f0] sm:$0xff] }
 0x259   : > { %4928 = vmatpush1.bf16.msra.mxu0 %v17786_v26  ;;  %5143 = vmatpush1.bf16.msra.mxu1 %v17788_v27  ;;  %v1165_v26 = vld [vmem:[%s29030_s4 + $0x878] sm:$0xff]  ;;  %v17850_v27 = vcombine.low %v1152_v14, %v1156_v15 }
 0x25a   : > { %4929 = vmatprep.subr.bf16.mxu0 %v17795_v28  ;;  %5144 = vmatprep.subr.bf16.mxu1 %v17797_v32  ;;  %v17852_v28 = vcombine.low %v1153_v16, %v1157_v18  ;;  %v1169_v32 = vld [vmem:[%s29030_s4 + $0x898] sm:$0xff]  ;;  %v17861_v33 = vcombine.high %v1161_v24, %v1165_v26  ;;  %v17860_v38 = vcombine.low %v1161_v24, %v1165_v26  ;;  %v1220_v18 = vld [vmem:[%s29030_s4 + $0xa30] sm:$0xff] }
 0x25b   : > { %v1228_v26 = vld [vmem:[%s29030_s4 + $0xa70] sm:$0xff] }
 0x25d   : > { %4930 = vmatpush1.bf16.msra.mxu0 %v17794_v35  ;;  %5145 = vmatpush1.bf16.msra.mxu1 %v17796_v36  ;;  %v1173_v35 = vld [vmem:[%s29030_s4 + $0x8b8] sm:$0xff]  ;;  %v22721_v36 = vld [vmem:[%s23438_s17 + $0x8] ss:$36 sps:$4 sm:$0xff]  }
 0x25e   : > { %4931 = vmatprep.subr.bf16.mxu0 %v17803_v37  ;;  %5146 = vmatprep.subr.bf16.mxu1 %v17805_v41  ;;  %v17858_v37 = vcombine.low %v1160_v22, %v1164_v23  ;;  %v1180_v41 = vld [vmem:[%s29030_s4 + $0x8f0] sm:$0xff]  ;;  %v17868_v47 = vcombine.low %v1169_v32, %v1173_v35 }
 0x25f   : > { %v17875_v48 = vcombine.high %v1176_v40, %v1180_v41  ;;  %v17874_v54 = vcombine.low %v1176_v40, %v1180_v41 }
 0x261   : > { %4932 = vmatpush1.bf16.msra.mxu0 %v17802_v43  ;;  %5147 = vmatpush1.bf16.msra.mxu1 %v17804_v44  ;;  %v17869_v43 = vcombine.high %v1169_v32, %v1173_v35  ;;  %v1181_v44 = vld [vmem:[%s29030_s4 + $0x8f8] sm:$0xff]  ;;  %v1236_v32 = vld [vmem:[%s29030_s4 + $0xab0] sm:$0xff] }
 0x262   : > { %4933 = vmatprep.subr.bf16.mxu0 %v17811_v45  ;;  %5148 = vmatprep.subr.bf16.mxu1 %v17813_v49  ;;  %v22722_v45 = vld [vmem:[%s23438_s17 + $0x14] ss:$36 sps:$4 sm:$0xff]   ;;  %v17876_v55 = vcombine.low %v1177_v42, %v1181_v44  ;;  %v17931_v41 = vcombine.high %v1232_v31, %v1236_v32 }
 0x263   : > { %v1184_v49 = vld [vmem:[%s29030_s4 + $0x910] sm:$0xff] }
 0x264   : > { %v17883_v56 = vcombine.high %v1184_v49, %v1188_v50  ;;  %v17882_v62 = vcombine.low %v1184_v49, %v1188_v50  ;;  %v1248_v50 = vld [vmem:[%s29030_s4 + $0xb10] sm:$0xff] }
 0x265   : > { %4934 = vmatpush1.bf16.msra.mxu0 %v17810_v51  ;;  %5149 = vmatpush1.bf16.msra.mxu1 %v17812_v52  ;;  %v1185_v51 = vld [vmem:[%s29030_s4 + $0x918] sm:$0xff]  ;;  %v17877_v52 = vcombine.high %v1177_v42, %v1181_v44  ;;  %v1240_v42 = vld [vmem:[%s29030_s4 + $0xad0] sm:$0xff] }
 0x266   : > { %4935 = vmatprep.subr.bf16.mxu0 %v17819_v53  ;;  %5150 = vmatprep.subr.bf16.mxu1 %v17821_v57  ;;  %v1189_v53 = vld [vmem:[%s29030_s4 + $0x938] sm:$0xff]  ;;  %v1192_v57 = vld [vmem:[%s29030_s4 + $0x950] sm:$0xff] }
 0x267   : > { %v17884_v63 = vcombine.low %v1185_v51, %v1189_v53  ;;  %v17891_v0 = vcombine.high %v1192_v57, %v1196_v58  ;;  %v17890_v6 = vcombine.low %v1192_v57, %v1196_v58  ;;  %v1256_v58 = vld [vmem:[%s29030_s4 + $0xb50] sm:$0xff] }
 0x269   : > { %4936 = vmatpush1.bf16.msra.mxu0 %v17818_v59  ;;  %5151 = vmatpush1.bf16.msra.mxu1 %v17820_v60  ;;  %v1193_v59 = vld [vmem:[%s29030_s4 + $0x958] sm:$0xff]  ;;  %v17885_v60 = vcombine.high %v1185_v51, %v1189_v53  ;;  %v1252_v51 = vld [vmem:[%s29030_s4 + $0xb30] sm:$0xff] }
 0x26a   : > { %4937 = vmatprep.subr.bf16.mxu0 %v17827_v61  ;;  %5152 = vmatprep.subr.bf16.mxu1 %v17829_v1  ;;  %v1197_v61 = vld [vmem:[%s29030_s4 + $0x978] sm:$0xff]  ;;  %v1200_v1 = vld [vmem:[%s29030_s4 + $0x990] sm:$0xff]  ;;  %v17947_v57 = vcombine.high %v1248_v50, %v1252_v51 }
 0x26b   : > { %v17892_v7 = vcombine.low %v1193_v59, %v1197_v61  ;;  %v17899_v8 = vcombine.high %v1200_v1, %v1204_v2  ;;  %v17898_v14 = vcombine.low %v1200_v1, %v1204_v2  ;;  %v1264_v2 = vld [vmem:[%s29030_s4 + $0xb90] sm:$0xff] }
 0x26d   : > { %4938 = vmatpush1.bf16.msra.mxu0 %v17826_v3  ;;  %5153 = vmatpush1.bf16.msra.mxu1 %v17828_v4  ;;  %v1201_v3 = vld [vmem:[%s29030_s4 + $0x998] sm:$0xff]  ;;  %v17893_v4 = vcombine.high %v1193_v59, %v1197_v61  ;;  %v1260_v59 = vld [vmem:[%s29030_s4 + $0xb70] sm:$0xff] }
 0x26e   : > { %4939 = vmatprep.subr.bf16.mxu0 %v17835_v5  ;;  %5154 = vmatprep.subr.bf16.mxu1 %v17837_v9  ;;  %v1205_v5 = vld [vmem:[%s29030_s4 + $0x9b8] sm:$0xff]  ;;  %v1208_v9 = vld [vmem:[%s29030_s4 + $0x9d0] sm:$0xff]  ;;  %v17955_v1 = vcombine.high %v1256_v58, %v1260_v59 }
 0x26f   : > { %v17900_v15 = vcombine.low %v1201_v3, %v1205_v5  ;;  %v17907_v16 = vcombine.high %v1208_v9, %v1212_v10  ;;  %v17906_v22 = vcombine.low %v1208_v9, %v1212_v10  ;;  %v1272_v10 = vld [vmem:[%s29030_s4 + $0xbd0] sm:$0xff] }
 0x271   : > { %4940 = vmatpush1.bf16.msra.mxu0 %v17834_v11  ;;  %5155 = vmatpush1.bf16.msra.mxu1 %v17836_v12  ;;  %v1209_v11 = vld [vmem:[%s29030_s4 + $0x9d8] sm:$0xff]  ;;  %v17901_v12 = vcombine.high %v1201_v3, %v1205_v5  ;;  %v1268_v3 = vld [vmem:[%s29030_s4 + $0xbb0] sm:$0xff] }
 0x272   : > { %4941 = vmatprep.subr.bf16.mxu0 %v17843_v13  ;;  %5156 = vmatprep.subr.bf16.mxu1 %v17845_v17  ;;  %v1213_v13 = vld [vmem:[%s29030_s4 + $0x9f8] sm:$0xff]  ;;  %v1216_v17 = vld [vmem:[%s29030_s4 + $0xa10] sm:$0xff]  ;;  %v17963_v9 = vcombine.high %v1264_v2, %v1268_v3 }
 0x273   : > { %v17908_v23 = vcombine.low %v1209_v11, %v1213_v13  ;;  %v17915_v24 = vcombine.high %v1216_v17, %v1220_v18  ;;  %v17914_v30 = vcombine.low %v1216_v17, %v1220_v18  ;;  %v1280_v18 = vld [vmem:[%s29030_s4 + $0xc10] sm:$0xff] }
 0x275   : > { %4942 = vmatpush1.bf16.msra.mxu0 %v17842_v19  ;;  %5157 = vmatpush1.bf16.msra.mxu1 %v17844_v20  ;;  %v1217_v19 = vld [vmem:[%s29030_s4 + $0xa18] sm:$0xff]  ;;  %v17909_v20 = vcombine.high %v1209_v11, %v1213_v13  ;;  %v1276_v11 = vld [vmem:[%s29030_s4 + $0xbf0] sm:$0xff] }
 0x276   : > { %4954 = vmatprep.subr.bf16.mxu0 %v17851_v21  ;;  %5169 = vmatprep.subr.bf16.mxu1 %v17853_v25  ;;  %v1221_v21 = vld [vmem:[%s29030_s4 + $0xa38] sm:$0xff]  ;;  %v1224_v25 = vld [vmem:[%s29030_s4 + $0xa50] sm:$0xff]  ;;  %v17971_v17 = vcombine.high %v1272_v10, %v1276_v11 }
 0x277   : > { %v17923_v35 = vcombine.high %v1224_v25, %v1228_v26 }
 0x278   : > { %4944 = vmatmul.mubr.bf16.vlgmr.msra.gmra.mrb[4].mxu0 %v22721_v36  ;;  %5159 = vmatmul.mubr.bf16.vlgmr.msra.gmra.mrb[4].mxu1 %v22721_v36  ;;  %v1233_v36 = vld [vmem:[%s29030_s4 + $0xa98] sm:$0xff] }
 0x279   : > { %4955 = vmatpush1.bf16.msra.mxu0 %v17850_v27  ;;  %5170 = vmatpush1.bf16.msra.mxu1 %v17852_v28  ;;  %v1225_v27 = vld [vmem:[%s29030_s4 + $0xa58] sm:$0xff]  ;;  %v17917_v28 = vcombine.high %v1217_v19, %v1221_v21 }
 0x27a   : > { %4956 = vmatprep.subr.bf16.mxu0 %v17859_v29  ;;  %5171 = vmatprep.subr.bf16.mxu1 %v17861_v33  ;;  %v1229_v29 = vld [vmem:[%s29030_s4 + $0xa78] sm:$0xff]  ;;  %v17916_v33 = vcombine.low %v1217_v19, %v1221_v21  ;;  %v1284_v19 = vld [vmem:[%s29030_s4 + $0xc30] sm:$0xff] }
 0x27b   : > { %4986 = vmatprep.mubr.bf16.mxu0 %v22722_v45  ;;  %5201 = vmatprep.mubr.bf16.mxu1 %v22722_v45  ;;  %v17924_v40 = vcombine.low %v1225_v27, %v1229_v29  ;;  %v1241_v45 = vld [vmem:[%s29030_s4 + $0xad8] sm:$0xff] }
 0x27d   : > { %4957 = vmatpush1.bf16.msra.mxu0 %v17858_v37  ;;  %5172 = vmatpush1.bf16.msra.mxu1 %v17860_v38  ;;  %v1237_v37 = vld [vmem:[%s29030_s4 + $0xab8] sm:$0xff]  ;;  %v17925_v38 = vcombine.high %v1225_v27, %v1229_v29  ;;  %v1292_v27 = vld [vmem:[%s29030_s4 + $0xc70] sm:$0xff] }
 0x27e   : > { %4958 = vmatprep.subr.bf16.mxu0 %v17867_v39  ;;  %5173 = vmatprep.subr.bf16.mxu1 %v17869_v43  ;;  %v17922_v39 = vcombine.low %v1224_v25, %v1228_v26  ;;  %v1244_v43 = vld [vmem:[%s29030_s4 + $0xaf0] sm:$0xff]  ;;  %v17933_v44 = vcombine.high %v1233_v36, %v1237_v37  ;;  %v17979_v25 = vcombine.high %v1280_v18, %v1284_v19 }
 0x27f   : > { %v17939_v49 = vcombine.high %v1240_v42, %v1244_v43  ;;  %v1288_v26 = vld [vmem:[%s29030_s4 + $0xc50] sm:$0xff] }
 0x281   : > { %4959 = vmatpush1.bf16.msra.mxu0 %v17866_v46  ;;  %5174 = vmatpush1.bf16.msra.mxu1 %v17868_v47  ;;  %v1245_v46 = vld [vmem:[%s29030_s4 + $0xaf8] sm:$0xff]  ;;  %v17930_v47 = vcombine.low %v1232_v31, %v1236_v32  ;;  %v17978_v31 = vcombine.low %v1280_v18, %v1284_v19 }
 0x282   : > { %4960 = vmatprep.subr.bf16.mxu0 %v17875_v48  ;;  %5175 = vmatprep.subr.bf16.mxu1 %v17877_v52  ;;  %v17932_v48 = vcombine.low %v1233_v36, %v1237_v37  ;;  %v1249_v52 = vld [vmem:[%s29030_s4 + $0xb18] sm:$0xff]  ;;  %v17941_v53 = vcombine.high %v1241_v45, %v1245_v46  ;;  %v1300_v36 = vld [vmem:[%s29030_s4 + $0xcb0] sm:$0xff] }
 0x283   : > { %v1297_v37 = vld [vmem:[%s29030_s4 + $0xc98] sm:$0xff] }
 0x285   : > { %4961 = vmatpush1.bf16.msra.mxu0 %v17874_v54  ;;  %5176 = vmatpush1.bf16.msra.mxu1 %v17876_v55  ;;  %v1253_v54 = vld [vmem:[%s29030_s4 + $0xb38] sm:$0xff]  ;;  %v17938_v55 = vcombine.low %v1240_v42, %v1244_v43 }
 0x286   : > { %4962 = vmatprep.subr.bf16.mxu0 %v17883_v56  ;;  %5177 = vmatprep.subr.bf16.mxu1 %v17885_v60  ;;  %v17940_v56 = vcombine.low %v1241_v45, %v1245_v46  ;;  %v1257_v60 = vld [vmem:[%s29030_s4 + $0xb58] sm:$0xff]  ;;  %v17949_v61 = vcombine.high %v1249_v52, %v1253_v54  ;;  %v1308_v45 = vld [vmem:[%s29030_s4 + $0xcf0] sm:$0xff] }
 0x287   : > { %v1305_v46 = vld [vmem:[%s29030_s4 + $0xcd8] sm:$0xff] }
 0x289   : > { %4963 = vmatpush1.bf16.msra.mxu0 %v17882_v62  ;;  %5178 = vmatpush1.bf16.msra.mxu1 %v17884_v63  ;;  %v1261_v62 = vld [vmem:[%s29030_s4 + $0xb78] sm:$0xff]  ;;  %v17946_v63 = vcombine.low %v1248_v50, %v1252_v51  ;;  %v1472_v50 = vlaneseq }
 0x28a   : > { %4964 = vmatprep.subr.bf16.mxu0 %v17891_v0  ;;  %5179 = vmatprep.subr.bf16.mxu1 %v17893_v4  ;;  %v17948_v0 = vcombine.low %v1249_v52, %v1253_v54  ;;  %v1265_v4 = vld [vmem:[%s29030_s4 + $0xb98] sm:$0xff]  ;;  %v17957_v5 = vcombine.high %v1257_v60, %v1261_v62  ;;  %v1312_v54 = vld [vmem:[%s29030_s4 + $0xd10] sm:$0xff] }
 0x28d   : > { %4965 = vmatpush1.bf16.msra.mxu0 %v17890_v6  ;;  %5180 = vmatpush1.bf16.msra.mxu1 %v17892_v7  ;;  %v1269_v6 = vld [vmem:[%s29030_s4 + $0xbb8] sm:$0xff]  ;;  %v17954_v7 = vcombine.low %v1256_v58, %v1260_v59  ;;  %v24874_v59 = vshrl.u32 %v1472_v50, 7 }
 0x28e   : > { %4966 = vmatprep.subr.bf16.mxu0 %v17899_v8  ;;  %5181 = vmatprep.subr.bf16.mxu1 %v17901_v12  ;;  %v17956_v8 = vcombine.low %v1257_v60, %v1261_v62  ;;  %v1273_v12 = vld [vmem:[%s29030_s4 + $0xbd8] sm:$0xff]  ;;  %v17965_v13 = vcombine.high %v1265_v4, %v1269_v6 }
 0x28f   : > { %v1317_v58 = vld [vmem:[%s29030_s4 + $0xd38] sm:$0xff]  ;;  %vm5320_vm2 = vcmp.lt.s32.totalorder %v24874_v59, 1  ;;  %vm7762_vm4 = vcmp.lt.s32.totalorder %v24874_v59, 7 }
 0x291   : > { %4967 = vmatpush1.bf16.msra.mxu0 %v17898_v14  ;;  %5182 = vmatpush1.bf16.msra.mxu1 %v17900_v15  ;;  %v1277_v14 = vld [vmem:[%s29030_s4 + $0xbf8] sm:$0xff]  ;;  %v17962_v15 = vcombine.low %v1264_v2, %v1268_v3  ;;  %v1470_v3 = vld [vmem:[%s29032_s9] sm:$0xff] }
 0x292   : > { %4968 = vmatprep.subr.bf16.mxu0 %v17907_v16  ;;  %5183 = vmatprep.subr.bf16.mxu1 %v17909_v20  ;;  %v17964_v16 = vcombine.low %v1265_v4, %v1269_v6  ;;  %v1281_v20 = vld [vmem:[%s29030_s4 + $0xc18] sm:$0xff]  ;;  %v17973_v21 = vcombine.high %v1273_v12, %v1277_v14 }
 0x293   : > { %v1325_v4 = vld [vmem:[%s29030_s4 + $0xd78] sm:$0xff] }
 0x295   : > { %4969 = vmatpush1.bf16.msra.mxu0 %v17906_v22  ;;  %5184 = vmatpush1.bf16.msra.mxu1 %v17908_v23  ;;  %v1285_v22 = vld [vmem:[%s29030_s4 + $0xc38] sm:$0xff]  ;;  %v17970_v23 = vcombine.low %v1272_v10, %v1276_v11  ;;  %v24901_v10 = vsub.s32 3, %v24874_v59 }
 0x296   : > { %4970 = vmatprep.subr.bf16.mxu0 %v17915_v24  ;;  %5185 = vmatprep.subr.bf16.mxu1 %v17917_v28  ;;  %v17972_v24 = vcombine.low %v1273_v12, %v1277_v14  ;;  %v1289_v28 = vld [vmem:[%s29030_s4 + $0xc58] sm:$0xff]  ;;  %v17981_v29 = vcombine.high %v1281_v20, %v1285_v22  ;;  %v17980_v32 = vcombine.low %v1281_v20, %v1285_v22  ;;  %v1328_v12 = vld [vmem:[%s29030_s4 + $0xd90] sm:$0xff] }
 0x297   : > { %v1329_v14 = vld [vmem:[%s29030_s4 + $0xd98] sm:$0xff]  ;;  %v1340_v22 = vld [vmem:[%s29030_s4 + $0xdf0] sm:$0xff] }
 0x299   : > { %4971 = vmatpush1.bf16.msra.mxu0 %v17914_v30  ;;  %5186 = vmatpush1.bf16.msra.mxu1 %v17916_v33  ;;  %v1293_v30 = vld [vmem:[%s29030_s4 + $0xc78] sm:$0xff]  ;;  %v17987_v33 = vcombine.high %v1288_v26, %v1292_v27 }
 0x29a   : > { %4972 = vmatprep.subr.bf16.mxu0 %v17923_v35  ;;  %5187 = vmatprep.subr.bf16.mxu1 %v17925_v38  ;;  %v1296_v35 = vld [vmem:[%s29030_s4 + $0xc90] sm:$0xff]  ;;  %v17989_v38 = vcombine.high %v1289_v28, %v1293_v30  ;;  %v17988_v42 = vcombine.low %v1289_v28, %v1293_v30 }
 0x29b   : > { %v17995_v43 = vcombine.high %v1296_v35, %v1300_v36  ;;  %v17994_v51 = vcombine.low %v1296_v35, %v1300_v36 }
 0x29d   : > { %4973 = vmatpush1.bf16.msra.mxu0 %v17922_v39  ;;  %5188 = vmatpush1.bf16.msra.mxu1 %v17924_v40  ;;  %v1301_v39 = vld [vmem:[%s29030_s4 + $0xcb8] sm:$0xff]  ;;  %v22723_v40 = vld [vmem:[%s23438_s17 + $0x10] ss:$36 sps:$4 sm:$0xff]  }
 0x29e   : > { %4974 = vmatprep.subr.bf16.mxu0 %v17931_v41  ;;  %5189 = vmatprep.subr.bf16.mxu1 %v17933_v44  ;;  %v17986_v41 = vcombine.low %v1288_v26, %v1292_v27  ;;  %v1304_v44 = vld [vmem:[%s29030_s4 + $0xcd0] sm:$0xff]  ;;  %v17996_v52 = vcombine.low %v1297_v37, %v1301_v39  ;;  %v1337_v26 = vld [vmem:[%s29030_s4 + $0xdd8] sm:$0xff] }
 0x29f   : > { %v18002_v60 = vcombine.low %v1304_v44, %v1308_v45  ;;  %v1341_v27 = vld [vmem:[%s29030_s4 + $0xdf8] sm:$0xff] }
 0x2a1   : > { %4975 = vmatpush1.bf16.msra.mxu0 %v17930_v47  ;;  %5190 = vmatpush1.bf16.msra.mxu1 %v17932_v48  ;;  %v17997_v47 = vcombine.high %v1297_v37, %v1301_v39  ;;  %v1309_v48 = vld [vmem:[%s29030_s4 + $0xcf8] sm:$0xff] }
 0x2a2   : > { %4976 = vmatprep.subr.bf16.mxu0 %v17939_v49  ;;  %5191 = vmatprep.subr.bf16.mxu1 %v17941_v53  ;;  %v22724_v49 = vld [vmem:[%s23438_s17 + $0x1c] ss:$36 sps:$4 sm:$0xff]   ;;  %v18003_v53 = vcombine.high %v1304_v44, %v1308_v45 }
 0x2a5   : > { %4977 = vmatpush1.bf16.msra.mxu0 %v17938_v55  ;;  %5192 = vmatpush1.bf16.msra.mxu1 %v17940_v56  ;;  %v1316_v55 = vld [vmem:[%s29030_s4 + $0xd30] sm:$0xff]  ;;  %v1313_v56 = vld [vmem:[%s29030_s4 + $0xd18] sm:$0xff] }
 0x2a6   : > { %4978 = vmatprep.subr.bf16.mxu0 %v17947_v57  ;;  %5193 = vmatprep.subr.bf16.mxu1 %v17949_v61  ;;  %v18005_v57 = vcombine.high %v1305_v46, %v1309_v48  ;;  %v18004_v61 = vcombine.low %v1305_v46, %v1309_v48  ;;  %v18011_v62 = vcombine.high %v1312_v54, %v1316_v55  ;;  %v1349_v48 = vld [vmem:[%s29030_s4 + $0xe38] sm:$0xff] }
 0x2a7   : > { %v18013_v2 = vcombine.high %v1313_v56, %v1317_v58  ;;  %v18010_v6 = vcombine.low %v1312_v54, %v1316_v55 }
 0x2a9   : > { %4979 = vmatpush1.bf16.msra.mxu0 %v17946_v63  ;;  %5194 = vmatpush1.bf16.msra.mxu1 %v17948_v0  ;;  %v1320_v63 = vld [vmem:[%s29030_s4 + $0xd50] sm:$0xff] }
 0x2aa   : > { %4980 = vmatprep.subr.bf16.mxu0 %v17955_v1  ;;  %5195 = vmatprep.subr.bf16.mxu1 %v17957_v5  ;;  %v1324_v0 = vld [vmem:[%s29030_s4 + $0xd70] sm:$0xff]  ;;  %v1321_v1 = vld [vmem:[%s29030_s4 + $0xd58] sm:$0xff]  ;;  %v24892_v5 = vsub.s32 0, %v24874_v59 }
 0x2ab   : > { %v18019_v11 = vcombine.high %v1320_v63, %v1324_v0  ;;  %v18018_v20 = vcombine.low %v1320_v63, %v1324_v0  ;;  %v1352_v63 = vld [vmem:[%s29030_s4 + $0xe50] sm:$0xff] }
 0x2ac   : > { %v1356_v0 = vld [vmem:[%s29030_s4 + $0xe70] sm:$0xff] }
 0x2ad   : > { %4981 = vmatpush1.bf16.msra.mxu0 %v17954_v7  ;;  %5196 = vmatpush1.bf16.msra.mxu1 %v17956_v8  ;;  %v24895_v7 = vsub.s32 2, %v24874_v59  ;;  %v24898_v8 = vsub.s32 1, %v24874_v59 }
 0x2ae   : > { %4982 = vmatprep.subr.bf16.mxu0 %v17963_v9  ;;  %5197 = vmatprep.subr.bf16.mxu1 %v17965_v13  ;;  %v18012_v9 = vcombine.low %v1313_v56, %v1317_v58  ;;  %v1332_v13 = vld [vmem:[%s29030_s4 + $0xdb0] sm:$0xff] }
 0x2af   : > { %v1483_v18 = vrot.slane %v1470_v3, %v24895_v7  ;;  %v1479_v19 = vrot.slane %v1470_v3, %v24898_v8 }
 0x2b1   : > { %4983 = vmatpush1.bf16.msra.mxu0 %v17962_v15  ;;  %5198 = vmatpush1.bf16.msra.mxu1 %v17964_v16  ;;  %v18021_v15 = vcombine.high %v1321_v1, %v1325_v4  ;;  %v1333_v16 = vld [vmem:[%s29030_s4 + $0xdb8] sm:$0xff] }
 0x2b2   : > { %4984 = vmatprep.subr.bf16.mxu0 %v17971_v17  ;;  %5199 = vmatprep.subr.bf16.mxu1 %v17973_v21  ;;  %v1475_v17 = vrot.slane %v1470_v3, %v24892_v5  ;;  %v24921_v21 = vld [vmem:[%s29030_s4 + $0xdd0] sm:$0xff]  ;;  %v18028_v39 = vcombine.low %v1329_v14, %v1333_v16 }
 0x2b3   : > { %v18035_v46 = vcombine.high %v24921_v21, %v1340_v22 }
 0x2b5   : > { %4985 = vmatpush1.bf16.msra.mxu0 %v17970_v23  ;;  %5200 = vmatpush1.bf16.msra.mxu1 %v17972_v24  ;;  %v1487_v23 = vrot.slane %v1470_v3, %v24901_v10  ;;  %v18020_v24 = vcombine.low %v1321_v1, %v1325_v4 }
 0x2b6   : > { %4997 = vmatprep.subr.bf16.mxu0 %v17979_v25  ;;  %5212 = vmatprep.subr.bf16.mxu1 %v17981_v29  ;;  %v18027_v25 = vcombine.high %v1328_v12, %v1332_v13  ;;  %v18029_v29 = vcombine.high %v1329_v14, %v1333_v16  ;;  %v1360_v16 = vld [vmem:[%s29030_s4 + $0xe90] sm:$0xff] }
 0x2b8   : > { %4987 = vmatmul.mubr.bf16.vlgmr.msra.gmra.mrb[4].mxu0 %v22723_v40  ;;  %5202 = vmatmul.mubr.bf16.vlgmr.msra.gmra.mrb[4].mxu1 %v22723_v40  ;;  %v1344_v40 = vld [vmem:[%s29030_s4 + $0xe10] sm:$0xff] }
 0x2b9   : > { %4998 = vmatpush1.bf16.msra.mxu0 %v17978_v31  ;;  %5213 = vmatpush1.bf16.msra.mxu1 %v17980_v32 }
 0x2ba   : > { %4999 = vmatprep.subr.bf16.mxu0 %v17987_v33  ;;  %5214 = vmatprep.subr.bf16.mxu1 %v17989_v38  ;;  %v18026_v38 = vcombine.low %v1328_v12, %v1332_v13 }
 0x2bb   : > { %5029 = vmatprep.mubr.bf16.mxu0 %v22724_v49  ;;  %5244 = vmatprep.mubr.bf16.mxu1 %v22724_v49 }
 0x2bd   : > { %5000 = vmatpush1.bf16.msra.mxu0 %v17986_v41  ;;  %5215 = vmatpush1.bf16.msra.mxu1 %v17988_v42  ;;  %v1348_v41 = vld [vmem:[%s29030_s4 + $0xe30] sm:$0xff] }
 0x2be   : > { %5001 = vmatprep.subr.bf16.mxu0 %v17995_v43  ;;  %5216 = vmatprep.subr.bf16.mxu1 %v17997_v47  ;;  %v1345_v47 = vld [vmem:[%s29030_s4 + $0xe18] sm:$0xff]  ;;  %v18043_v4 = vcombine.high %v1344_v40, %v1348_v41 }
 0x2bf   : > { %v18045_v13 = vcombine.high %v1345_v47, %v1349_v48 }
 0x2c1   : > { %5002 = vmatpush1.bf16.msra.mxu0 %v17994_v51  ;;  %5217 = vmatpush1.bf16.msra.mxu1 %v17996_v52  ;;  %v18034_v52 = vcombine.low %v24921_v21, %v1340_v22  ;;  %v1365_v21 = vld [vmem:[%s29030_s4 + $0xeb8] sm:$0xff] }
 0x2c2   : > { %5003 = vmatprep.subr.bf16.mxu0 %v18003_v53  ;;  %5218 = vmatprep.subr.bf16.mxu1 %v18005_v57  ;;  %v18037_v53 = vcombine.high %v1337_v26, %v1341_v27 }
 0x2c5   : > { %5004 = vmatpush1.bf16.msra.mxu0 %v18002_v60  ;;  %5219 = vmatpush1.bf16.msra.mxu1 %v18004_v61 }
 0x2c6   : > { %5005 = vmatprep.subr.bf16.mxu0 %v18011_v62  ;;  %5220 = vmatprep.subr.bf16.mxu1 %v18013_v2  ;;  %v18036_v62 = vcombine.low %v1337_v26, %v1341_v27 }
 0x2c9   : > { %5006 = vmatpush1.bf16.msra.mxu0 %v18010_v6  ;;  %5221 = vmatpush1.bf16.msra.mxu1 %v18012_v9  ;;  %v1353_v6 = vld [vmem:[%s29030_s4 + $0xe58] sm:$0xff] }
 0x2ca   : > { %5007 = vmatprep.subr.bf16.mxu0 %v18019_v11  ;;  %5222 = vmatprep.subr.bf16.mxu1 %v18021_v15  ;;  %v1357_v9 = vld [vmem:[%s29030_s4 + $0xe78] sm:$0xff]  ;;  %v18042_v15 = vcombine.low %v1344_v40, %v1348_v41  ;;  %v1384_v41 = vld [vmem:[%s29030_s4 + $0xf50] sm:$0xff] }
 0x2cb   : > { %v4644_v28 = vpop.f32.mrb[0].mxu0  ;;  %v4859_v31 = vpop.f32.mrb[0].mxu1  ;;  %v18053_v22 = vcombine.high %v1353_v6, %v1357_v9  ;;  %v18052_v26 = vcombine.low %v1353_v6, %v1357_v9 }
 0x2cc   : > { %v20165_v30 = vadd.f32 %v4644_v28, %v1475_v17  ;;  %v4646_v32 = vpop.f32.mrb[1].mxu0  ;;  %v20169_v33 = vadd.f32 %v4859_v31, %v1483_v18  ;;  %v4861_v36 = vpop.f32.mrb[1].mxu1  ;;  %v1369_v28 = vld [vmem:[%s29030_s4 + $0xed8] sm:$0xff] }
 0x2cd   : > { %v20166_v35 = vadd.f32 %v4646_v32, %v1479_v19  ;;  %v4648_v37 = vpop.f32.mrb[2].mxu0  ;;  %5008 = vmatpush1.bf16.msra.mxu0 %v18018_v20  ;;  %v20170_v42 = vadd.f32 %v4861_v36, %v1487_v23  ;;  %v4863_v44 = vpop.f32.mrb[2].mxu1  ;;  %5223 = vmatpush1.bf16.msra.mxu1 %v18020_v24  ;;  %v1361_v20 = vld [vmem:[%s29030_s4 + $0xe98] sm:$0xff]  ;;  %v1368_v24 = vld [vmem:[%s29030_s4 + $0xed0] sm:$0xff] }
 0x2ce   : > { %v20167_v43 = vadd.f32 %v4648_v37, %v1475_v17  ;;  %v4650_v45 = vpop.f32.mrb[3].mxu0  ;;  %5009 = vmatprep.subr.bf16.mxu0 %v18027_v25  ;;  %v20171_v49 = vadd.f32 %v4863_v44, %v1483_v18  ;;  %v4865_v51 = vpop.f32.mrb[3].mxu1  ;;  %5224 = vmatprep.subr.bf16.mxu1 %v18029_v29  ;;  %v5298_v54 = vmax.f32 %v20165_v30, 0.0  ;;  %v5300_v55 = vmax.f32 %v20169_v33, 0.0  ;;  %v1364_v17 = vld [vmem:[%s29030_s4 + $0xeb0] sm:$0xff]  ;;  %v1373_v29 = vld [vmem:[%s29030_s4 + $0xef8] sm:$0xff] }
 0x2cf   : > { %v20168_v50 = vadd.f32 %v4650_v45, %v1479_v19  ;;  %v20172_v57 = vadd.f32 %v4865_v51, %v1487_v23  ;;  %v5299_v58 = vmax.f32 %v20166_v35, 0.0  ;;  %v5301_v1 = vmax.f32 %v20170_v42, 0.0  ;;  %v1372_v25 = vld [vmem:[%s29030_s4 + $0xef0] sm:$0xff]  ;;  %v1377_v37 = vld [vmem:[%s29030_s4 + $0xf18] sm:$0xff] }
 0x2d0   : > { %v5306_v56 = vmax.f32 %v20167_v43, 0.0  ;;  %v5308_v60 = vmax.f32 %v20171_v49, 0.0  ;;  %v18044_v18 = vcombine.low %v1345_v47, %v1349_v48  ;;  %v18051_v19 = vcombine.high %v1352_v63, %v1356_v0  ;;  %v1376_v32 = vld [vmem:[%s29030_s4 + $0xf10] sm:$0xff]  ;;  %v1385_v45 = vld [vmem:[%s29030_s4 + $0xf58] sm:$0xff] }
 0x2d1   : > { %v5307_v61 = vmax.f32 %v20168_v50, 0.0  ;;  %5010 = vmatpush1.bf16.msra.mxu0 %v18026_v38  ;;  %v5309_v3 = vmax.f32 %v20172_v57, 0.0  ;;  %5225 = vmatpush1.bf16.msra.mxu1 %v18028_v39  ;;  %v18050_v23 = vcombine.low %v1352_v63, %v1356_v0  ;;  %v18059_v27 = vcombine.high %v1360_v16, %v1364_v17  ;;  %v1380_v33 = vld [vmem:[%s29030_s4 + $0xf30] sm:$0xff]  ;;  %v1381_v38 = vld [vmem:[%s29030_s4 + $0xf38] sm:$0xff] }
 0x2d2   : > { %v24953_v2 = vpack.c.bf16 %v5306_v56, %v5298_v54  ;;  %5011 = vmatprep.subr.bf16.mxu0 %v18035_v46  ;;  %v24961_v11 = vpack.c.bf16 %v5308_v60, %v5300_v55  ;;  %5226 = vmatprep.subr.bf16.mxu1 %v18037_v53  ;;  %v18061_v30 = vcombine.high %v1361_v20, %v1365_v21  ;;  %v1388_v42 = vld [vmem:[%s29030_s4 + $0xf70] sm:$0xff]  ;;  %v1389_v46 = vld [vmem:[%s29030_s4 + $0xf78] sm:$0xff] }
 0x2d3   : > { %v24963_v12 = vpack.c.bf16 %v5307_v61, %v5299_v58  ;;  %v24965_v14 = vpack.c.bf16 %v5309_v3, %v5301_v1  ;;  %v18058_v31 = vcombine.low %v1360_v16, %v1364_v17  ;;  %v18060_v35 = vcombine.low %v1361_v20, %v1365_v21  ;;  %v1392_v49 = vld [vmem:[%s29030_s4 + $0xf90] sm:$0xff]  ;;  %v1393_v53 = vld [vmem:[%s29030_s4 + $0xf98] sm:$0xff] }
 0x2d4   : > { %v18067_v36 = vcombine.high %v1368_v24, %v1372_v25  ;;  %v18069_v39 = vcombine.high %v1369_v28, %v1373_v29  ;;  %v18066_v40 = vcombine.low %v1368_v24, %v1372_v25  ;;  %v18068_v43 = vcombine.low %v1369_v28, %v1373_v29  ;;  %v1396_v50 = vld [vmem:[%s29030_s4 + $0xfb0] sm:$0xff]  ;;  %v1397_v54 = vld [vmem:[%s29030_s4 + $0xfb8] sm:$0xff] }
 0x2d5   : > { %5012 = vmatpush1.bf16.msra.mxu0 %v18034_v52  ;;  %5227 = vmatpush1.bf16.msra.mxu1 %v18036_v62  ;;  %v18075_v44 = vcombine.high %v1376_v32, %v1380_v33  ;;  %v18077_v47 = vcombine.high %v1377_v37, %v1381_v38  ;;  %v18074_v48 = vcombine.low %v1376_v32, %v1380_v33  ;;  %v1400_v57 = vld [vmem:[%s29030_s4 + $0xfd0] sm:$0xff]  ;;  %v1401_v62 = vld [vmem:[%s29030_s4 + $0xfd8] sm:$0xff] }
 0x2d6   : > { %5013 = vmatprep.subr.bf16.mxu0 %v18043_v4  ;;  %5228 = vmatprep.subr.bf16.mxu1 %v18045_v13  ;;  %v18076_v51 = vcombine.low %v1377_v37, %v1381_v38  ;;  %v18083_v52 = vcombine.high %v1384_v41, %v1388_v42  ;;  %v18085_v55 = vcombine.high %v1385_v45, %v1389_v46  ;;  %v1404_v58 = vld [vmem:[%s29030_s4 + $0xff0] sm:$0xff]  ;;  %v1405_v63 = vld [vmem:[%s29030_s4 + $0xff8] sm:$0xff] }
 0x2d7   : > { %v18082_v56 = vcombine.low %v1384_v41, %v1388_v42  ;;  %v18084_v60 = vcombine.low %v1385_v45, %v1389_v46  ;;  %v18091_v61 = vcombine.high %v1392_v49, %v1396_v50  ;;  %v18093_v0 = vcombine.high %v1393_v53, %v1397_v54  ;;  %v1408_v3 = vld [vmem:[%s29030_s4 + $0x1010] sm:$0xff]  ;;  %v1409_v13 = vld [vmem:[%s29030_s4 + $0x1018] sm:$0xff] }
 0x2d8   : > { %v18090_v1 = vcombine.low %v1392_v49, %v1396_v50  ;;  %v1412_v4 = vld [vmem:[%s29030_s4 + $0x1030] sm:$0xff]  ;;  %v18092_v6 = vcombine.low %v1393_v53, %v1397_v54  ;;  %v18099_v9 = vcombine.high %v1400_v57, %v1404_v58  ;;  %v18101_v16 = vcombine.high %v1401_v62, %v1405_v63  ;;  %v22725_v33 = vld [vmem:[%s23438_s17 + $0x18] ss:$36 sps:$4 sm:$0xff]  }
 0x2d9   : > { %5014 = vmatpush1.bf16.msra.mxu0 %v18042_v15  ;;  %5229 = vmatpush1.bf16.msra.mxu1 %v18044_v18  ;;  %v1413_v15 = vld [vmem:[%s29030_s4 + $0x1038] sm:$0xff]  ;;  %v18098_v17 = vcombine.low %v1400_v57, %v1404_v58  ;;  %v1416_v18 = vld [vmem:[%s29030_s4 + $0x1050] sm:$0xff]  ;;  %v18100_v20 = vcombine.low %v1401_v62, %v1405_v63  ;;  %v18107_v21 = vcombine.high %v1408_v3, %v1412_v4 }
 0x2da   : > { %5015 = vmatprep.subr.bf16.mxu0 %v18051_v19  ;;  %5230 = vmatprep.subr.bf16.mxu1 %v18053_v22  ;;  %v1420_v19 = vld [vmem:[%s29030_s4 + $0x1070] sm:$0xff]  ;;  %v1417_v22 = vld [vmem:[%s29030_s4 + $0x1058] sm:$0xff]  ;;  %v18109_v24 = vcombine.high %v1409_v13, %v1413_v15  ;;  %v18106_v25 = vcombine.low %v1408_v3, %v1412_v4  ;;  %v18108_v28 = vcombine.low %v1409_v13, %v1413_v15 }
 0x2db   : > { %v18115_v29 = vcombine.high %v1416_v18, %v1420_v19  ;;  %v1436_v37 = vld [vmem:[%s29030_s4 + $0x10f0] sm:$0xff]  ;;  %v1437_v41 = vld [vmem:[%s29030_s4 + $0x10f8] sm:$0xff] }
 0x2dc   : > { %v1444_v45 = vld [vmem:[%s29030_s4 + $0x1130] sm:$0xff] }
 0x2dd   : > { %5016 = vmatpush1.bf16.msra.mxu0 %v18050_v23  ;;  %5231 = vmatpush1.bf16.msra.mxu1 %v18052_v26  ;;  %v1421_v23 = vld [vmem:[%s29030_s4 + $0x1078] sm:$0xff]  ;;  %v1424_v26 = vld [vmem:[%s29030_s4 + $0x1090] sm:$0xff] }
 0x2de   : > { %5017 = vmatprep.subr.bf16.mxu0 %v18059_v27  ;;  %5232 = vmatprep.subr.bf16.mxu1 %v18061_v30  ;;  %v1428_v27 = vld [vmem:[%s29030_s4 + $0x10b0] sm:$0xff]  ;;  %v1425_v30 = vld [vmem:[%s29030_s4 + $0x1098] sm:$0xff]  ;;  %v18117_v32 = vcombine.high %v1417_v22, %v1421_v23  ;;  %v18116_v38 = vcombine.low %v1417_v22, %v1421_v23 }
 0x2df   : > { %v20544_v23 = vld [vmem:[%s29033_s6 + $0x4] ss:$16 sps:$4 sm:$0xff]  }
 0x2e1   : > { %5018 = vmatpush1.bf16.msra.mxu0 %v18058_v31  ;;  %5233 = vmatpush1.bf16.msra.mxu1 %v18060_v35  ;;  %v1429_v31 = vld [vmem:[%s29030_s4 + $0x10b8] sm:$0xff]  ;;  %v18114_v35 = vcombine.low %v1416_v18, %v1420_v19 }
 0x2e2   : > { %5019 = vmatprep.subr.bf16.mxu0 %v18067_v36  ;;  %5234 = vmatprep.subr.bf16.mxu1 %v18069_v39  ;;  %v1432_v36 = vld [vmem:[%s29030_s4 + $0x10d0] sm:$0xff]  ;;  %v18123_v39 = vcombine.high %v1424_v26, %v1428_v27  ;;  %v18125_v42 = vcombine.high %v1425_v30, %v1429_v31  ;;  %v18124_v46 = vcombine.low %v1425_v30, %v1429_v31  ;;  %v20553_v30 = vld [vmem:[%s29033_s6 + $0x2c] ss:$16 sps:$4 sm:$0xff]  }
 0x2e3   : > { %v18130_v50 = vcombine.low %v1432_v36, %v1436_v37  ;;  %v20548_v31 = vld [vmem:[%s29033_s6 + $0x20] ss:$16 sps:$4 sm:$0xff]  }
 0x2e5   : > { %5020 = vmatpush1.bf16.msra.mxu0 %v18066_v40  ;;  %5235 = vmatpush1.bf16.msra.mxu1 %v18068_v43  ;;  %v1433_v40 = vld [vmem:[%s29030_s4 + $0x10d8] sm:$0xff]  ;;  %v18122_v43 = vcombine.low %v1424_v26, %v1428_v27  ;;  %v20542_v27 = vld [vmem:[%s29033_s6] ss:$16 sps:$4 sm:$0xff]  }
 0x2e6   : > { %5021 = vmatprep.subr.bf16.mxu0 %v18075_v44  ;;  %5236 = vmatprep.subr.bf16.mxu1 %v18077_v47  ;;  %v1440_v44 = vld [vmem:[%s29030_s4 + $0x1110] sm:$0xff]  ;;  %v18131_v47 = vcombine.high %v1432_v36, %v1436_v37  ;;  %v18133_v49 = vcombine.high %v1433_v40, %v1437_v41  ;;  %v18132_v53 = vcombine.low %v1433_v40, %v1437_v41  ;;  %v20559_v36 = vld [vmem:[%s29033_s6 + $0x4c] ss:$16 sps:$4 sm:$0xff]  }
 0x2e7   : > { %v18139_v54 = vcombine.high %v1440_v44, %v1444_v45  ;;  %v18138_v58 = vcombine.low %v1440_v44, %v1444_v45  ;;  %v20554_v37 = vld [vmem:[%s29033_s6 + $0x40] ss:$16 sps:$4 sm:$0xff]   ;;  %v20565_v40 = vld [vmem:[%s29033_s6 + $0x6c] ss:$16 sps:$4 sm:$0xff]  }
 0x2e8   : > { %v20560_v41 = vld [vmem:[%s29033_s6 + $0x60] ss:$16 sps:$4 sm:$0xff]   ;;  %v20571_v44 = vld [vmem:[%s29033_s6 + $0x8c] ss:$16 sps:$4 sm:$0xff]  }
 0x2e9   : > { %5022 = vmatpush1.bf16.msra.mxu0 %v18074_v48  ;;  %5237 = vmatpush1.bf16.msra.mxu1 %v18076_v51  ;;  %v1441_v48 = vld [vmem:[%s29030_s4 + $0x1118] sm:$0xff]  ;;  %v1448_v51 = vld [vmem:[%s29030_s4 + $0x1150] sm:$0xff] }
 0x2ea   : > { %5023 = vmatprep.subr.bf16.mxu0 %v18083_v52  ;;  %5238 = vmatprep.subr.bf16.mxu1 %v18085_v55  ;;  %v1452_v52 = vld [vmem:[%s29030_s4 + $0x1170] sm:$0xff]  ;;  %v1449_v55 = vld [vmem:[%s29030_s4 + $0x1158] sm:$0xff] }
 0x2eb   : > { %v18147_v63 = vcombine.high %v1448_v51, %v1452_v52  ;;  %v18146_v4 = vcombine.low %v1448_v51, %v1452_v52  ;;  %v20566_v45 = vld [vmem:[%s29033_s6 + $0x80] ss:$16 sps:$4 sm:$0xff]   ;;  %v20583_v51 = vld [vmem:[%s29033_s6 + $0xcc] ss:$16 sps:$4 sm:$0xff]  }
 0x2ec   : > { %v20578_v52 = vld [vmem:[%s29033_s6 + $0xc0] ss:$16 sps:$4 sm:$0xff]  }
 0x2ed   : > { %5024 = vmatpush1.bf16.msra.mxu0 %v18082_v56  ;;  %5239 = vmatpush1.bf16.msra.mxu1 %v18084_v60  ;;  %v1453_v56 = vld [vmem:[%s29030_s4 + $0x1178] sm:$0xff]  ;;  %v1456_v60 = vld [vmem:[%s29030_s4 + $0x1190] sm:$0xff] }
 0x2ee   : > { %5025 = vmatprep.subr.bf16.mxu0 %v18091_v61  ;;  %5240 = vmatprep.subr.bf16.mxu1 %v18093_v0  ;;  %v1460_v61 = vld [vmem:[%s29030_s4 + $0x11b0] sm:$0xff]  ;;  %v1457_v0 = vld [vmem:[%s29030_s4 + $0x1198] sm:$0xff]  ;;  %v18149_v3 = vcombine.high %v1449_v55, %v1453_v56  ;;  %v18148_v13 = vcombine.low %v1449_v55, %v1453_v56 }
 0x2ef   : > { %v18155_v15 = vcombine.high %v1456_v60, %v1460_v61  ;;  %v18154_v19 = vcombine.low %v1456_v60, %v1460_v61  ;;  %v20589_v55 = vld [vmem:[%s29033_s6 + $0xec] ss:$16 sps:$4 sm:$0xff]   ;;  %v20584_v56 = vld [vmem:[%s29033_s6 + $0xe0] ss:$16 sps:$4 sm:$0xff]  }
 0x2f0   : > { %v20595_v60 = vld [vmem:[%s29033_s6 + $0x10c] ss:$16 sps:$4 sm:$0xff]   ;;  %v20590_v61 = vld [vmem:[%s29033_s6 + $0x100] ss:$16 sps:$4 sm:$0xff]  }
 0x2f1   : > { %5026 = vmatpush1.bf16.msra.mxu0 %v18090_v1  ;;  %5241 = vmatpush1.bf16.msra.mxu1 %v18092_v6  ;;  %v1461_v1 = vld [vmem:[%s29030_s4 + $0x11b8] sm:$0xff]  ;;  %v1464_v6 = vld [vmem:[%s29030_s4 + $0x11d0] sm:$0xff] }
 0x2f2   : > { %5027 = vmatprep.subr.bf16.mxu0 %v18099_v9  ;;  %5242 = vmatprep.subr.bf16.mxu1 %v18101_v16  ;;  %v1468_v9 = vld [vmem:[%s29030_s4 + $0x11f0] sm:$0xff]  ;;  %v1465_v16 = vld [vmem:[%s29030_s4 + $0x11d8] sm:$0xff]  ;;  %v18157_v18 = vcombine.high %v1457_v0, %v1461_v1 }
 0x2f5   : > { %5028 = vmatpush1.bf16.msra.mxu0 %v18098_v17  ;;  %5243 = vmatpush1.bf16.msra.mxu1 %v18100_v20  ;;  %v1469_v17 = vld [vmem:[%s29030_s4 + $0x11f8] sm:$0xff]  ;;  %v18156_v20 = vcombine.low %v1457_v0, %v1461_v1  ;;  %v20596_v1 = vld [vmem:[%s29033_s6 + $0x120] ss:$16 sps:$4 sm:$0xff]  }
 0x2f6   : > { %5040 = vmatprep.subr.bf16.mxu0 %v18107_v21  ;;  %5255 = vmatprep.subr.bf16.mxu1 %v18109_v24  ;;  %v18163_v21 = vcombine.high %v1464_v6, %v1468_v9  ;;  %v18165_v22 = vcombine.high %v1465_v16, %v1469_v17  ;;  %v18162_v24 = vcombine.low %v1464_v6, %v1468_v9  ;;  %v20601_v0 = vld [vmem:[%s29033_s6 + $0x12c] ss:$16 sps:$4 sm:$0xff]   ;;  %v20602_v9 = vld [vmem:[%s29033_s6 + $0x140] ss:$16 sps:$4 sm:$0xff]  }
 0x2f7   : > { %v18164_v26 = vcombine.low %v1465_v16, %v1469_v17  ;;  %v20607_v6 = vld [vmem:[%s29033_s6 + $0x14c] ss:$16 sps:$4 sm:$0xff]   ;;  %v20608_v17 = vld [vmem:[%s29033_s6 + $0x160] ss:$16 sps:$4 sm:$0xff]  }
 0x2f8   : > { %5030 = vmatmul.mubr.bf16.vlgmr.msra.gmra.mrb[4].mxu0 %v22725_v33  ;;  %5245 = vmatmul.mubr.bf16.vlgmr.msra.gmra.mrb[4].mxu1 %v22725_v33  ;;  %v20551_v33 = vld [vmem:[%s29033_s6 + $0x28] ss:$16 sps:$4 sm:$0xff]   ;;  %v20613_v16 = vld [vmem:[%s29033_s6 + $0x16c] ss:$16 sps:$4 sm:$0xff]  }
 0x2f9   : > { %5041 = vmatpush1.bf16.msra.mxu0 %v18106_v25  ;;  %5256 = vmatpush1.bf16.msra.mxu1 %v18108_v28  ;;  %v20547_v25 = vld [vmem:[%s29033_s6 + $0xc] ss:$16 sps:$4 sm:$0xff]   ;;  %v20545_v28 = vld [vmem:[%s29033_s6 + $0x8] ss:$16 sps:$4 sm:$0xff]  }
 0x2fa   : > { %5042 = vmatprep.subr.bf16.mxu0 %v18115_v29  ;;  %5257 = vmatprep.subr.bf16.mxu1 %v18117_v32  ;;  %v20550_v29 = vld [vmem:[%s29033_s6 + $0x24] ss:$16 sps:$4 sm:$0xff]  }
 0x2fb   : > { %5072 = vmatprep.mubr.bf16.mxu0 %v22986_v34  ;;  %5287 = vmatprep.mubr.bf16.mxu1 %v22986_v34  ;;  %v1445_v34 = vld [vmem:[%s29030_s4 + $0x1138] sm:$0xff]  ;;  %v22726_v32 = vld [vmem:[%s23438_s17 + $0x20] ss:$36 sps:$4 sm:$0xff]   ;;  %s29044_s17 = smov %s29043_s27  ;;  %s29053_s4 = sld [smem:[#allocation42_spill]] }
 0x2fc   : > { %v18141_v57 = vcombine.high %v1441_v48, %v1445_v34  ;;  %v18140_v62 = vcombine.low %v1441_v48, %v1445_v34  ;;  %v20577_v48 = vld [vmem:[%s29033_s6 + $0xac] ss:$16 sps:$4 sm:$0xff]   ;;  %v20572_v34 = vld [vmem:[%s29033_s6 + $0xa0] ss:$16 sps:$4 sm:$0xff]  }
 0x2fd   : > { %5043 = vmatpush1.bf16.msra.mxu0 %v18114_v35  ;;  %5258 = vmatpush1.bf16.msra.mxu1 %v18116_v38  ;;  %v20556_v35 = vld [vmem:[%s29033_s6 + $0x44] ss:$16 sps:$4 sm:$0xff]   ;;  %v20557_v38 = vld [vmem:[%s29033_s6 + $0x48] ss:$16 sps:$4 sm:$0xff]  }
 0x2fe   : > { %5044 = vmatprep.subr.bf16.mxu0 %v18123_v39  ;;  %5259 = vmatprep.subr.bf16.mxu1 %v18125_v42  ;;  %v20562_v39 = vld [vmem:[%s29033_s6 + $0x64] ss:$16 sps:$4 sm:$0xff]   ;;  %v20563_v42 = vld [vmem:[%s29033_s6 + $0x68] ss:$16 sps:$4 sm:$0xff]  }
 0x301   : > { %5045 = vmatpush1.bf16.msra.mxu0 %v18122_v43  ;;  %5260 = vmatpush1.bf16.msra.mxu1 %v18124_v46  ;;  %v20568_v43 = vld [vmem:[%s29033_s6 + $0x84] ss:$16 sps:$4 sm:$0xff]   ;;  %v20569_v46 = vld [vmem:[%s29033_s6 + $0x88] ss:$16 sps:$4 sm:$0xff]  }
 0x302   : > { %5046 = vmatprep.subr.bf16.mxu0 %v18131_v47  ;;  %5261 = vmatprep.subr.bf16.mxu1 %v18133_v49  ;;  %v20574_v47 = vld [vmem:[%s29033_s6 + $0xa4] ss:$16 sps:$4 sm:$0xff]   ;;  %v20575_v49 = vld [vmem:[%s29033_s6 + $0xa8] ss:$16 sps:$4 sm:$0xff]  }
 0x305   : > { %5047 = vmatpush1.bf16.msra.mxu0 %v18130_v50  ;;  %5262 = vmatpush1.bf16.msra.mxu1 %v18132_v53  ;;  %v20580_v50 = vld [vmem:[%s29033_s6 + $0xc4] ss:$16 sps:$4 sm:$0xff]   ;;  %v20581_v53 = vld [vmem:[%s29033_s6 + $0xc8] ss:$16 sps:$4 sm:$0xff]  }
 0x306   : > { %5048 = vmatprep.subr.bf16.mxu0 %v18139_v54  ;;  %5263 = vmatprep.subr.bf16.mxu1 %v18141_v57  ;;  %v20586_v54 = vld [vmem:[%s29033_s6 + $0xe4] ss:$16 sps:$4 sm:$0xff]   ;;  %v20587_v57 = vld [vmem:[%s29033_s6 + $0xe8] ss:$16 sps:$4 sm:$0xff]  }
 0x309   : > { %5049 = vmatpush1.bf16.msra.mxu0 %v18138_v58  ;;  %5264 = vmatpush1.bf16.msra.mxu1 %v18140_v62  ;;  %v20592_v58 = vld [vmem:[%s29033_s6 + $0x104] ss:$16 sps:$4 sm:$0xff]   ;;  %v20593_v62 = vld [vmem:[%s29033_s6 + $0x108] ss:$16 sps:$4 sm:$0xff]  }
 0x30a   : > { %5050 = vmatprep.subr.bf16.mxu0 %v18147_v63  ;;  %5265 = vmatprep.subr.bf16.mxu1 %v18149_v3  ;;  %v20598_v63 = vld [vmem:[%s29033_s6 + $0x124] ss:$16 sps:$4 sm:$0xff]   ;;  %v20599_v3 = vld [vmem:[%s29033_s6 + $0x128] ss:$16 sps:$4 sm:$0xff]  }
 0x30d   : > { %5051 = vmatpush1.bf16.msra.mxu0 %v18146_v4  ;;  %5266 = vmatpush1.bf16.msra.mxu1 %v18148_v13  ;;  %v20604_v4 = vld [vmem:[%s29033_s6 + $0x144] ss:$16 sps:$4 sm:$0xff]   ;;  %v20605_v13 = vld [vmem:[%s29033_s6 + $0x148] ss:$16 sps:$4 sm:$0xff]  }
 0x30e   : > { %5052 = vmatprep.subr.bf16.mxu0 %v18155_v15  ;;  %5267 = vmatprep.subr.bf16.mxu1 %v18157_v18  ;;  %v20610_v15 = vld [vmem:[%s29033_s6 + $0x164] ss:$16 sps:$4 sm:$0xff]   ;;  %v20611_v18 = vld [vmem:[%s29033_s6 + $0x168] ss:$16 sps:$4 sm:$0xff]  }
 0x311   : > { %5053 = vmatpush1.bf16.msra.mxu0 %v18154_v19  ;;  %5268 = vmatpush1.bf16.msra.mxu1 %v18156_v20  ;;  %v20616_v19 = vld [vmem:[%s29033_s6 + $0x184] ss:$16 sps:$4 sm:$0xff]   ;;  %v20619_v20 = vld [vmem:[%s29033_s6 + $0x18c] ss:$16 sps:$4 sm:$0xff]  }
 0x312   : > { %5054 = vmatprep.subr.bf16.mxu0 %v18163_v21  ;;  %5269 = vmatprep.subr.bf16.mxu1 %v18165_v22  ;;  %v20614_v21 = vld [vmem:[%s29033_s6 + $0x180] ss:$16 sps:$4 sm:$0xff]   ;;  %v20617_v22 = vld [vmem:[%s29033_s6 + $0x188] ss:$16 sps:$4 sm:$0xff]  }
 0x315   : > { %5055 = vmatpush1.bf16.msra.mxu0 %v18162_v24  ;;  %5270 = vmatpush1.bf16.msra.mxu1 %v18164_v26  ;;  %v20625_v24 = vld [vmem:[%s29033_s6 + $0x1ac] ss:$16 sps:$4 sm:$0xff]   ;;  %v20623_v26 = vld [vmem:[%s29033_s6 + $0x1a8] ss:$16 sps:$4 sm:$0xff]  }
 0x316   : > { %7308 = vmatprep.subr.bf16.mxu0 %v20544_v23  ;;  %7523 = vmatprep.subr.bf16.mxu1 %v20547_v25  ;;  %v20622_v23 = vld [vmem:[%s29033_s6 + $0x1a4] ss:$16 sps:$4 sm:$0xff]   ;;  %v20620_v25 = vld [vmem:[%s29033_s6 + $0x1a0] ss:$16 sps:$4 sm:$0xff]  }
 0x318   : > { %5073 = vmatmul.mubr.bf16.vlgmr.msra.gmra.mrb[4].mxu0 %v22726_v32  ;;  %5288 = vmatmul.mubr.bf16.vlgmr.msra.gmra.mrb[4].mxu1 %v22726_v32  ;;  %v20637_v32 = vld [vmem:[%s29033_s6 + $0x1ec] ss:$16 sps:$4 sm:$0xff]  }
 0x319   : > { %7309 = vmatpush1.bf16.msra.mxu0 %v20542_v27  ;;  %7524 = vmatpush1.bf16.msra.mxu1 %v20545_v28  ;;  %v20628_v27 = vld [vmem:[%s29033_s6 + $0x1c4] ss:$16 sps:$4 sm:$0xff]   ;;  %v20631_v28 = vld [vmem:[%s29033_s6 + $0x1cc] ss:$16 sps:$4 sm:$0xff]  }
 0x31a   : > { %7310 = vmatprep.subr.bf16.mxu0 %v20550_v29  ;;  %7525 = vmatprep.subr.bf16.mxu1 %v20553_v30  ;;  %v20626_v29 = vld [vmem:[%s29033_s6 + $0x1c0] ss:$16 sps:$4 sm:$0xff]   ;;  %v20629_v30 = vld [vmem:[%s29033_s6 + $0x1c8] ss:$16 sps:$4 sm:$0xff]  }
 0x31d   : > { %7311 = vmatpush1.bf16.msra.mxu0 %v20548_v31  ;;  %7526 = vmatpush1.bf16.msra.mxu1 %v20551_v33  ;;  %v20634_v31 = vld [vmem:[%s29033_s6 + $0x1e4] ss:$16 sps:$4 sm:$0xff]   ;;  %v20632_v33 = vld [vmem:[%s29033_s6 + $0x1e0] ss:$16 sps:$4 sm:$0xff]  }
 0x31e   : > { %7312 = vmatprep.subr.bf16.mxu0 %v20556_v35  ;;  %7527 = vmatprep.subr.bf16.mxu1 %v20559_v36  ;;  %v20635_v35 = vld [vmem:[%s29033_s6 + $0x1e8] ss:$16 sps:$4 sm:$0xff]   ;;  %v20640_v36 = vld [vmem:[%s29033_s6 + $0x204] ss:$16 sps:$4 sm:$0xff]  }
 0x321   : > { %7313 = vmatpush1.bf16.msra.mxu0 %v20554_v37  ;;  %7528 = vmatpush1.bf16.msra.mxu1 %v20557_v38  ;;  %v20643_v37 = vld [vmem:[%s29033_s6 + $0x20c] ss:$16 sps:$4 sm:$0xff]   ;;  %v1490_v38 = vsub.s32 4, %v24874_v59 }
 0x322   : > { %7314 = vmatprep.subr.bf16.mxu0 %v20562_v39  ;;  %7529 = vmatprep.subr.bf16.mxu1 %v20565_v40  ;;  %v1498_v39 = vsub.s32 6, %v24874_v59  ;;  %v1494_v40 = vsub.s32 5, %v24874_v59 }
 0x325   : > { %7315 = vmatpush1.bf16.msra.mxu0 %v20560_v41  ;;  %7530 = vmatpush1.bf16.msra.mxu1 %v20563_v42  ;;  %v1502_v41 = vsub.s32 7, %v24874_v59  ;;  %v25342_v42 = vadd.s32 8, %v24874_v59 }
 0x326   : > { %7316 = vmatprep.subr.bf16.mxu0 %v20568_v43  ;;  %7531 = vmatprep.subr.bf16.mxu1 %v20571_v44  ;;  %v22727_v43 = vld [vmem:[%s29032_s9] sm:$0xff] }
 0x327   : > { %v1491_v44 = vrot.slane %v22727_v43, %v1490_v38  ;;  %v20644_v38 = vld [vmem:[%s29033_s6 + $0x220] ss:$16 sps:$4 sm:$0xff]  }
 0x329   : > { %7317 = vmatpush1.bf16.msra.mxu0 %v20566_v45  ;;  %7532 = vmatpush1.bf16.msra.mxu1 %v20569_v46  ;;  %v1499_v45 = vrot.slane %v22727_v43, %v1498_v39  ;;  %v1495_v46 = vrot.slane %v22727_v43, %v1494_v40  ;;  %v20647_v39 = vld [vmem:[%s29033_s6 + $0x228] ss:$16 sps:$4 sm:$0xff]   ;;  %v20649_v40 = vld [vmem:[%s29033_s6 + $0x22c] ss:$16 sps:$4 sm:$0xff]  }
 0x32a   : > { %7318 = vmatprep.subr.bf16.mxu0 %v20574_v47  ;;  %7533 = vmatprep.subr.bf16.mxu1 %v20577_v48  ;;  %v1503_v47 = vrot.slane %v22727_v43, %v1502_v41  ;;  %v20652_v41 = vld [vmem:[%s29033_s6 + $0x244] ss:$16 sps:$4 sm:$0xff]   ;;  %v20655_v43 = vld [vmem:[%s29033_s6 + $0x24c] ss:$16 sps:$4 sm:$0xff]  }
 0x32d   : > { %7319 = vmatpush1.bf16.msra.mxu0 %v20572_v34  ;;  %7534 = vmatpush1.bf16.msra.mxu1 %v20575_v49  ;;  %v5337_v34 = vand.u32 3, %v25342_v42  ;;  %v21318_v42 = vld [vmem:[%s29038_s26 + $0x624] ss:$16 sps:$4 sm:$0xff]  }
 0x32e   : > { %7320 = vmatprep.subr.bf16.mxu0 %v20580_v50  ;;  %7535 = vmatprep.subr.bf16.mxu1 %v20583_v51 }
 0x32f   : > { %vm25351_vm0 = vcmp.ne.s32.totalorder %v5337_v34, 0  ;;  %vm19863_vm5 = vcmp.ne.s32.totalorder %v5337_v34, 3  ;;  %v21321_v34 = vld [vmem:[%s29038_s26 + $0x62c] ss:$16 sps:$4 sm:$0xff]  }
 0x331   : > { %7321 = vmatpush1.bf16.msra.mxu0 %v20578_v52  ;;  %7536 = vmatpush1.bf16.msra.mxu1 %v20581_v53 }
 0x332   : > { %7322 = vmatprep.subr.bf16.mxu0 %v20586_v54  ;;  %7537 = vmatprep.subr.bf16.mxu1 %v20589_v55 }
 0x335   : > { %7323 = vmatpush1.bf16.msra.mxu0 %v20584_v56  ;;  %7538 = vmatpush1.bf16.msra.mxu1 %v20587_v57  ;;  %v5330_v56 = vand.u32 3, %v24874_v59 }
 0x336   : > { %7324 = vmatprep.subr.bf16.mxu0 %v20592_v58  ;;  %7539 = vmatprep.subr.bf16.mxu1 %v20595_v60 }
 0x337   : > { %vm19862_vm1 = vcmp.ne.s32.totalorder %v5330_v56, 0  ;;  %vm19864_vm6 = vcmp.ne.s32.totalorder %v5330_v56, 3  ;;  %v21316_v56 = vld [vmem:[%s29038_s26 + $0x620] ss:$16 sps:$4 sm:$0xff]  }
 0x338   : > { %vm25368_vm3 = vmpackc.low %vm25351_vm0, %vm19862_vm1 }
 0x339   : > { %7325 = vmatpush1.bf16.msra.mxu0 %v20590_v61  ;;  %7540 = vmatpush1.bf16.msra.mxu1 %v20593_v62  ;;  %vm26804_vm7 = vmpackc.low %vm19863_vm5, %vm19864_vm6 }
 0x33a   : > { %7326 = vmatprep.subr.bf16.mxu0 %v20598_v63  ;;  %7541 = vmatprep.subr.bf16.mxu1 %v20601_v0 }
 0x33d   : > { %7327 = vmatpush1.bf16.msra.mxu0 %v20596_v1  ;;  %7542 = vmatpush1.bf16.msra.mxu1 %v20599_v3  ;;  %v20680_v3 = vld [vmem:[%s29033_s6 + $0x2e0] ss:$16 sps:$4 sm:$0xff]  }
 0x33e   : > { %7328 = vmatprep.subr.bf16.mxu0 %v20604_v4  ;;  %7543 = vmatprep.subr.bf16.mxu1 %v20607_v6 }
 0x341   : > { %7329 = vmatpush1.bf16.msra.mxu0 %v20602_v9  ;;  %7544 = vmatpush1.bf16.msra.mxu1 %v20605_v13 }
 0x342   : > { %7330 = vmatprep.subr.bf16.mxu0 %v20610_v15  ;;  %7545 = vmatprep.subr.bf16.mxu1 %v20613_v16 }
 0x345   : > { %7331 = vmatpush1.bf16.msra.mxu0 %v20608_v17  ;;  %7546 = vmatpush1.bf16.msra.mxu1 %v20611_v18 }
 0x346   : > { %7332 = vmatprep.subr.bf16.mxu0 %v20616_v19  ;;  %7547 = vmatprep.subr.bf16.mxu1 %v20619_v20 }
 0x349   : > { %7333 = vmatpush1.bf16.msra.mxu0 %v20614_v21  ;;  %7548 = vmatpush1.bf16.msra.mxu1 %v20617_v22 }
 0x34a   : > { %7334 = vmatprep.subr.bf16.mxu0 %v20622_v23  ;;  %7549 = vmatprep.subr.bf16.mxu1 %v20625_v24 }
 0x34d   : > { %7335 = vmatpush1.bf16.msra.mxu0 %v20620_v25  ;;  %7550 = vmatpush1.bf16.msra.mxu1 %v20623_v26 }
 0x34e   : > { %7336 = vmatprep.subr.bf16.mxu0 %v20628_v27  ;;  %7551 = vmatprep.subr.bf16.mxu1 %v20631_v28 }
 0x351   : > { %7337 = vmatpush1.bf16.msra.mxu0 %v20626_v29  ;;  %7552 = vmatpush1.bf16.msra.mxu1 %v20629_v30  ;;  %v20638_v30 = vld [vmem:[%s29033_s6 + $0x200] ss:$16 sps:$4 sm:$0xff]  }
 0x352   : > { %7338 = vmatprep.subr.bf16.mxu0 %v20634_v31  ;;  %7553 = vmatprep.subr.bf16.mxu1 %v20637_v32  ;;  %v20641_v31 = vld [vmem:[%s29033_s6 + $0x208] ss:$16 sps:$4 sm:$0xff]  }
 0x355   : > { %7339 = vmatpush1.bf16.msra.mxu0 %v20632_v33  ;;  %7554 = vmatpush1.bf16.msra.mxu1 %v20635_v35 }
 0x356   : > { %7351 = vmatprep.subr.bf16.mxu0 %v20640_v36  ;;  %7566 = vmatprep.subr.bf16.mxu1 %v20643_v37  ;;  %v20646_v37 = vld [vmem:[%s29033_s6 + $0x224] ss:$16 sps:$4 sm:$0xff]  }
 0x3eb   : > { %v5074_v48 = vpop.f32.mrb[4].mxu0  ;;  %v5289_v50 = vpop.f32.mrb[4].mxu1 }
 0x3ec   : > { %v20173_v49 = vadd.f32 %v5074_v48, %v1491_v44  ;;  %v5076_v51 = vpop.f32.mrb[5].mxu0  ;;  %v20177_v52 = vadd.f32 %v5289_v50, %v1499_v45  ;;  %v5291_v54 = vpop.f32.mrb[5].mxu1  ;;  %v20656_v48 = vld [vmem:[%s29033_s6 + $0x260] ss:$16 sps:$4 sm:$0xff]   ;;  %v20664_v50 = vld [vmem:[%s29033_s6 + $0x284] ss:$16 sps:$4 sm:$0xff]  }
 0x3ed   : > { %v20174_v53 = vadd.f32 %v5076_v51, %v1495_v46  ;;  %v5078_v55 = vpop.f32.mrb[6].mxu0  ;;  %v20178_v57 = vadd.f32 %v5291_v54, %v1503_v47  ;;  %v5293_v60 = vpop.f32.mrb[6].mxu1  ;;  %v20667_v51 = vld [vmem:[%s29033_s6 + $0x28c] ss:$16 sps:$4 sm:$0xff]   ;;  %v20670_v54 = vld [vmem:[%s29033_s6 + $0x2a4] ss:$16 sps:$4 sm:$0xff]  }
 0x3ee   : > { %v20175_v58 = vadd.f32 %v5078_v55, %v1491_v44  ;;  %v5080_v61 = vpop.f32.mrb[7].mxu0  ;;  %v5304_v62 = vmax.f32 %v20177_v52, 0.0  ;;  %v20179_v63 = vadd.f32 %v5293_v60, %v1499_v45  ;;  %v5295_v1 = vpop.f32.mrb[7].mxu1  ;;  %v5302_v4 = vmax.f32 %v20173_v49, 0.0  ;;  %v20650_v44 = vld [vmem:[%s29033_s6 + $0x240] ss:$16 sps:$4 sm:$0xff]  }
 0x3ef   : > { %v20176_v0 = vadd.f32 %v5080_v61, %v1495_v46  ;;  %v5305_v6 = vmax.f32 %v20178_v57, 0.0  ;;  %v20180_v13 = vadd.f32 %v5295_v1, %v1503_v47  ;;  %v5303_v15 = vmax.f32 %v20174_v53, 0.0  ;;  %v20653_v45 = vld [vmem:[%s29033_s6 + $0x248] ss:$16 sps:$4 sm:$0xff]   ;;  %v20658_v46 = vld [vmem:[%s29033_s6 + $0x264] ss:$16 sps:$4 sm:$0xff]  }
 0x3f0   : > { %v5310_v9 = vmax.f32 %v20175_v58, 0.0  ;;  %v5312_v16 = vmax.f32 %v20179_v63, 0.0  ;;  %v5314_v20 = vrot.slane %v5304_v62, 7  ;;  %v20661_v47 = vld [vmem:[%s29033_s6 + $0x26c] ss:$16 sps:$4 sm:$0xff]  }
 0x3f1   : > { %v5311_v17 = vmax.f32 %v20176_v0, 0.0  ;;  %v5313_v19 = vmax.f32 %v20180_v13, 0.0  ;;  %v5315_v24 = vrot.slane %v5305_v6, 7  ;;  %v20659_v49 = vld [vmem:[%s29033_s6 + $0x268] ss:$16 sps:$4 sm:$0xff]  }
 0x3f2   : > { %v25358_v18 = vpack.c.bf16 %v5310_v9, %v5302_v4  ;;  %v5316_v21 = vrot.slane %v5312_v16, 7  ;;  %v25360_v22 = vpack.c.bf16 %v5312_v16, %v5304_v62  ;;  %v20662_v52 = vld [vmem:[%s29033_s6 + $0x280] ss:$16 sps:$4 sm:$0xff]   ;;  %v20665_v53 = vld [vmem:[%s29033_s6 + $0x288] ss:$16 sps:$4 sm:$0xff]  }
 0x3f3   : > { %v25362_v23 = vpack.c.bf16 %v5311_v17, %v5303_v15  ;;  %v5317_v25 = vrot.slane %v5313_v19, 7  ;;  %v25364_v26 = vpack.c.bf16 %v5313_v19, %v5305_v6  ;;  %v20673_v55 = vld [vmem:[%s29033_s6 + $0x2ac] ss:$16 sps:$4 sm:$0xff]   ;;  %v20668_v57 = vld [vmem:[%s29033_s6 + $0x2a0] ss:$16 sps:$4 sm:$0xff]  }
 0x3f4   : > { %v5321_v28 = vsel %vm5320_vm2, %v5314_v20, %v5316_v21  ;;  %v5323_v29 = vsel %vm5320_vm2, %v5316_v21, %v5314_v20  ;;  %v20671_v58 = vld [vmem:[%s29033_s6 + $0x2a8] ss:$16 sps:$4 sm:$0xff]   ;;  %v20676_v60 = vld [vmem:[%s29033_s6 + $0x2c4] ss:$16 sps:$4 sm:$0xff]   ;;  %v20679_v61 = vld [vmem:[%s29033_s6 + $0x2cc] ss:$16 sps:$4 sm:$0xff]  }
 0x3f5   : > { %v18494_v32 = vpack.c.bf16 %v5321_v28, %v5323_v29  ;;  %v5322_v33 = vsel %vm5320_vm2, %v5315_v24, %v5317_v25  ;;  %v5324_v35 = vsel %vm5320_vm2, %v5317_v25, %v5315_v24  ;;  %v20674_v62 = vld [vmem:[%s29033_s6 + $0x2c0] ss:$16 sps:$4 sm:$0xff]   ;;  %v20677_v63 = vld [vmem:[%s29033_s6 + $0x2c8] ss:$16 sps:$4 sm:$0xff]   ;;  %v20682_v0 = vld [vmem:[%s29033_s6 + $0x2e4] ss:$16 sps:$4 sm:$0xff]  }
 0x3f6   : > { %v18489_v36 = vpack.c.bf16 %v5322_v33, %v5324_v35  ;;  %v20685_v1 = vld [vmem:[%s29033_s6 + $0x2ec] ss:$16 sps:$4 sm:$0xff]   ;;  %v20683_v4 = vld [vmem:[%s29033_s6 + $0x2e8] ss:$16 sps:$4 sm:$0xff]   ;;  %v20688_v6 = vld [vmem:[%s29033_s6 + $0x304] ss:$16 sps:$4 sm:$0xff]  }
 0x3f7   : > { %v20691_v9 = vld [vmem:[%s29033_s6 + $0x30c] ss:$16 sps:$4 sm:$0xff]   ;;  %v20686_v13 = vld [vmem:[%s29033_s6 + $0x300] ss:$16 sps:$4 sm:$0xff]   ;;  %v20689_v15 = vld [vmem:[%s29033_s6 + $0x308] ss:$16 sps:$4 sm:$0xff]  }
 0x3f8   : > { %18490 = vmatprep.mubr.msk.bf16.mxu0 %vm25368_vm3, %v18489_v36  ;;  %18500 = vmatprep.mubr.msk.bf16.mxu1 %vm25368_vm3, %v18489_v36  ;;  %v20694_v16 = vld [vmem:[%s29033_s6 + $0x324] ss:$16 sps:$4 sm:$0xff]   ;;  %v20697_v17 = vld [vmem:[%s29033_s6 + $0x32c] ss:$16 sps:$4 sm:$0xff]   ;;  %v20692_v19 = vld [vmem:[%s29033_s6 + $0x320] ss:$16 sps:$4 sm:$0xff]  }
 0x3f9   : > { %18495 = vmatmul.mubr.msk.bf16.vlgmr.msra.gmra.mrb[8].mxu0 %vm25368_vm3, %v18494_v32  ;;  %18505 = vmatmul.mubr.msk.bf16.vlgmr.msra.gmra.mrb[8].mxu1 %vm25368_vm3, %v18494_v32  ;;  %v20695_v20 = vld [vmem:[%s29033_s6 + $0x328] ss:$16 sps:$4 sm:$0xff]   ;;  %v20700_v21 = vld [vmem:[%s29033_s6 + $0x344] ss:$16 sps:$4 sm:$0xff]   ;;  %v20703_v24 = vld [vmem:[%s29033_s6 + $0x34c] ss:$16 sps:$4 sm:$0xff]  }
 0x3fa   : > { %7352 = vmatpush1.bf16.msra.mxu0 %v20638_v30  ;;  %7567 = vmatpush1.bf16.msra.mxu1 %v20641_v31  ;;  %v20698_v25 = vld [vmem:[%s29033_s6 + $0x340] ss:$16 sps:$4 sm:$0xff]   ;;  %v20701_v28 = vld [vmem:[%s29033_s6 + $0x348] ss:$16 sps:$4 sm:$0xff]   ;;  %v20706_v29 = vld [vmem:[%s29033_s6 + $0x364] ss:$16 sps:$4 sm:$0xff]  }
 0x3fb   : > { %7383 = vmatprep.mubr.bf16.mxu0 %v24963_v12  ;;  %7598 = vmatprep.mubr.bf16.mxu1 %v24963_v12  ;;  %v20709_v30 = vld [vmem:[%s29033_s6 + $0x36c] ss:$16 sps:$4 sm:$0xff]   ;;  %v20704_v31 = vld [vmem:[%s29033_s6 + $0x360] ss:$16 sps:$4 sm:$0xff]   ;;  %v20707_v32 = vld [vmem:[%s29033_s6 + $0x368] ss:$16 sps:$4 sm:$0xff]  }
 0x3fc   : > { %7353 = vmatprep.subr.bf16.mxu0 %v20646_v37  ;;  %7568 = vmatprep.subr.bf16.mxu1 %v20649_v40  ;;  %v20712_v33 = vld [vmem:[%s29033_s6 + $0x384] ss:$16 sps:$4 sm:$0xff]   ;;  %v20715_v35 = vld [vmem:[%s29033_s6 + $0x38c] ss:$16 sps:$4 sm:$0xff]   ;;  %v20710_v36 = vld [vmem:[%s29033_s6 + $0x380] ss:$16 sps:$4 sm:$0xff]  }
 0x3fd   : > { %v20713_v37 = vld [vmem:[%s29033_s6 + $0x388] ss:$16 sps:$4 sm:$0xff]   ;;  %v20716_v40 = vld [vmem:[%s29033_s6 + $0x3a0] ss:$16 sps:$4 sm:$0xff]  }
 0x3fe   : > { %7354 = vmatpush1.bf16.msra.mxu0 %v20644_v38  ;;  %7569 = vmatpush1.bf16.msra.mxu1 %v20647_v39  ;;  %v20718_v38 = vld [vmem:[%s29033_s6 + $0x3a4] ss:$16 sps:$4 sm:$0xff]   ;;  %v20721_v39 = vld [vmem:[%s29033_s6 + $0x3ac] ss:$16 sps:$4 sm:$0xff]  }
 0x3ff   : > { %7355 = vmatprep.subr.bf16.mxu0 %v20652_v41  ;;  %7570 = vmatprep.subr.bf16.mxu1 %v20655_v43  ;;  %v20719_v41 = vld [vmem:[%s29033_s6 + $0x3a8] ss:$16 sps:$4 sm:$0xff]   ;;  %v20724_v43 = vld [vmem:[%s29033_s6 + $0x3c4] ss:$16 sps:$4 sm:$0xff]  }
 0x402   : > { %7356 = vmatpush1.bf16.msra.mxu0 %v20650_v44  ;;  %7571 = vmatpush1.bf16.msra.mxu1 %v20653_v45  ;;  %v20727_v44 = vld [vmem:[%s29033_s6 + $0x3cc] ss:$16 sps:$4 sm:$0xff]   ;;  %v20722_v45 = vld [vmem:[%s29033_s6 + $0x3c0] ss:$16 sps:$4 sm:$0xff]  }
 0x403   : > { %7357 = vmatprep.subr.bf16.mxu0 %v20658_v46  ;;  %7572 = vmatprep.subr.bf16.mxu1 %v20661_v47  ;;  %v20725_v46 = vld [vmem:[%s29033_s6 + $0x3c8] ss:$16 sps:$4 sm:$0xff]   ;;  %v20730_v47 = vld [vmem:[%s29033_s6 + $0x3e4] ss:$16 sps:$4 sm:$0xff]  }
 0x406   : > { %7358 = vmatpush1.bf16.msra.mxu0 %v20656_v48  ;;  %7573 = vmatpush1.bf16.msra.mxu1 %v20659_v49  ;;  %v20733_v48 = vld [vmem:[%s29033_s6 + $0x3ec] ss:$16 sps:$4 sm:$0xff]   ;;  %v20728_v49 = vld [vmem:[%s29033_s6 + $0x3e0] ss:$16 sps:$4 sm:$0xff]  }
 0x407   : > { %7359 = vmatprep.subr.bf16.mxu0 %v20664_v50  ;;  %7574 = vmatprep.subr.bf16.mxu1 %v20667_v51  ;;  %v20731_v50 = vld [vmem:[%s29033_s6 + $0x3e8] ss:$16 sps:$4 sm:$0xff]   ;;  %v20736_v51 = vld [vmem:[%s29033_s6 + $0x404] ss:$16 sps:$4 sm:$0xff]  }
 0x40a   : > { %7360 = vmatpush1.bf16.msra.mxu0 %v20662_v52  ;;  %7575 = vmatpush1.bf16.msra.mxu1 %v20665_v53  ;;  %v20739_v52 = vld [vmem:[%s29033_s6 + $0x40c] ss:$16 sps:$4 sm:$0xff]   ;;  %v20734_v53 = vld [vmem:[%s29033_s6 + $0x400] ss:$16 sps:$4 sm:$0xff]  }
 0x40b   : > { %7361 = vmatprep.subr.bf16.mxu0 %v20670_v54  ;;  %7576 = vmatprep.subr.bf16.mxu1 %v20673_v55  ;;  %v20737_v54 = vld [vmem:[%s29033_s6 + $0x408] ss:$16 sps:$4 sm:$0xff]   ;;  %v20742_v55 = vld [vmem:[%s29033_s6 + $0x424] ss:$16 sps:$4 sm:$0xff]  }
 0x40e   : > { %7362 = vmatpush1.bf16.msra.mxu0 %v20668_v57  ;;  %7577 = vmatpush1.bf16.msra.mxu1 %v20671_v58  ;;  %v20745_v57 = vld [vmem:[%s29033_s6 + $0x42c] ss:$16 sps:$4 sm:$0xff]   ;;  %v20740_v58 = vld [vmem:[%s29033_s6 + $0x420] ss:$16 sps:$4 sm:$0xff]  }
 0x40f   : > { %7363 = vmatprep.subr.bf16.mxu0 %v20676_v60  ;;  %7578 = vmatprep.subr.bf16.mxu1 %v20679_v61  ;;  %v20743_v60 = vld [vmem:[%s29033_s6 + $0x428] ss:$16 sps:$4 sm:$0xff]   ;;  %v20748_v61 = vld [vmem:[%s29033_s6 + $0x444] ss:$16 sps:$4 sm:$0xff]  }
 0x412   : > { %7364 = vmatpush1.bf16.msra.mxu0 %v20674_v62  ;;  %7579 = vmatpush1.bf16.msra.mxu1 %v20677_v63  ;;  %v20751_v62 = vld [vmem:[%s29033_s6 + $0x44c] ss:$16 sps:$4 sm:$0xff]   ;;  %v20746_v63 = vld [vmem:[%s29033_s6 + $0x440] ss:$16 sps:$4 sm:$0xff]  }
 0x413   : > { %7365 = vmatprep.subr.bf16.mxu0 %v20682_v0  ;;  %7580 = vmatprep.subr.bf16.mxu1 %v20685_v1  ;;  %v20749_v0 = vld [vmem:[%s29033_s6 + $0x448] ss:$16 sps:$4 sm:$0xff]   ;;  %v20754_v1 = vld [vmem:[%s29033_s6 + $0x464] ss:$16 sps:$4 sm:$0xff]  }
 0x416   : > { %7366 = vmatpush1.bf16.msra.mxu0 %v20680_v3  ;;  %7581 = vmatpush1.bf16.msra.mxu1 %v20683_v4  ;;  %v20757_v3 = vld [vmem:[%s29033_s6 + $0x46c] ss:$16 sps:$4 sm:$0xff]   ;;  %v20752_v4 = vld [vmem:[%s29033_s6 + $0x460] ss:$16 sps:$4 sm:$0xff]  }
 0x417   : > { %7367 = vmatprep.subr.bf16.mxu0 %v20688_v6  ;;  %7582 = vmatprep.subr.bf16.mxu1 %v20691_v9  ;;  %v20755_v6 = vld [vmem:[%s29033_s6 + $0x468] ss:$16 sps:$4 sm:$0xff]   ;;  %v20760_v9 = vld [vmem:[%s29033_s6 + $0x484] ss:$16 sps:$4 sm:$0xff]  }
 0x41a   : > { %7368 = vmatpush1.bf16.msra.mxu0 %v20686_v13  ;;  %7583 = vmatpush1.bf16.msra.mxu1 %v20689_v15  ;;  %v20763_v13 = vld [vmem:[%s29033_s6 + $0x48c] ss:$16 sps:$4 sm:$0xff]   ;;  %v20758_v15 = vld [vmem:[%s29033_s6 + $0x480] ss:$16 sps:$4 sm:$0xff]  }
 0x41b   : > { %7369 = vmatprep.subr.bf16.mxu0 %v20694_v16  ;;  %7584 = vmatprep.subr.bf16.mxu1 %v20697_v17  ;;  %v20761_v16 = vld [vmem:[%s29033_s6 + $0x488] ss:$16 sps:$4 sm:$0xff]   ;;  %v20766_v17 = vld [vmem:[%s29033_s6 + $0x4a4] ss:$16 sps:$4 sm:$0xff]  }
 0x41e   : > { %7370 = vmatpush1.bf16.msra.mxu0 %v20692_v19  ;;  %7585 = vmatpush1.bf16.msra.mxu1 %v20695_v20  ;;  %v20769_v19 = vld [vmem:[%s29033_s6 + $0x4ac] ss:$16 sps:$4 sm:$0xff]   ;;  %v20764_v20 = vld [vmem:[%s29033_s6 + $0x4a0] ss:$16 sps:$4 sm:$0xff]  }
 0x41f   : > { %7371 = vmatprep.subr.bf16.mxu0 %v20700_v21  ;;  %7586 = vmatprep.subr.bf16.mxu1 %v20703_v24  ;;  %v20767_v21 = vld [vmem:[%s29033_s6 + $0x4a8] ss:$16 sps:$4 sm:$0xff]   ;;  %v20772_v24 = vld [vmem:[%s29033_s6 + $0x4c4] ss:$16 sps:$4 sm:$0xff]  }
 0x422   : > { %7372 = vmatpush1.bf16.msra.mxu0 %v20698_v25  ;;  %7587 = vmatpush1.bf16.msra.mxu1 %v20701_v28  ;;  %v20775_v25 = vld [vmem:[%s29033_s6 + $0x4cc] ss:$16 sps:$4 sm:$0xff]   ;;  %v20770_v28 = vld [vmem:[%s29033_s6 + $0x4c0] ss:$16 sps:$4 sm:$0xff]  }
 0x423   : > { %7373 = vmatprep.subr.bf16.mxu0 %v20706_v29  ;;  %7588 = vmatprep.subr.bf16.mxu1 %v20709_v30  ;;  %v20773_v29 = vld [vmem:[%s29033_s6 + $0x4c8] ss:$16 sps:$4 sm:$0xff]   ;;  %v20778_v30 = vld [vmem:[%s29033_s6 + $0x4e4] ss:$16 sps:$4 sm:$0xff]  }
 0x426   : > { %7374 = vmatpush1.bf16.msra.mxu0 %v20704_v31  ;;  %7589 = vmatpush1.bf16.msra.mxu1 %v20707_v32  ;;  %v20781_v31 = vld [vmem:[%s29033_s6 + $0x4ec] ss:$16 sps:$4 sm:$0xff]   ;;  %v20776_v32 = vld [vmem:[%s29033_s6 + $0x4e0] ss:$16 sps:$4 sm:$0xff]  }
 0x427   : > { %7375 = vmatprep.subr.bf16.mxu0 %v20712_v33  ;;  %7590 = vmatprep.subr.bf16.mxu1 %v20715_v35  ;;  %v20779_v33 = vld [vmem:[%s29033_s6 + $0x4e8] ss:$16 sps:$4 sm:$0xff]   ;;  %v20784_v35 = vld [vmem:[%s29033_s6 + $0x504] ss:$16 sps:$4 sm:$0xff]  }
 0x42a   : > { %7376 = vmatpush1.bf16.msra.mxu0 %v20710_v36  ;;  %7591 = vmatpush1.bf16.msra.mxu1 %v20713_v37  ;;  %v20787_v36 = vld [vmem:[%s29033_s6 + $0x50c] ss:$16 sps:$4 sm:$0xff]   ;;  %v20782_v37 = vld [vmem:[%s29033_s6 + $0x500] ss:$16 sps:$4 sm:$0xff]  }
 0x42b   : > { %7377 = vmatprep.subr.bf16.mxu0 %v20718_v38  ;;  %7592 = vmatprep.subr.bf16.mxu1 %v20721_v39  ;;  %v20785_v38 = vld [vmem:[%s29033_s6 + $0x508] ss:$16 sps:$4 sm:$0xff]   ;;  %v20790_v39 = vld [vmem:[%s29033_s6 + $0x524] ss:$16 sps:$4 sm:$0xff]  }
 0x42e   : > { %7378 = vmatpush1.bf16.msra.mxu0 %v20716_v40  ;;  %7593 = vmatpush1.bf16.msra.mxu1 %v20719_v41  ;;  %v20793_v40 = vld [vmem:[%s29033_s6 + $0x52c] ss:$16 sps:$4 sm:$0xff]   ;;  %v20788_v41 = vld [vmem:[%s29033_s6 + $0x520] ss:$16 sps:$4 sm:$0xff]  }
 0x42f   : > { %7379 = vmatprep.subr.bf16.mxu0 %v20724_v43  ;;  %7594 = vmatprep.subr.bf16.mxu1 %v20727_v44  ;;  %v20791_v43 = vld [vmem:[%s29033_s6 + $0x528] ss:$16 sps:$4 sm:$0xff]   ;;  %v20796_v44 = vld [vmem:[%s29033_s6 + $0x544] ss:$16 sps:$4 sm:$0xff]  }
 0x432   : > { %7380 = vmatpush1.bf16.msra.mxu0 %v20722_v45  ;;  %7595 = vmatpush1.bf16.msra.mxu1 %v20725_v46  ;;  %v20799_v45 = vld [vmem:[%s29033_s6 + $0x54c] ss:$16 sps:$4 sm:$0xff]   ;;  %v20794_v46 = vld [vmem:[%s29033_s6 + $0x540] ss:$16 sps:$4 sm:$0xff]  }
 0x433   : > { %7381 = vmatprep.subr.bf16.mxu0 %v20730_v47  ;;  %7596 = vmatprep.subr.bf16.mxu1 %v20733_v48  ;;  %v20797_v47 = vld [vmem:[%s29033_s6 + $0x548] ss:$16 sps:$4 sm:$0xff]   ;;  %v20802_v48 = vld [vmem:[%s29033_s6 + $0x564] ss:$16 sps:$4 sm:$0xff]  }
 0x436   : > { %7382 = vmatpush1.bf16.msra.mxu0 %v20728_v49  ;;  %7597 = vmatpush1.bf16.msra.mxu1 %v20731_v50  ;;  %v20805_v49 = vld [vmem:[%s29033_s6 + $0x56c] ss:$16 sps:$4 sm:$0xff]   ;;  %v20800_v50 = vld [vmem:[%s29033_s6 + $0x560] ss:$16 sps:$4 sm:$0xff]  }
 0x437   : > { %7394 = vmatprep.subr.bf16.mxu0 %v20736_v51  ;;  %7609 = vmatprep.subr.bf16.mxu1 %v20739_v52  ;;  %v20803_v51 = vld [vmem:[%s29033_s6 + $0x568] ss:$16 sps:$4 sm:$0xff]   ;;  %v20808_v52 = vld [vmem:[%s29033_s6 + $0x584] ss:$16 sps:$4 sm:$0xff]  }
 0x439   : > { %7384 = vmatmul.mubr.bf16.vlgmr.msra.gmra.mrb[8].mxu0 %v24953_v2  ;;  %7599 = vmatmul.mubr.bf16.vlgmr.msra.gmra.mrb[8].mxu1 %v24953_v2 }
 0x43a   : > { %7395 = vmatpush1.bf16.msra.mxu0 %v20734_v53  ;;  %7426 = vmatprep.mubr.bf16.mxu0 %v24965_v14  ;;  %v20811_v53 = vld [vmem:[%s29033_s6 + $0x58c] ss:$16 sps:$4 sm:$0xff]  }
 0x43b   : > { %7610 = vmatpush1.bf16.msra.mxu1 %v20737_v54  ;;  %7641 = vmatprep.mubr.bf16.mxu1 %v24965_v14  ;;  %v20806_v54 = vld [vmem:[%s29033_s6 + $0x580] ss:$16 sps:$4 sm:$0xff]  }
 0x43c   : > { %7396 = vmatprep.subr.bf16.mxu0 %v20742_v55  ;;  %7611 = vmatprep.subr.bf16.mxu1 %v20745_v57  ;;  %v20809_v55 = vld [vmem:[%s29033_s6 + $0x588] ss:$16 sps:$4 sm:$0xff]   ;;  %v20814_v57 = vld [vmem:[%s29033_s6 + $0x5a4] ss:$16 sps:$4 sm:$0xff]  }
 0x43e   : > { %7397 = vmatpush1.bf16.msra.mxu0 %v20740_v58  ;;  %v20817_v58 = vld [vmem:[%s29033_s6 + $0x5ac] ss:$16 sps:$4 sm:$0xff]  }
 0x43f   : > { %7612 = vmatpush1.bf16.msra.mxu1 %v20743_v60  ;;  %7398 = vmatprep.subr.bf16.mxu0 %v20748_v61  ;;  %v20812_v60 = vld [vmem:[%s29033_s6 + $0x5a0] ss:$16 sps:$4 sm:$0xff]   ;;  %v20815_v61 = vld [vmem:[%s29033_s6 + $0x5a8] ss:$16 sps:$4 sm:$0xff]  }
 0x440   : > { %7613 = vmatprep.subr.bf16.mxu1 %v20751_v62  ;;  %v20820_v62 = vld [vmem:[%s29033_s6 + $0x5c4] ss:$16 sps:$4 sm:$0xff]  }
 0x442   : > { %7399 = vmatpush1.bf16.msra.mxu0 %v20746_v63  ;;  %v20823_v63 = vld [vmem:[%s29033_s6 + $0x5cc] ss:$16 sps:$4 sm:$0xff]  }
 0x443   : > { %7614 = vmatpush1.bf16.msra.mxu1 %v20749_v0  ;;  %7400 = vmatprep.subr.bf16.mxu0 %v20754_v1  ;;  %v20818_v0 = vld [vmem:[%s29033_s6 + $0x5c0] ss:$16 sps:$4 sm:$0xff]   ;;  %v20821_v1 = vld [vmem:[%s29033_s6 + $0x5c8] ss:$16 sps:$4 sm:$0xff]  }
 0x444   : > { %7615 = vmatprep.subr.bf16.mxu1 %v20757_v3  ;;  %v20826_v3 = vld [vmem:[%s29033_s6 + $0x5e4] ss:$16 sps:$4 sm:$0xff]  }
 0x446   : > { %7401 = vmatpush1.bf16.msra.mxu0 %v20752_v4  ;;  %v20829_v4 = vld [vmem:[%s29033_s6 + $0x5ec] ss:$16 sps:$4 sm:$0xff]  }
 0x447   : > { %7616 = vmatpush1.bf16.msra.mxu1 %v20755_v6  ;;  %7402 = vmatprep.subr.bf16.mxu0 %v20760_v9  ;;  %v20824_v6 = vld [vmem:[%s29033_s6 + $0x5e0] ss:$16 sps:$4 sm:$0xff]   ;;  %v20827_v9 = vld [vmem:[%s29033_s6 + $0x5e8] ss:$16 sps:$4 sm:$0xff]  }
 0x448   : > { %7617 = vmatprep.subr.bf16.mxu1 %v20763_v13  ;;  %v20832_v13 = vld [vmem:[%s29033_s6 + $0x604] ss:$16 sps:$4 sm:$0xff]  }
 0x44a   : > { %7403 = vmatpush1.bf16.msra.mxu0 %v20758_v15  ;;  %v20835_v15 = vld [vmem:[%s29033_s6 + $0x60c] ss:$16 sps:$4 sm:$0xff]  }
 0x44b   : > { %7618 = vmatpush1.bf16.msra.mxu1 %v20761_v16  ;;  %7404 = vmatprep.subr.bf16.mxu0 %v20766_v17  ;;  %v20830_v16 = vld [vmem:[%s29033_s6 + $0x600] ss:$16 sps:$4 sm:$0xff]   ;;  %v20833_v17 = vld [vmem:[%s29033_s6 + $0x608] ss:$16 sps:$4 sm:$0xff]  }
 0x44c   : > { %7619 = vmatprep.subr.bf16.mxu1 %v20769_v19  ;;  %v20838_v19 = vld [vmem:[%s29033_s6 + $0x624] ss:$16 sps:$4 sm:$0xff]  }
 0x44e   : > { %7405 = vmatpush1.bf16.msra.mxu0 %v20764_v20  ;;  %v20841_v20 = vld [vmem:[%s29033_s6 + $0x62c] ss:$16 sps:$4 sm:$0xff]  }
 0x44f   : > { %7620 = vmatpush1.bf16.msra.mxu1 %v20767_v21  ;;  %7406 = vmatprep.subr.bf16.mxu0 %v20772_v24  ;;  %v20836_v21 = vld [vmem:[%s29033_s6 + $0x620] ss:$16 sps:$4 sm:$0xff]   ;;  %v20839_v24 = vld [vmem:[%s29033_s6 + $0x628] ss:$16 sps:$4 sm:$0xff]  }
 0x450   : > { %7621 = vmatprep.subr.bf16.mxu1 %v20775_v25  ;;  %v20844_v25 = vld [vmem:[%s29033_s6 + $0x644] ss:$16 sps:$4 sm:$0xff]  }
 0x452   : > { %7407 = vmatpush1.bf16.msra.mxu0 %v20770_v28  ;;  %v20847_v28 = vld [vmem:[%s29033_s6 + $0x64c] ss:$16 sps:$4 sm:$0xff]  }
 0x453   : > { %7622 = vmatpush1.bf16.msra.mxu1 %v20773_v29  ;;  %7408 = vmatprep.subr.bf16.mxu0 %v20778_v30  ;;  %v20842_v29 = vld [vmem:[%s29033_s6 + $0x640] ss:$16 sps:$4 sm:$0xff]   ;;  %v20845_v30 = vld [vmem:[%s29033_s6 + $0x648] ss:$16 sps:$4 sm:$0xff]  }
 0x454   : > { %7623 = vmatprep.subr.bf16.mxu1 %v20781_v31  ;;  %v20850_v31 = vld [vmem:[%s29033_s6 + $0x664] ss:$16 sps:$4 sm:$0xff]  }
 0x456   : > { %7409 = vmatpush1.bf16.msra.mxu0 %v20776_v32  ;;  %v20853_v32 = vld [vmem:[%s29033_s6 + $0x66c] ss:$16 sps:$4 sm:$0xff]  }
 0x457   : > { %7624 = vmatpush1.bf16.msra.mxu1 %v20779_v33  ;;  %7410 = vmatprep.subr.bf16.mxu0 %v20784_v35  ;;  %v20848_v33 = vld [vmem:[%s29033_s6 + $0x660] ss:$16 sps:$4 sm:$0xff]   ;;  %v20851_v35 = vld [vmem:[%s29033_s6 + $0x668] ss:$16 sps:$4 sm:$0xff]  }
 0x458   : > { %7625 = vmatprep.subr.bf16.mxu1 %v20787_v36  ;;  %v20856_v36 = vld [vmem:[%s29033_s6 + $0x684] ss:$16 sps:$4 sm:$0xff]  }
 0x45a   : > { %7411 = vmatpush1.bf16.msra.mxu0 %v20782_v37  ;;  %v20859_v37 = vld [vmem:[%s29033_s6 + $0x68c] ss:$16 sps:$4 sm:$0xff]  }
 0x45b   : > { %7626 = vmatpush1.bf16.msra.mxu1 %v20785_v38  ;;  %7412 = vmatprep.subr.bf16.mxu0 %v20790_v39  ;;  %v20854_v38 = vld [vmem:[%s29033_s6 + $0x680] ss:$16 sps:$4 sm:$0xff]   ;;  %v20857_v39 = vld [vmem:[%s29033_s6 + $0x688] ss:$16 sps:$4 sm:$0xff]  }
 0x45c   : > { %7627 = vmatprep.subr.bf16.mxu1 %v20793_v40  ;;  %v20862_v40 = vld [vmem:[%s29033_s6 + $0x6a4] ss:$16 sps:$4 sm:$0xff]  }
 0x45e   : > { %7413 = vmatpush1.bf16.msra.mxu0 %v20788_v41  ;;  %v20865_v41 = vld [vmem:[%s29033_s6 + $0x6ac] ss:$16 sps:$4 sm:$0xff]  }
 0x45f   : > { %7628 = vmatpush1.bf16.msra.mxu1 %v20791_v43  ;;  %7414 = vmatprep.subr.bf16.mxu0 %v20796_v44  ;;  %v20860_v43 = vld [vmem:[%s29033_s6 + $0x6a0] ss:$16 sps:$4 sm:$0xff]   ;;  %v20863_v44 = vld [vmem:[%s29033_s6 + $0x6a8] ss:$16 sps:$4 sm:$0xff]  }
 0x460   : > { %7629 = vmatprep.subr.bf16.mxu1 %v20799_v45  ;;  %v20868_v45 = vld [vmem:[%s29033_s6 + $0x6c4] ss:$16 sps:$4 sm:$0xff]  }
 0x462   : > { %7415 = vmatpush1.bf16.msra.mxu0 %v20794_v46  ;;  %v20871_v46 = vld [vmem:[%s29033_s6 + $0x6cc] ss:$16 sps:$4 sm:$0xff]  }
 0x463   : > { %7630 = vmatpush1.bf16.msra.mxu1 %v20797_v47  ;;  %7416 = vmatprep.subr.bf16.mxu0 %v20802_v48  ;;  %v20866_v47 = vld [vmem:[%s29033_s6 + $0x6c0] ss:$16 sps:$4 sm:$0xff]   ;;  %v20869_v48 = vld [vmem:[%s29033_s6 + $0x6c8] ss:$16 sps:$4 sm:$0xff]  }
 0x464   : > { %7631 = vmatprep.subr.bf16.mxu1 %v20805_v49  ;;  %v20874_v49 = vld [vmem:[%s29033_s6 + $0x6e4] ss:$16 sps:$4 sm:$0xff]  }
 0x466   : > { %7417 = vmatpush1.bf16.msra.mxu0 %v20800_v50  ;;  %v20877_v50 = vld [vmem:[%s29033_s6 + $0x6ec] ss:$16 sps:$4 sm:$0xff]  }
 0x467   : > { %7632 = vmatpush1.bf16.msra.mxu1 %v20803_v51  ;;  %7418 = vmatprep.subr.bf16.mxu0 %v20808_v52  ;;  %v20872_v51 = vld [vmem:[%s29033_s6 + $0x6e0] ss:$16 sps:$4 sm:$0xff]   ;;  %v20875_v52 = vld [vmem:[%s29033_s6 + $0x6e8] ss:$16 sps:$4 sm:$0xff]  }
 0x468   : > { %7633 = vmatprep.subr.bf16.mxu1 %v20811_v53  ;;  %v20880_v53 = vld [vmem:[%s29033_s6 + $0x704] ss:$16 sps:$4 sm:$0xff]  }
 0x46a   : > { %7419 = vmatpush1.bf16.msra.mxu0 %v20806_v54  ;;  %v20883_v54 = vld [vmem:[%s29033_s6 + $0x70c] ss:$16 sps:$4 sm:$0xff]  }
 0x46b   : > { %7634 = vmatpush1.bf16.msra.mxu1 %v20809_v55  ;;  %7420 = vmatprep.subr.bf16.mxu0 %v20814_v57  ;;  %v20878_v55 = vld [vmem:[%s29033_s6 + $0x700] ss:$16 sps:$4 sm:$0xff]   ;;  %v20881_v57 = vld [vmem:[%s29033_s6 + $0x708] ss:$16 sps:$4 sm:$0xff]  }
 0x46c   : > { %7635 = vmatprep.subr.bf16.mxu1 %v20817_v58  ;;  %v20886_v58 = vld [vmem:[%s29033_s6 + $0x724] ss:$16 sps:$4 sm:$0xff]  }
 0x46e   : > { %7421 = vmatpush1.bf16.msra.mxu0 %v20812_v60  ;;  %v20889_v60 = vld [vmem:[%s29033_s6 + $0x72c] ss:$16 sps:$4 sm:$0xff]  }
 0x46f   : > { %7636 = vmatpush1.bf16.msra.mxu1 %v20815_v61  ;;  %7422 = vmatprep.subr.bf16.mxu0 %v20820_v62  ;;  %v20884_v61 = vld [vmem:[%s29033_s6 + $0x720] ss:$16 sps:$4 sm:$0xff]   ;;  %v20887_v62 = vld [vmem:[%s29033_s6 + $0x728] ss:$16 sps:$4 sm:$0xff]  }
 0x470   : > { %7637 = vmatprep.subr.bf16.mxu1 %v20823_v63  ;;  %v20892_v63 = vld [vmem:[%s29033_s6 + $0x744] ss:$16 sps:$4 sm:$0xff]  }
 0x472   : > { %7423 = vmatpush1.bf16.msra.mxu0 %v20818_v0  ;;  %v20895_v0 = vld [vmem:[%s29033_s6 + $0x74c] ss:$16 sps:$4 sm:$0xff]  }
 0x473   : > { %7638 = vmatpush1.bf16.msra.mxu1 %v20821_v1  ;;  %7424 = vmatprep.subr.bf16.mxu0 %v20826_v3  ;;  %v20890_v1 = vld [vmem:[%s29033_s6 + $0x740] ss:$16 sps:$4 sm:$0xff]   ;;  %v20893_v3 = vld [vmem:[%s29033_s6 + $0x748] ss:$16 sps:$4 sm:$0xff]  }
 0x474   : > { %7639 = vmatprep.subr.bf16.mxu1 %v20829_v4  ;;  %v20898_v4 = vld [vmem:[%s29033_s6 + $0x764] ss:$16 sps:$4 sm:$0xff]  }
 0x476   : > { %7425 = vmatpush1.bf16.msra.mxu0 %v20824_v6  ;;  %v20901_v6 = vld [vmem:[%s29033_s6 + $0x76c] ss:$16 sps:$4 sm:$0xff]  }
 0x477   : > { %7640 = vmatpush1.bf16.msra.mxu1 %v20827_v9  ;;  %7437 = vmatprep.subr.bf16.mxu0 %v20832_v13  ;;  %v20896_v9 = vld [vmem:[%s29033_s6 + $0x760] ss:$16 sps:$4 sm:$0xff]   ;;  %v20899_v13 = vld [vmem:[%s29033_s6 + $0x768] ss:$16 sps:$4 sm:$0xff]  }
 0x478   : > { %7652 = vmatprep.subr.bf16.mxu1 %v20835_v15  ;;  %v20904_v15 = vld [vmem:[%s29033_s6 + $0x784] ss:$16 sps:$4 sm:$0xff]  }
 0x479   : > { %7427 = vmatmul.mubr.bf16.vlgmr.msra.gmra.mrb[8].mxu0 %v24961_v11 }
 0x47a   : > { %7642 = vmatmul.mubr.bf16.vlgmr.msra.gmra.mrb[8].mxu1 %v24961_v11  ;;  %7438 = vmatpush1.bf16.msra.mxu0 %v20830_v16  ;;  %v20907_v16 = vld [vmem:[%s29033_s6 + $0x78c] ss:$16 sps:$4 sm:$0xff]  }
 0x47b   : > { %7469 = vmatprep.mubr.bf16.mxu0 %v25362_v23  ;;  %7653 = vmatpush1.bf16.msra.mxu1 %v20833_v17  ;;  %v20902_v17 = vld [vmem:[%s29033_s6 + $0x780] ss:$16 sps:$4 sm:$0xff]  }
 0x47c   : > { %7684 = vmatprep.mubr.bf16.mxu1 %v25362_v23  ;;  %7439 = vmatprep.subr.bf16.mxu0 %v20838_v19  ;;  %v20905_v19 = vld [vmem:[%s29033_s6 + $0x788] ss:$16 sps:$4 sm:$0xff]  }
 0x47d   : > { %7654 = vmatprep.subr.bf16.mxu1 %v20841_v20  ;;  %v20910_v20 = vld [vmem:[%s29033_s6 + $0x7a4] ss:$16 sps:$4 sm:$0xff]  }
 0x47e   : > { %7440 = vmatpush1.bf16.msra.mxu0 %v20836_v21  ;;  %v20913_v21 = vld [vmem:[%s29033_s6 + $0x7ac] ss:$16 sps:$4 sm:$0xff]  }
 0x47f   : > { %7655 = vmatpush1.bf16.msra.mxu1 %v20839_v24  ;;  %7441 = vmatprep.subr.bf16.mxu0 %v20844_v25  ;;  %v20908_v24 = vld [vmem:[%s29033_s6 + $0x7a0] ss:$16 sps:$4 sm:$0xff]   ;;  %v20911_v25 = vld [vmem:[%s29033_s6 + $0x7a8] ss:$16 sps:$4 sm:$0xff]  }
 0x480   : > { %7656 = vmatprep.subr.bf16.mxu1 %v20847_v28  ;;  %v20916_v28 = vld [vmem:[%s29033_s6 + $0x7c4] ss:$16 sps:$4 sm:$0xff]  }
 0x482   : > { %7442 = vmatpush1.bf16.msra.mxu0 %v20842_v29  ;;  %v20919_v29 = vld [vmem:[%s29033_s6 + $0x7cc] ss:$16 sps:$4 sm:$0xff]  }
 0x483   : > { %7657 = vmatpush1.bf16.msra.mxu1 %v20845_v30  ;;  %7443 = vmatprep.subr.bf16.mxu0 %v20850_v31  ;;  %v20914_v30 = vld [vmem:[%s29033_s6 + $0x7c0] ss:$16 sps:$4 sm:$0xff]   ;;  %v20917_v31 = vld [vmem:[%s29033_s6 + $0x7c8] ss:$16 sps:$4 sm:$0xff]  }
 0x484   : > { %7658 = vmatprep.subr.bf16.mxu1 %v20853_v32  ;;  %v20922_v32 = vld [vmem:[%s29033_s6 + $0x7e4] ss:$16 sps:$4 sm:$0xff]  }
 0x486   : > { %7444 = vmatpush1.bf16.msra.mxu0 %v20848_v33  ;;  %v20925_v33 = vld [vmem:[%s29033_s6 + $0x7ec] ss:$16 sps:$4 sm:$0xff]  }
 0x487   : > { %7659 = vmatpush1.bf16.msra.mxu1 %v20851_v35  ;;  %7445 = vmatprep.subr.bf16.mxu0 %v20856_v36  ;;  %v20920_v35 = vld [vmem:[%s29033_s6 + $0x7e0] ss:$16 sps:$4 sm:$0xff]   ;;  %v20923_v36 = vld [vmem:[%s29033_s6 + $0x7e8] ss:$16 sps:$4 sm:$0xff]  }
 0x488   : > { %7660 = vmatprep.subr.bf16.mxu1 %v20859_v37  ;;  %v20928_v37 = vld [vmem:[%s29033_s6 + $0x804] ss:$16 sps:$4 sm:$0xff]  }
 0x48a   : > { %7446 = vmatpush1.bf16.msra.mxu0 %v20854_v38  ;;  %v20931_v38 = vld [vmem:[%s29033_s6 + $0x80c] ss:$16 sps:$4 sm:$0xff]  }
 0x48b   : > { %7661 = vmatpush1.bf16.msra.mxu1 %v20857_v39  ;;  %7447 = vmatprep.subr.bf16.mxu0 %v20862_v40  ;;  %v20926_v39 = vld [vmem:[%s29033_s6 + $0x800] ss:$16 sps:$4 sm:$0xff]   ;;  %v20929_v40 = vld [vmem:[%s29033_s6 + $0x808] ss:$16 sps:$4 sm:$0xff]  }
 0x48c   : > { %7662 = vmatprep.subr.bf16.mxu1 %v20865_v41  ;;  %v20934_v41 = vld [vmem:[%s29033_s6 + $0x824] ss:$16 sps:$4 sm:$0xff]  }
 0x48e   : > { %7448 = vmatpush1.bf16.msra.mxu0 %v20860_v43  ;;  %v20937_v43 = vld [vmem:[%s29033_s6 + $0x82c] ss:$16 sps:$4 sm:$0xff]  }
 0x48f   : > { %7663 = vmatpush1.bf16.msra.mxu1 %v20863_v44  ;;  %7449 = vmatprep.subr.bf16.mxu0 %v20868_v45  ;;  %v20932_v44 = vld [vmem:[%s29033_s6 + $0x820] ss:$16 sps:$4 sm:$0xff]   ;;  %v20935_v45 = vld [vmem:[%s29033_s6 + $0x828] ss:$16 sps:$4 sm:$0xff]  }
 0x490   : > { %7664 = vmatprep.subr.bf16.mxu1 %v20871_v46  ;;  %v20940_v46 = vld [vmem:[%s29033_s6 + $0x844] ss:$16 sps:$4 sm:$0xff]  }
 0x492   : > { %7450 = vmatpush1.bf16.msra.mxu0 %v20866_v47  ;;  %v20943_v47 = vld [vmem:[%s29033_s6 + $0x84c] ss:$16 sps:$4 sm:$0xff]  }
 0x493   : > { %7665 = vmatpush1.bf16.msra.mxu1 %v20869_v48  ;;  %7451 = vmatprep.subr.bf16.mxu0 %v20874_v49  ;;  %v20938_v48 = vld [vmem:[%s29033_s6 + $0x840] ss:$16 sps:$4 sm:$0xff]   ;;  %v20941_v49 = vld [vmem:[%s29033_s6 + $0x848] ss:$16 sps:$4 sm:$0xff]  }
 0x494   : > { %7666 = vmatprep.subr.bf16.mxu1 %v20877_v50  ;;  %v20946_v50 = vld [vmem:[%s29033_s6 + $0x864] ss:$16 sps:$4 sm:$0xff]  }
 0x496   : > { %7452 = vmatpush1.bf16.msra.mxu0 %v20872_v51  ;;  %v20949_v51 = vld [vmem:[%s29033_s6 + $0x86c] ss:$16 sps:$4 sm:$0xff]  }
 0x497   : > { %7667 = vmatpush1.bf16.msra.mxu1 %v20875_v52  ;;  %7453 = vmatprep.subr.bf16.mxu0 %v20880_v53  ;;  %v20944_v52 = vld [vmem:[%s29033_s6 + $0x860] ss:$16 sps:$4 sm:$0xff]   ;;  %v20947_v53 = vld [vmem:[%s29033_s6 + $0x868] ss:$16 sps:$4 sm:$0xff]  }
 0x498   : > { %7668 = vmatprep.subr.bf16.mxu1 %v20883_v54  ;;  %v20952_v54 = vld [vmem:[%s29033_s6 + $0x884] ss:$16 sps:$4 sm:$0xff]  }
 0x49a   : > { %7454 = vmatpush1.bf16.msra.mxu0 %v20878_v55  ;;  %v20955_v55 = vld [vmem:[%s29033_s6 + $0x88c] ss:$16 sps:$4 sm:$0xff]  }
 0x49b   : > { %7669 = vmatpush1.bf16.msra.mxu1 %v20881_v57  ;;  %7455 = vmatprep.subr.bf16.mxu0 %v20886_v58  ;;  %v20950_v57 = vld [vmem:[%s29033_s6 + $0x880] ss:$16 sps:$4 sm:$0xff]   ;;  %v20953_v58 = vld [vmem:[%s29033_s6 + $0x888] ss:$16 sps:$4 sm:$0xff]  }
 0x49c   : > { %7670 = vmatprep.subr.bf16.mxu1 %v20889_v60  ;;  %v20958_v60 = vld [vmem:[%s29033_s6 + $0x8a4] ss:$16 sps:$4 sm:$0xff]  }
 0x49e   : > { %7456 = vmatpush1.bf16.msra.mxu0 %v20884_v61  ;;  %v20961_v61 = vld [vmem:[%s29033_s6 + $0x8ac] ss:$16 sps:$4 sm:$0xff]  }
 0x49f   : > { %7671 = vmatpush1.bf16.msra.mxu1 %v20887_v62  ;;  %7457 = vmatprep.subr.bf16.mxu0 %v20892_v63  ;;  %v20956_v62 = vld [vmem:[%s29033_s6 + $0x8a0] ss:$16 sps:$4 sm:$0xff]   ;;  %v20959_v63 = vld [vmem:[%s29033_s6 + $0x8a8] ss:$16 sps:$4 sm:$0xff]  }
 0x4a0   : > { %7672 = vmatprep.subr.bf16.mxu1 %v20895_v0  ;;  %v20964_v0 = vld [vmem:[%s29033_s6 + $0x8c4] ss:$16 sps:$4 sm:$0xff]  }
 0x4a2   : > { %7458 = vmatpush1.bf16.msra.mxu0 %v20890_v1  ;;  %v20967_v1 = vld [vmem:[%s29033_s6 + $0x8cc] ss:$16 sps:$4 sm:$0xff]  }
 0x4a3   : > { %7673 = vmatpush1.bf16.msra.mxu1 %v20893_v3  ;;  %7459 = vmatprep.subr.bf16.mxu0 %v20898_v4  ;;  %v20962_v3 = vld [vmem:[%s29033_s6 + $0x8c0] ss:$16 sps:$4 sm:$0xff]   ;;  %v20965_v4 = vld [vmem:[%s29033_s6 + $0x8c8] ss:$16 sps:$4 sm:$0xff]  }
 0x4a4   : > { %7674 = vmatprep.subr.bf16.mxu1 %v20901_v6  ;;  %v20970_v6 = vld [vmem:[%s29033_s6 + $0x8e4] ss:$16 sps:$4 sm:$0xff]  }
 0x4a6   : > { %7460 = vmatpush1.bf16.msra.mxu0 %v20896_v9  ;;  %v20973_v9 = vld [vmem:[%s29033_s6 + $0x8ec] ss:$16 sps:$4 sm:$0xff]  }
 0x4a7   : > { %7675 = vmatpush1.bf16.msra.mxu1 %v20899_v13  ;;  %7461 = vmatprep.subr.bf16.mxu0 %v20904_v15  ;;  %v20968_v13 = vld [vmem:[%s29033_s6 + $0x8e0] ss:$16 sps:$4 sm:$0xff]   ;;  %v20971_v15 = vld [vmem:[%s29033_s6 + $0x8e8] ss:$16 sps:$4 sm:$0xff]  }
 0x4a8   : > { %7676 = vmatprep.subr.bf16.mxu1 %v20907_v16  ;;  %v20976_v16 = vld [vmem:[%s29033_s6 + $0x904] ss:$16 sps:$4 sm:$0xff]  }
 0x4aa   : > { %7462 = vmatpush1.bf16.msra.mxu0 %v20902_v17  ;;  %v20979_v17 = vld [vmem:[%s29033_s6 + $0x90c] ss:$16 sps:$4 sm:$0xff]  }
 0x4ab   : > { %7677 = vmatpush1.bf16.msra.mxu1 %v20905_v19  ;;  %7463 = vmatprep.subr.bf16.mxu0 %v20910_v20  ;;  %v20974_v19 = vld [vmem:[%s29033_s6 + $0x900] ss:$16 sps:$4 sm:$0xff]   ;;  %v20977_v20 = vld [vmem:[%s29033_s6 + $0x908] ss:$16 sps:$4 sm:$0xff]  }
 0x4ac   : > { %7678 = vmatprep.subr.bf16.mxu1 %v20913_v21  ;;  %v20982_v21 = vld [vmem:[%s29033_s6 + $0x924] ss:$16 sps:$4 sm:$0xff]  }
 0x4ae   : > { %7464 = vmatpush1.bf16.msra.mxu0 %v20908_v24  ;;  %v20985_v24 = vld [vmem:[%s29033_s6 + $0x92c] ss:$16 sps:$4 sm:$0xff]  }
 0x4af   : > { %7679 = vmatpush1.bf16.msra.mxu1 %v20911_v25  ;;  %7465 = vmatprep.subr.bf16.mxu0 %v20916_v28  ;;  %v20980_v25 = vld [vmem:[%s29033_s6 + $0x920] ss:$16 sps:$4 sm:$0xff]   ;;  %v20983_v28 = vld [vmem:[%s29033_s6 + $0x928] ss:$16 sps:$4 sm:$0xff]  }
 0x4b0   : > { %7680 = vmatprep.subr.bf16.mxu1 %v20919_v29  ;;  %v20988_v29 = vld [vmem:[%s29033_s6 + $0x944] ss:$16 sps:$4 sm:$0xff]  }
 0x4b2   : > { %7466 = vmatpush1.bf16.msra.mxu0 %v20914_v30  ;;  %v20991_v30 = vld [vmem:[%s29033_s6 + $0x94c] ss:$16 sps:$4 sm:$0xff]  }
 0x4b3   : > { %7681 = vmatpush1.bf16.msra.mxu1 %v20917_v31  ;;  %7467 = vmatprep.subr.bf16.mxu0 %v20922_v32  ;;  %v20986_v31 = vld [vmem:[%s29033_s6 + $0x940] ss:$16 sps:$4 sm:$0xff]   ;;  %v20989_v32 = vld [vmem:[%s29033_s6 + $0x948] ss:$16 sps:$4 sm:$0xff]  }
 0x4b4   : > { %7682 = vmatprep.subr.bf16.mxu1 %v20925_v33  ;;  %v20994_v33 = vld [vmem:[%s29033_s6 + $0x964] ss:$16 sps:$4 sm:$0xff]  }
 0x4b6   : > { %7468 = vmatpush1.bf16.msra.mxu0 %v20920_v35  ;;  %v20997_v35 = vld [vmem:[%s29033_s6 + $0x96c] ss:$16 sps:$4 sm:$0xff]  }
 0x4b7   : > { %7683 = vmatpush1.bf16.msra.mxu1 %v20923_v36  ;;  %7480 = vmatprep.subr.bf16.mxu0 %v20928_v37  ;;  %v20992_v36 = vld [vmem:[%s29033_s6 + $0x960] ss:$16 sps:$4 sm:$0xff]   ;;  %v20995_v37 = vld [vmem:[%s29033_s6 + $0x968] ss:$16 sps:$4 sm:$0xff]  }
 0x4b8   : > { %7695 = vmatprep.subr.bf16.mxu1 %v20931_v38  ;;  %v21000_v38 = vld [vmem:[%s29033_s6 + $0x984] ss:$16 sps:$4 sm:$0xff]  }
 0x4b9   : > { %7470 = vmatmul.mubr.bf16.vlgmr.msra.gmra.mrb[8].mxu0 %v25358_v18 }
 0x4ba   : > { %7685 = vmatmul.mubr.bf16.vlgmr.msra.gmra.mrb[8].mxu1 %v25358_v18  ;;  %7481 = vmatpush1.bf16.msra.mxu0 %v20926_v39  ;;  %v21003_v39 = vld [vmem:[%s29033_s6 + $0x98c] ss:$16 sps:$4 sm:$0xff]  }
 0x4bb   : > { %7512 = vmatprep.mubr.bf16.mxu0 %v25364_v26  ;;  %7696 = vmatpush1.bf16.msra.mxu1 %v20929_v40  ;;  %v20998_v40 = vld [vmem:[%s29033_s6 + $0x980] ss:$16 sps:$4 sm:$0xff]  }
 0x4bc   : > { %7727 = vmatprep.mubr.bf16.mxu1 %v25364_v26  ;;  %7482 = vmatprep.subr.bf16.mxu0 %v20934_v41  ;;  %v21001_v41 = vld [vmem:[%s29033_s6 + $0x988] ss:$16 sps:$4 sm:$0xff]  }
 0x4bd   : > { %7697 = vmatprep.subr.bf16.mxu1 %v20937_v43  ;;  %v21006_v43 = vld [vmem:[%s29033_s6 + $0x9a4] ss:$16 sps:$4 sm:$0xff]  }
 0x4be   : > { %7483 = vmatpush1.bf16.msra.mxu0 %v20932_v44  ;;  %v21009_v44 = vld [vmem:[%s29033_s6 + $0x9ac] ss:$16 sps:$4 sm:$0xff]  }
 0x4bf   : > { %7698 = vmatpush1.bf16.msra.mxu1 %v20935_v45  ;;  %7484 = vmatprep.subr.bf16.mxu0 %v20940_v46  ;;  %v21004_v45 = vld [vmem:[%s29033_s6 + $0x9a0] ss:$16 sps:$4 sm:$0xff]   ;;  %v21007_v46 = vld [vmem:[%s29033_s6 + $0x9a8] ss:$16 sps:$4 sm:$0xff]  }
 0x4c0   : > { %7699 = vmatprep.subr.bf16.mxu1 %v20943_v47  ;;  %v21012_v47 = vld [vmem:[%s29033_s6 + $0x9c4] ss:$16 sps:$4 sm:$0xff]  }
 0x4c2   : > { %7485 = vmatpush1.bf16.msra.mxu0 %v20938_v48  ;;  %v21015_v48 = vld [vmem:[%s29033_s6 + $0x9cc] ss:$16 sps:$4 sm:$0xff]  }
 0x4c3   : > { %7700 = vmatpush1.bf16.msra.mxu1 %v20941_v49  ;;  %7486 = vmatprep.subr.bf16.mxu0 %v20946_v50  ;;  %v21010_v49 = vld [vmem:[%s29033_s6 + $0x9c0] ss:$16 sps:$4 sm:$0xff]   ;;  %v21013_v50 = vld [vmem:[%s29033_s6 + $0x9c8] ss:$16 sps:$4 sm:$0xff]  }
 0x4c4   : > { %7701 = vmatprep.subr.bf16.mxu1 %v20949_v51  ;;  %v21018_v51 = vld [vmem:[%s29033_s6 + $0x9e4] ss:$16 sps:$4 sm:$0xff]  }
 0x4c6   : > { %7487 = vmatpush1.bf16.msra.mxu0 %v20944_v52  ;;  %v21021_v52 = vld [vmem:[%s29033_s6 + $0x9ec] ss:$16 sps:$4 sm:$0xff]  }
 0x4c7   : > { %7702 = vmatpush1.bf16.msra.mxu1 %v20947_v53  ;;  %7488 = vmatprep.subr.bf16.mxu0 %v20952_v54  ;;  %v21016_v53 = vld [vmem:[%s29033_s6 + $0x9e0] ss:$16 sps:$4 sm:$0xff]   ;;  %v21019_v54 = vld [vmem:[%s29033_s6 + $0x9e8] ss:$16 sps:$4 sm:$0xff]  }
 0x4c8   : > { %7703 = vmatprep.subr.bf16.mxu1 %v20955_v55  ;;  %v21024_v55 = vld [vmem:[%s29038_s26 + $0x4] ss:$16 sps:$4 sm:$0xff]  }
 0x4ca   : > { %7489 = vmatpush1.bf16.msra.mxu0 %v20950_v57  ;;  %v21027_v57 = vld [vmem:[%s29038_s26 + $0xc] ss:$16 sps:$4 sm:$0xff]  }
 0x4cb   : > { %7704 = vmatpush1.bf16.msra.mxu1 %v20953_v58  ;;  %7490 = vmatprep.subr.bf16.mxu0 %v20958_v60  ;;  %v21022_v58 = vld [vmem:[%s29038_s26] ss:$16 sps:$4 sm:$0xff]   ;;  %v21025_v60 = vld [vmem:[%s29038_s26 + $0x8] ss:$16 sps:$4 sm:$0xff]  }
 0x4cc   : > { %7705 = vmatprep.subr.bf16.mxu1 %v20961_v61  ;;  %v21030_v61 = vld [vmem:[%s29038_s26 + $0x24] ss:$16 sps:$4 sm:$0xff]  }
 0x4ce   : > { %7491 = vmatpush1.bf16.msra.mxu0 %v20956_v62  ;;  %v21033_v62 = vld [vmem:[%s29038_s26 + $0x2c] ss:$16 sps:$4 sm:$0xff]  }
 0x4cf   : > { %7706 = vmatpush1.bf16.msra.mxu1 %v20959_v63  ;;  %7492 = vmatprep.subr.bf16.mxu0 %v20964_v0  ;;  %v21028_v63 = vld [vmem:[%s29038_s26 + $0x20] ss:$16 sps:$4 sm:$0xff]   ;;  %v21031_v0 = vld [vmem:[%s29038_s26 + $0x28] ss:$16 sps:$4 sm:$0xff]  }
 0x4d0   : > { %7707 = vmatprep.subr.bf16.mxu1 %v20967_v1  ;;  %v21036_v1 = vld [vmem:[%s29038_s26 + $0x44] ss:$16 sps:$4 sm:$0xff]  }
 0x4d2   : > { %7493 = vmatpush1.bf16.msra.mxu0 %v20962_v3  ;;  %v21039_v3 = vld [vmem:[%s29038_s26 + $0x4c] ss:$16 sps:$4 sm:$0xff]  }
 0x4d3   : > { %7708 = vmatpush1.bf16.msra.mxu1 %v20965_v4  ;;  %7494 = vmatprep.subr.bf16.mxu0 %v20970_v6  ;;  %v21034_v4 = vld [vmem:[%s29038_s26 + $0x40] ss:$16 sps:$4 sm:$0xff]   ;;  %v21037_v6 = vld [vmem:[%s29038_s26 + $0x48] ss:$16 sps:$4 sm:$0xff]  }
 0x4d4   : > { %7709 = vmatprep.subr.bf16.mxu1 %v20973_v9  ;;  %v21042_v9 = vld [vmem:[%s29038_s26 + $0x64] ss:$16 sps:$4 sm:$0xff]  }
 0x4d6   : > { %7495 = vmatpush1.bf16.msra.mxu0 %v20968_v13  ;;  %v21045_v13 = vld [vmem:[%s29038_s26 + $0x6c] ss:$16 sps:$4 sm:$0xff]  }
 0x4d7   : > { %7710 = vmatpush1.bf16.msra.mxu1 %v20971_v15  ;;  %7496 = vmatprep.subr.bf16.mxu0 %v20976_v16  ;;  %v21040_v15 = vld [vmem:[%s29038_s26 + $0x60] ss:$16 sps:$4 sm:$0xff]   ;;  %v21043_v16 = vld [vmem:[%s29038_s26 + $0x68] ss:$16 sps:$4 sm:$0xff]  }
 0x4d8   : > { %7711 = vmatprep.subr.bf16.mxu1 %v20979_v17  ;;  %v21048_v17 = vld [vmem:[%s29038_s26 + $0x84] ss:$16 sps:$4 sm:$0xff]  }
 0x4da   : > { %7497 = vmatpush1.bf16.msra.mxu0 %v20974_v19  ;;  %v21051_v19 = vld [vmem:[%s29038_s26 + $0x8c] ss:$16 sps:$4 sm:$0xff]  }
 0x4db   : > { %7712 = vmatpush1.bf16.msra.mxu1 %v20977_v20  ;;  %7498 = vmatprep.subr.bf16.mxu0 %v20982_v21  ;;  %v21046_v20 = vld [vmem:[%s29038_s26 + $0x80] ss:$16 sps:$4 sm:$0xff]   ;;  %v21049_v21 = vld [vmem:[%s29038_s26 + $0x88] ss:$16 sps:$4 sm:$0xff]  }
 0x4dc   : > { %7713 = vmatprep.subr.bf16.mxu1 %v20985_v24  ;;  %v21054_v24 = vld [vmem:[%s29038_s26 + $0xa4] ss:$16 sps:$4 sm:$0xff]  }
 0x4de   : > { %7499 = vmatpush1.bf16.msra.mxu0 %v20980_v25  ;;  %v21057_v25 = vld [vmem:[%s29038_s26 + $0xac] ss:$16 sps:$4 sm:$0xff]  }
 0x4df   : > { %7714 = vmatpush1.bf16.msra.mxu1 %v20983_v28  ;;  %7500 = vmatprep.subr.bf16.mxu0 %v20988_v29  ;;  %v21052_v28 = vld [vmem:[%s29038_s26 + $0xa0] ss:$16 sps:$4 sm:$0xff]   ;;  %v21055_v29 = vld [vmem:[%s29038_s26 + $0xa8] ss:$16 sps:$4 sm:$0xff]  }
 0x4e0   : > { %7715 = vmatprep.subr.bf16.mxu1 %v20991_v30  ;;  %v21060_v30 = vld [vmem:[%s29038_s26 + $0xc4] ss:$16 sps:$4 sm:$0xff]  }
 0x4e2   : > { %7501 = vmatpush1.bf16.msra.mxu0 %v20986_v31  ;;  %v21063_v31 = vld [vmem:[%s29038_s26 + $0xcc] ss:$16 sps:$4 sm:$0xff]  }
 0x4e3   : > { %7716 = vmatpush1.bf16.msra.mxu1 %v20989_v32  ;;  %7502 = vmatprep.subr.bf16.mxu0 %v20994_v33  ;;  %v21058_v32 = vld [vmem:[%s29038_s26 + $0xc0] ss:$16 sps:$4 sm:$0xff]   ;;  %v21061_v33 = vld [vmem:[%s29038_s26 + $0xc8] ss:$16 sps:$4 sm:$0xff]  }
 0x4e4   : > { %7717 = vmatprep.subr.bf16.mxu1 %v20997_v35  ;;  %v21066_v35 = vld [vmem:[%s29038_s26 + $0xe4] ss:$16 sps:$4 sm:$0xff]  }
 0x4e6   : > { %7503 = vmatpush1.bf16.msra.mxu0 %v20992_v36  ;;  %v21069_v36 = vld [vmem:[%s29038_s26 + $0xec] ss:$16 sps:$4 sm:$0xff]  }
 0x4e7   : > { %7718 = vmatpush1.bf16.msra.mxu1 %v20995_v37  ;;  %7504 = vmatprep.subr.bf16.mxu0 %v21000_v38  ;;  %v21064_v37 = vld [vmem:[%s29038_s26 + $0xe0] ss:$16 sps:$4 sm:$0xff]   ;;  %v21067_v38 = vld [vmem:[%s29038_s26 + $0xe8] ss:$16 sps:$4 sm:$0xff]  }
 0x4e8   : > { %7719 = vmatprep.subr.bf16.mxu1 %v21003_v39  ;;  %v21072_v39 = vld [vmem:[%s29038_s26 + $0x104] ss:$16 sps:$4 sm:$0xff]  }
 0x4ea   : > { %7505 = vmatpush1.bf16.msra.mxu0 %v20998_v40  ;;  %v21075_v40 = vld [vmem:[%s29038_s26 + $0x10c] ss:$16 sps:$4 sm:$0xff]  }
 0x4eb   : > { %7720 = vmatpush1.bf16.msra.mxu1 %v21001_v41  ;;  %7506 = vmatprep.subr.bf16.mxu0 %v21006_v43  ;;  %v21070_v41 = vld [vmem:[%s29038_s26 + $0x100] ss:$16 sps:$4 sm:$0xff]   ;;  %v21073_v43 = vld [vmem:[%s29038_s26 + $0x108] ss:$16 sps:$4 sm:$0xff]  }
 0x4ec   : > { %7721 = vmatprep.subr.bf16.mxu1 %v21009_v44  ;;  %v21078_v44 = vld [vmem:[%s29038_s26 + $0x124] ss:$16 sps:$4 sm:$0xff]  }
 0x4ee   : > { %7507 = vmatpush1.bf16.msra.mxu0 %v21004_v45  ;;  %v21081_v45 = vld [vmem:[%s29038_s26 + $0x12c] ss:$16 sps:$4 sm:$0xff]  }
 0x4ef   : > { %7722 = vmatpush1.bf16.msra.mxu1 %v21007_v46  ;;  %7508 = vmatprep.subr.bf16.mxu0 %v21012_v47  ;;  %v21076_v46 = vld [vmem:[%s29038_s26 + $0x120] ss:$16 sps:$4 sm:$0xff]   ;;  %v21079_v47 = vld [vmem:[%s29038_s26 + $0x128] ss:$16 sps:$4 sm:$0xff]  }
 0x4f0   : > { %7723 = vmatprep.subr.bf16.mxu1 %v21015_v48  ;;  %v21084_v48 = vld [vmem:[%s29038_s26 + $0x144] ss:$16 sps:$4 sm:$0xff]  }
 0x4f2   : > { %7509 = vmatpush1.bf16.msra.mxu0 %v21010_v49  ;;  %v21087_v49 = vld [vmem:[%s29038_s26 + $0x14c] ss:$16 sps:$4 sm:$0xff]  }
 0x4f3   : > { %7724 = vmatpush1.bf16.msra.mxu1 %v21013_v50  ;;  %7510 = vmatprep.subr.bf16.mxu0 %v21018_v51  ;;  %v21082_v50 = vld [vmem:[%s29038_s26 + $0x140] ss:$16 sps:$4 sm:$0xff]   ;;  %v21085_v51 = vld [vmem:[%s29038_s26 + $0x148] ss:$16 sps:$4 sm:$0xff]  }
 0x4f4   : > { %7725 = vmatprep.subr.bf16.mxu1 %v21021_v52  ;;  %v21090_v52 = vld [vmem:[%s29038_s26 + $0x164] ss:$16 sps:$4 sm:$0xff]  }
 0x4f6   : > { %7511 = vmatpush1.bf16.msra.mxu0 %v21016_v53  ;;  %v21093_v53 = vld [vmem:[%s29038_s26 + $0x16c] ss:$16 sps:$4 sm:$0xff]  }
 0x4f7   : > { %7726 = vmatpush1.bf16.msra.mxu1 %v21019_v54  ;;  %9339 = vmatprep.subr.bf16.mxu0 %v21024_v55  ;;  %v21088_v54 = vld [vmem:[%s29038_s26 + $0x160] ss:$16 sps:$4 sm:$0xff]   ;;  %v21091_v55 = vld [vmem:[%s29038_s26 + $0x168] ss:$16 sps:$4 sm:$0xff]  }
 0x4f8   : > { %9511 = vmatprep.subr.bf16.mxu1 %v21027_v57  ;;  %v21096_v57 = vld [vmem:[%s29038_s26 + $0x184] ss:$16 sps:$4 sm:$0xff]  }
 0x4f9   : > { %7513 = vmatmul.mubr.bf16.vlgmr.msra.gmra.mrb[8].mxu0 %v25360_v22 }
 0x4fa   : > { %7728 = vmatmul.mubr.bf16.vlgmr.msra.gmra.mrb[8].mxu1 %v25360_v22  ;;  %9340 = vmatpush1.bf16.msra.mxu0 %v21022_v58  ;;  %v21099_v58 = vld [vmem:[%s29038_s26 + $0x18c] ss:$16 sps:$4 sm:$0xff]  }
 0x4fb   : > { %9512 = vmatpush1.bf16.msra.mxu1 %v21025_v60  ;;  %9341 = vmatprep.subr.bf16.mxu0 %v21030_v61  ;;  %v21094_v60 = vld [vmem:[%s29038_s26 + $0x180] ss:$16 sps:$4 sm:$0xff]   ;;  %v21097_v61 = vld [vmem:[%s29038_s26 + $0x188] ss:$16 sps:$4 sm:$0xff]  }
 0x4fc   : > { %9513 = vmatprep.subr.bf16.mxu1 %v21033_v62  ;;  %v21102_v62 = vld [vmem:[%s29038_s26 + $0x1a4] ss:$16 sps:$4 sm:$0xff]  }
 0x4fe   : > { %9342 = vmatpush1.bf16.msra.mxu0 %v21028_v63  ;;  %v21105_v63 = vld [vmem:[%s29038_s26 + $0x1ac] ss:$16 sps:$4 sm:$0xff]  }
 0x4ff   : > { %9514 = vmatpush1.bf16.msra.mxu1 %v21031_v0  ;;  %9343 = vmatprep.subr.bf16.mxu0 %v21036_v1  ;;  %v21100_v0 = vld [vmem:[%s29038_s26 + $0x1a0] ss:$16 sps:$4 sm:$0xff]   ;;  %v21103_v1 = vld [vmem:[%s29038_s26 + $0x1a8] ss:$16 sps:$4 sm:$0xff]  }
 0x500   : > { %9515 = vmatprep.subr.bf16.mxu1 %v21039_v3  ;;  %v21108_v3 = vld [vmem:[%s29038_s26 + $0x1c4] ss:$16 sps:$4 sm:$0xff]  }
 0x502   : > { %9344 = vmatpush1.bf16.msra.mxu0 %v21034_v4  ;;  %v21111_v4 = vld [vmem:[%s29038_s26 + $0x1cc] ss:$16 sps:$4 sm:$0xff]  }
 0x503   : > { %9516 = vmatpush1.bf16.msra.mxu1 %v21037_v6  ;;  %9345 = vmatprep.subr.bf16.mxu0 %v21042_v9  ;;  %v21106_v6 = vld [vmem:[%s29038_s26 + $0x1c0] ss:$16 sps:$4 sm:$0xff]   ;;  %v21109_v9 = vld [vmem:[%s29038_s26 + $0x1c8] ss:$16 sps:$4 sm:$0xff]  }
 0x504   : > { %9517 = vmatprep.subr.bf16.mxu1 %v21045_v13  ;;  %v21114_v13 = vld [vmem:[%s29038_s26 + $0x1e4] ss:$16 sps:$4 sm:$0xff]  }
 0x506   : > { %9346 = vmatpush1.bf16.msra.mxu0 %v21040_v15  ;;  %v21117_v15 = vld [vmem:[%s29038_s26 + $0x1ec] ss:$16 sps:$4 sm:$0xff]  }
 0x507   : > { %9518 = vmatpush1.bf16.msra.mxu1 %v21043_v16  ;;  %9347 = vmatprep.subr.bf16.mxu0 %v21048_v17  ;;  %v21112_v16 = vld [vmem:[%s29038_s26 + $0x1e0] ss:$16 sps:$4 sm:$0xff]   ;;  %v21115_v17 = vld [vmem:[%s29038_s26 + $0x1e8] ss:$16 sps:$4 sm:$0xff]  }
 0x508   : > { %9519 = vmatprep.subr.bf16.mxu1 %v21051_v19  ;;  %v21120_v19 = vld [vmem:[%s29038_s26 + $0x204] ss:$16 sps:$4 sm:$0xff]  }
 0x50a   : > { %9348 = vmatpush1.bf16.msra.mxu0 %v21046_v20  ;;  %v21123_v20 = vld [vmem:[%s29038_s26 + $0x20c] ss:$16 sps:$4 sm:$0xff]  }
 0x50b   : > { %9520 = vmatpush1.bf16.msra.mxu1 %v21049_v21  ;;  %9349 = vmatprep.subr.bf16.mxu0 %v21054_v24  ;;  %v5686_v21 = vld [vmem:[%s29039_s0] sm:$0xf] }
 0x50c   : > { %9521 = vmatprep.subr.bf16.mxu1 %v21057_v25  ;;  %v5691_v24 = vrot.slane %v5686_v21, %v24892_v5  ;;  %v5699_v25 = vrot.slane %v5686_v21, %v24895_v7 }
 0x50e   : > { %9350 = vmatpush1.bf16.msra.mxu0 %v21052_v28  ;;  %v5695_v28 = vrot.slane %v5686_v21, %v24898_v8 }
 0x50f   : > { %9522 = vmatpush1.bf16.msra.mxu1 %v21055_v29  ;;  %9351 = vmatprep.subr.bf16.mxu0 %v21060_v30  ;;  %v5703_v29 = vrot.slane %v5686_v21, %v24901_v10 }
 0x510   : > { %9523 = vmatprep.subr.bf16.mxu1 %v21063_v31 }
 0x512   : > { %9352 = vmatpush1.bf16.msra.mxu0 %v21058_v32 }
 0x513   : > { %9524 = vmatpush1.bf16.msra.mxu1 %v21061_v33  ;;  %9353 = vmatprep.subr.bf16.mxu0 %v21066_v35 }
 0x514   : > { %9525 = vmatprep.subr.bf16.mxu1 %v21069_v36 }
 0x516   : > { %9354 = vmatpush1.bf16.msra.mxu0 %v21064_v37 }
 0x517   : > { %9526 = vmatpush1.bf16.msra.mxu1 %v21067_v38  ;;  %9355 = vmatprep.subr.bf16.mxu0 %v21072_v39 }
 0x518   : > { %9527 = vmatprep.subr.bf16.mxu1 %v21075_v40 }
 0x51a   : > { %9356 = vmatpush1.bf16.msra.mxu0 %v21070_v41 }
 0x51b   : > { %9528 = vmatpush1.bf16.msra.mxu1 %v21073_v43  ;;  %9357 = vmatprep.subr.bf16.mxu0 %v21078_v44 }
 0x51c   : > { %9529 = vmatprep.subr.bf16.mxu1 %v21081_v45 }
 0x51e   : > { %9358 = vmatpush1.bf16.msra.mxu0 %v21076_v46 }
 0x51f   : > { %9530 = vmatpush1.bf16.msra.mxu1 %v21079_v47  ;;  %9359 = vmatprep.subr.bf16.mxu0 %v21084_v48 }
 0x520   : > { %9531 = vmatprep.subr.bf16.mxu1 %v21087_v49 }
 0x522   : > { %9360 = vmatpush1.bf16.msra.mxu0 %v21082_v50 }
 0x523   : > { %9532 = vmatpush1.bf16.msra.mxu1 %v21085_v51  ;;  %9361 = vmatprep.subr.bf16.mxu0 %v21090_v52 }
 0x524   : > { %9533 = vmatprep.subr.bf16.mxu1 %v21093_v53 }
 0x526   : > { %9362 = vmatpush1.bf16.msra.mxu0 %v21088_v54 }
 0x527   : > { %9534 = vmatpush1.bf16.msra.mxu1 %v21091_v55  ;;  %9363 = vmatprep.subr.bf16.mxu0 %v21096_v57 }
 0x528   : > { %9535 = vmatprep.subr.bf16.mxu1 %v21099_v58 }
 0x52a   : > { %9364 = vmatpush1.bf16.msra.mxu0 %v21094_v60 }
 0x52b   : > { %9536 = vmatpush1.bf16.msra.mxu1 %v21097_v61  ;;  %9365 = vmatprep.subr.bf16.mxu0 %v21102_v62 }
 0x52c   : > { %9537 = vmatprep.subr.bf16.mxu1 %v21105_v63 }
 0x52e   : > { %9366 = vmatpush1.bf16.msra.mxu0 %v21100_v0 }
 0x52f   : > { %9538 = vmatpush1.bf16.msra.mxu1 %v21103_v1  ;;  %9367 = vmatprep.subr.bf16.mxu0 %v21108_v3 }
 0x530   : > { %9539 = vmatprep.subr.bf16.mxu1 %v21111_v4 }
 0x532   : > { %9368 = vmatpush1.bf16.msra.mxu0 %v21106_v6 }
 0x533   : > { %9540 = vmatpush1.bf16.msra.mxu1 %v21109_v9  ;;  %9369 = vmatprep.subr.bf16.mxu0 %v21114_v13 }
 0x534   : > { %9541 = vmatprep.subr.bf16.mxu1 %v21117_v15 }
 0x536   : > { %9370 = vmatpush1.bf16.msra.mxu0 %v21112_v16 }
 0x537   : > { %9542 = vmatpush1.bf16.msra.mxu1 %v21115_v17  ;;  %9382 = vmatprep.subr.bf16.mxu0 %v21120_v19 }
 0x538   : > { %9554 = vmatprep.subr.bf16.mxu1 %v21123_v20 }
 0x5cc   : > { %v7514_v30 = vpop.f32.mrb[8].mxu0 }
 0x5cd   : > { %v20181_v31 = vadd.f32 %v7514_v30, %v5691_v24  ;;  %v7729_v32 = vpop.f32.mrb[8].mxu1  ;;  %v7516_v33 = vpop.f32.mrb[9].mxu0  ;;  %v21118_v30 = vld [vmem:[%s29038_s26 + $0x200] ss:$16 sps:$4 sm:$0xff]  }
 0x5ce   : > { %v20185_v35 = vadd.f32 %v7729_v32, %v5699_v25  ;;  %v20182_v36 = vadd.f32 %v7516_v33, %v5695_v28  ;;  %v7731_v37 = vpop.f32.mrb[9].mxu1  ;;  %v7518_v38 = vpop.f32.mrb[10].mxu0  ;;  %v21126_v33 = vld [vmem:[%s29038_s26 + $0x224] ss:$16 sps:$4 sm:$0xff]  }
 0x5cf   : > { %v7738_v39 = vmax.f32 %v20181_v31, 0.0  ;;  %v20186_v40 = vadd.f32 %v7731_v37, %v5703_v29  ;;  %v20183_v41 = vadd.f32 %v7518_v38, %v5691_v24  ;;  %v7733_v43 = vpop.f32.mrb[10].mxu1  ;;  %v7520_v44 = vpop.f32.mrb[11].mxu0  ;;  %v21121_v31 = vld [vmem:[%s29038_s26 + $0x208] ss:$16 sps:$4 sm:$0xff]  }
 0x5d0   : > { %v7740_v45 = vmax.f32 %v20185_v35, 0.0  ;;  %v7739_v46 = vmax.f32 %v20182_v36, 0.0  ;;  %v20187_v47 = vadd.f32 %v7733_v43, %v5699_v25  ;;  %v20184_v48 = vadd.f32 %v7520_v44, %v5695_v28  ;;  %v7735_v49 = vpop.f32.mrb[11].mxu1  ;;  %v21129_v35 = vld [vmem:[%s29038_s26 + $0x22c] ss:$16 sps:$4 sm:$0xff]  }
 0x5d1   : > { %v7758_v50 = vrot.slane %v7738_v39, 1  ;;  %v7741_v51 = vmax.f32 %v20186_v40, 0.0  ;;  %v7742_v52 = vmax.f32 %v20183_v41, 0.0  ;;  %v20188_v53 = vadd.f32 %v7735_v49, %v5703_v29  ;;  %v21124_v36 = vld [vmem:[%s29038_s26 + $0x220] ss:$16 sps:$4 sm:$0xff]  }
 0x5d2   : > { %v7746_v54 = vrot.slane %v7740_v45, 7  ;;  %v7759_v55 = vrot.slane %v7739_v46, 1  ;;  %v7744_v57 = vmax.f32 %v20187_v47, 0.0  ;;  %v7743_v58 = vmax.f32 %v20184_v48, 0.0  ;;  %v21127_v37 = vld [vmem:[%s29038_s26 + $0x228] ss:$16 sps:$4 sm:$0xff]  }
 0x5d3   : > { %v7747_v60 = vrot.slane %v7741_v51, 7  ;;  %v7760_v61 = vrot.slane %v7742_v52, 1  ;;  %v26372_v62 = vpack.c.bf16 %v7742_v52, %v7738_v39  ;;  %v7745_v63 = vmax.f32 %v20188_v53, 0.0  ;;  %v21132_v38 = vld [vmem:[%s29038_s26 + $0x244] ss:$16 sps:$4 sm:$0xff]  }
 0x5d4   : > { %v7748_v0 = vrot.slane %v7744_v57, 7  ;;  %v26374_v1 = vpack.c.bf16 %v7744_v57, %v7740_v45  ;;  %v7761_v3 = vrot.slane %v7743_v58, 1  ;;  %v7776_v4 = vpack.c.bf16 %v7743_v58, %v7739_v46  ;;  %v21135_v39 = vld [vmem:[%s29038_s26 + $0x24c] ss:$16 sps:$4 sm:$0xff]   ;;  %v21130_v40 = vld [vmem:[%s29038_s26 + $0x240] ss:$16 sps:$4 sm:$0xff]  }
 0x5d5   : > { %v7763_v6 = vsel %vm7762_vm4, %v7758_v50, %v7760_v61  ;;  %v7765_v9 = vsel %vm7762_vm4, %v7760_v61, %v7758_v50  ;;  %v7749_v13 = vrot.slane %v7745_v63, 7  ;;  %v26380_v15 = vpack.c.bf16 %v7745_v63, %v7741_v51  ;;  %v21133_v41 = vld [vmem:[%s29038_s26 + $0x248] ss:$16 sps:$4 sm:$0xff]   ;;  %v21138_v43 = vld [vmem:[%s29038_s26 + $0x264] ss:$16 sps:$4 sm:$0xff]  }
 0x5d6   : > { %v26382_v16 = vpack.c.bf16 %v7765_v9, %v7763_v6  ;;  %v7750_v17 = vsel %vm5320_vm2, %v7746_v54, %v7748_v0  ;;  %v7752_v19 = vsel %vm5320_vm2, %v7748_v0, %v7746_v54  ;;  %v7764_v20 = vsel %vm7762_vm4, %v7759_v55, %v7761_v3  ;;  %v21141_v44 = vld [vmem:[%s29038_s26 + $0x26c] ss:$16 sps:$4 sm:$0xff]   ;;  %v21136_v45 = vld [vmem:[%s29038_s26 + $0x260] ss:$16 sps:$4 sm:$0xff]   ;;  %v21139_v46 = vld [vmem:[%s29038_s26 + $0x268] ss:$16 sps:$4 sm:$0xff]  }
 0x5d7   : > { %v18770_v21 = vpack.c.bf16 %v7750_v17, %v7752_v19  ;;  %v7766_v24 = vsel %vm7762_vm4, %v7761_v3, %v7759_v55  ;;  %v7751_v25 = vsel %vm5320_vm2, %v7747_v60, %v7749_v13  ;;  %v7753_v28 = vsel %vm5320_vm2, %v7749_v13, %v7747_v60  ;;  %v21144_v47 = vld [vmem:[%s29038_s26 + $0x284] ss:$16 sps:$4 sm:$0xff]   ;;  %v21147_v48 = vld [vmem:[%s29038_s26 + $0x28c] ss:$16 sps:$4 sm:$0xff]   ;;  %v21142_v49 = vld [vmem:[%s29038_s26 + $0x280] ss:$16 sps:$4 sm:$0xff]  }
 0x5d8   : > { %v18765_v29 = vpack.c.bf16 %v7751_v25, %v7753_v28  ;;  %v26402_v32 = vpack.c.bf16 %v7766_v24, %v7764_v20  ;;  %v21145_v50 = vld [vmem:[%s29038_s26 + $0x288] ss:$16 sps:$4 sm:$0xff]   ;;  %v21150_v51 = vld [vmem:[%s29038_s26 + $0x2a4] ss:$16 sps:$4 sm:$0xff]   ;;  %v21153_v52 = vld [vmem:[%s29038_s26 + $0x2ac] ss:$16 sps:$4 sm:$0xff]  }
 0x5d9   : > { %v21148_v53 = vld [vmem:[%s29038_s26 + $0x2a0] ss:$16 sps:$4 sm:$0xff]   ;;  %v21151_v54 = vld [vmem:[%s29038_s26 + $0x2a8] ss:$16 sps:$4 sm:$0xff]   ;;  %v21156_v55 = vld [vmem:[%s29038_s26 + $0x2c4] ss:$16 sps:$4 sm:$0xff]  }
 0x5da   : > { %18766 = vmatprep.mubr.msk.bf16.mxu0 %vm25368_vm3, %v18765_v29  ;;  %18786 = vmatprep.mubr.msk.bf16.mxu1 %vm25368_vm3, %v18765_v29  ;;  %v21159_v57 = vld [vmem:[%s29038_s26 + $0x2cc] ss:$16 sps:$4 sm:$0xff]   ;;  %v21154_v58 = vld [vmem:[%s29038_s26 + $0x2c0] ss:$16 sps:$4 sm:$0xff]   ;;  %v21157_v60 = vld [vmem:[%s29038_s26 + $0x2c8] ss:$16 sps:$4 sm:$0xff]  }
 0x5db   : > { %18771 = vmatmul.mubr.msk.bf16.vlgmr.msra.gmra.mrb[12].mxu0 %vm25368_vm3, %v18770_v21  ;;  %18791 = vmatmul.mubr.msk.bf16.vlgmr.msra.gmra.mrb[12].mxu1 %vm25368_vm3, %v18770_v21  ;;  %v21162_v61 = vld [vmem:[%s29038_s26 + $0x2e4] ss:$16 sps:$4 sm:$0xff]   ;;  %v21165_v63 = vld [vmem:[%s29038_s26 + $0x2ec] ss:$16 sps:$4 sm:$0xff]   ;;  %v21160_v0 = vld [vmem:[%s29038_s26 + $0x2e0] ss:$16 sps:$4 sm:$0xff]  }
 0x5dc   : > { %9383 = vmatpush1.bf16.msra.mxu0 %v21118_v30  ;;  %9555 = vmatpush1.bf16.msra.mxu1 %v21121_v31  ;;  %v21163_v3 = vld [vmem:[%s29038_s26 + $0x2e8] ss:$16 sps:$4 sm:$0xff]   ;;  %v21171_v6 = vld [vmem:[%s29038_s26 + $0x30c] ss:$16 sps:$4 sm:$0xff]   ;;  %v21166_v9 = vld [vmem:[%s29038_s26 + $0x300] ss:$16 sps:$4 sm:$0xff]  }
 0x5dd   : > { %9414 = vmatprep.mubr.bf16.mxu0 %v7776_v4  ;;  %9586 = vmatprep.mubr.bf16.mxu1 %v7776_v4  ;;  %v21168_v4 = vld [vmem:[%s29038_s26 + $0x304] ss:$16 sps:$4 sm:$0xff]   ;;  %v21169_v13 = vld [vmem:[%s29038_s26 + $0x308] ss:$16 sps:$4 sm:$0xff]   ;;  %v21177_v19 = vld [vmem:[%s29038_s26 + $0x32c] ss:$16 sps:$4 sm:$0xff]  }
 0x5de   : > { %9384 = vmatprep.subr.bf16.mxu0 %v21126_v33  ;;  %9556 = vmatprep.subr.bf16.mxu1 %v21129_v35  ;;  %v21174_v17 = vld [vmem:[%s29038_s26 + $0x324] ss:$16 sps:$4 sm:$0xff]   ;;  %v21172_v20 = vld [vmem:[%s29038_s26 + $0x320] ss:$16 sps:$4 sm:$0xff]   ;;  %v21175_v21 = vld [vmem:[%s29038_s26 + $0x328] ss:$16 sps:$4 sm:$0xff]  }
 0x5df   : > { %v21180_v24 = vld [vmem:[%s29038_s26 + $0x344] ss:$16 sps:$4 sm:$0xff]   ;;  %v21183_v25 = vld [vmem:[%s29038_s26 + $0x34c] ss:$16 sps:$4 sm:$0xff]   ;;  %v21178_v28 = vld [vmem:[%s29038_s26 + $0x340] ss:$16 sps:$4 sm:$0xff]  }
 0x5e0   : > { %9385 = vmatpush1.bf16.msra.mxu0 %v21124_v36  ;;  %9557 = vmatpush1.bf16.msra.mxu1 %v21127_v37  ;;  %v21181_v29 = vld [vmem:[%s29038_s26 + $0x348] ss:$16 sps:$4 sm:$0xff]   ;;  %v21186_v30 = vld [vmem:[%s29038_s26 + $0x364] ss:$16 sps:$4 sm:$0xff]   ;;  %v21189_v31 = vld [vmem:[%s29038_s26 + $0x36c] ss:$16 sps:$4 sm:$0xff]  }
 0x5e1   : > { %9386 = vmatprep.subr.bf16.mxu0 %v21132_v38  ;;  %9558 = vmatprep.subr.bf16.mxu1 %v21135_v39  ;;  %v21184_v33 = vld [vmem:[%s29038_s26 + $0x360] ss:$16 sps:$4 sm:$0xff]   ;;  %v21187_v35 = vld [vmem:[%s29038_s26 + $0x368] ss:$16 sps:$4 sm:$0xff]   ;;  %v21192_v36 = vld [vmem:[%s29038_s26 + $0x384] ss:$16 sps:$4 sm:$0xff]  }
 0x5e2   : > { %v21195_v37 = vld [vmem:[%s29038_s26 + $0x38c] ss:$16 sps:$4 sm:$0xff]   ;;  %v21190_v38 = vld [vmem:[%s29038_s26 + $0x380] ss:$16 sps:$4 sm:$0xff]   ;;  %v21193_v39 = vld [vmem:[%s29038_s26 + $0x388] ss:$16 sps:$4 sm:$0xff]  }
 0x5e4   : > { %9387 = vmatpush1.bf16.msra.mxu0 %v21130_v40  ;;  %9559 = vmatpush1.bf16.msra.mxu1 %v21133_v41  ;;  %v21198_v40 = vld [vmem:[%s29038_s26 + $0x3a4] ss:$16 sps:$4 sm:$0xff]   ;;  %v21201_v41 = vld [vmem:[%s29038_s26 + $0x3ac] ss:$16 sps:$4 sm:$0xff]  }
 0x5e5   : > { %9388 = vmatprep.subr.bf16.mxu0 %v21138_v43  ;;  %9560 = vmatprep.subr.bf16.mxu1 %v21141_v44  ;;  %v21196_v43 = vld [vmem:[%s29038_s26 + $0x3a0] ss:$16 sps:$4 sm:$0xff]   ;;  %v21199_v44 = vld [vmem:[%s29038_s26 + $0x3a8] ss:$16 sps:$4 sm:$0xff]  }
 0x5e8   : > { %9389 = vmatpush1.bf16.msra.mxu0 %v21136_v45  ;;  %9561 = vmatpush1.bf16.msra.mxu1 %v21139_v46  ;;  %v21204_v45 = vld [vmem:[%s29038_s26 + $0x3c4] ss:$16 sps:$4 sm:$0xff]   ;;  %v21207_v46 = vld [vmem:[%s29038_s26 + $0x3cc] ss:$16 sps:$4 sm:$0xff]  }
 0x5e9   : > { %9390 = vmatprep.subr.bf16.mxu0 %v21144_v47  ;;  %9562 = vmatprep.subr.bf16.mxu1 %v21147_v48  ;;  %v21202_v47 = vld [vmem:[%s29038_s26 + $0x3c0] ss:$16 sps:$4 sm:$0xff]   ;;  %v21205_v48 = vld [vmem:[%s29038_s26 + $0x3c8] ss:$16 sps:$4 sm:$0xff]  }
 0x5ec   : > { %9391 = vmatpush1.bf16.msra.mxu0 %v21142_v49  ;;  %9563 = vmatpush1.bf16.msra.mxu1 %v21145_v50  ;;  %v21210_v49 = vld [vmem:[%s29038_s26 + $0x3e4] ss:$16 sps:$4 sm:$0xff]   ;;  %v21213_v50 = vld [vmem:[%s29038_s26 + $0x3ec] ss:$16 sps:$4 sm:$0xff]  }
 0x5ed   : > { %9392 = vmatprep.subr.bf16.mxu0 %v21150_v51  ;;  %9564 = vmatprep.subr.bf16.mxu1 %v21153_v52  ;;  %v21208_v51 = vld [vmem:[%s29038_s26 + $0x3e0] ss:$16 sps:$4 sm:$0xff]   ;;  %v21211_v52 = vld [vmem:[%s29038_s26 + $0x3e8] ss:$16 sps:$4 sm:$0xff]  }
 0x5f0   : > { %9393 = vmatpush1.bf16.msra.mxu0 %v21148_v53  ;;  %9565 = vmatpush1.bf16.msra.mxu1 %v21151_v54  ;;  %v21216_v53 = vld [vmem:[%s29038_s26 + $0x404] ss:$16 sps:$4 sm:$0xff]   ;;  %v21219_v54 = vld [vmem:[%s29038_s26 + $0x40c] ss:$16 sps:$4 sm:$0xff]  }
 0x5f1   : > { %9394 = vmatprep.subr.bf16.mxu0 %v21156_v55  ;;  %9566 = vmatprep.subr.bf16.mxu1 %v21159_v57  ;;  %v21214_v55 = vld [vmem:[%s29038_s26 + $0x400] ss:$16 sps:$4 sm:$0xff]   ;;  %v21217_v57 = vld [vmem:[%s29038_s26 + $0x408] ss:$16 sps:$4 sm:$0xff]  }
 0x5f4   : > { %9395 = vmatpush1.bf16.msra.mxu0 %v21154_v58  ;;  %9567 = vmatpush1.bf16.msra.mxu1 %v21157_v60  ;;  %v21222_v58 = vld [vmem:[%s29038_s26 + $0x424] ss:$16 sps:$4 sm:$0xff]   ;;  %v21225_v60 = vld [vmem:[%s29038_s26 + $0x42c] ss:$16 sps:$4 sm:$0xff]  }
 0x5f5   : > { %9396 = vmatprep.subr.bf16.mxu0 %v21162_v61  ;;  %9568 = vmatprep.subr.bf16.mxu1 %v21165_v63  ;;  %v21220_v61 = vld [vmem:[%s29038_s26 + $0x420] ss:$16 sps:$4 sm:$0xff]   ;;  %v21223_v63 = vld [vmem:[%s29038_s26 + $0x428] ss:$16 sps:$4 sm:$0xff]  }
 0x5f8   : > { %9397 = vmatpush1.bf16.msra.mxu0 %v21160_v0  ;;  %9569 = vmatpush1.bf16.msra.mxu1 %v21163_v3  ;;  %v21228_v0 = vld [vmem:[%s29038_s26 + $0x444] ss:$16 sps:$4 sm:$0xff]   ;;  %v21226_v3 = vld [vmem:[%s29038_s26 + $0x440] ss:$16 sps:$4 sm:$0xff]  }
 0x5f9   : > { %9398 = vmatprep.subr.bf16.mxu0 %v21168_v4  ;;  %9570 = vmatprep.subr.bf16.mxu1 %v21171_v6  ;;  %v21234_v4 = vld [vmem:[%s29038_s26 + $0x464] ss:$16 sps:$4 sm:$0xff]   ;;  %v21237_v6 = vld [vmem:[%s29038_s26 + $0x46c] ss:$16 sps:$4 sm:$0xff]  }
 0x5fc   : > { %9399 = vmatpush1.bf16.msra.mxu0 %v21166_v9  ;;  %9571 = vmatpush1.bf16.msra.mxu1 %v21169_v13  ;;  %v21232_v9 = vld [vmem:[%s29038_s26 + $0x460] ss:$16 sps:$4 sm:$0xff]   ;;  %v21235_v13 = vld [vmem:[%s29038_s26 + $0x468] ss:$16 sps:$4 sm:$0xff]  }
 0x5fd   : > { %9400 = vmatprep.subr.bf16.mxu0 %v21174_v17  ;;  %9572 = vmatprep.subr.bf16.mxu1 %v21177_v19  ;;  %v21240_v17 = vld [vmem:[%s29038_s26 + $0x484] ss:$16 sps:$4 sm:$0xff]   ;;  %v21243_v19 = vld [vmem:[%s29038_s26 + $0x48c] ss:$16 sps:$4 sm:$0xff]  }
 0x600   : > { %9401 = vmatpush1.bf16.msra.mxu0 %v21172_v20  ;;  %9573 = vmatpush1.bf16.msra.mxu1 %v21175_v21  ;;  %v21238_v20 = vld [vmem:[%s29038_s26 + $0x480] ss:$16 sps:$4 sm:$0xff]   ;;  %v21241_v21 = vld [vmem:[%s29038_s26 + $0x488] ss:$16 sps:$4 sm:$0xff]  }
 0x601   : > { %9402 = vmatprep.subr.bf16.mxu0 %v21180_v24  ;;  %9574 = vmatprep.subr.bf16.mxu1 %v21183_v25  ;;  %v21246_v24 = vld [vmem:[%s29038_s26 + $0x4a4] ss:$16 sps:$4 sm:$0xff]   ;;  %v21249_v25 = vld [vmem:[%s29038_s26 + $0x4ac] ss:$16 sps:$4 sm:$0xff]  }
 0x604   : > { %9403 = vmatpush1.bf16.msra.mxu0 %v21178_v28  ;;  %9575 = vmatpush1.bf16.msra.mxu1 %v21181_v29  ;;  %v21244_v28 = vld [vmem:[%s29038_s26 + $0x4a0] ss:$16 sps:$4 sm:$0xff]   ;;  %v21247_v29 = vld [vmem:[%s29038_s26 + $0x4a8] ss:$16 sps:$4 sm:$0xff]  }
 0x605   : > { %9404 = vmatprep.subr.bf16.mxu0 %v21186_v30  ;;  %9576 = vmatprep.subr.bf16.mxu1 %v21189_v31  ;;  %v21252_v30 = vld [vmem:[%s29038_s26 + $0x4c4] ss:$16 sps:$4 sm:$0xff]   ;;  %v21255_v31 = vld [vmem:[%s29038_s26 + $0x4cc] ss:$16 sps:$4 sm:$0xff]  }
 0x608   : > { %9405 = vmatpush1.bf16.msra.mxu0 %v21184_v33  ;;  %9577 = vmatpush1.bf16.msra.mxu1 %v21187_v35  ;;  %v21250_v33 = vld [vmem:[%s29038_s26 + $0x4c0] ss:$16 sps:$4 sm:$0xff]   ;;  %v21253_v35 = vld [vmem:[%s29038_s26 + $0x4c8] ss:$16 sps:$4 sm:$0xff]  }
 0x609   : > { %9406 = vmatprep.subr.bf16.mxu0 %v21192_v36  ;;  %9578 = vmatprep.subr.bf16.mxu1 %v21195_v37  ;;  %v21258_v36 = vld [vmem:[%s29038_s26 + $0x4e4] ss:$16 sps:$4 sm:$0xff]   ;;  %v21261_v37 = vld [vmem:[%s29038_s26 + $0x4ec] ss:$16 sps:$4 sm:$0xff]  }
 0x60c   : > { %9407 = vmatpush1.bf16.msra.mxu0 %v21190_v38  ;;  %9579 = vmatpush1.bf16.msra.mxu1 %v21193_v39  ;;  %v21256_v38 = vld [vmem:[%s29038_s26 + $0x4e0] ss:$16 sps:$4 sm:$0xff]   ;;  %v21259_v39 = vld [vmem:[%s29038_s26 + $0x4e8] ss:$16 sps:$4 sm:$0xff]  }
 0x60d   : > { %9408 = vmatprep.subr.bf16.mxu0 %v21198_v40  ;;  %9580 = vmatprep.subr.bf16.mxu1 %v21201_v41  ;;  %v21264_v40 = vld [vmem:[%s29038_s26 + $0x504] ss:$16 sps:$4 sm:$0xff]   ;;  %v21267_v41 = vld [vmem:[%s29038_s26 + $0x50c] ss:$16 sps:$4 sm:$0xff]  }
 0x610   : > { %9409 = vmatpush1.bf16.msra.mxu0 %v21196_v43  ;;  %9581 = vmatpush1.bf16.msra.mxu1 %v21199_v44  ;;  %v21262_v43 = vld [vmem:[%s29038_s26 + $0x500] ss:$16 sps:$4 sm:$0xff]   ;;  %v21265_v44 = vld [vmem:[%s29038_s26 + $0x508] ss:$16 sps:$4 sm:$0xff]  }
 0x611   : > { %9410 = vmatprep.subr.bf16.mxu0 %v21204_v45  ;;  %9582 = vmatprep.subr.bf16.mxu1 %v21207_v46  ;;  %v21270_v45 = vld [vmem:[%s29038_s26 + $0x524] ss:$16 sps:$4 sm:$0xff]   ;;  %v21273_v46 = vld [vmem:[%s29038_s26 + $0x52c] ss:$16 sps:$4 sm:$0xff]  }
 0x614   : > { %9411 = vmatpush1.bf16.msra.mxu0 %v21202_v47  ;;  %9583 = vmatpush1.bf16.msra.mxu1 %v21205_v48  ;;  %v21268_v47 = vld [vmem:[%s29038_s26 + $0x520] ss:$16 sps:$4 sm:$0xff]   ;;  %v21271_v48 = vld [vmem:[%s29038_s26 + $0x528] ss:$16 sps:$4 sm:$0xff]  }
 0x615   : > { %9412 = vmatprep.subr.bf16.mxu0 %v21210_v49  ;;  %9584 = vmatprep.subr.bf16.mxu1 %v21213_v50  ;;  %v21276_v49 = vld [vmem:[%s29038_s26 + $0x544] ss:$16 sps:$4 sm:$0xff]   ;;  %v21279_v50 = vld [vmem:[%s29038_s26 + $0x54c] ss:$16 sps:$4 sm:$0xff]  }
 0x618   : > { %9413 = vmatpush1.bf16.msra.mxu0 %v21208_v51  ;;  %9585 = vmatpush1.bf16.msra.mxu1 %v21211_v52  ;;  %v21274_v51 = vld [vmem:[%s29038_s26 + $0x540] ss:$16 sps:$4 sm:$0xff]   ;;  %v21277_v52 = vld [vmem:[%s29038_s26 + $0x548] ss:$16 sps:$4 sm:$0xff]  }
 0x619   : > { %9425 = vmatprep.subr.bf16.mxu0 %v21216_v53  ;;  %9597 = vmatprep.subr.bf16.mxu1 %v21219_v54  ;;  %v21282_v53 = vld [vmem:[%s29038_s26 + $0x564] ss:$16 sps:$4 sm:$0xff]   ;;  %v21285_v54 = vld [vmem:[%s29038_s26 + $0x56c] ss:$16 sps:$4 sm:$0xff]  }
 0x61b   : > { %9415 = vmatmul.mubr.bf16.vlgmr.msra.gmra.mrb[12].mxu0 %v26372_v62  ;;  %9587 = vmatmul.mubr.bf16.vlgmr.msra.gmra.mrb[12].mxu1 %v26372_v62  ;;  %v21231_v62 = vld [vmem:[%s29038_s26 + $0x44c] ss:$16 sps:$4 sm:$0xff]  }
 0x61c   : > { %9426 = vmatpush1.bf16.msra.mxu0 %v21214_v55  ;;  %9457 = vmatprep.mubr.bf16.mxu0 %v26380_v15  ;;  %v21280_v55 = vld [vmem:[%s29038_s26 + $0x560] ss:$16 sps:$4 sm:$0xff]  }
 0x61d   : > { %9598 = vmatpush1.bf16.msra.mxu1 %v21217_v57  ;;  %9629 = vmatprep.mubr.bf16.mxu1 %v26380_v15  ;;  %v21229_v15 = vld [vmem:[%s29038_s26 + $0x448] ss:$16 sps:$4 sm:$0xff]  }
 0x61e   : > { %9427 = vmatprep.subr.bf16.mxu0 %v21222_v58  ;;  %9599 = vmatprep.subr.bf16.mxu1 %v21225_v60  ;;  %v21283_v57 = vld [vmem:[%s29038_s26 + $0x568] ss:$16 sps:$4 sm:$0xff]   ;;  %v21288_v58 = vld [vmem:[%s29038_s26 + $0x584] ss:$16 sps:$4 sm:$0xff]   ;;  %v21291_v60 = vld [vmem:[%s29038_s26 + $0x58c] ss:$16 sps:$4 sm:$0xff]  }
 0x620   : > { %9428 = vmatpush1.bf16.msra.mxu0 %v21220_v61  ;;  %v21286_v61 = vld [vmem:[%s29038_s26 + $0x580] ss:$16 sps:$4 sm:$0xff]  }
 0x621   : > { %9600 = vmatpush1.bf16.msra.mxu1 %v21223_v63  ;;  %9429 = vmatprep.subr.bf16.mxu0 %v21228_v0  ;;  %v21289_v63 = vld [vmem:[%s29038_s26 + $0x588] ss:$16 sps:$4 sm:$0xff]   ;;  %v21294_v0 = vld [vmem:[%s29038_s26 + $0x5a4] ss:$16 sps:$4 sm:$0xff]  }
 0x622   : > { %9601 = vmatprep.subr.bf16.mxu1 %v21231_v62  ;;  %v21297_v62 = vld [vmem:[%s29038_s26 + $0x5ac] ss:$16 sps:$4 sm:$0xff]  }
 0x624   : > { %9430 = vmatpush1.bf16.msra.mxu0 %v21226_v3  ;;  %v21292_v3 = vld [vmem:[%s29038_s26 + $0x5a0] ss:$16 sps:$4 sm:$0xff]  }
 0x625   : > { %9602 = vmatpush1.bf16.msra.mxu1 %v21229_v15  ;;  %9431 = vmatprep.subr.bf16.mxu0 %v21234_v4  ;;  %v21295_v15 = vld [vmem:[%s29038_s26 + $0x5a8] ss:$16 sps:$4 sm:$0xff]   ;;  %v21300_v4 = vld [vmem:[%s29038_s26 + $0x5c4] ss:$16 sps:$4 sm:$0xff]  }
 0x626   : > { %9603 = vmatprep.subr.bf16.mxu1 %v21237_v6  ;;  %v21303_v6 = vld [vmem:[%s29038_s26 + $0x5cc] ss:$16 sps:$4 sm:$0xff]  }
 0x628   : > { %9432 = vmatpush1.bf16.msra.mxu0 %v21232_v9  ;;  %v21298_v9 = vld [vmem:[%s29038_s26 + $0x5c0] ss:$16 sps:$4 sm:$0xff]  }
 0x629   : > { %9604 = vmatpush1.bf16.msra.mxu1 %v21235_v13  ;;  %9433 = vmatprep.subr.bf16.mxu0 %v21240_v17  ;;  %v21301_v13 = vld [vmem:[%s29038_s26 + $0x5c8] ss:$16 sps:$4 sm:$0xff]   ;;  %v21306_v17 = vld [vmem:[%s29038_s26 + $0x5e4] ss:$16 sps:$4 sm:$0xff]  }
 0x62a   : > { %9605 = vmatprep.subr.bf16.mxu1 %v21243_v19  ;;  %v21309_v19 = vld [vmem:[%s29038_s26 + $0x5ec] ss:$16 sps:$4 sm:$0xff]  }
 0x62c   : > { %9434 = vmatpush1.bf16.msra.mxu0 %v21238_v20  ;;  %v21304_v20 = vld [vmem:[%s29038_s26 + $0x5e0] ss:$16 sps:$4 sm:$0xff]  }
 0x62d   : > { %9606 = vmatpush1.bf16.msra.mxu1 %v21241_v21  ;;  %9435 = vmatprep.subr.bf16.mxu0 %v21246_v24  ;;  %v21307_v21 = vld [vmem:[%s29038_s26 + $0x5e8] ss:$16 sps:$4 sm:$0xff]   ;;  %v21312_v24 = vld [vmem:[%s29038_s26 + $0x604] ss:$16 sps:$4 sm:$0xff]  }
 0x62e   : > { %9607 = vmatprep.subr.bf16.mxu1 %v21249_v25  ;;  %v21315_v25 = vld [vmem:[%s29038_s26 + $0x60c] ss:$16 sps:$4 sm:$0xff]  }
 0x630   : > { %9436 = vmatpush1.bf16.msra.mxu0 %v21244_v28  ;;  %v21310_v28 = vld [vmem:[%s29038_s26 + $0x600] ss:$16 sps:$4 sm:$0xff]  }
 0x631   : > { %9608 = vmatpush1.bf16.msra.mxu1 %v21247_v29  ;;  %9437 = vmatprep.subr.bf16.mxu0 %v21252_v30  ;;  %v21313_v29 = vld [vmem:[%s29038_s26 + $0x608] ss:$16 sps:$4 sm:$0xff]  }
 0x632   : > { %9609 = vmatprep.subr.bf16.mxu1 %v21255_v31  ;;  %v21319_v31 = vld [vmem:[%s29038_s26 + $0x628] ss:$16 sps:$4 sm:$0xff]  }
 0x634   : > { %9438 = vmatpush1.bf16.msra.mxu0 %v21250_v33  ;;  %v21324_v33 = vld [vmem:[%s29038_s26 + $0x644] ss:$16 sps:$4 sm:$0xff]  }
 0x635   : > { %9610 = vmatpush1.bf16.msra.mxu1 %v21253_v35  ;;  %9439 = vmatprep.subr.bf16.mxu0 %v21258_v36  ;;  %v21322_v35 = vld [vmem:[%s29038_s26 + $0x640] ss:$16 sps:$4 sm:$0xff]   ;;  %v21325_v36 = vld [vmem:[%s29038_s26 + $0x648] ss:$16 sps:$4 sm:$0xff]  }
 0x636   : > { %9611 = vmatprep.subr.bf16.mxu1 %v21261_v37  ;;  %v21333_v37 = vld [vmem:[%s29038_s26 + $0x66c] ss:$16 sps:$4 sm:$0xff]  }
 0x638   : > { %9440 = vmatpush1.bf16.msra.mxu0 %v21256_v38  ;;  %v21328_v38 = vld [vmem:[%s29038_s26 + $0x660] ss:$16 sps:$4 sm:$0xff]  }
 0x639   : > { %9612 = vmatpush1.bf16.msra.mxu1 %v21259_v39  ;;  %9441 = vmatprep.subr.bf16.mxu0 %v21264_v40  ;;  %v21331_v39 = vld [vmem:[%s29038_s26 + $0x668] ss:$16 sps:$4 sm:$0xff]   ;;  %v21336_v40 = vld [vmem:[%s29038_s26 + $0x684] ss:$16 sps:$4 sm:$0xff]  }
 0x63a   : > { %9613 = vmatprep.subr.bf16.mxu1 %v21267_v41  ;;  %v21339_v41 = vld [vmem:[%s29038_s26 + $0x68c] ss:$16 sps:$4 sm:$0xff]  }
 0x63c   : > { %9442 = vmatpush1.bf16.msra.mxu0 %v21262_v43  ;;  %v21334_v43 = vld [vmem:[%s29038_s26 + $0x680] ss:$16 sps:$4 sm:$0xff]  }
 0x63d   : > { %9614 = vmatpush1.bf16.msra.mxu1 %v21265_v44  ;;  %9443 = vmatprep.subr.bf16.mxu0 %v21270_v45  ;;  %v21337_v44 = vld [vmem:[%s29038_s26 + $0x688] ss:$16 sps:$4 sm:$0xff]   ;;  %v21342_v45 = vld [vmem:[%s29038_s26 + $0x6a4] ss:$16 sps:$4 sm:$0xff]  }
 0x63e   : > { %9615 = vmatprep.subr.bf16.mxu1 %v21273_v46  ;;  %v21345_v46 = vld [vmem:[%s29038_s26 + $0x6ac] ss:$16 sps:$4 sm:$0xff]  }
 0x640   : > { %9444 = vmatpush1.bf16.msra.mxu0 %v21268_v47  ;;  %v21340_v47 = vld [vmem:[%s29038_s26 + $0x6a0] ss:$16 sps:$4 sm:$0xff]  }
 0x641   : > { %9616 = vmatpush1.bf16.msra.mxu1 %v21271_v48  ;;  %9445 = vmatprep.subr.bf16.mxu0 %v21276_v49  ;;  %v21343_v48 = vld [vmem:[%s29038_s26 + $0x6a8] ss:$16 sps:$4 sm:$0xff]   ;;  %v21348_v49 = vld [vmem:[%s29038_s26 + $0x6c4] ss:$16 sps:$4 sm:$0xff]  }
 0x642   : > { %9617 = vmatprep.subr.bf16.mxu1 %v21279_v50  ;;  %v21351_v50 = vld [vmem:[%s29038_s26 + $0x6cc] ss:$16 sps:$4 sm:$0xff]  }
 0x644   : > { %9446 = vmatpush1.bf16.msra.mxu0 %v21274_v51  ;;  %v21346_v51 = vld [vmem:[%s29038_s26 + $0x6c0] ss:$16 sps:$4 sm:$0xff]  }
 0x645   : > { %9618 = vmatpush1.bf16.msra.mxu1 %v21277_v52  ;;  %9447 = vmatprep.subr.bf16.mxu0 %v21282_v53  ;;  %v21349_v52 = vld [vmem:[%s29038_s26 + $0x6c8] ss:$16 sps:$4 sm:$0xff]   ;;  %v21354_v53 = vld [vmem:[%s29038_s26 + $0x6e4] ss:$16 sps:$4 sm:$0xff]  }
 0x646   : > { %9619 = vmatprep.subr.bf16.mxu1 %v21285_v54  ;;  %v21357_v54 = vld [vmem:[%s29038_s26 + $0x6ec] ss:$16 sps:$4 sm:$0xff]  }
 0x648   : > { %9448 = vmatpush1.bf16.msra.mxu0 %v21280_v55  ;;  %v21352_v55 = vld [vmem:[%s29038_s26 + $0x6e0] ss:$16 sps:$4 sm:$0xff]  }
 0x649   : > { %9620 = vmatpush1.bf16.msra.mxu1 %v21283_v57  ;;  %9449 = vmatprep.subr.bf16.mxu0 %v21288_v58  ;;  %v21355_v57 = vld [vmem:[%s29038_s26 + $0x6e8] ss:$16 sps:$4 sm:$0xff]   ;;  %v21360_v58 = vld [vmem:[%s29038_s26 + $0x704] ss:$16 sps:$4 sm:$0xff]  }
 0x64a   : > { %9621 = vmatprep.subr.bf16.mxu1 %v21291_v60  ;;  %v21363_v60 = vld [vmem:[%s29038_s26 + $0x70c] ss:$16 sps:$4 sm:$0xff]  }
 0x64c   : > { %9450 = vmatpush1.bf16.msra.mxu0 %v21286_v61  ;;  %v21358_v61 = vld [vmem:[%s29038_s26 + $0x700] ss:$16 sps:$4 sm:$0xff]  }
 0x64d   : > { %9622 = vmatpush1.bf16.msra.mxu1 %v21289_v63  ;;  %9451 = vmatprep.subr.bf16.mxu0 %v21294_v0  ;;  %v21361_v63 = vld [vmem:[%s29038_s26 + $0x708] ss:$16 sps:$4 sm:$0xff]   ;;  %v21366_v0 = vld [vmem:[%s29038_s26 + $0x724] ss:$16 sps:$4 sm:$0xff]  }
 0x64e   : > { %9623 = vmatprep.subr.bf16.mxu1 %v21297_v62  ;;  %v21369_v62 = vld [vmem:[%s29038_s26 + $0x72c] ss:$16 sps:$4 sm:$0xff]  }
 0x650   : > { %9452 = vmatpush1.bf16.msra.mxu0 %v21292_v3  ;;  %v21364_v3 = vld [vmem:[%s29038_s26 + $0x720] ss:$16 sps:$4 sm:$0xff]  }
 0x651   : > { %9624 = vmatpush1.bf16.msra.mxu1 %v21295_v15  ;;  %9453 = vmatprep.subr.bf16.mxu0 %v21300_v4  ;;  %v21367_v15 = vld [vmem:[%s29038_s26 + $0x728] ss:$16 sps:$4 sm:$0xff]   ;;  %v21372_v4 = vld [vmem:[%s29038_s26 + $0x744] ss:$16 sps:$4 sm:$0xff]  }
 0x652   : > { %9625 = vmatprep.subr.bf16.mxu1 %v21303_v6  ;;  %v21375_v6 = vld [vmem:[%s29038_s26 + $0x74c] ss:$16 sps:$4 sm:$0xff]  }
 0x654   : > { %9454 = vmatpush1.bf16.msra.mxu0 %v21298_v9  ;;  %v21370_v9 = vld [vmem:[%s29038_s26 + $0x740] ss:$16 sps:$4 sm:$0xff]  }
 0x655   : > { %9626 = vmatpush1.bf16.msra.mxu1 %v21301_v13  ;;  %9455 = vmatprep.subr.bf16.mxu0 %v21306_v17  ;;  %v21373_v13 = vld [vmem:[%s29038_s26 + $0x748] ss:$16 sps:$4 sm:$0xff]   ;;  %v21378_v17 = vld [vmem:[%s29038_s26 + $0x764] ss:$16 sps:$4 sm:$0xff]  }
 0x656   : > { %9627 = vmatprep.subr.bf16.mxu1 %v21309_v19  ;;  %v21381_v19 = vld [vmem:[%s29038_s26 + $0x76c] ss:$16 sps:$4 sm:$0xff]  }
 0x658   : > { %9456 = vmatpush1.bf16.msra.mxu0 %v21304_v20  ;;  %v21376_v20 = vld [vmem:[%s29038_s26 + $0x760] ss:$16 sps:$4 sm:$0xff]  }
 0x659   : > { %9628 = vmatpush1.bf16.msra.mxu1 %v21307_v21  ;;  %9468 = vmatprep.subr.bf16.mxu0 %v21312_v24  ;;  %v21379_v21 = vld [vmem:[%s29038_s26 + $0x768] ss:$16 sps:$4 sm:$0xff]   ;;  %v21384_v24 = vld [vmem:[%s29038_s26 + $0x784] ss:$16 sps:$4 sm:$0xff]  }
 0x65a   : > { %9640 = vmatprep.subr.bf16.mxu1 %v21315_v25  ;;  %v21387_v25 = vld [vmem:[%s29038_s26 + $0x78c] ss:$16 sps:$4 sm:$0xff]  }
 0x65b   : > { %9458 = vmatmul.mubr.bf16.vlgmr.msra.gmra.mrb[12].mxu0 %v26374_v1 }
 0x65c   : > { %9630 = vmatmul.mubr.bf16.vlgmr.msra.gmra.mrb[12].mxu1 %v26374_v1  ;;  %9469 = vmatpush1.bf16.msra.mxu0 %v21310_v28  ;;  %v21327_v1 = vld [vmem:[%s29038_s26 + $0x64c] ss:$16 sps:$4 sm:$0xff]   ;;  %v21382_v28 = vld [vmem:[%s29038_s26 + $0x780] ss:$16 sps:$4 sm:$0xff]  }
 0x65d   : > { %18776 = vmatprep.mubr.msk.bf16.mxu0 %vm26804_vm7, %v26402_v32  ;;  %9641 = vmatpush1.bf16.msra.mxu1 %v21313_v29  ;;  %v21385_v29 = vld [vmem:[%s29038_s26 + $0x788] ss:$16 sps:$4 sm:$0xff]  }
 0x65e   : > { %18796 = vmatprep.mubr.msk.bf16.mxu1 %vm26804_vm7, %v26402_v32  ;;  %9470 = vmatprep.subr.bf16.mxu0 %v21318_v42  ;;  %v21330_v32 = vld [vmem:[%s29038_s26 + $0x664] ss:$16 sps:$4 sm:$0xff]  }
 0x65f   : > { %9642 = vmatprep.subr.bf16.mxu1 %v21321_v34  ;;  %v21390_v42 = vld [vmem:[%s29038_s26 + $0x7a4] ss:$16 sps:$4 sm:$0xff]   ;;  %v21393_v34 = vld [vmem:[%s29038_s26 + $0x7ac] ss:$16 sps:$4 sm:$0xff]  }
 0x660   : > { %9471 = vmatpush1.bf16.msra.mxu0 %v21316_v56  ;;  %v21388_v56 = vld [vmem:[%s29038_s26 + $0x7a0] ss:$16 sps:$4 sm:$0xff]  }
 0x661   : > { %9643 = vmatpush1.bf16.msra.mxu1 %v21319_v31  ;;  %9472 = vmatprep.subr.bf16.mxu0 %v21324_v33  ;;  %v21391_v31 = vld [vmem:[%s29038_s26 + $0x7a8] ss:$16 sps:$4 sm:$0xff]   ;;  %v21396_v33 = vld [vmem:[%s29038_s26 + $0x7c4] ss:$16 sps:$4 sm:$0xff]  }
 0x662   : > { %9644 = vmatprep.subr.bf16.mxu1 %v21327_v1  ;;  %v21399_v1 = vld [vmem:[%s29038_s26 + $0x7cc] ss:$16 sps:$4 sm:$0xff]  }
 0x664   : > { %9473 = vmatpush1.bf16.msra.mxu0 %v21322_v35  ;;  %v21394_v35 = vld [vmem:[%s29038_s26 + $0x7c0] ss:$16 sps:$4 sm:$0xff]  }
 0x665   : > { %9645 = vmatpush1.bf16.msra.mxu1 %v21325_v36  ;;  %9474 = vmatprep.subr.bf16.mxu0 %v21330_v32  ;;  %v21397_v36 = vld [vmem:[%s29038_s26 + $0x7c8] ss:$16 sps:$4 sm:$0xff]   ;;  %v21402_v32 = vld [vmem:[%s29038_s26 + $0x7e4] ss:$16 sps:$4 sm:$0xff]  }
 0x666   : > { %9646 = vmatprep.subr.bf16.mxu1 %v21333_v37  ;;  %v21405_v37 = vld [vmem:[%s29038_s26 + $0x7ec] ss:$16 sps:$4 sm:$0xff]  }
 0x668   : > { %9475 = vmatpush1.bf16.msra.mxu0 %v21328_v38  ;;  %v21400_v38 = vld [vmem:[%s29038_s26 + $0x7e0] ss:$16 sps:$4 sm:$0xff]  }
 0x669   : > { %9647 = vmatpush1.bf16.msra.mxu1 %v21331_v39  ;;  %9476 = vmatprep.subr.bf16.mxu0 %v21336_v40  ;;  %v21403_v39 = vld [vmem:[%s29038_s26 + $0x7e8] ss:$16 sps:$4 sm:$0xff]   ;;  %v21408_v40 = vld [vmem:[%s29042_s5 + $0x4] ss:$16 sps:$4 sm:$0xff]  }
 0x66a   : > { %9648 = vmatprep.subr.bf16.mxu1 %v21339_v41  ;;  %v21411_v41 = vld [vmem:[%s29042_s5 + $0xc] ss:$16 sps:$4 sm:$0xff]  }
 0x66c   : > { %9477 = vmatpush1.bf16.msra.mxu0 %v21334_v43  ;;  %v21406_v43 = vld [vmem:[%s29042_s5] ss:$16 sps:$4 sm:$0xff]  }
 0x66d   : > { %9649 = vmatpush1.bf16.msra.mxu1 %v21337_v44  ;;  %9478 = vmatprep.subr.bf16.mxu0 %v21342_v45  ;;  %v21409_v44 = vld [vmem:[%s29042_s5 + $0x8] ss:$16 sps:$4 sm:$0xff]   ;;  %v21414_v45 = vld [vmem:[%s29042_s5 + $0x24] ss:$16 sps:$4 sm:$0xff]  }
 0x66e   : > { %9650 = vmatprep.subr.bf16.mxu1 %v21345_v46  ;;  %v21417_v46 = vld [vmem:[%s29042_s5 + $0x2c] ss:$16 sps:$4 sm:$0xff]  }
 0x670   : > { %9479 = vmatpush1.bf16.msra.mxu0 %v21340_v47  ;;  %v21412_v47 = vld [vmem:[%s29042_s5 + $0x20] ss:$16 sps:$4 sm:$0xff]  }
 0x671   : > { %9651 = vmatpush1.bf16.msra.mxu1 %v21343_v48  ;;  %9480 = vmatprep.subr.bf16.mxu0 %v21348_v49  ;;  %v21415_v48 = vld [vmem:[%s29042_s5 + $0x28] ss:$16 sps:$4 sm:$0xff]   ;;  %v21420_v49 = vld [vmem:[%s29042_s5 + $0x44] ss:$16 sps:$4 sm:$0xff]  }
 0x672   : > { %9652 = vmatprep.subr.bf16.mxu1 %v21351_v50  ;;  %v21418_v50 = vld [vmem:[%s29042_s5 + $0x40] ss:$16 sps:$4 sm:$0xff]  }
 0x674   : > { %9481 = vmatpush1.bf16.msra.mxu0 %v21346_v51  ;;  %v21421_v51 = vld [vmem:[%s29042_s5 + $0x48] ss:$16 sps:$4 sm:$0xff]  }
 0x675   : > { %9653 = vmatpush1.bf16.msra.mxu1 %v21349_v52  ;;  %9482 = vmatprep.subr.bf16.mxu0 %v21354_v53  ;;  %v21429_v52 = vld [vmem:[%s29042_s5 + $0x6c] ss:$16 sps:$4 sm:$0xff]   ;;  %v21424_v53 = vld [vmem:[%s29042_s5 + $0x60] ss:$16 sps:$4 sm:$0xff]  }
 0x676   : > { %9654 = vmatprep.subr.bf16.mxu1 %v21357_v54  ;;  %v21427_v54 = vld [vmem:[%s29042_s5 + $0x68] ss:$16 sps:$4 sm:$0xff]  }
 0x678   : > { %9483 = vmatpush1.bf16.msra.mxu0 %v21352_v55  ;;  %v21432_v55 = vld [vmem:[%s29042_s5 + $0x84] ss:$16 sps:$4 sm:$0xff]  }
 0x679   : > { %9655 = vmatpush1.bf16.msra.mxu1 %v21355_v57  ;;  %9484 = vmatprep.subr.bf16.mxu0 %v21360_v58  ;;  %v21435_v57 = vld [vmem:[%s29042_s5 + $0x8c] ss:$16 sps:$4 sm:$0xff]   ;;  %v21430_v58 = vld [vmem:[%s29042_s5 + $0x80] ss:$16 sps:$4 sm:$0xff]  }
 0x67a   : > { %9656 = vmatprep.subr.bf16.mxu1 %v21363_v60  ;;  %v21433_v60 = vld [vmem:[%s29042_s5 + $0x88] ss:$16 sps:$4 sm:$0xff]  }
 0x67c   : > { %9485 = vmatpush1.bf16.msra.mxu0 %v21358_v61  ;;  %v21438_v61 = vld [vmem:[%s29042_s5 + $0xa4] ss:$16 sps:$4 sm:$0xff]  }
 0x67d   : > { %9657 = vmatpush1.bf16.msra.mxu1 %v21361_v63  ;;  %9486 = vmatprep.subr.bf16.mxu0 %v21366_v0  ;;  %v21441_v63 = vld [vmem:[%s29042_s5 + $0xac] ss:$16 sps:$4 sm:$0xff]   ;;  %v21436_v0 = vld [vmem:[%s29042_s5 + $0xa0] ss:$16 sps:$4 sm:$0xff]  }
 0x67e   : > { %9658 = vmatprep.subr.bf16.mxu1 %v21369_v62  ;;  %v21439_v62 = vld [vmem:[%s29042_s5 + $0xa8] ss:$16 sps:$4 sm:$0xff]  }
 0x680   : > { %9487 = vmatpush1.bf16.msra.mxu0 %v21364_v3  ;;  %v21444_v3 = vld [vmem:[%s29042_s5 + $0xc4] ss:$16 sps:$4 sm:$0xff]  }
 0x681   : > { %9659 = vmatpush1.bf16.msra.mxu1 %v21367_v15  ;;  %9488 = vmatprep.subr.bf16.mxu0 %v21372_v4  ;;  %v21447_v15 = vld [vmem:[%s29042_s5 + $0xcc] ss:$16 sps:$4 sm:$0xff]   ;;  %v21442_v4 = vld [vmem:[%s29042_s5 + $0xc0] ss:$16 sps:$4 sm:$0xff]  }
 0x682   : > { %9660 = vmatprep.subr.bf16.mxu1 %v21375_v6  ;;  %v21445_v6 = vld [vmem:[%s29042_s5 + $0xc8] ss:$16 sps:$4 sm:$0xff]  }
 0x684   : > { %9489 = vmatpush1.bf16.msra.mxu0 %v21370_v9  ;;  %v21450_v9 = vld [vmem:[%s29042_s5 + $0xe4] ss:$16 sps:$4 sm:$0xff]  }
 0x685   : > { %9661 = vmatpush1.bf16.msra.mxu1 %v21373_v13  ;;  %9490 = vmatprep.subr.bf16.mxu0 %v21378_v17  ;;  %v21453_v13 = vld [vmem:[%s29042_s5 + $0xec] ss:$16 sps:$4 sm:$0xff]   ;;  %v21448_v17 = vld [vmem:[%s29042_s5 + $0xe0] ss:$16 sps:$4 sm:$0xff]  }
 0x686   : > { %9662 = vmatprep.subr.bf16.mxu1 %v21381_v19  ;;  %v21451_v19 = vld [vmem:[%s29042_s5 + $0xe8] ss:$16 sps:$4 sm:$0xff]  }
 0x688   : > { %9491 = vmatpush1.bf16.msra.mxu0 %v21376_v20  ;;  %v21456_v20 = vld [vmem:[%s29042_s5 + $0x104] ss:$16 sps:$4 sm:$0xff]  }
 0x689   : > { %9663 = vmatpush1.bf16.msra.mxu1 %v21379_v21  ;;  %9492 = vmatprep.subr.bf16.mxu0 %v21384_v24  ;;  %v21459_v21 = vld [vmem:[%s29042_s5 + $0x10c] ss:$16 sps:$4 sm:$0xff]   ;;  %v21454_v24 = vld [vmem:[%s29042_s5 + $0x100] ss:$16 sps:$4 sm:$0xff]  }
 0x68a   : > { %9664 = vmatprep.subr.bf16.mxu1 %v21387_v25  ;;  %v21457_v25 = vld [vmem:[%s29042_s5 + $0x108] ss:$16 sps:$4 sm:$0xff]  }
 0x68c   : > { %9493 = vmatpush1.bf16.msra.mxu0 %v21382_v28  ;;  %v21462_v28 = vld [vmem:[%s29042_s5 + $0x124] ss:$16 sps:$4 sm:$0xff]  }
 0x68d   : > { %9665 = vmatpush1.bf16.msra.mxu1 %v21385_v29  ;;  %9494 = vmatprep.subr.bf16.mxu0 %v21390_v42  ;;  %v21465_v29 = vld [vmem:[%s29042_s5 + $0x12c] ss:$16 sps:$4 sm:$0xff]   ;;  %v21460_v42 = vld [vmem:[%s29042_s5 + $0x120] ss:$16 sps:$4 sm:$0xff]  }
 0x68e   : > { %9666 = vmatprep.subr.bf16.mxu1 %v21393_v34  ;;  %v21463_v34 = vld [vmem:[%s29042_s5 + $0x128] ss:$16 sps:$4 sm:$0xff]  }
 0x690   : > { %9495 = vmatpush1.bf16.msra.mxu0 %v21388_v56  ;;  %v21468_v56 = vld [vmem:[%s29042_s5 + $0x144] ss:$16 sps:$4 sm:$0xff]  }
 0x691   : > { %9667 = vmatpush1.bf16.msra.mxu1 %v21391_v31  ;;  %9496 = vmatprep.subr.bf16.mxu0 %v21396_v33  ;;  %v21471_v31 = vld [vmem:[%s29042_s5 + $0x14c] ss:$16 sps:$4 sm:$0xff]   ;;  %v21466_v33 = vld [vmem:[%s29042_s5 + $0x140] ss:$16 sps:$4 sm:$0xff]  }
 0x692   : > { %9668 = vmatprep.subr.bf16.mxu1 %v21399_v1  ;;  %v21469_v1 = vld [vmem:[%s29042_s5 + $0x148] ss:$16 sps:$4 sm:$0xff]  }
 0x694   : > { %9497 = vmatpush1.bf16.msra.mxu0 %v21394_v35  ;;  %v21474_v35 = vld [vmem:[%s29042_s5 + $0x164] ss:$16 sps:$4 sm:$0xff]  }
 0x695   : > { %9669 = vmatpush1.bf16.msra.mxu1 %v21397_v36  ;;  %9498 = vmatprep.subr.bf16.mxu0 %v21402_v32  ;;  %v21477_v36 = vld [vmem:[%s29042_s5 + $0x16c] ss:$16 sps:$4 sm:$0xff]   ;;  %v21472_v32 = vld [vmem:[%s29042_s5 + $0x160] ss:$16 sps:$4 sm:$0xff]  }
 0x696   : > { %9670 = vmatprep.subr.bf16.mxu1 %v21405_v37  ;;  %v21475_v37 = vld [vmem:[%s29042_s5 + $0x168] ss:$16 sps:$4 sm:$0xff]  }
 0x698   : > { %9499 = vmatpush1.bf16.msra.mxu0 %v21400_v38  ;;  %v21480_v38 = vld [vmem:[%s29042_s5 + $0x184] ss:$16 sps:$4 sm:$0xff]  }
 0x699   : > { %9671 = vmatpush1.bf16.msra.mxu1 %v21403_v39  ;;  %11241 = vmatprep.subr.bf16.mxu0 %v21408_v40  ;;  %v21483_v39 = vld [vmem:[%s29042_s5 + $0x18c] ss:$16 sps:$4 sm:$0xff]   ;;  %v21478_v40 = vld [vmem:[%s29042_s5 + $0x180] ss:$16 sps:$4 sm:$0xff]  }
 0x69a   : > { %11413 = vmatprep.subr.bf16.mxu1 %v21411_v41  ;;  %v21481_v41 = vld [vmem:[%s29042_s5 + $0x188] ss:$16 sps:$4 sm:$0xff]  }
 0x69b   : > { %18781 = vmatmul.mubr.msk.bf16.vlgmr.msra.gmra.mrb[12].mxu0 %vm26804_vm7, %v26382_v16 }
 0x69c   : > { %18801 = vmatmul.mubr.msk.bf16.vlgmr.msra.gmra.mrb[12].mxu1 %vm26804_vm7, %v26382_v16  ;;  %11242 = vmatpush1.bf16.msra.mxu0 %v21406_v43  ;;  %v21423_v16 = vld [vmem:[%s29042_s5 + $0x4c] ss:$16 sps:$4 sm:$0xff]   ;;  %v21486_v43 = vld [vmem:[%s29042_s5 + $0x1a4] ss:$16 sps:$4 sm:$0xff]  }
 0x69d   : > { %11273 = vmatprep.mubr.bf16.mxu0 %v24963_v12  ;;  %11414 = vmatpush1.bf16.msra.mxu1 %v21409_v44  ;;  %v21489_v44 = vld [vmem:[%s29042_s5 + $0x1ac] ss:$16 sps:$4 sm:$0xff]  }
 0x69e   : > { %11445 = vmatprep.mubr.bf16.mxu1 %v24963_v12  ;;  %11243 = vmatprep.subr.bf16.mxu0 %v21414_v45  ;;  %v21426_v12 = vld [vmem:[%s29042_s5 + $0x64] ss:$16 sps:$4 sm:$0xff]   ;;  %v21484_v45 = vld [vmem:[%s29042_s5 + $0x1a0] ss:$16 sps:$4 sm:$0xff]  }
 0x69f   : > { %11415 = vmatprep.subr.bf16.mxu1 %v21417_v46  ;;  %v21487_v46 = vld [vmem:[%s29042_s5 + $0x1a8] ss:$16 sps:$4 sm:$0xff]  }
 0x6a0   : > { %11244 = vmatpush1.bf16.msra.mxu0 %v21412_v47  ;;  %v21492_v47 = vld [vmem:[%s29042_s5 + $0x1c4] ss:$16 sps:$4 sm:$0xff]  }
 0x6a1   : > { %11416 = vmatpush1.bf16.msra.mxu1 %v21415_v48  ;;  %11245 = vmatprep.subr.bf16.mxu0 %v21420_v49  ;;  %v21495_v48 = vld [vmem:[%s29042_s5 + $0x1cc] ss:$16 sps:$4 sm:$0xff]   ;;  %v21490_v49 = vld [vmem:[%s29042_s5 + $0x1c0] ss:$16 sps:$4 sm:$0xff]  }
 0x6a2   : > { %11417 = vmatprep.subr.bf16.mxu1 %v21423_v16  ;;  %v21493_v16 = vld [vmem:[%s29042_s5 + $0x1c8] ss:$16 sps:$4 sm:$0xff]  }
 0x6a4   : > { %11246 = vmatpush1.bf16.msra.mxu0 %v21418_v50  ;;  %v21498_v50 = vld [vmem:[%s29042_s5 + $0x1e4] ss:$16 sps:$4 sm:$0xff]  }
 0x6a5   : > { %11418 = vmatpush1.bf16.msra.mxu1 %v21421_v51  ;;  %11247 = vmatprep.subr.bf16.mxu0 %v21426_v12  ;;  %v21501_v51 = vld [vmem:[%s29042_s5 + $0x1ec] ss:$16 sps:$4 sm:$0xff]   ;;  %v21496_v12 = vld [vmem:[%s29042_s5 + $0x1e0] ss:$16 sps:$4 sm:$0xff]  }
 0x6a6   : > { %11419 = vmatprep.subr.bf16.mxu1 %v21429_v52  ;;  %v21499_v52 = vld [vmem:[%s29042_s5 + $0x1e8] ss:$16 sps:$4 sm:$0xff]  }
 0x6a8   : > { %11248 = vmatpush1.bf16.msra.mxu0 %v21424_v53  ;;  %v21504_v53 = vld [vmem:[%s29042_s5 + $0x204] ss:$16 sps:$4 sm:$0xff]  }
 0x6a9   : > { %11420 = vmatpush1.bf16.msra.mxu1 %v21427_v54  ;;  %11249 = vmatprep.subr.bf16.mxu0 %v21432_v55  ;;  %v21507_v54 = vld [vmem:[%s29042_s5 + $0x20c] ss:$16 sps:$4 sm:$0xff]   ;;  %v21502_v55 = vld [vmem:[%s29042_s5 + $0x200] ss:$16 sps:$4 sm:$0xff]  }
 0x6aa   : > { %11421 = vmatprep.subr.bf16.mxu1 %v21435_v57  ;;  %v21505_v57 = vld [vmem:[%s29042_s5 + $0x208] ss:$16 sps:$4 sm:$0xff]  }
 0x6ac   : > { %11250 = vmatpush1.bf16.msra.mxu0 %v21430_v58  ;;  %v21510_v58 = vld [vmem:[%s29042_s5 + $0x224] ss:$16 sps:$4 sm:$0xff]  }
 0x6ad   : > { %11422 = vmatpush1.bf16.msra.mxu1 %v21433_v60  ;;  %11251 = vmatprep.subr.bf16.mxu0 %v21438_v61  ;;  %v21513_v60 = vld [vmem:[%s29042_s5 + $0x22c] ss:$16 sps:$4 sm:$0xff]   ;;  %v21508_v61 = vld [vmem:[%s29042_s5 + $0x220] ss:$16 sps:$4 sm:$0xff]  }
 0x6ae   : > { %11423 = vmatprep.subr.bf16.mxu1 %v21441_v63  ;;  %v21511_v63 = vld [vmem:[%s29042_s5 + $0x228] ss:$16 sps:$4 sm:$0xff]  }
 0x6b0   : > { %11252 = vmatpush1.bf16.msra.mxu0 %v21436_v0  ;;  %v21516_v0 = vld [vmem:[%s29042_s5 + $0x244] ss:$16 sps:$4 sm:$0xff]  }
 0x6b1   : > { %11424 = vmatpush1.bf16.msra.mxu1 %v21439_v62  ;;  %11253 = vmatprep.subr.bf16.mxu0 %v21444_v3  ;;  %v21514_v62 = vld [vmem:[%s29042_s5 + $0x240] ss:$16 sps:$4 sm:$0xff]   ;;  %v21517_v3 = vld [vmem:[%s29042_s5 + $0x248] ss:$16 sps:$4 sm:$0xff]  }
 0x6b2   : > { %11425 = vmatprep.subr.bf16.mxu1 %v21447_v15  ;;  %v21525_v15 = vld [vmem:[%s29042_s5 + $0x26c] ss:$16 sps:$4 sm:$0xff]  }
 0x6b4   : > { %11254 = vmatpush1.bf16.msra.mxu0 %v21442_v4  ;;  %v21520_v4 = vld [vmem:[%s29042_s5 + $0x260] ss:$16 sps:$4 sm:$0xff]  }
 0x6b5   : > { %11426 = vmatpush1.bf16.msra.mxu1 %v21445_v6  ;;  %11255 = vmatprep.subr.bf16.mxu0 %v21450_v9  ;;  %v21523_v6 = vld [vmem:[%s29042_s5 + $0x268] ss:$16 sps:$4 sm:$0xff]   ;;  %v21528_v9 = vld [vmem:[%s29042_s5 + $0x284] ss:$16 sps:$4 sm:$0xff]  }
 0x6b6   : > { %11427 = vmatprep.subr.bf16.mxu1 %v21453_v13  ;;  %v21531_v13 = vld [vmem:[%s29042_s5 + $0x28c] ss:$16 sps:$4 sm:$0xff]  }
 0x6b8   : > { %11256 = vmatpush1.bf16.msra.mxu0 %v21448_v17  ;;  %v21526_v17 = vld [vmem:[%s29042_s5 + $0x280] ss:$16 sps:$4 sm:$0xff]  }
 0x6b9   : > { %11428 = vmatpush1.bf16.msra.mxu1 %v21451_v19  ;;  %11257 = vmatprep.subr.bf16.mxu0 %v21456_v20  ;;  %v21529_v19 = vld [vmem:[%s29042_s5 + $0x288] ss:$16 sps:$4 sm:$0xff]   ;;  %v21534_v20 = vld [vmem:[%s29042_s5 + $0x2a4] ss:$16 sps:$4 sm:$0xff]  }
 0x6ba   : > { %11429 = vmatprep.subr.bf16.mxu1 %v21459_v21  ;;  %v21537_v21 = vld [vmem:[%s29042_s5 + $0x2ac] ss:$16 sps:$4 sm:$0xff]  }
 0x6bc   : > { %11258 = vmatpush1.bf16.msra.mxu0 %v21454_v24  ;;  %v21532_v24 = vld [vmem:[%s29042_s5 + $0x2a0] ss:$16 sps:$4 sm:$0xff]  }
 0x6bd   : > { %11430 = vmatpush1.bf16.msra.mxu1 %v21457_v25  ;;  %11259 = vmatprep.subr.bf16.mxu0 %v21462_v28  ;;  %v21535_v25 = vld [vmem:[%s29042_s5 + $0x2a8] ss:$16 sps:$4 sm:$0xff]   ;;  %v21540_v28 = vld [vmem:[%s29042_s5 + $0x2c4] ss:$16 sps:$4 sm:$0xff]  }
 0x6be   : > { %11431 = vmatprep.subr.bf16.mxu1 %v21465_v29  ;;  %v21543_v29 = vld [vmem:[%s29042_s5 + $0x2cc] ss:$16 sps:$4 sm:$0xff]  }
 0x6c0   : > { %11260 = vmatpush1.bf16.msra.mxu0 %v21460_v42  ;;  %v21538_v42 = vld [vmem:[%s29042_s5 + $0x2c0] ss:$16 sps:$4 sm:$0xff]  }
 0x6c1   : > { %11432 = vmatpush1.bf16.msra.mxu1 %v21463_v34  ;;  %11261 = vmatprep.subr.bf16.mxu0 %v21468_v56  ;;  %v21541_v34 = vld [vmem:[%s29042_s5 + $0x2c8] ss:$16 sps:$4 sm:$0xff]   ;;  %v21546_v56 = vld [vmem:[%s29042_s5 + $0x2e4] ss:$16 sps:$4 sm:$0xff]  }
 0x6c2   : > { %11433 = vmatprep.subr.bf16.mxu1 %v21471_v31  ;;  %v21549_v31 = vld [vmem:[%s29042_s5 + $0x2ec] ss:$16 sps:$4 sm:$0xff]  }
 0x6c4   : > { %11262 = vmatpush1.bf16.msra.mxu0 %v21466_v33  ;;  %v21544_v33 = vld [vmem:[%s29042_s5 + $0x2e0] ss:$16 sps:$4 sm:$0xff]  }
 0x6c5   : > { %11434 = vmatpush1.bf16.msra.mxu1 %v21469_v1  ;;  %11263 = vmatprep.subr.bf16.mxu0 %v21474_v35  ;;  %v21547_v1 = vld [vmem:[%s29042_s5 + $0x2e8] ss:$16 sps:$4 sm:$0xff]   ;;  %v21552_v35 = vld [vmem:[%s29042_s5 + $0x304] ss:$16 sps:$4 sm:$0xff]  }
 0x6c6   : > { %11435 = vmatprep.subr.bf16.mxu1 %v21477_v36  ;;  %v21555_v36 = vld [vmem:[%s29042_s5 + $0x30c] ss:$16 sps:$4 sm:$0xff]  }
 0x6c8   : > { %11264 = vmatpush1.bf16.msra.mxu0 %v21472_v32  ;;  %v21550_v32 = vld [vmem:[%s29042_s5 + $0x300] ss:$16 sps:$4 sm:$0xff]  }
 0x6c9   : > { %11436 = vmatpush1.bf16.msra.mxu1 %v21475_v37  ;;  %11265 = vmatprep.subr.bf16.mxu0 %v21480_v38  ;;  %v21553_v37 = vld [vmem:[%s29042_s5 + $0x308] ss:$16 sps:$4 sm:$0xff]   ;;  %v21558_v38 = vld [vmem:[%s29042_s5 + $0x324] ss:$16 sps:$4 sm:$0xff]  }
 0x6ca   : > { %11437 = vmatprep.subr.bf16.mxu1 %v21483_v39  ;;  %v21561_v39 = vld [vmem:[%s29042_s5 + $0x32c] ss:$16 sps:$4 sm:$0xff]  }
 0x6cc   : > { %11266 = vmatpush1.bf16.msra.mxu0 %v21478_v40  ;;  %v21556_v40 = vld [vmem:[%s29042_s5 + $0x320] ss:$16 sps:$4 sm:$0xff]  }
 0x6cd   : > { %11438 = vmatpush1.bf16.msra.mxu1 %v21481_v41  ;;  %11267 = vmatprep.subr.bf16.mxu0 %v21486_v43  ;;  %v21559_v41 = vld [vmem:[%s29042_s5 + $0x328] ss:$16 sps:$4 sm:$0xff]   ;;  %v21564_v43 = vld [vmem:[%s29042_s5 + $0x344] ss:$16 sps:$4 sm:$0xff]  }
 0x6ce   : > { %11439 = vmatprep.subr.bf16.mxu1 %v21489_v44  ;;  %v21567_v44 = vld [vmem:[%s29042_s5 + $0x34c] ss:$16 sps:$4 sm:$0xff]  }
 0x6d0   : > { %11268 = vmatpush1.bf16.msra.mxu0 %v21484_v45  ;;  %v21562_v45 = vld [vmem:[%s29042_s5 + $0x340] ss:$16 sps:$4 sm:$0xff]  }
 0x6d1   : > { %11440 = vmatpush1.bf16.msra.mxu1 %v21487_v46  ;;  %11269 = vmatprep.subr.bf16.mxu0 %v21492_v47  ;;  %v21565_v46 = vld [vmem:[%s29042_s5 + $0x348] ss:$16 sps:$4 sm:$0xff]   ;;  %v21570_v47 = vld [vmem:[%s29042_s5 + $0x364] ss:$16 sps:$4 sm:$0xff]  }
 0x6d2   : > { %11441 = vmatprep.subr.bf16.mxu1 %v21495_v48  ;;  %v21573_v48 = vld [vmem:[%s29042_s5 + $0x36c] ss:$16 sps:$4 sm:$0xff]  }
 0x6d4   : > { %11270 = vmatpush1.bf16.msra.mxu0 %v21490_v49  ;;  %v21568_v49 = vld [vmem:[%s29042_s5 + $0x360] ss:$16 sps:$4 sm:$0xff]  }
 0x6d5   : > { %11442 = vmatpush1.bf16.msra.mxu1 %v21493_v16  ;;  %11271 = vmatprep.subr.bf16.mxu0 %v21498_v50  ;;  %v21571_v16 = vld [vmem:[%s29042_s5 + $0x368] ss:$16 sps:$4 sm:$0xff]   ;;  %v21576_v50 = vld [vmem:[%s29042_s5 + $0x384] ss:$16 sps:$4 sm:$0xff]  }
 0x6d6   : > { %11443 = vmatprep.subr.bf16.mxu1 %v21501_v51  ;;  %v21579_v51 = vld [vmem:[%s29042_s5 + $0x38c] ss:$16 sps:$4 sm:$0xff]  }
 0x6d8   : > { %11272 = vmatpush1.bf16.msra.mxu0 %v21496_v12  ;;  %v21574_v12 = vld [vmem:[%s29042_s5 + $0x380] ss:$16 sps:$4 sm:$0xff]  }
 0x6d9   : > { %11444 = vmatpush1.bf16.msra.mxu1 %v21499_v52  ;;  %11284 = vmatprep.subr.bf16.mxu0 %v21504_v53  ;;  %v21577_v52 = vld [vmem:[%s29042_s5 + $0x388] ss:$16 sps:$4 sm:$0xff]   ;;  %v21582_v53 = vld [vmem:[%s29042_s5 + $0x3a4] ss:$16 sps:$4 sm:$0xff]  }
 0x6da   : > { %11456 = vmatprep.subr.bf16.mxu1 %v21507_v54  ;;  %v21585_v54 = vld [vmem:[%s29042_s5 + $0x3ac] ss:$16 sps:$4 sm:$0xff]  }
 0x6db   : > { %11274 = vmatmul.mubr.bf16.vlgmr.msra.gmra.mrb[12].mxu0 %v24953_v2 }
 0x6dc   : > { %11446 = vmatmul.mubr.bf16.vlgmr.msra.gmra.mrb[12].mxu1 %v24953_v2  ;;  %11285 = vmatpush1.bf16.msra.mxu0 %v21502_v55  ;;  %v21519_v2 = vld [vmem:[%s29042_s5 + $0x24c] ss:$16 sps:$4 sm:$0xff]   ;;  %v21580_v55 = vld [vmem:[%s29042_s5 + $0x3a0] ss:$16 sps:$4 sm:$0xff]  }
 0x6dd   : > { %11316 = vmatprep.mubr.bf16.mxu0 %v24965_v14  ;;  %11457 = vmatpush1.bf16.msra.mxu1 %v21505_v57  ;;  %v21583_v57 = vld [vmem:[%s29042_s5 + $0x3a8] ss:$16 sps:$4 sm:$0xff]  }
 0x6de   : > { %11488 = vmatprep.mubr.bf16.mxu1 %v24965_v14  ;;  %11286 = vmatprep.subr.bf16.mxu0 %v21510_v58  ;;  %v21522_v14 = vld [vmem:[%s29042_s5 + $0x264] ss:$16 sps:$4 sm:$0xff]  }
 0x6df   : > { %11458 = vmatprep.subr.bf16.mxu1 %v21513_v60  ;;  %v21588_v58 = vld [vmem:[%s29042_s5 + $0x3c4] ss:$16 sps:$4 sm:$0xff]   ;;  %v21591_v60 = vld [vmem:[%s29042_s5 + $0x3cc] ss:$16 sps:$4 sm:$0xff]  }
 0x6e0   : > { %11287 = vmatpush1.bf16.msra.mxu0 %v21508_v61  ;;  %v21586_v61 = vld [vmem:[%s29042_s5 + $0x3c0] ss:$16 sps:$4 sm:$0xff]  }
 0x6e1   : > { %11459 = vmatpush1.bf16.msra.mxu1 %v21511_v63  ;;  %11288 = vmatprep.subr.bf16.mxu0 %v21516_v0  ;;  %v21589_v63 = vld [vmem:[%s29042_s5 + $0x3c8] ss:$16 sps:$4 sm:$0xff]   ;;  %v21594_v0 = vld [vmem:[%s29042_s5 + $0x3e4] ss:$16 sps:$4 sm:$0xff]  }
 0x6e2   : > { %11460 = vmatprep.subr.bf16.mxu1 %v21519_v2  ;;  %v21597_v2 = vld [vmem:[%s29042_s5 + $0x3ec] ss:$16 sps:$4 sm:$0xff]  }
 0x6e4   : > { %11289 = vmatpush1.bf16.msra.mxu0 %v21514_v62  ;;  %v21592_v62 = vld [vmem:[%s29042_s5 + $0x3e0] ss:$16 sps:$4 sm:$0xff]  }
 0x6e5   : > { %11461 = vmatpush1.bf16.msra.mxu1 %v21517_v3  ;;  %11290 = vmatprep.subr.bf16.mxu0 %v21522_v14  ;;  %v21595_v3 = vld [vmem:[%s29042_s5 + $0x3e8] ss:$16 sps:$4 sm:$0xff]   ;;  %v21600_v14 = vld [vmem:[%s29042_s5 + $0x404] ss:$16 sps:$4 sm:$0xff]  }
 0x6e6   : > { %11462 = vmatprep.subr.bf16.mxu1 %v21525_v15  ;;  %v21603_v15 = vld [vmem:[%s29042_s5 + $0x40c] ss:$16 sps:$4 sm:$0xff]  }
 0x6e8   : > { %11291 = vmatpush1.bf16.msra.mxu0 %v21520_v4  ;;  %v21598_v4 = vld [vmem:[%s29042_s5 + $0x400] ss:$16 sps:$4 sm:$0xff]  }
 0x6e9   : > { %11463 = vmatpush1.bf16.msra.mxu1 %v21523_v6  ;;  %11292 = vmatprep.subr.bf16.mxu0 %v21528_v9  ;;  %v21601_v6 = vld [vmem:[%s29042_s5 + $0x408] ss:$16 sps:$4 sm:$0xff]   ;;  %v21606_v9 = vld [vmem:[%s29042_s5 + $0x424] ss:$16 sps:$4 sm:$0xff]  }
 0x6ea   : > { %11464 = vmatprep.subr.bf16.mxu1 %v21531_v13  ;;  %v21609_v13 = vld [vmem:[%s29042_s5 + $0x42c] ss:$16 sps:$4 sm:$0xff]  }
 0x6ec   : > { %11293 = vmatpush1.bf16.msra.mxu0 %v21526_v17  ;;  %v21604_v17 = vld [vmem:[%s29042_s5 + $0x420] ss:$16 sps:$4 sm:$0xff]  }
 0x6ed   : > { %11465 = vmatpush1.bf16.msra.mxu1 %v21529_v19  ;;  %11294 = vmatprep.subr.bf16.mxu0 %v21534_v20  ;;  %v21607_v19 = vld [vmem:[%s29042_s5 + $0x428] ss:$16 sps:$4 sm:$0xff]   ;;  %v21612_v20 = vld [vmem:[%s29042_s5 + $0x444] ss:$16 sps:$4 sm:$0xff]  }
 0x6ee   : > { %11466 = vmatprep.subr.bf16.mxu1 %v21537_v21  ;;  %v21610_v21 = vld [vmem:[%s29042_s5 + $0x440] ss:$16 sps:$4 sm:$0xff]  }
 0x6f0   : > { %11295 = vmatpush1.bf16.msra.mxu0 %v21532_v24  ;;  %v21613_v24 = vld [vmem:[%s29042_s5 + $0x448] ss:$16 sps:$4 sm:$0xff]  }
 0x6f1   : > { %11467 = vmatpush1.bf16.msra.mxu1 %v21535_v25  ;;  %11296 = vmatprep.subr.bf16.mxu0 %v21540_v28  ;;  %v21621_v25 = vld [vmem:[%s29042_s5 + $0x46c] ss:$16 sps:$4 sm:$0xff]   ;;  %v21616_v28 = vld [vmem:[%s29042_s5 + $0x460] ss:$16 sps:$4 sm:$0xff]  }
 0x6f2   : > { %11468 = vmatprep.subr.bf16.mxu1 %v21543_v29  ;;  %v21619_v29 = vld [vmem:[%s29042_s5 + $0x468] ss:$16 sps:$4 sm:$0xff]  }
 0x6f4   : > { %11297 = vmatpush1.bf16.msra.mxu0 %v21538_v42  ;;  %v21624_v42 = vld [vmem:[%s29042_s5 + $0x484] ss:$16 sps:$4 sm:$0xff]  }
 0x6f5   : > { %11469 = vmatpush1.bf16.msra.mxu1 %v21541_v34  ;;  %11298 = vmatprep.subr.bf16.mxu0 %v21546_v56  ;;  %v21627_v34 = vld [vmem:[%s29042_s5 + $0x48c] ss:$16 sps:$4 sm:$0xff]   ;;  %v21622_v56 = vld [vmem:[%s29042_s5 + $0x480] ss:$16 sps:$4 sm:$0xff]  }
 0x6f6   : > { %11470 = vmatprep.subr.bf16.mxu1 %v21549_v31  ;;  %v21625_v31 = vld [vmem:[%s29042_s5 + $0x488] ss:$16 sps:$4 sm:$0xff]  }
 0x6f8   : > { %11299 = vmatpush1.bf16.msra.mxu0 %v21544_v33  ;;  %v21630_v33 = vld [vmem:[%s29042_s5 + $0x4a4] ss:$16 sps:$4 sm:$0xff]  }
 0x6f9   : > { %11471 = vmatpush1.bf16.msra.mxu1 %v21547_v1  ;;  %11300 = vmatprep.subr.bf16.mxu0 %v21552_v35  ;;  %v21633_v1 = vld [vmem:[%s29042_s5 + $0x4ac] ss:$16 sps:$4 sm:$0xff]   ;;  %v21628_v35 = vld [vmem:[%s29042_s5 + $0x4a0] ss:$16 sps:$4 sm:$0xff]  }
 0x6fa   : > { %11472 = vmatprep.subr.bf16.mxu1 %v21555_v36  ;;  %v21631_v36 = vld [vmem:[%s29042_s5 + $0x4a8] ss:$16 sps:$4 sm:$0xff]  }
 0x6fc   : > { %11301 = vmatpush1.bf16.msra.mxu0 %v21550_v32  ;;  %v21636_v32 = vld [vmem:[%s29042_s5 + $0x4c4] ss:$16 sps:$4 sm:$0xff]  }
 0x6fd   : > { %11473 = vmatpush1.bf16.msra.mxu1 %v21553_v37  ;;  %11302 = vmatprep.subr.bf16.mxu0 %v21558_v38  ;;  %v21639_v37 = vld [vmem:[%s29042_s5 + $0x4cc] ss:$16 sps:$4 sm:$0xff]   ;;  %v21634_v38 = vld [vmem:[%s29042_s5 + $0x4c0] ss:$16 sps:$4 sm:$0xff]  }
 0x6fe   : > { %11474 = vmatprep.subr.bf16.mxu1 %v21561_v39  ;;  %v21637_v39 = vld [vmem:[%s29042_s5 + $0x4c8] ss:$16 sps:$4 sm:$0xff]  }
 0x700   : > { %11303 = vmatpush1.bf16.msra.mxu0 %v21556_v40  ;;  %v21642_v40 = vld [vmem:[%s29042_s5 + $0x4e4] ss:$16 sps:$4 sm:$0xff]  }
 0x701   : > { %11475 = vmatpush1.bf16.msra.mxu1 %v21559_v41  ;;  %11304 = vmatprep.subr.bf16.mxu0 %v21564_v43  ;;  %v21645_v41 = vld [vmem:[%s29042_s5 + $0x4ec] ss:$16 sps:$4 sm:$0xff]   ;;  %v21640_v43 = vld [vmem:[%s29042_s5 + $0x4e0] ss:$16 sps:$4 sm:$0xff]  }
 0x702   : > { %11476 = vmatprep.subr.bf16.mxu1 %v21567_v44  ;;  %v21643_v44 = vld [vmem:[%s29042_s5 + $0x4e8] ss:$16 sps:$4 sm:$0xff]  }
 0x704   : > { %11305 = vmatpush1.bf16.msra.mxu0 %v21562_v45  ;;  %v21648_v45 = vld [vmem:[%s29042_s5 + $0x504] ss:$16 sps:$4 sm:$0xff]  }
 0x705   : > { %11477 = vmatpush1.bf16.msra.mxu1 %v21565_v46  ;;  %11306 = vmatprep.subr.bf16.mxu0 %v21570_v47  ;;  %v21651_v46 = vld [vmem:[%s29042_s5 + $0x50c] ss:$16 sps:$4 sm:$0xff]   ;;  %v21646_v47 = vld [vmem:[%s29042_s5 + $0x500] ss:$16 sps:$4 sm:$0xff]  }
 0x706   : > { %11478 = vmatprep.subr.bf16.mxu1 %v21573_v48  ;;  %v21649_v48 = vld [vmem:[%s29042_s5 + $0x508] ss:$16 sps:$4 sm:$0xff]  }
 0x708   : > { %11307 = vmatpush1.bf16.msra.mxu0 %v21568_v49  ;;  %v21654_v49 = vld [vmem:[%s29042_s5 + $0x524] ss:$16 sps:$4 sm:$0xff]  }
 0x709   : > { %11479 = vmatpush1.bf16.msra.mxu1 %v21571_v16  ;;  %11308 = vmatprep.subr.bf16.mxu0 %v21576_v50  ;;  %v21657_v16 = vld [vmem:[%s29042_s5 + $0x52c] ss:$16 sps:$4 sm:$0xff]   ;;  %v21652_v50 = vld [vmem:[%s29042_s5 + $0x520] ss:$16 sps:$4 sm:$0xff]  }
 0x70a   : > { %11480 = vmatprep.subr.bf16.mxu1 %v21579_v51  ;;  %v21655_v51 = vld [vmem:[%s29042_s5 + $0x528] ss:$16 sps:$4 sm:$0xff]  }
 0x70c   : > { %11309 = vmatpush1.bf16.msra.mxu0 %v21574_v12  ;;  %v21660_v12 = vld [vmem:[%s29042_s5 + $0x544] ss:$16 sps:$4 sm:$0xff]  }
 0x70d   : > { %11481 = vmatpush1.bf16.msra.mxu1 %v21577_v52  ;;  %11310 = vmatprep.subr.bf16.mxu0 %v21582_v53  ;;  %v21663_v52 = vld [vmem:[%s29042_s5 + $0x54c] ss:$16 sps:$4 sm:$0xff]   ;;  %v21658_v53 = vld [vmem:[%s29042_s5 + $0x540] ss:$16 sps:$4 sm:$0xff]  }
 0x70e   : > { %11482 = vmatprep.subr.bf16.mxu1 %v21585_v54  ;;  %v21661_v54 = vld [vmem:[%s29042_s5 + $0x548] ss:$16 sps:$4 sm:$0xff]  }
 0x710   : > { %11311 = vmatpush1.bf16.msra.mxu0 %v21580_v55  ;;  %v21666_v55 = vld [vmem:[%s29042_s5 + $0x564] ss:$16 sps:$4 sm:$0xff]  }
 0x711   : > { %11483 = vmatpush1.bf16.msra.mxu1 %v21583_v57  ;;  %11312 = vmatprep.subr.bf16.mxu0 %v21588_v58  ;;  %v21669_v57 = vld [vmem:[%s29042_s5 + $0x56c] ss:$16 sps:$4 sm:$0xff]   ;;  %v21664_v58 = vld [vmem:[%s29042_s5 + $0x560] ss:$16 sps:$4 sm:$0xff]  }
 0x712   : > { %11484 = vmatprep.subr.bf16.mxu1 %v21591_v60  ;;  %v21667_v60 = vld [vmem:[%s29042_s5 + $0x568] ss:$16 sps:$4 sm:$0xff]  }
 0x714   : > { %11313 = vmatpush1.bf16.msra.mxu0 %v21586_v61  ;;  %v21672_v61 = vld [vmem:[%s29042_s5 + $0x584] ss:$16 sps:$4 sm:$0xff]  }
 0x715   : > { %11485 = vmatpush1.bf16.msra.mxu1 %v21589_v63  ;;  %11314 = vmatprep.subr.bf16.mxu0 %v21594_v0  ;;  %v21675_v63 = vld [vmem:[%s29042_s5 + $0x58c] ss:$16 sps:$4 sm:$0xff]   ;;  %v21670_v0 = vld [vmem:[%s29042_s5 + $0x580] ss:$16 sps:$4 sm:$0xff]  }
 0x716   : > { %11486 = vmatprep.subr.bf16.mxu1 %v21597_v2  ;;  %v21673_v2 = vld [vmem:[%s29042_s5 + $0x588] ss:$16 sps:$4 sm:$0xff]  }
 0x718   : > { %11315 = vmatpush1.bf16.msra.mxu0 %v21592_v62  ;;  %v21678_v62 = vld [vmem:[%s29042_s5 + $0x5a4] ss:$16 sps:$4 sm:$0xff]  }
 0x719   : > { %11487 = vmatpush1.bf16.msra.mxu1 %v21595_v3  ;;  %11327 = vmatprep.subr.bf16.mxu0 %v21600_v14  ;;  %v21681_v3 = vld [vmem:[%s29042_s5 + $0x5ac] ss:$16 sps:$4 sm:$0xff]   ;;  %v21676_v14 = vld [vmem:[%s29042_s5 + $0x5a0] ss:$16 sps:$4 sm:$0xff]  }
 0x71a   : > { %11499 = vmatprep.subr.bf16.mxu1 %v21603_v15  ;;  %v21679_v15 = vld [vmem:[%s29042_s5 + $0x5a8] ss:$16 sps:$4 sm:$0xff]  }
 0x71b   : > { %11317 = vmatmul.mubr.bf16.vlgmr.msra.gmra.mrb[12].mxu0 %v24961_v11 }
 0x71c   : > { %11489 = vmatmul.mubr.bf16.vlgmr.msra.gmra.mrb[12].mxu1 %v24961_v11  ;;  %11328 = vmatpush1.bf16.msra.mxu0 %v21598_v4  ;;  %v21615_v11 = vld [vmem:[%s29042_s5 + $0x44c] ss:$16 sps:$4 sm:$0xff]   ;;  %v21684_v4 = vld [vmem:[%s29042_s5 + $0x5c4] ss:$16 sps:$4 sm:$0xff]  }
 0x71d   : > { %11359 = vmatprep.mubr.bf16.mxu0 %v25362_v23  ;;  %11500 = vmatpush1.bf16.msra.mxu1 %v21601_v6  ;;  %v21687_v6 = vld [vmem:[%s29042_s5 + $0x5cc] ss:$16 sps:$4 sm:$0xff]  }
 0x71e   : > { %11531 = vmatprep.mubr.bf16.mxu1 %v25362_v23  ;;  %11329 = vmatprep.subr.bf16.mxu0 %v21606_v9  ;;  %v21618_v23 = vld [vmem:[%s29042_s5 + $0x464] ss:$16 sps:$4 sm:$0xff]   ;;  %v21682_v9 = vld [vmem:[%s29042_s5 + $0x5c0] ss:$16 sps:$4 sm:$0xff]  }
 0x71f   : > { %11501 = vmatprep.subr.bf16.mxu1 %v21609_v13  ;;  %v21685_v13 = vld [vmem:[%s29042_s5 + $0x5c8] ss:$16 sps:$4 sm:$0xff]  }
 0x720   : > { %11330 = vmatpush1.bf16.msra.mxu0 %v21604_v17  ;;  %v21690_v17 = vld [vmem:[%s29042_s5 + $0x5e4] ss:$16 sps:$4 sm:$0xff]  }
 0x721   : > { %11502 = vmatpush1.bf16.msra.mxu1 %v21607_v19  ;;  %11331 = vmatprep.subr.bf16.mxu0 %v21612_v20  ;;  %v21693_v19 = vld [vmem:[%s29042_s5 + $0x5ec] ss:$16 sps:$4 sm:$0xff]   ;;  %v21688_v20 = vld [vmem:[%s29042_s5 + $0x5e0] ss:$16 sps:$4 sm:$0xff]  }
 0x722   : > { %11503 = vmatprep.subr.bf16.mxu1 %v21615_v11  ;;  %v21691_v11 = vld [vmem:[%s29042_s5 + $0x5e8] ss:$16 sps:$4 sm:$0xff]  }
 0x724   : > { %11332 = vmatpush1.bf16.msra.mxu0 %v21610_v21  ;;  %v21696_v21 = vld [vmem:[%s29042_s5 + $0x604] ss:$16 sps:$4 sm:$0xff]  }
 0x725   : > { %11504 = vmatpush1.bf16.msra.mxu1 %v21613_v24  ;;  %11333 = vmatprep.subr.bf16.mxu0 %v21618_v23  ;;  %v21699_v24 = vld [vmem:[%s29042_s5 + $0x60c] ss:$16 sps:$4 sm:$0xff]   ;;  %v21694_v23 = vld [vmem:[%s29042_s5 + $0x600] ss:$16 sps:$4 sm:$0xff]  }
 0x726   : > { %11505 = vmatprep.subr.bf16.mxu1 %v21621_v25  ;;  %v21697_v25 = vld [vmem:[%s29042_s5 + $0x608] ss:$16 sps:$4 sm:$0xff]  }
 0x728   : > { %11334 = vmatpush1.bf16.msra.mxu0 %v21616_v28  ;;  %v21702_v28 = vld [vmem:[%s29042_s5 + $0x624] ss:$16 sps:$4 sm:$0xff]  }
 0x729   : > { %11506 = vmatpush1.bf16.msra.mxu1 %v21619_v29  ;;  %11335 = vmatprep.subr.bf16.mxu0 %v21624_v42  ;;  %v21705_v29 = vld [vmem:[%s29042_s5 + $0x62c] ss:$16 sps:$4 sm:$0xff]   ;;  %v21700_v42 = vld [vmem:[%s29042_s5 + $0x620] ss:$16 sps:$4 sm:$0xff]  }
 0x72a   : > { %11507 = vmatprep.subr.bf16.mxu1 %v21627_v34  ;;  %v21703_v34 = vld [vmem:[%s29042_s5 + $0x628] ss:$16 sps:$4 sm:$0xff]  }
 0x72c   : > { %11336 = vmatpush1.bf16.msra.mxu0 %v21622_v56  ;;  %v21708_v56 = vld [vmem:[%s29042_s5 + $0x644] ss:$16 sps:$4 sm:$0xff]  }
 0x72d   : > { %11508 = vmatpush1.bf16.msra.mxu1 %v21625_v31  ;;  %11337 = vmatprep.subr.bf16.mxu0 %v21630_v33  ;;  %v21706_v31 = vld [vmem:[%s29042_s5 + $0x640] ss:$16 sps:$4 sm:$0xff]   ;;  %v21709_v33 = vld [vmem:[%s29042_s5 + $0x648] ss:$16 sps:$4 sm:$0xff]  }
 0x72e   : > { %11509 = vmatprep.subr.bf16.mxu1 %v21633_v1  ;;  %v21717_v1 = vld [vmem:[%s29042_s5 + $0x66c] ss:$16 sps:$4 sm:$0xff]  }
 0x730   : > { %11338 = vmatpush1.bf16.msra.mxu0 %v21628_v35  ;;  %v21712_v35 = vld [vmem:[%s29042_s5 + $0x660] ss:$16 sps:$4 sm:$0xff]  }
 0x731   : > { %11510 = vmatpush1.bf16.msra.mxu1 %v21631_v36  ;;  %11339 = vmatprep.subr.bf16.mxu0 %v21636_v32  ;;  %v21715_v36 = vld [vmem:[%s29042_s5 + $0x668] ss:$16 sps:$4 sm:$0xff]   ;;  %v21720_v32 = vld [vmem:[%s29042_s5 + $0x684] ss:$16 sps:$4 sm:$0xff]  }
 0x732   : > { %11511 = vmatprep.subr.bf16.mxu1 %v21639_v37  ;;  %v21723_v37 = vld [vmem:[%s29042_s5 + $0x68c] ss:$16 sps:$4 sm:$0xff]  }
 0x734   : > { %11340 = vmatpush1.bf16.msra.mxu0 %v21634_v38  ;;  %v21718_v38 = vld [vmem:[%s29042_s5 + $0x680] ss:$16 sps:$4 sm:$0xff]  }
 0x735   : > { %11512 = vmatpush1.bf16.msra.mxu1 %v21637_v39  ;;  %11341 = vmatprep.subr.bf16.mxu0 %v21642_v40  ;;  %v21721_v39 = vld [vmem:[%s29042_s5 + $0x688] ss:$16 sps:$4 sm:$0xff]   ;;  %v21726_v40 = vld [vmem:[%s29042_s5 + $0x6a4] ss:$16 sps:$4 sm:$0xff]  }
 0x736   : > { %11513 = vmatprep.subr.bf16.mxu1 %v21645_v41  ;;  %v21729_v41 = vld [vmem:[%s29042_s5 + $0x6ac] ss:$16 sps:$4 sm:$0xff]  }
 0x738   : > { %11342 = vmatpush1.bf16.msra.mxu0 %v21640_v43  ;;  %v21724_v43 = vld [vmem:[%s29042_s5 + $0x6a0] ss:$16 sps:$4 sm:$0xff]  }
 0x739   : > { %11514 = vmatpush1.bf16.msra.mxu1 %v21643_v44  ;;  %11343 = vmatprep.subr.bf16.mxu0 %v21648_v45  ;;  %v21727_v44 = vld [vmem:[%s29042_s5 + $0x6a8] ss:$16 sps:$4 sm:$0xff]   ;;  %v21732_v45 = vld [vmem:[%s29042_s5 + $0x6c4] ss:$16 sps:$4 sm:$0xff]  }
 0x73a   : > { %11515 = vmatprep.subr.bf16.mxu1 %v21651_v46  ;;  %v21735_v46 = vld [vmem:[%s29042_s5 + $0x6cc] ss:$16 sps:$4 sm:$0xff]  }
 0x73c   : > { %11344 = vmatpush1.bf16.msra.mxu0 %v21646_v47  ;;  %v21730_v47 = vld [vmem:[%s29042_s5 + $0x6c0] ss:$16 sps:$4 sm:$0xff]  }
 0x73d   : > { %11516 = vmatpush1.bf16.msra.mxu1 %v21649_v48  ;;  %11345 = vmatprep.subr.bf16.mxu0 %v21654_v49  ;;  %v21733_v48 = vld [vmem:[%s29042_s5 + $0x6c8] ss:$16 sps:$4 sm:$0xff]   ;;  %v21738_v49 = vld [vmem:[%s29042_s5 + $0x6e4] ss:$16 sps:$4 sm:$0xff]  }
 0x73e   : > { %11517 = vmatprep.subr.bf16.mxu1 %v21657_v16  ;;  %v21741_v16 = vld [vmem:[%s29042_s5 + $0x6ec] ss:$16 sps:$4 sm:$0xff]  }
 0x740   : > { %11346 = vmatpush1.bf16.msra.mxu0 %v21652_v50  ;;  %v21736_v50 = vld [vmem:[%s29042_s5 + $0x6e0] ss:$16 sps:$4 sm:$0xff]  }
 0x741   : > { %11518 = vmatpush1.bf16.msra.mxu1 %v21655_v51  ;;  %11347 = vmatprep.subr.bf16.mxu0 %v21660_v12  ;;  %v21739_v51 = vld [vmem:[%s29042_s5 + $0x6e8] ss:$16 sps:$4 sm:$0xff]   ;;  %v21744_v12 = vld [vmem:[%s29042_s5 + $0x704] ss:$16 sps:$4 sm:$0xff]  }
 0x742   : > { %11519 = vmatprep.subr.bf16.mxu1 %v21663_v52  ;;  %v21747_v52 = vld [vmem:[%s29042_s5 + $0x70c] ss:$16 sps:$4 sm:$0xff]  }
 0x744   : > { %11348 = vmatpush1.bf16.msra.mxu0 %v21658_v53  ;;  %v21742_v53 = vld [vmem:[%s29042_s5 + $0x700] ss:$16 sps:$4 sm:$0xff]  }
 0x745   : > { %11520 = vmatpush1.bf16.msra.mxu1 %v21661_v54  ;;  %11349 = vmatprep.subr.bf16.mxu0 %v21666_v55  ;;  %v21745_v54 = vld [vmem:[%s29042_s5 + $0x708] ss:$16 sps:$4 sm:$0xff]   ;;  %v21750_v55 = vld [vmem:[%s29042_s5 + $0x724] ss:$16 sps:$4 sm:$0xff]  }
 0x746   : > { %11521 = vmatprep.subr.bf16.mxu1 %v21669_v57  ;;  %v21753_v57 = vld [vmem:[%s29042_s5 + $0x72c] ss:$16 sps:$4 sm:$0xff]  }
 0x748   : > { %11350 = vmatpush1.bf16.msra.mxu0 %v21664_v58  ;;  %v21748_v58 = vld [vmem:[%s29042_s5 + $0x720] ss:$16 sps:$4 sm:$0xff]  }
 0x749   : > { %11522 = vmatpush1.bf16.msra.mxu1 %v21667_v60  ;;  %11351 = vmatprep.subr.bf16.mxu0 %v21672_v61  ;;  %v21751_v60 = vld [vmem:[%s29042_s5 + $0x728] ss:$16 sps:$4 sm:$0xff]   ;;  %v21756_v61 = vld [vmem:[%s29042_s5 + $0x744] ss:$16 sps:$4 sm:$0xff]  }
 0x74a   : > { %11523 = vmatprep.subr.bf16.mxu1 %v21675_v63  ;;  %v21759_v63 = vld [vmem:[%s29042_s5 + $0x74c] ss:$16 sps:$4 sm:$0xff]  }
 0x74c   : > { %11352 = vmatpush1.bf16.msra.mxu0 %v21670_v0  ;;  %v21754_v0 = vld [vmem:[%s29042_s5 + $0x740] ss:$16 sps:$4 sm:$0xff]  }
 0x74d   : > { %11524 = vmatpush1.bf16.msra.mxu1 %v21673_v2  ;;  %11353 = vmatprep.subr.bf16.mxu0 %v21678_v62  ;;  %v21757_v2 = vld [vmem:[%s29042_s5 + $0x748] ss:$16 sps:$4 sm:$0xff]   ;;  %v21762_v62 = vld [vmem:[%s29042_s5 + $0x764] ss:$16 sps:$4 sm:$0xff]  }
 0x74e   : > { %11525 = vmatprep.subr.bf16.mxu1 %v21681_v3  ;;  %v21765_v3 = vld [vmem:[%s29042_s5 + $0x76c] ss:$16 sps:$4 sm:$0xff]  }
 0x750   : > { %11354 = vmatpush1.bf16.msra.mxu0 %v21676_v14  ;;  %v21760_v14 = vld [vmem:[%s29042_s5 + $0x760] ss:$16 sps:$4 sm:$0xff]  }
 0x751   : > { %11526 = vmatpush1.bf16.msra.mxu1 %v21679_v15  ;;  %11355 = vmatprep.subr.bf16.mxu0 %v21684_v4  ;;  %v21763_v15 = vld [vmem:[%s29042_s5 + $0x768] ss:$16 sps:$4 sm:$0xff]   ;;  %v21768_v4 = vld [vmem:[%s29042_s5 + $0x784] ss:$16 sps:$4 sm:$0xff]  }
 0x752   : > { %11527 = vmatprep.subr.bf16.mxu1 %v21687_v6  ;;  %v21771_v6 = vld [vmem:[%s29042_s5 + $0x78c] ss:$16 sps:$4 sm:$0xff]  }
 0x754   : > { %11356 = vmatpush1.bf16.msra.mxu0 %v21682_v9  ;;  %v21766_v9 = vld [vmem:[%s29042_s5 + $0x780] ss:$16 sps:$4 sm:$0xff]  }
 0x755   : > { %11528 = vmatpush1.bf16.msra.mxu1 %v21685_v13  ;;  %11357 = vmatprep.subr.bf16.mxu0 %v21690_v17  ;;  %v21769_v13 = vld [vmem:[%s29042_s5 + $0x788] ss:$16 sps:$4 sm:$0xff]   ;;  %v21774_v17 = vld [vmem:[%s29042_s5 + $0x7a4] ss:$16 sps:$4 sm:$0xff]  }
 0x756   : > { %11529 = vmatprep.subr.bf16.mxu1 %v21693_v19  ;;  %v21777_v19 = vld [vmem:[%s29042_s5 + $0x7ac] ss:$16 sps:$4 sm:$0xff]  }
 0x758   : > { %11358 = vmatpush1.bf16.msra.mxu0 %v21688_v20  ;;  %v21772_v20 = vld [vmem:[%s29042_s5 + $0x7a0] ss:$16 sps:$4 sm:$0xff]  }
 0x759   : > { %11530 = vmatpush1.bf16.msra.mxu1 %v21691_v11  ;;  %11370 = vmatprep.subr.bf16.mxu0 %v21696_v21  ;;  %v21775_v11 = vld [vmem:[%s29042_s5 + $0x7a8] ss:$16 sps:$4 sm:$0xff]   ;;  %v21780_v21 = vld [vmem:[%s29042_s5 + $0x7c4] ss:$16 sps:$4 sm:$0xff]  }
 0x75a   : > { %11542 = vmatprep.subr.bf16.mxu1 %v21699_v24  ;;  %v21783_v24 = vld [vmem:[%s29042_s5 + $0x7cc] ss:$16 sps:$4 sm:$0xff]  }
 0x75b   : > { %11360 = vmatmul.mubr.bf16.vlgmr.msra.gmra.mrb[12].mxu0 %v25358_v18 }
 0x75c   : > { %11532 = vmatmul.mubr.bf16.vlgmr.msra.gmra.mrb[12].mxu1 %v25358_v18  ;;  %11371 = vmatpush1.bf16.msra.mxu0 %v21694_v23  ;;  %v21711_v18 = vld [vmem:[%s29042_s5 + $0x64c] ss:$16 sps:$4 sm:$0xff]   ;;  %v21778_v23 = vld [vmem:[%s29042_s5 + $0x7c0] ss:$16 sps:$4 sm:$0xff]  }
 0x75d   : > { %11402 = vmatprep.mubr.bf16.mxu0 %v25364_v26  ;;  %11543 = vmatpush1.bf16.msra.mxu1 %v21697_v25  ;;  %v21781_v25 = vld [vmem:[%s29042_s5 + $0x7c8] ss:$16 sps:$4 sm:$0xff]  }
 0x75e   : > { %11574 = vmatprep.mubr.bf16.mxu1 %v25364_v26  ;;  %11372 = vmatprep.subr.bf16.mxu0 %v21702_v28  ;;  %v21714_v26 = vld [vmem:[%s29042_s5 + $0x664] ss:$16 sps:$4 sm:$0xff]  }
 0x75f   : > { %11544 = vmatprep.subr.bf16.mxu1 %v21705_v29  ;;  %v21786_v28 = vld [vmem:[%s29042_s5 + $0x7e4] ss:$16 sps:$4 sm:$0xff]   ;;  %v21789_v29 = vld [vmem:[%s29042_s5 + $0x7ec] ss:$16 sps:$4 sm:$0xff]  }
 0x760   : > { %11373 = vmatpush1.bf16.msra.mxu0 %v21700_v42  ;;  %v21784_v42 = vld [vmem:[%s29042_s5 + $0x7e0] ss:$16 sps:$4 sm:$0xff]  }
 0x761   : > { %11545 = vmatpush1.bf16.msra.mxu1 %v21703_v34  ;;  %11374 = vmatprep.subr.bf16.mxu0 %v21708_v56  ;;  %v21787_v34 = vld [vmem:[%s29042_s5 + $0x7e8] ss:$16 sps:$4 sm:$0xff]   ;;  %v21792_v56 = vld [vmem:[%s29043_s27 + $0x4] ss:$16 sps:$4 sm:$0xff]   ;;  %s29052_s27 = sld [smem:[#allocation25_spill]]  ;;  %s28893_s5 = scalar_lea.hbm %s29053_s4, %s19858_s10 }
 0x762   : > { %11546 = vmatprep.subr.bf16.mxu1 %v21711_v18  ;;  %v21795_v18 = vld [vmem:[%s29044_s17 + $0xc] ss:$16 sps:$4 sm:$0xff]  }
 0x764   : > { %11375 = vmatpush1.bf16.msra.mxu0 %v21706_v31  ;;  %v21790_v31 = vld [vmem:[%s29044_s17] ss:$16 sps:$4 sm:$0xff]  }
 0x765   : > { %11547 = vmatpush1.bf16.msra.mxu1 %v21709_v33  ;;  %11376 = vmatprep.subr.bf16.mxu0 %v21714_v26  ;;  %v21793_v33 = vld [vmem:[%s29044_s17 + $0x8] ss:$16 sps:$4 sm:$0xff]   ;;  %v21798_v26 = vld [vmem:[%s29044_s17 + $0x24] ss:$16 sps:$4 sm:$0xff]  }
 0x766   : > { %11548 = vmatprep.subr.bf16.mxu1 %v21717_v1  ;;  %v21801_v1 = vld [vmem:[%s29044_s17 + $0x2c] ss:$16 sps:$4 sm:$0xff]  }
 0x767   : > { %p29054_p1 = scmp.ne.s32.totalorder %s29052_s27, 0 }
 0x768   : > { %11377 = vmatpush1.bf16.msra.mxu0 %v21712_v35  ;;  %v21796_v35 = vld [vmem:[%s29044_s17 + $0x20] ss:$16 sps:$4 sm:$0xff]  }
 0x769   : > { %11549 = vmatpush1.bf16.msra.mxu1 %v21715_v36  ;;  %11378 = vmatprep.subr.bf16.mxu0 %v21720_v32  ;;  %v21799_v36 = vld [vmem:[%s29044_s17 + $0x28] ss:$16 sps:$4 sm:$0xff]   ;;  %v21804_v32 = vld [vmem:[%s29044_s17 + $0x44] ss:$16 sps:$4 sm:$0xff]  }
 0x76a   : > { %11550 = vmatprep.subr.bf16.mxu1 %v21723_v37  ;;  %v21802_v37 = vld [vmem:[%s29044_s17 + $0x40] ss:$16 sps:$4 sm:$0xff]  }
 0x76c   : > { %11379 = vmatpush1.bf16.msra.mxu0 %v21718_v38  ;;  %v21805_v38 = vld [vmem:[%s29044_s17 + $0x48] ss:$16 sps:$4 sm:$0xff]  }
 0x76d   : > { %11551 = vmatpush1.bf16.msra.mxu1 %v21721_v39  ;;  %11380 = vmatprep.subr.bf16.mxu0 %v21726_v40  ;;  %v21810_v39 = vld [vmem:[%s29044_s17 + $0x64] ss:$16 sps:$4 sm:$0xff]   ;;  %v21813_v40 = vld [vmem:[%s29044_s17 + $0x6c] ss:$16 sps:$4 sm:$0xff]  }
 0x76e   : > { %11552 = vmatprep.subr.bf16.mxu1 %v21729_v41  ;;  %v21808_v41 = vld [vmem:[%s29044_s17 + $0x60] ss:$16 sps:$4 sm:$0xff]  }
 0x770   : > { %11381 = vmatpush1.bf16.msra.mxu0 %v21724_v43  ;;  %v21811_v43 = vld [vmem:[%s29044_s17 + $0x68] ss:$16 sps:$4 sm:$0xff]  }
 0x771   : > { %11553 = vmatpush1.bf16.msra.mxu1 %v21727_v44  ;;  %11382 = vmatprep.subr.bf16.mxu0 %v21732_v45  ;;  %v21816_v44 = vld [vmem:[%s29044_s17 + $0x84] ss:$16 sps:$4 sm:$0xff]   ;;  %v21819_v45 = vld [vmem:[%s29044_s17 + $0x8c] ss:$16 sps:$4 sm:$0xff]  }
 0x772   : > { %11554 = vmatprep.subr.bf16.mxu1 %v21735_v46  ;;  %v21814_v46 = vld [vmem:[%s29044_s17 + $0x80] ss:$16 sps:$4 sm:$0xff]  }
 0x774   : > { %11383 = vmatpush1.bf16.msra.mxu0 %v21730_v47  ;;  %v21817_v47 = vld [vmem:[%s29044_s17 + $0x88] ss:$16 sps:$4 sm:$0xff]  }
 0x775   : > { %11555 = vmatpush1.bf16.msra.mxu1 %v21733_v48  ;;  %11384 = vmatprep.subr.bf16.mxu0 %v21738_v49  ;;  %v21822_v48 = vld [vmem:[%s29044_s17 + $0xa4] ss:$16 sps:$4 sm:$0xff]   ;;  %v21825_v49 = vld [vmem:[%s29044_s17 + $0xac] ss:$16 sps:$4 sm:$0xff]  }
 0x776   : > { %11556 = vmatprep.subr.bf16.mxu1 %v21741_v16  ;;  %v21820_v16 = vld [vmem:[%s29044_s17 + $0xa0] ss:$16 sps:$4 sm:$0xff]  }
 0x778   : > { %11385 = vmatpush1.bf16.msra.mxu0 %v21736_v50  ;;  %v21823_v50 = vld [vmem:[%s29044_s17 + $0xa8] ss:$16 sps:$4 sm:$0xff]  }
 0x779   : > { %11557 = vmatpush1.bf16.msra.mxu1 %v21739_v51  ;;  %11386 = vmatprep.subr.bf16.mxu0 %v21744_v12  ;;  %v21828_v51 = vld [vmem:[%s29044_s17 + $0xc4] ss:$16 sps:$4 sm:$0xff]   ;;  %v21831_v12 = vld [vmem:[%s29044_s17 + $0xcc] ss:$16 sps:$4 sm:$0xff]  }
 0x77a   : > { %11558 = vmatprep.subr.bf16.mxu1 %v21747_v52  ;;  %v21826_v52 = vld [vmem:[%s29044_s17 + $0xc0] ss:$16 sps:$4 sm:$0xff]  }
 0x77c   : > { %11387 = vmatpush1.bf16.msra.mxu0 %v21742_v53  ;;  %v21829_v53 = vld [vmem:[%s29044_s17 + $0xc8] ss:$16 sps:$4 sm:$0xff]  }
 0x77d   : > { %11559 = vmatpush1.bf16.msra.mxu1 %v21745_v54  ;;  %11388 = vmatprep.subr.bf16.mxu0 %v21750_v55  ;;  %v21834_v54 = vld [vmem:[%s29044_s17 + $0xe4] ss:$16 sps:$4 sm:$0xff]   ;;  %v21837_v55 = vld [vmem:[%s29044_s17 + $0xec] ss:$16 sps:$4 sm:$0xff]  }
 0x77e   : > { %11560 = vmatprep.subr.bf16.mxu1 %v21753_v57  ;;  %v21832_v57 = vld [vmem:[%s29044_s17 + $0xe0] ss:$16 sps:$4 sm:$0xff]  }
 0x780   : > { %11389 = vmatpush1.bf16.msra.mxu0 %v21748_v58  ;;  %v21835_v58 = vld [vmem:[%s29044_s17 + $0xe8] ss:$16 sps:$4 sm:$0xff]  }
 0x781   : > { %11561 = vmatpush1.bf16.msra.mxu1 %v21751_v60  ;;  %11390 = vmatprep.subr.bf16.mxu0 %v21756_v61  ;;  %v21840_v60 = vld [vmem:[%s29044_s17 + $0x104] ss:$16 sps:$4 sm:$0xff]   ;;  %v21843_v61 = vld [vmem:[%s29044_s17 + $0x10c] ss:$16 sps:$4 sm:$0xff]  }
 0x782   : > { %11562 = vmatprep.subr.bf16.mxu1 %v21759_v63  ;;  %v21838_v63 = vld [vmem:[%s29044_s17 + $0x100] ss:$16 sps:$4 sm:$0xff]  }
 0x784   : > { %11391 = vmatpush1.bf16.msra.mxu0 %v21754_v0  ;;  %v21841_v0 = vld [vmem:[%s29044_s17 + $0x108] ss:$16 sps:$4 sm:$0xff]  }
 0x785   : > { %11563 = vmatpush1.bf16.msra.mxu1 %v21757_v2  ;;  %11392 = vmatprep.subr.bf16.mxu0 %v21762_v62  ;;  %v21846_v2 = vld [vmem:[%s29044_s17 + $0x124] ss:$16 sps:$4 sm:$0xff]   ;;  %v21849_v62 = vld [vmem:[%s29044_s17 + $0x12c] ss:$16 sps:$4 sm:$0xff]  }
 0x786   : > { %11564 = vmatprep.subr.bf16.mxu1 %v21765_v3  ;;  %v21844_v3 = vld [vmem:[%s29044_s17 + $0x120] ss:$16 sps:$4 sm:$0xff]  }
 0x788   : > { %11393 = vmatpush1.bf16.msra.mxu0 %v21760_v14  ;;  %v21847_v14 = vld [vmem:[%s29044_s17 + $0x128] ss:$16 sps:$4 sm:$0xff]  }
 0x789   : > { %11565 = vmatpush1.bf16.msra.mxu1 %v21763_v15  ;;  %11394 = vmatprep.subr.bf16.mxu0 %v21768_v4  ;;  %v21852_v15 = vld [vmem:[%s29044_s17 + $0x144] ss:$16 sps:$4 sm:$0xff]   ;;  %v21855_v4 = vld [vmem:[%s29044_s17 + $0x14c] ss:$16 sps:$4 sm:$0xff]  }
 0x78a   : > { %11566 = vmatprep.subr.bf16.mxu1 %v21771_v6  ;;  %v21850_v6 = vld [vmem:[%s29044_s17 + $0x140] ss:$16 sps:$4 sm:$0xff]  }
 0x78c   : > { %11395 = vmatpush1.bf16.msra.mxu0 %v21766_v9  ;;  %v21853_v9 = vld [vmem:[%s29044_s17 + $0x148] ss:$16 sps:$4 sm:$0xff]  }
 0x78d   : > { %11567 = vmatpush1.bf16.msra.mxu1 %v21769_v13  ;;  %11396 = vmatprep.subr.bf16.mxu0 %v21774_v17  ;;  %v21858_v13 = vld [vmem:[%s29044_s17 + $0x164] ss:$16 sps:$4 sm:$0xff]   ;;  %v21861_v17 = vld [vmem:[%s29044_s17 + $0x16c] ss:$16 sps:$4 sm:$0xff]  }
 0x78e   : > { %11568 = vmatprep.subr.bf16.mxu1 %v21777_v19  ;;  %v21856_v19 = vld [vmem:[%s29044_s17 + $0x160] ss:$16 sps:$4 sm:$0xff]  }
 0x790   : > { %11397 = vmatpush1.bf16.msra.mxu0 %v21772_v20  ;;  %v21859_v20 = vld [vmem:[%s29044_s17 + $0x168] ss:$16 sps:$4 sm:$0xff]  }
 0x791   : > { %11569 = vmatpush1.bf16.msra.mxu1 %v21775_v11  ;;  %11398 = vmatprep.subr.bf16.mxu0 %v21780_v21  ;;  %v21864_v11 = vld [vmem:[%s29044_s17 + $0x184] ss:$16 sps:$4 sm:$0xff]   ;;  %v21867_v21 = vld [vmem:[%s29044_s17 + $0x18c] ss:$16 sps:$4 sm:$0xff]  }
 0x792   : > { %11570 = vmatprep.subr.bf16.mxu1 %v21783_v24  ;;  %v21862_v24 = vld [vmem:[%s29044_s17 + $0x180] ss:$16 sps:$4 sm:$0xff]  }
 0x794   : > { %11399 = vmatpush1.bf16.msra.mxu0 %v21778_v23  ;;  %v21865_v23 = vld [vmem:[%s29044_s17 + $0x188] ss:$16 sps:$4 sm:$0xff]  }
 0x795   : > { %11571 = vmatpush1.bf16.msra.mxu1 %v21781_v25  ;;  %11400 = vmatprep.subr.bf16.mxu0 %v21786_v28  ;;  %v21870_v25 = vld [vmem:[%s29044_s17 + $0x1a4] ss:$16 sps:$4 sm:$0xff]   ;;  %v21873_v28 = vld [vmem:[%s29044_s17 + $0x1ac] ss:$16 sps:$4 sm:$0xff]  }
 0x796   : > { %11572 = vmatprep.subr.bf16.mxu1 %v21789_v29  ;;  %v21868_v29 = vld [vmem:[%s29044_s17 + $0x1a0] ss:$16 sps:$4 sm:$0xff]  }
 0x798   : > { %11401 = vmatpush1.bf16.msra.mxu0 %v21784_v42  ;;  %v21871_v42 = vld [vmem:[%s29044_s17 + $0x1a8] ss:$16 sps:$4 sm:$0xff]  }
 0x799   : > { %11573 = vmatpush1.bf16.msra.mxu1 %v21787_v34  ;;  %13191 = vmatprep.subr.bf16.mxu0 %v21792_v56  ;;  %v21876_v34 = vld [vmem:[%s29044_s17 + $0x1c4] ss:$16 sps:$4 sm:$0xff]   ;;  %v21879_v56 = vld [vmem:[%s29044_s17 + $0x1cc] ss:$16 sps:$4 sm:$0xff]  }
 0x79a   : > { %13363 = vmatprep.subr.bf16.mxu1 %v21795_v18  ;;  %v21874_v18 = vld [vmem:[%s29044_s17 + $0x1c0] ss:$16 sps:$4 sm:$0xff]  }
 0x79b   : > { %11403 = vmatmul.mubr.bf16.vlgmr.msra.gmra.mrb[12].mxu0 %v25360_v22 }
 0x79c   : > { %11575 = vmatmul.mubr.bf16.vlgmr.msra.gmra.mrb[12].mxu1 %v25360_v22  ;;  %13192 = vmatpush1.bf16.msra.mxu0 %v21790_v31  ;;  %v21807_v22 = vld [vmem:[%s29044_s17 + $0x4c] ss:$16 sps:$4 sm:$0xff]   ;;  %v21877_v31 = vld [vmem:[%s29044_s17 + $0x1c8] ss:$16 sps:$4 sm:$0xff]  }
 0x79d   : > { %13364 = vmatpush1.bf16.msra.mxu1 %v21793_v33  ;;  %13193 = vmatprep.subr.bf16.mxu0 %v21798_v26  ;;  %v21882_v33 = vld [vmem:[%s29044_s17 + $0x1e4] ss:$16 sps:$4 sm:$0xff]   ;;  %v21885_v26 = vld [vmem:[%s29044_s17 + $0x1ec] ss:$16 sps:$4 sm:$0xff]  }
 0x79e   : > { %13365 = vmatprep.subr.bf16.mxu1 %v21801_v1  ;;  %v21880_v1 = vld [vmem:[%s29044_s17 + $0x1e0] ss:$16 sps:$4 sm:$0xff]  }
 0x7a0   : > { %13194 = vmatpush1.bf16.msra.mxu0 %v21796_v35  ;;  %v21883_v35 = vld [vmem:[%s29044_s17 + $0x1e8] ss:$16 sps:$4 sm:$0xff]  }
 0x7a1   : > { %13366 = vmatpush1.bf16.msra.mxu1 %v21799_v36  ;;  %13195 = vmatprep.subr.bf16.mxu0 %v21804_v32  ;;  %v21888_v36 = vld [vmem:[%s29044_s17 + $0x204] ss:$16 sps:$4 sm:$0xff]   ;;  %v21891_v32 = vld [vmem:[%s29044_s17 + $0x20c] ss:$16 sps:$4 sm:$0xff]  }
 0x7a2   : > { %13367 = vmatprep.subr.bf16.mxu1 %v21807_v22  ;;  %v27987_v22 = vld [vmem:[%s29045_s7] sm:$0xf]  ;;  %s29048_s7 = sld [smem:[#allocation40_spill]] }
 0x7a4   : > { %13196 = vmatpush1.bf16.msra.mxu0 %v21802_v37  ;;  %v27992_v37 = vld [vmem:[%s29046_s13] sm:$0xf] }
 0x7a5   : > { %13368 = vmatpush1.bf16.msra.mxu1 %v21805_v38  ;;  %13197 = vmatprep.subr.bf16.mxu0 %v21810_v39  ;;  %v8050_v38 = vrot.slane %v27987_v22, %v24895_v7  ;;  %v9952_v39 = vrot.slane %v27992_v37, %v24895_v7 }
 0x7a6   : > { %13369 = vmatprep.subr.bf16.mxu1 %v21813_v40  ;;  %v8054_v40 = vrot.slane %v27987_v22, %v24901_v10 }
 0x7a8   : > { %13198 = vmatpush1.bf16.msra.mxu0 %v21808_v41  ;;  %v9956_v41 = vrot.slane %v27992_v37, %v24901_v10  ;;  %s29049_s29 = smov %s29048_s7 }
 0x7a9   : > { %13370 = vmatpush1.bf16.msra.mxu1 %v21811_v43  ;;  %13199 = vmatprep.subr.bf16.mxu0 %v21816_v44  ;;  %v20197_v43 = vadd.f32 %v9952_v39, %v8050_v38  ;;  %v21915_v38 = vld [vmem:[%s29044_s17 + $0x28c] ss:$16 sps:$4 sm:$0xff]   ;;  %v21910_v39 = vld [vmem:[%s29044_s17 + $0x280] ss:$16 sps:$4 sm:$0xff]  }
 0x7aa   : > { %13371 = vmatprep.subr.bf16.mxu1 %v21819_v45  ;;  %v20199_v44 = vadd.f32 %v9956_v41, %v8054_v40  ;;  %v21913_v40 = vld [vmem:[%s29044_s17 + $0x288] ss:$16 sps:$4 sm:$0xff]   ;;  %v21918_v41 = vld [vmem:[%s29044_s17 + $0x2a4] ss:$16 sps:$4 sm:$0xff]  }
 0x7ac   : > { %13200 = vmatpush1.bf16.msra.mxu0 %v21814_v46 }
 0x7ad   : > { %13372 = vmatpush1.bf16.msra.mxu1 %v21817_v47  ;;  %13201 = vmatprep.subr.bf16.mxu0 %v21822_v48  ;;  %v8046_v47 = vrot.slane %v27987_v22, %v24898_v8  ;;  %v9948_v48 = vrot.slane %v27992_v37, %v24898_v8 }
 0x7ae   : > { %13373 = vmatprep.subr.bf16.mxu1 %v21825_v49 }
 0x7b0   : > { %13202 = vmatpush1.bf16.msra.mxu0 %v21820_v16 }
 0x7b1   : > { %13374 = vmatpush1.bf16.msra.mxu1 %v21823_v50  ;;  %13203 = vmatprep.subr.bf16.mxu0 %v21828_v51 }
 0x7b2   : > { %13375 = vmatprep.subr.bf16.mxu1 %v21831_v12 }
 0x7b4   : > { %13204 = vmatpush1.bf16.msra.mxu0 %v21826_v52 }
 0x7b5   : > { %13376 = vmatpush1.bf16.msra.mxu1 %v21829_v53  ;;  %13205 = vmatprep.subr.bf16.mxu0 %v21834_v54 }
 0x7b6   : > { %13377 = vmatprep.subr.bf16.mxu1 %v21837_v55 }
 0x7b8   : > { %13206 = vmatpush1.bf16.msra.mxu0 %v21832_v57 }
 0x7b9   : > { %13378 = vmatpush1.bf16.msra.mxu1 %v21835_v58  ;;  %13207 = vmatprep.subr.bf16.mxu0 %v21840_v60  ;;  %v20191_v58 = vadd.f32 %v9948_v48, %v8046_v47  ;;  %v21924_v47 = vld [vmem:[%s29044_s17 + $0x2c4] ss:$16 sps:$4 sm:$0xff]   ;;  %v21927_v48 = vld [vmem:[%s29044_s17 + $0x2cc] ss:$16 sps:$4 sm:$0xff]  }
 0x7ba   : > { %13379 = vmatprep.subr.bf16.mxu1 %v21843_v61 }
 0x7bc   : > { %13208 = vmatpush1.bf16.msra.mxu0 %v21838_v63 }
 0x7bd   : > { %13380 = vmatpush1.bf16.msra.mxu1 %v21841_v0  ;;  %13209 = vmatprep.subr.bf16.mxu0 %v21846_v2 }
 0x7be   : > { %13381 = vmatprep.subr.bf16.mxu1 %v21849_v62 }
 0x7c0   : > { %13210 = vmatpush1.bf16.msra.mxu0 %v21844_v3 }
 0x7c1   : > { %13382 = vmatpush1.bf16.msra.mxu1 %v21847_v14  ;;  %13211 = vmatprep.subr.bf16.mxu0 %v21852_v15 }
 0x7c2   : > { %13383 = vmatprep.subr.bf16.mxu1 %v21855_v4 }
 0x7c4   : > { %13212 = vmatpush1.bf16.msra.mxu0 %v21850_v6 }
 0x7c5   : > { %13384 = vmatpush1.bf16.msra.mxu1 %v21853_v9  ;;  %13213 = vmatprep.subr.bf16.mxu0 %v21858_v13 }
 0x7c6   : > { %13385 = vmatprep.subr.bf16.mxu1 %v21861_v17 }
 0x7c8   : > { %13214 = vmatpush1.bf16.msra.mxu0 %v21856_v19 }
 0x7c9   : > { %13386 = vmatpush1.bf16.msra.mxu1 %v21859_v20  ;;  %13215 = vmatprep.subr.bf16.mxu0 %v21864_v11  ;;  %v21886_v11 = vld [vmem:[%s29044_s17 + $0x200] ss:$16 sps:$4 sm:$0xff]  }
 0x7ca   : > { %13387 = vmatprep.subr.bf16.mxu1 %v21867_v21  ;;  %v21889_v21 = vld [vmem:[%s29044_s17 + $0x208] ss:$16 sps:$4 sm:$0xff]  }
 0x7cc   : > { %13216 = vmatpush1.bf16.msra.mxu0 %v21862_v24 }
 0x7cd   : > { %13388 = vmatpush1.bf16.msra.mxu1 %v21865_v23  ;;  %13217 = vmatprep.subr.bf16.mxu0 %v21870_v25  ;;  %v21894_v25 = vld [vmem:[%s29044_s17 + $0x224] ss:$16 sps:$4 sm:$0xff]  }
 0x7ce   : > { %13389 = vmatprep.subr.bf16.mxu1 %v21873_v28  ;;  %v21897_v28 = vld [vmem:[%s29044_s17 + $0x22c] ss:$16 sps:$4 sm:$0xff]  }
 0x7d0   : > { %13218 = vmatpush1.bf16.msra.mxu0 %v21868_v29 }
 0x7d1   : > { %13390 = vmatpush1.bf16.msra.mxu1 %v21871_v42  ;;  %13219 = vmatprep.subr.bf16.mxu0 %v21876_v34  ;;  %v21892_v42 = vld [vmem:[%s29044_s17 + $0x220] ss:$16 sps:$4 sm:$0xff]   ;;  %v21895_v34 = vld [vmem:[%s29044_s17 + $0x228] ss:$16 sps:$4 sm:$0xff]  }
 0x7d2   : > { %13391 = vmatprep.subr.bf16.mxu1 %v21879_v56  ;;  %v21900_v56 = vld [vmem:[%s29044_s17 + $0x244] ss:$16 sps:$4 sm:$0xff]  }
 0x7d4   : > { %13220 = vmatpush1.bf16.msra.mxu0 %v21874_v18  ;;  %v21903_v18 = vld [vmem:[%s29044_s17 + $0x24c] ss:$16 sps:$4 sm:$0xff]  }
 0x7d5   : > { %13392 = vmatpush1.bf16.msra.mxu1 %v21877_v31  ;;  %13221 = vmatprep.subr.bf16.mxu0 %v21882_v33  ;;  %v21898_v31 = vld [vmem:[%s29044_s17 + $0x240] ss:$16 sps:$4 sm:$0xff]   ;;  %v21901_v33 = vld [vmem:[%s29044_s17 + $0x248] ss:$16 sps:$4 sm:$0xff]  }
 0x7d6   : > { %13393 = vmatprep.subr.bf16.mxu1 %v21885_v26  ;;  %v21906_v26 = vld [vmem:[%s29044_s17 + $0x264] ss:$16 sps:$4 sm:$0xff]  }
 0x7d8   : > { %13222 = vmatpush1.bf16.msra.mxu0 %v21880_v1  ;;  %v21909_v1 = vld [vmem:[%s29044_s17 + $0x26c] ss:$16 sps:$4 sm:$0xff]  }
 0x7d9   : > { %13394 = vmatpush1.bf16.msra.mxu1 %v21883_v35  ;;  %13234 = vmatprep.subr.bf16.mxu0 %v21888_v36  ;;  %v21904_v35 = vld [vmem:[%s29044_s17 + $0x260] ss:$16 sps:$4 sm:$0xff]   ;;  %v21907_v36 = vld [vmem:[%s29044_s17 + $0x268] ss:$16 sps:$4 sm:$0xff]  }
 0x7da   : > { %13406 = vmatprep.subr.bf16.mxu1 %v21891_v32  ;;  %v21912_v32 = vld [vmem:[%s29044_s17 + $0x284] ss:$16 sps:$4 sm:$0xff]  }
 0x86e   : > { %v28002_v45 = vpop.f32.mrb[12].mxu0 }
 0x86f   : > { %v11576_v46 = vpop.f32.mrb[12].mxu1  ;;  %v11406_v49 = vpop.f32.mrb[13].mxu0 }
 0x870   : > { %v20198_v16 = vadd.f32 %v20197_v43, %v11576_v46  ;;  %v11578_v50 = vpop.f32.mrb[13].mxu1  ;;  %v28008_v51 = vpop.f32.mrb[14].mxu0  ;;  %v20192_v14 = vadd.f32 %v20191_v58, %v11406_v49  ;;  %v21919_v46 = vld [vmem:[%s29044_s17 + $0x2a8] ss:$16 sps:$4 sm:$0xff]   ;;  %v21922_v49 = vld [vmem:[%s29044_s17 + $0x2c0] ss:$16 sps:$4 sm:$0xff]  }
 0x871   : > { %v20200_v12 = vadd.f32 %v20199_v44, %v11578_v50  ;;  %v11580_v52 = vpop.f32.mrb[14].mxu1  ;;  %v11410_v53 = vpop.f32.mrb[15].mxu0  ;;  %v21930_v50 = vld [vmem:[%s29044_s17 + $0x2e4] ss:$16 sps:$4 sm:$0xff]  }
 0x872   : > { %v28010_v54 = vmax.f32 %v20198_v16, 0.0  ;;  %v20202_v55 = vadd.f32 %v20197_v43, %v11580_v52  ;;  %v11582_v57 = vpop.f32.mrb[15].mxu1  ;;  %v20196_v0 = vadd.f32 %v20191_v58, %v11410_v53  ;;  %v28038_v24 = vmax.f32 %v20192_v14, 0.0  ;;  %v21921_v43 = vld [vmem:[%s29044_s17 + $0x2ac] ss:$16 sps:$4 sm:$0xff]  }
 0x873   : > { %v28012_v60 = vmax.f32 %v20200_v12, 0.0  ;;  %v20204_v61 = vadd.f32 %v20199_v44, %v11582_v57  ;;  %v21916_v44 = vld [vmem:[%s29044_s17 + $0x2a0] ss:$16 sps:$4 sm:$0xff]   ;;  %v21925_v16 = vld [vmem:[%s29044_s17 + $0x2c8] ss:$16 sps:$4 sm:$0xff]  }
 0x874   : > { %v28014_v63 = vmax.f32 %v20202_v55, 0.0  ;;  %v11601_v62 = vrot.slane %v28010_v54, 7  ;;  %v28026_v13 = vmax.f32 %v20196_v0, 0.0  ;;  %v21933_v12 = vld [vmem:[%s29044_s17 + $0x2ec] ss:$16 sps:$4 sm:$0xff]  }
 0x875   : > { %v28016_v2 = vmax.f32 %v20204_v61, 0.0  ;;  %v11602_v15 = vrot.slane %v28012_v60, 7  ;;  %v21928_v52 = vld [vmem:[%s29044_s17 + $0x2e0] ss:$16 sps:$4 sm:$0xff]   ;;  %v21931_v53 = vld [vmem:[%s29044_s17 + $0x2e8] ss:$16 sps:$4 sm:$0xff]  }
 0x876   : > { %v11603_v3 = vrot.slane %v28014_v63, 7  ;;  %v11628_v29 = vpack.c.bf16 %v28026_v13, %v28038_v24  ;;  %v21936_v55 = vld [vmem:[%s29044_s17 + $0x304] ss:$16 sps:$4 sm:$0xff]   ;;  %v21939_v57 = vld [vmem:[%s29044_s17 + $0x30c] ss:$16 sps:$4 sm:$0xff]  }
 0x877   : > { %v11604_v4 = vrot.slane %v28016_v2, 7  ;;  %v21934_v58 = vld [vmem:[%s29044_s17 + $0x300] ss:$16 sps:$4 sm:$0xff]   ;;  %v21937_v61 = vld [vmem:[%s29044_s17 + $0x308] ss:$16 sps:$4 sm:$0xff]  }
 0x878   : > { %v11605_v6 = vsel %vm5320_vm2, %v11601_v62, %v11603_v3  ;;  %v11607_v9 = vsel %vm5320_vm2, %v11603_v3, %v11601_v62  ;;  %v21942_v0 = vld [vmem:[%s29044_s17 + $0x324] ss:$16 sps:$4 sm:$0xff]   ;;  %v21945_v62 = vld [vmem:[%s29044_s17 + $0x32c] ss:$16 sps:$4 sm:$0xff]   ;;  %v21940_v3 = vld [vmem:[%s29044_s17 + $0x320] ss:$16 sps:$4 sm:$0xff]  }
 0x879   : > { %v11606_v17 = vsel %vm5320_vm2, %v11602_v15, %v11604_v4  ;;  %v11608_v19 = vsel %vm5320_vm2, %v11604_v4, %v11602_v15  ;;  %v19322_v23 = vpack.c.bf16 %v11605_v6, %v11607_v9  ;;  %v21943_v14 = vld [vmem:[%s29044_s17 + $0x328] ss:$16 sps:$4 sm:$0xff]   ;;  %v21948_v15 = vld [vmem:[%s29044_s17 + $0x344] ss:$16 sps:$4 sm:$0xff]   ;;  %v21951_v4 = vld [vmem:[%s29044_s17 + $0x34c] ss:$16 sps:$4 sm:$0xff]  }
 0x87a   : > { %v19317_v20 = vpack.c.bf16 %v11606_v17, %v11608_v19  ;;  %v21946_v6 = vld [vmem:[%s29044_s17 + $0x340] ss:$16 sps:$4 sm:$0xff]   ;;  %v21949_v9 = vld [vmem:[%s29044_s17 + $0x348] ss:$16 sps:$4 sm:$0xff]   ;;  %v21954_v17 = vld [vmem:[%s29044_s17 + $0x364] ss:$16 sps:$4 sm:$0xff]  }
 0x87b   : > { %v21957_v19 = vld [vmem:[%s29044_s17 + $0x36c] ss:$16 sps:$4 sm:$0xff]  }
 0x87c   : > { %19318 = vmatprep.mubr.msk.bf16.mxu0 %vm25368_vm3, %v19317_v20  ;;  %19338 = vmatprep.mubr.msk.bf16.mxu1 %vm25368_vm3, %v19317_v20  ;;  %v21952_v20 = vld [vmem:[%s29044_s17 + $0x360] ss:$16 sps:$4 sm:$0xff]  }
 0x87d   : > { %19323 = vmatmul.mubr.msk.bf16.vlgmr.msra.gmra.mrb[16].mxu0 %vm25368_vm3, %v19322_v23  ;;  %19343 = vmatmul.mubr.msk.bf16.vlgmr.msra.gmra.mrb[16].mxu1 %vm25368_vm3, %v19322_v23  ;;  %v21963_v23 = vld [vmem:[%s29044_s17 + $0x38c] ss:$16 sps:$4 sm:$0xff]  }
 0x87e   : > { %13235 = vmatpush1.bf16.msra.mxu0 %v21886_v11  ;;  %13407 = vmatpush1.bf16.msra.mxu1 %v21889_v21  ;;  %v21955_v11 = vld [vmem:[%s29044_s17 + $0x368] ss:$16 sps:$4 sm:$0xff]   ;;  %v21960_v21 = vld [vmem:[%s29044_s17 + $0x384] ss:$16 sps:$4 sm:$0xff]  }
 0x87f   : > { %13266 = vmatprep.mubr.bf16.mxu0 %v11628_v29  ;;  %13438 = vmatprep.mubr.bf16.mxu1 %v11628_v29  ;;  %v21966_v29 = vld [vmem:[%s29044_s17 + $0x3a4] ss:$16 sps:$4 sm:$0xff]  }
 0x880   : > { %13236 = vmatprep.subr.bf16.mxu0 %v21894_v25  ;;  %13408 = vmatprep.subr.bf16.mxu1 %v21897_v28  ;;  %v21958_v25 = vld [vmem:[%s29044_s17 + $0x380] ss:$16 sps:$4 sm:$0xff]   ;;  %v21961_v28 = vld [vmem:[%s29044_s17 + $0x388] ss:$16 sps:$4 sm:$0xff]  }
 0x882   : > { %13237 = vmatpush1.bf16.msra.mxu0 %v21892_v42  ;;  %13409 = vmatpush1.bf16.msra.mxu1 %v21895_v34  ;;  %v21969_v42 = vld [vmem:[%s29044_s17 + $0x3ac] ss:$16 sps:$4 sm:$0xff]   ;;  %v8042_v34 = vrot.slane %v27987_v22, %v24892_v5 }
 0x883   : > { %13238 = vmatprep.subr.bf16.mxu0 %v21900_v56  ;;  %13410 = vmatprep.subr.bf16.mxu1 %v21903_v18  ;;  %v9944_v56 = vrot.slane %v27992_v37, %v24892_v5  ;;  %v21964_v18 = vld [vmem:[%s29044_s17 + $0x3a0] ss:$16 sps:$4 sm:$0xff]   ;;  %v21975_v22 = vld [vmem:[%s29044_s17 + $0x3cc] ss:$16 sps:$4 sm:$0xff]  }
 0x885   : > { %v20189_v37 = vadd.f32 %v9944_v56, %v8042_v34  ;;  %v22032_v34 = vld [vmem:[%s29044_s17 + $0x504] ss:$16 sps:$4 sm:$0xff]   ;;  %v22035_v56 = vld [vmem:[%s29044_s17 + $0x50c] ss:$16 sps:$4 sm:$0xff]  }
 0x886   : > { %13239 = vmatpush1.bf16.msra.mxu0 %v21898_v31  ;;  %13411 = vmatpush1.bf16.msra.mxu1 %v21901_v33  ;;  %v21967_v31 = vld [vmem:[%s29044_s17 + $0x3a8] ss:$16 sps:$4 sm:$0xff]   ;;  %v21972_v33 = vld [vmem:[%s29044_s17 + $0x3c4] ss:$16 sps:$4 sm:$0xff]  }
 0x887   : > { %13240 = vmatprep.subr.bf16.mxu0 %v21906_v26  ;;  %13412 = vmatprep.subr.bf16.mxu1 %v21909_v1  ;;  %v21970_v26 = vld [vmem:[%s29044_s17 + $0x3c0] ss:$16 sps:$4 sm:$0xff]   ;;  %v21973_v1 = vld [vmem:[%s29044_s17 + $0x3c8] ss:$16 sps:$4 sm:$0xff]  }
 0x88a   : > { %13241 = vmatpush1.bf16.msra.mxu0 %v21904_v35  ;;  %13413 = vmatpush1.bf16.msra.mxu1 %v21907_v36  ;;  %v20194_v35 = vadd.f32 %v20189_v37, %v28008_v51  ;;  %v21978_v36 = vld [vmem:[%s29044_s17 + $0x3e4] ss:$16 sps:$4 sm:$0xff]   ;;  %v21979_v51 = vld [vmem:[%s29044_s17 + $0x3e8] ss:$16 sps:$4 sm:$0xff]  }
 0x88b   : > { %13242 = vmatprep.subr.bf16.mxu0 %v21912_v32  ;;  %13414 = vmatprep.subr.bf16.mxu1 %v21915_v38  ;;  %v21981_v32 = vld [vmem:[%s29044_s17 + $0x3ec] ss:$16 sps:$4 sm:$0xff]   ;;  %v20190_v38 = vadd.f32 %v20189_v37, %v28002_v45  ;;  %v22036_v37 = vld [vmem:[%s29044_s17 + $0x520] ss:$16 sps:$4 sm:$0xff]  }
 0x88c   : > { %v21987_v45 = vld [vmem:[%s29044_s17 + $0x40c] ss:$16 sps:$4 sm:$0xff]  }
 0x88e   : > { %13243 = vmatpush1.bf16.msra.mxu0 %v21910_v39  ;;  %13415 = vmatpush1.bf16.msra.mxu1 %v21913_v40  ;;  %v21976_v39 = vld [vmem:[%s29044_s17 + $0x3e0] ss:$16 sps:$4 sm:$0xff]   ;;  %v28236_v40 = vmax.f32 %v20194_v35, 0.0  ;;  %v22047_v35 = vld [vmem:[%s29044_s17 + $0x54c] ss:$16 sps:$4 sm:$0xff]  }
 0x88f   : > { %13244 = vmatprep.subr.bf16.mxu0 %v21918_v41  ;;  %13416 = vmatprep.subr.bf16.mxu1 %v21921_v43  ;;  %v21984_v41 = vld [vmem:[%s29044_s17 + $0x404] ss:$16 sps:$4 sm:$0xff]   ;;  %v28244_v43 = vmax.f32 %v20190_v38, 0.0 }
 0x890   : > { %v22050_v38 = vld [vmem:[%s29044_s17 + $0x564] ss:$16 sps:$4 sm:$0xff]  }
 0x892   : > { %13245 = vmatpush1.bf16.msra.mxu0 %v21916_v44  ;;  %13417 = vmatpush1.bf16.msra.mxu1 %v21919_v46  ;;  %v21982_v44 = vld [vmem:[%s29044_s17 + $0x400] ss:$16 sps:$4 sm:$0xff]   ;;  %v11627_v46 = vpack.c.bf16 %v28236_v40, %v28244_v43 }
 0x893   : > { %13246 = vmatprep.subr.bf16.mxu0 %v21924_v47  ;;  %13418 = vmatprep.subr.bf16.mxu1 %v21927_v48  ;;  %v21985_v47 = vld [vmem:[%s29044_s17 + $0x408] ss:$16 sps:$4 sm:$0xff]   ;;  %v11630_v48 = vpack.c.bf16 %v28016_v2, %v28012_v60 }
 0x896   : > { %13247 = vmatpush1.bf16.msra.mxu0 %v21922_v49  ;;  %13419 = vmatpush1.bf16.msra.mxu1 %v21925_v16  ;;  %v21990_v49 = vld [vmem:[%s29044_s17 + $0x424] ss:$16 sps:$4 sm:$0xff]   ;;  %v21993_v16 = vld [vmem:[%s29044_s17 + $0x42c] ss:$16 sps:$4 sm:$0xff]  }
 0x897   : > { %13248 = vmatprep.subr.bf16.mxu0 %v21930_v50  ;;  %13420 = vmatprep.subr.bf16.mxu1 %v21933_v12  ;;  %v21988_v50 = vld [vmem:[%s29044_s17 + $0x420] ss:$16 sps:$4 sm:$0xff]   ;;  %v21991_v12 = vld [vmem:[%s29044_s17 + $0x428] ss:$16 sps:$4 sm:$0xff]  }
 0x89a   : > { %13249 = vmatpush1.bf16.msra.mxu0 %v21928_v52  ;;  %13421 = vmatpush1.bf16.msra.mxu1 %v21931_v53  ;;  %v21996_v52 = vld [vmem:[%s29044_s17 + $0x444] ss:$16 sps:$4 sm:$0xff]   ;;  %v21999_v53 = vld [vmem:[%s29044_s17 + $0x44c] ss:$16 sps:$4 sm:$0xff]  }
 0x89b   : > { %13250 = vmatprep.subr.bf16.mxu0 %v21936_v55  ;;  %13422 = vmatprep.subr.bf16.mxu1 %v21939_v57  ;;  %v21994_v55 = vld [vmem:[%s29044_s17 + $0x440] ss:$16 sps:$4 sm:$0xff]   ;;  %v21997_v57 = vld [vmem:[%s29044_s17 + $0x448] ss:$16 sps:$4 sm:$0xff]  }
 0x89e   : > { %13251 = vmatpush1.bf16.msra.mxu0 %v21934_v58  ;;  %13423 = vmatpush1.bf16.msra.mxu1 %v21937_v61  ;;  %v22002_v58 = vld [vmem:[%s29044_s17 + $0x464] ss:$16 sps:$4 sm:$0xff]   ;;  %v22005_v61 = vld [vmem:[%s29044_s17 + $0x46c] ss:$16 sps:$4 sm:$0xff]  }
 0x89f   : > { %13252 = vmatprep.subr.bf16.mxu0 %v21942_v0  ;;  %13424 = vmatprep.subr.bf16.mxu1 %v21945_v62  ;;  %v22000_v0 = vld [vmem:[%s29044_s17 + $0x460] ss:$16 sps:$4 sm:$0xff]   ;;  %v22003_v62 = vld [vmem:[%s29044_s17 + $0x468] ss:$16 sps:$4 sm:$0xff]  }
 0x8a2   : > { %13253 = vmatpush1.bf16.msra.mxu0 %v21940_v3  ;;  %13425 = vmatpush1.bf16.msra.mxu1 %v21943_v14  ;;  %v22008_v3 = vld [vmem:[%s29044_s17 + $0x484] ss:$16 sps:$4 sm:$0xff]   ;;  %v22011_v14 = vld [vmem:[%s29044_s17 + $0x48c] ss:$16 sps:$4 sm:$0xff]  }
 0x8a3   : > { %13254 = vmatprep.subr.bf16.mxu0 %v21948_v15  ;;  %13426 = vmatprep.subr.bf16.mxu1 %v21951_v4  ;;  %v22006_v15 = vld [vmem:[%s29044_s17 + $0x480] ss:$16 sps:$4 sm:$0xff]   ;;  %v22009_v4 = vld [vmem:[%s29044_s17 + $0x488] ss:$16 sps:$4 sm:$0xff]  }
 0x8a6   : > { %13255 = vmatpush1.bf16.msra.mxu0 %v21946_v6  ;;  %13427 = vmatpush1.bf16.msra.mxu1 %v21949_v9  ;;  %v22014_v6 = vld [vmem:[%s29044_s17 + $0x4a4] ss:$16 sps:$4 sm:$0xff]   ;;  %v22017_v9 = vld [vmem:[%s29044_s17 + $0x4ac] ss:$16 sps:$4 sm:$0xff]  }
 0x8a7   : > { %13256 = vmatprep.subr.bf16.mxu0 %v21954_v17  ;;  %13428 = vmatprep.subr.bf16.mxu1 %v21957_v19  ;;  %v22012_v17 = vld [vmem:[%s29044_s17 + $0x4a0] ss:$16 sps:$4 sm:$0xff]   ;;  %v22015_v19 = vld [vmem:[%s29044_s17 + $0x4a8] ss:$16 sps:$4 sm:$0xff]  }
 0x8aa   : > { %13257 = vmatpush1.bf16.msra.mxu0 %v21952_v20  ;;  %13429 = vmatpush1.bf16.msra.mxu1 %v21955_v11  ;;  %v22020_v20 = vld [vmem:[%s29044_s17 + $0x4c4] ss:$16 sps:$4 sm:$0xff]   ;;  %v22023_v11 = vld [vmem:[%s29044_s17 + $0x4cc] ss:$16 sps:$4 sm:$0xff]  }
 0x8ab   : > { %13258 = vmatprep.subr.bf16.mxu0 %v21960_v21  ;;  %13430 = vmatprep.subr.bf16.mxu1 %v21963_v23  ;;  %v22018_v21 = vld [vmem:[%s29044_s17 + $0x4c0] ss:$16 sps:$4 sm:$0xff]   ;;  %v22021_v23 = vld [vmem:[%s29044_s17 + $0x4c8] ss:$16 sps:$4 sm:$0xff]  }
 0x8ae   : > { %13259 = vmatpush1.bf16.msra.mxu0 %v21958_v25  ;;  %13431 = vmatpush1.bf16.msra.mxu1 %v21961_v28  ;;  %v22026_v25 = vld [vmem:[%s29044_s17 + $0x4e4] ss:$16 sps:$4 sm:$0xff]   ;;  %v22029_v28 = vld [vmem:[%s29044_s17 + $0x4ec] ss:$16 sps:$4 sm:$0xff]  }
 0x8af   : > { %13260 = vmatprep.subr.bf16.mxu0 %v21966_v29  ;;  %13432 = vmatprep.subr.bf16.mxu1 %v21969_v42  ;;  %v22024_v29 = vld [vmem:[%s29044_s17 + $0x4e0] ss:$16 sps:$4 sm:$0xff]   ;;  %v22027_v42 = vld [vmem:[%s29044_s17 + $0x4e8] ss:$16 sps:$4 sm:$0xff]  }
 0x8b2   : > { %13261 = vmatpush1.bf16.msra.mxu0 %v21964_v18  ;;  %13433 = vmatpush1.bf16.msra.mxu1 %v21967_v31  ;;  %v22030_v18 = vld [vmem:[%s29044_s17 + $0x500] ss:$16 sps:$4 sm:$0xff]   ;;  %v22033_v31 = vld [vmem:[%s29044_s17 + $0x508] ss:$16 sps:$4 sm:$0xff]  }
 0x8b3   : > { %13262 = vmatprep.subr.bf16.mxu0 %v21972_v33  ;;  %13434 = vmatprep.subr.bf16.mxu1 %v21975_v22  ;;  %v22038_v33 = vld [vmem:[%s29044_s17 + $0x524] ss:$16 sps:$4 sm:$0xff]   ;;  %v22041_v22 = vld [vmem:[%s29044_s17 + $0x52c] ss:$16 sps:$4 sm:$0xff]  }
 0x8b6   : > { %13263 = vmatpush1.bf16.msra.mxu0 %v21970_v26  ;;  %13435 = vmatpush1.bf16.msra.mxu1 %v21973_v1  ;;  %v22039_v26 = vld [vmem:[%s29044_s17 + $0x528] ss:$16 sps:$4 sm:$0xff]   ;;  %v22044_v1 = vld [vmem:[%s29044_s17 + $0x544] ss:$16 sps:$4 sm:$0xff]  }
 0x8b7   : > { %13264 = vmatprep.subr.bf16.mxu0 %v21978_v36  ;;  %13436 = vmatprep.subr.bf16.mxu1 %v21981_v32  ;;  %v22042_v36 = vld [vmem:[%s29044_s17 + $0x540] ss:$16 sps:$4 sm:$0xff]   ;;  %v22045_v32 = vld [vmem:[%s29044_s17 + $0x548] ss:$16 sps:$4 sm:$0xff]  }
 0x8ba   : > { %13265 = vmatpush1.bf16.msra.mxu0 %v21976_v39  ;;  %13437 = vmatpush1.bf16.msra.mxu1 %v21979_v51  ;;  %v22053_v39 = vld [vmem:[%s29044_s17 + $0x56c] ss:$16 sps:$4 sm:$0xff]   ;;  %v22048_v51 = vld [vmem:[%s29044_s17 + $0x560] ss:$16 sps:$4 sm:$0xff]  }
 0x8bb   : > { %13277 = vmatprep.subr.bf16.mxu0 %v21984_v41  ;;  %13449 = vmatprep.subr.bf16.mxu1 %v21987_v45  ;;  %v22051_v41 = vld [vmem:[%s29044_s17 + $0x568] ss:$16 sps:$4 sm:$0xff]   ;;  %v22056_v45 = vld [vmem:[%s29044_s17 + $0x584] ss:$16 sps:$4 sm:$0xff]  }
 0x8bd   : > { %13267 = vmatmul.mubr.bf16.vlgmr.msra.gmra.mrb[16].mxu0 %v11627_v46  ;;  %13439 = vmatmul.mubr.bf16.vlgmr.msra.gmra.mrb[16].mxu1 %v11627_v46  ;;  %v22054_v46 = vld [vmem:[%s29044_s17 + $0x580] ss:$16 sps:$4 sm:$0xff]  }
 0x8be   : > { %13278 = vmatpush1.bf16.msra.mxu0 %v21982_v44  ;;  %13309 = vmatprep.mubr.bf16.mxu0 %v11630_v48  ;;  %v22059_v44 = vld [vmem:[%s29044_s17 + $0x58c] ss:$16 sps:$4 sm:$0xff]  }
 0x8bf   : > { %13450 = vmatpush1.bf16.msra.mxu1 %v21985_v47  ;;  %13481 = vmatprep.mubr.bf16.mxu1 %v11630_v48  ;;  %v22057_v47 = vld [vmem:[%s29044_s17 + $0x588] ss:$16 sps:$4 sm:$0xff]   ;;  %v22062_v48 = vld [vmem:[%s29044_s17 + $0x5a4] ss:$16 sps:$4 sm:$0xff]  }
 0x8c0   : > { %13279 = vmatprep.subr.bf16.mxu0 %v21990_v49  ;;  %13451 = vmatprep.subr.bf16.mxu1 %v21993_v16  ;;  %v22065_v49 = vld [vmem:[%s29044_s17 + $0x5ac] ss:$16 sps:$4 sm:$0xff]   ;;  %v22060_v16 = vld [vmem:[%s29044_s17 + $0x5a0] ss:$16 sps:$4 sm:$0xff]  }
 0x8c2   : > { %13280 = vmatpush1.bf16.msra.mxu0 %v21988_v50  ;;  %v22063_v50 = vld [vmem:[%s29044_s17 + $0x5a8] ss:$16 sps:$4 sm:$0xff]  }
 0x8c3   : > { %13452 = vmatpush1.bf16.msra.mxu1 %v21991_v12  ;;  %13281 = vmatprep.subr.bf16.mxu0 %v21996_v52  ;;  %v22068_v12 = vld [vmem:[%s29044_s17 + $0x5c4] ss:$16 sps:$4 sm:$0xff]   ;;  %v22071_v52 = vld [vmem:[%s29044_s17 + $0x5cc] ss:$16 sps:$4 sm:$0xff]  }
 0x8c4   : > { %13453 = vmatprep.subr.bf16.mxu1 %v21999_v53  ;;  %v22066_v53 = vld [vmem:[%s29044_s17 + $0x5c0] ss:$16 sps:$4 sm:$0xff]  }
 0x8c6   : > { %13282 = vmatpush1.bf16.msra.mxu0 %v21994_v55  ;;  %v22069_v55 = vld [vmem:[%s29044_s17 + $0x5c8] ss:$16 sps:$4 sm:$0xff]  }
 0x8c7   : > { %13454 = vmatpush1.bf16.msra.mxu1 %v21997_v57  ;;  %13283 = vmatprep.subr.bf16.mxu0 %v22002_v58  ;;  %v22074_v57 = vld [vmem:[%s29044_s17 + $0x5e4] ss:$16 sps:$4 sm:$0xff]   ;;  %v22077_v58 = vld [vmem:[%s29044_s17 + $0x5ec] ss:$16 sps:$4 sm:$0xff]  }
 0x8c8   : > { %13455 = vmatprep.subr.bf16.mxu1 %v22005_v61  ;;  %v11616_v61 = vrot.slane %v28026_v13, 1 }
 0x8ca   : > { %13284 = vmatpush1.bf16.msra.mxu0 %v22000_v0  ;;  %v22072_v0 = vld [vmem:[%s29044_s17 + $0x5e0] ss:$16 sps:$4 sm:$0xff]  }
 0x8cb   : > { %13456 = vmatpush1.bf16.msra.mxu1 %v22003_v62  ;;  %13285 = vmatprep.subr.bf16.mxu0 %v22008_v3  ;;  %v22075_v62 = vld [vmem:[%s29044_s17 + $0x5e8] ss:$16 sps:$4 sm:$0xff]   ;;  %v22080_v3 = vld [vmem:[%s29044_s17 + $0x604] ss:$16 sps:$4 sm:$0xff]  }
 0x8cc   : > { %13457 = vmatprep.subr.bf16.mxu1 %v22011_v14  ;;  %v11614_v14 = vrot.slane %v28038_v24, 1 }
 0x8ce   : > { %13286 = vmatpush1.bf16.msra.mxu0 %v22006_v15  ;;  %v22083_v15 = vld [vmem:[%s29044_s17 + $0x60c] ss:$16 sps:$4 sm:$0xff]  }
 0x8cf   : > { %13458 = vmatpush1.bf16.msra.mxu1 %v22009_v4  ;;  %13287 = vmatprep.subr.bf16.mxu0 %v22014_v6  ;;  %v22078_v4 = vld [vmem:[%s29044_s17 + $0x600] ss:$16 sps:$4 sm:$0xff]   ;;  %v11618_v6 = vsel %vm7762_vm4, %v11614_v14, %v11616_v61 }
 0x8d0   : > { %13459 = vmatprep.subr.bf16.mxu1 %v22017_v9  ;;  %v11620_v9 = vsel %vm7762_vm4, %v11616_v61, %v11614_v14  ;;  %v22143_v61 = vld [vmem:[%s29044_s17 + $0x74c] ss:$16 sps:$4 sm:$0xff]  }
 0x8d1   : > { %v22149_v14 = vld [vmem:[%s29044_s17 + $0x76c] ss:$16 sps:$4 sm:$0xff]  }
 0x8d2   : > { %13288 = vmatpush1.bf16.msra.mxu0 %v22012_v17  ;;  %v11629_v17 = vpack.c.bf16 %v28014_v63, %v28010_v54 }
 0x8d3   : > { %13460 = vmatpush1.bf16.msra.mxu1 %v22015_v19  ;;  %13289 = vmatprep.subr.bf16.mxu0 %v22020_v20  ;;  %v22081_v19 = vld [vmem:[%s29044_s17 + $0x608] ss:$16 sps:$4 sm:$0xff]   ;;  %v22086_v20 = vld [vmem:[%s29044_s17 + $0x624] ss:$16 sps:$4 sm:$0xff]  }
 0x8d4   : > { %13461 = vmatprep.subr.bf16.mxu1 %v22023_v11  ;;  %v19327_v11 = vpack.c.bf16 %v11620_v9, %v11618_v6  ;;  %v22152_v6 = vld [vmem:[%s29044_s17 + $0x784] ss:$16 sps:$4 sm:$0xff]   ;;  %v22155_v9 = vld [vmem:[%s29044_s17 + $0x78c] ss:$16 sps:$4 sm:$0xff]  }
 0x8d6   : > { %13290 = vmatpush1.bf16.msra.mxu0 %v22018_v21  ;;  %v22089_v21 = vld [vmem:[%s29044_s17 + $0x62c] ss:$16 sps:$4 sm:$0xff]  }
 0x8d7   : > { %13462 = vmatpush1.bf16.msra.mxu1 %v22021_v23  ;;  %13291 = vmatprep.subr.bf16.mxu0 %v22026_v25  ;;  %v22084_v23 = vld [vmem:[%s29044_s17 + $0x620] ss:$16 sps:$4 sm:$0xff]   ;;  %v22087_v25 = vld [vmem:[%s29044_s17 + $0x628] ss:$16 sps:$4 sm:$0xff]  }
 0x8d8   : > { %13463 = vmatprep.subr.bf16.mxu1 %v22029_v28  ;;  %v22092_v28 = vld [vmem:[%s29044_s17 + $0x644] ss:$16 sps:$4 sm:$0xff]  }
 0x8da   : > { %13292 = vmatpush1.bf16.msra.mxu0 %v22024_v29  ;;  %v22095_v29 = vld [vmem:[%s29044_s17 + $0x64c] ss:$16 sps:$4 sm:$0xff]  }
 0x8db   : > { %13464 = vmatpush1.bf16.msra.mxu1 %v22027_v42  ;;  %13293 = vmatprep.subr.bf16.mxu0 %v22032_v34  ;;  %v22090_v42 = vld [vmem:[%s29044_s17 + $0x640] ss:$16 sps:$4 sm:$0xff]   ;;  %v22093_v34 = vld [vmem:[%s29044_s17 + $0x648] ss:$16 sps:$4 sm:$0xff]  }
 0x8dc   : > { %13465 = vmatprep.subr.bf16.mxu1 %v22035_v56  ;;  %v22098_v56 = vld [vmem:[%s29044_s17 + $0x664] ss:$16 sps:$4 sm:$0xff]  }
 0x8de   : > { %13294 = vmatpush1.bf16.msra.mxu0 %v22030_v18  ;;  %v22101_v18 = vld [vmem:[%s29044_s17 + $0x66c] ss:$16 sps:$4 sm:$0xff]  }
 0x8df   : > { %13466 = vmatpush1.bf16.msra.mxu1 %v22033_v31  ;;  %13295 = vmatprep.subr.bf16.mxu0 %v22038_v33  ;;  %v22096_v31 = vld [vmem:[%s29044_s17 + $0x660] ss:$16 sps:$4 sm:$0xff]   ;;  %v22099_v33 = vld [vmem:[%s29044_s17 + $0x668] ss:$16 sps:$4 sm:$0xff]  }
 0x8e0   : > { %13467 = vmatprep.subr.bf16.mxu1 %v22041_v22  ;;  %v22104_v22 = vld [vmem:[%s29044_s17 + $0x684] ss:$16 sps:$4 sm:$0xff]  }
 0x8e2   : > { %13296 = vmatpush1.bf16.msra.mxu0 %v22036_v37  ;;  %v22107_v37 = vld [vmem:[%s29044_s17 + $0x68c] ss:$16 sps:$4 sm:$0xff]  }
 0x8e3   : > { %13468 = vmatpush1.bf16.msra.mxu1 %v22039_v26  ;;  %13297 = vmatprep.subr.bf16.mxu0 %v22044_v1  ;;  %v22102_v26 = vld [vmem:[%s29044_s17 + $0x680] ss:$16 sps:$4 sm:$0xff]   ;;  %v22105_v1 = vld [vmem:[%s29044_s17 + $0x688] ss:$16 sps:$4 sm:$0xff]  }
 0x8e4   : > { %13469 = vmatprep.subr.bf16.mxu1 %v22047_v35  ;;  %v22110_v35 = vld [vmem:[%s29044_s17 + $0x6a4] ss:$16 sps:$4 sm:$0xff]  }
 0x8e6   : > { %13298 = vmatpush1.bf16.msra.mxu0 %v22042_v36  ;;  %v22113_v36 = vld [vmem:[%s29044_s17 + $0x6ac] ss:$16 sps:$4 sm:$0xff]  }
 0x8e7   : > { %13470 = vmatpush1.bf16.msra.mxu1 %v22045_v32  ;;  %13299 = vmatprep.subr.bf16.mxu0 %v22050_v38  ;;  %v22108_v32 = vld [vmem:[%s29044_s17 + $0x6a0] ss:$16 sps:$4 sm:$0xff]   ;;  %v22111_v38 = vld [vmem:[%s29044_s17 + $0x6a8] ss:$16 sps:$4 sm:$0xff]  }
 0x8e8   : > { %13471 = vmatprep.subr.bf16.mxu1 %v22053_v39  ;;  %v22116_v39 = vld [vmem:[%s29044_s17 + $0x6c4] ss:$16 sps:$4 sm:$0xff]  }
 0x8ea   : > { %13300 = vmatpush1.bf16.msra.mxu0 %v22048_v51  ;;  %v22119_v51 = vld [vmem:[%s29044_s17 + $0x6cc] ss:$16 sps:$4 sm:$0xff]  }
 0x8eb   : > { %13472 = vmatpush1.bf16.msra.mxu1 %v22051_v41  ;;  %13301 = vmatprep.subr.bf16.mxu0 %v22056_v45  ;;  %v22114_v41 = vld [vmem:[%s29044_s17 + $0x6c0] ss:$16 sps:$4 sm:$0xff]   ;;  %v22117_v45 = vld [vmem:[%s29044_s17 + $0x6c8] ss:$16 sps:$4 sm:$0xff]  }
 0x8ec   : > { %13473 = vmatprep.subr.bf16.mxu1 %v22059_v44  ;;  %v22122_v44 = vld [vmem:[%s29044_s17 + $0x6e4] ss:$16 sps:$4 sm:$0xff]  }
 0x8ee   : > { %13302 = vmatpush1.bf16.msra.mxu0 %v22054_v46  ;;  %v22125_v46 = vld [vmem:[%s29044_s17 + $0x6ec] ss:$16 sps:$4 sm:$0xff]  }
 0x8ef   : > { %13474 = vmatpush1.bf16.msra.mxu1 %v22057_v47  ;;  %13303 = vmatprep.subr.bf16.mxu0 %v22062_v48  ;;  %v22120_v47 = vld [vmem:[%s29044_s17 + $0x6e0] ss:$16 sps:$4 sm:$0xff]   ;;  %v22123_v48 = vld [vmem:[%s29044_s17 + $0x6e8] ss:$16 sps:$4 sm:$0xff]  }
 0x8f0   : > { %13475 = vmatprep.subr.bf16.mxu1 %v22065_v49  ;;  %v22128_v49 = vld [vmem:[%s29044_s17 + $0x704] ss:$16 sps:$4 sm:$0xff]  }
 0x8f2   : > { %13304 = vmatpush1.bf16.msra.mxu0 %v22060_v16  ;;  %v22131_v16 = vld [vmem:[%s29044_s17 + $0x70c] ss:$16 sps:$4 sm:$0xff]  }
 0x8f3   : > { %13476 = vmatpush1.bf16.msra.mxu1 %v22063_v50  ;;  %13305 = vmatprep.subr.bf16.mxu0 %v22068_v12  ;;  %v22126_v50 = vld [vmem:[%s29044_s17 + $0x700] ss:$16 sps:$4 sm:$0xff]   ;;  %v22129_v12 = vld [vmem:[%s29044_s17 + $0x708] ss:$16 sps:$4 sm:$0xff]  }
 0x8f4   : > { %13477 = vmatprep.subr.bf16.mxu1 %v22071_v52  ;;  %v22134_v52 = vld [vmem:[%s29044_s17 + $0x724] ss:$16 sps:$4 sm:$0xff]  }
 0x8f6   : > { %13306 = vmatpush1.bf16.msra.mxu0 %v22066_v53  ;;  %v22137_v53 = vld [vmem:[%s29044_s17 + $0x72c] ss:$16 sps:$4 sm:$0xff]  }
 0x8f7   : > { %13478 = vmatpush1.bf16.msra.mxu1 %v22069_v55  ;;  %13307 = vmatprep.subr.bf16.mxu0 %v22074_v57  ;;  %v22132_v55 = vld [vmem:[%s29044_s17 + $0x720] ss:$16 sps:$4 sm:$0xff]   ;;  %v22135_v57 = vld [vmem:[%s29044_s17 + $0x728] ss:$16 sps:$4 sm:$0xff]  }
 0x8f8   : > { %13479 = vmatprep.subr.bf16.mxu1 %v22077_v58  ;;  %v22140_v58 = vld [vmem:[%s29044_s17 + $0x744] ss:$16 sps:$4 sm:$0xff]  }
 0x8fa   : > { %13308 = vmatpush1.bf16.msra.mxu0 %v22072_v0  ;;  %v22138_v0 = vld [vmem:[%s29044_s17 + $0x740] ss:$16 sps:$4 sm:$0xff]  }
 0x8fb   : > { %13480 = vmatpush1.bf16.msra.mxu1 %v22075_v62  ;;  %13320 = vmatprep.subr.bf16.mxu0 %v22080_v3  ;;  %v22141_v62 = vld [vmem:[%s29044_s17 + $0x748] ss:$16 sps:$4 sm:$0xff]   ;;  %v22146_v3 = vld [vmem:[%s29044_s17 + $0x764] ss:$16 sps:$4 sm:$0xff]  }
 0x8fc   : > { %13492 = vmatprep.subr.bf16.mxu1 %v22083_v15  ;;  %v22144_v15 = vld [vmem:[%s29044_s17 + $0x760] ss:$16 sps:$4 sm:$0xff]  }
 0x8fd   : > { %13310 = vmatmul.mubr.bf16.vlgmr.msra.gmra.mrb[16].mxu0 %v11629_v17 }
 0x8fe   : > { %13482 = vmatmul.mubr.bf16.vlgmr.msra.gmra.mrb[16].mxu1 %v11629_v17  ;;  %13321 = vmatpush1.bf16.msra.mxu0 %v22078_v4  ;;  %v22147_v4 = vld [vmem:[%s29044_s17 + $0x768] ss:$16 sps:$4 sm:$0xff]   ;;  %v22150_v17 = vld [vmem:[%s29044_s17 + $0x780] ss:$16 sps:$4 sm:$0xff]  }
 0x8ff   : > { %19328 = vmatprep.mubr.msk.bf16.mxu0 %vm26804_vm7, %v19327_v11  ;;  %13493 = vmatpush1.bf16.msra.mxu1 %v22081_v19  ;;  %v22153_v19 = vld [vmem:[%s29044_s17 + $0x788] ss:$16 sps:$4 sm:$0xff]  }
 0x900   : > { %19348 = vmatprep.mubr.msk.bf16.mxu1 %vm26804_vm7, %v19327_v11  ;;  %13322 = vmatprep.subr.bf16.mxu0 %v22086_v20  ;;  %v22158_v20 = vld [vmem:[%s29044_s17 + $0x7a4] ss:$16 sps:$4 sm:$0xff]   ;;  %v22161_v11 = vld [vmem:[%s29044_s17 + $0x7ac] ss:$16 sps:$4 sm:$0xff]  }
 0x901   : > { %13494 = vmatprep.subr.bf16.mxu1 %v22089_v21  ;;  %v22156_v21 = vld [vmem:[%s29044_s17 + $0x7a0] ss:$16 sps:$4 sm:$0xff]  }
 0x902   : > { %13323 = vmatpush1.bf16.msra.mxu0 %v22084_v23  ;;  %v22159_v23 = vld [vmem:[%s29044_s17 + $0x7a8] ss:$16 sps:$4 sm:$0xff]  }
 0x903   : > { %13495 = vmatpush1.bf16.msra.mxu1 %v22087_v25  ;;  %13324 = vmatprep.subr.bf16.mxu0 %v22092_v28  ;;  %v22164_v25 = vld [vmem:[%s29044_s17 + $0x7c4] ss:$16 sps:$4 sm:$0xff]   ;;  %v22167_v28 = vld [vmem:[%s29044_s17 + $0x7cc] ss:$16 sps:$4 sm:$0xff]  }
 0x904   : > { %13496 = vmatprep.subr.bf16.mxu1 %v22095_v29  ;;  %v22162_v29 = vld [vmem:[%s29044_s17 + $0x7c0] ss:$16 sps:$4 sm:$0xff]  }
 0x906   : > { %13325 = vmatpush1.bf16.msra.mxu0 %v22090_v42  ;;  %v22165_v42 = vld [vmem:[%s29044_s17 + $0x7c8] ss:$16 sps:$4 sm:$0xff]  }
 0x907   : > { %13497 = vmatpush1.bf16.msra.mxu1 %v22093_v34  ;;  %13326 = vmatprep.subr.bf16.mxu0 %v22098_v56  ;;  %v22170_v34 = vld [vmem:[%s29044_s17 + $0x7e4] ss:$16 sps:$4 sm:$0xff]   ;;  %v11615_v56 = vrot.slane %v28236_v40, 1 }
 0x908   : > { %13498 = vmatprep.subr.bf16.mxu1 %v22101_v18  ;;  %v22173_v18 = vld [vmem:[%s29044_s17 + $0x7ec] ss:$16 sps:$4 sm:$0xff]  }
 0x90a   : > { %13327 = vmatpush1.bf16.msra.mxu0 %v22096_v31  ;;  %v11613_v31 = vrot.slane %v28244_v43, 1 }
 0x90b   : > { %13499 = vmatpush1.bf16.msra.mxu1 %v22099_v33  ;;  %13328 = vmatprep.subr.bf16.mxu0 %v22104_v22  ;;  %v22168_v33 = vld [vmem:[%s29044_s17 + $0x7e0] ss:$16 sps:$4 sm:$0xff]   ;;  %v22171_v22 = vld [vmem:[%s29044_s17 + $0x7e8] ss:$16 sps:$4 sm:$0xff]  }
 0x90c   : > { %13500 = vmatprep.subr.bf16.mxu1 %v22107_v37  ;;  %v22176_v37 = vld [vmem:[#allocation2 + $0x4] ss:$16 sps:$4 sm:$0xff]  }
 0x90e   : > { %13329 = vmatpush1.bf16.msra.mxu0 %v22102_v26  ;;  %v11617_v26 = vsel %vm7762_vm4, %v11613_v31, %v11615_v56 }
 0x90f   : > { %13501 = vmatpush1.bf16.msra.mxu1 %v22105_v1  ;;  %13330 = vmatprep.subr.bf16.mxu0 %v22110_v35  ;;  %v11619_v1 = vsel %vm7762_vm4, %v11615_v56, %v11613_v31  ;;  %v22179_v35 = vld [vmem:[#allocation2 + $0xc] ss:$16 sps:$4 sm:$0xff]   ;;  %v22237_v31 = vld [vmem:[#allocation2 + $0x148] ss:$16 sps:$4 sm:$0xff]  }
 0x910   : > { %13502 = vmatprep.subr.bf16.mxu1 %v22113_v36  ;;  %v22174_v36 = vld [vmem:[#allocation2] ss:$16 sps:$4 sm:$0xff]   ;;  %v22239_v56 = vld [vmem:[#allocation2 + $0x14c] ss:$16 sps:$4 sm:$0xff]  }
 0x912   : > { %13331 = vmatpush1.bf16.msra.mxu0 %v22108_v32  ;;  %v19332_v32 = vpack.c.bf16 %v11619_v1, %v11617_v26  ;;  %v22243_v26 = vld [vmem:[#allocation2 + $0x168] ss:$16 sps:$4 sm:$0xff]   ;;  %v22248_v1 = vld [vmem:[#allocation2 + $0x184] ss:$16 sps:$4 sm:$0xff]  }
 0x913   : > { %13503 = vmatpush1.bf16.msra.mxu1 %v22111_v38  ;;  %13332 = vmatprep.subr.bf16.mxu0 %v22116_v39  ;;  %v22177_v38 = vld [vmem:[#allocation2 + $0x8] ss:$16 sps:$4 sm:$0xff]   ;;  %v22182_v39 = vld [vmem:[#allocation2 + $0x24] ss:$16 sps:$4 sm:$0xff]  }
 0x914   : > { %13504 = vmatprep.subr.bf16.mxu1 %v22119_v51  ;;  %v22185_v51 = vld [vmem:[#allocation2 + $0x2c] ss:$16 sps:$4 sm:$0xff]  }
 0x916   : > { %13333 = vmatpush1.bf16.msra.mxu0 %v22114_v41  ;;  %v22180_v41 = vld [vmem:[#allocation2 + $0x20] ss:$16 sps:$4 sm:$0xff]  }
 0x917   : > { %13505 = vmatpush1.bf16.msra.mxu1 %v22117_v45  ;;  %13334 = vmatprep.subr.bf16.mxu0 %v22122_v44  ;;  %v22183_v45 = vld [vmem:[#allocation2 + $0x28] ss:$16 sps:$4 sm:$0xff]   ;;  %v22188_v44 = vld [vmem:[#allocation2 + $0x44] ss:$16 sps:$4 sm:$0xff]  }
 0x918   : > { %13506 = vmatprep.subr.bf16.mxu1 %v22125_v46  ;;  %v22191_v46 = vld [vmem:[#allocation2 + $0x4c] ss:$16 sps:$4 sm:$0xff]  }
 0x91a   : > { %13335 = vmatpush1.bf16.msra.mxu0 %v22120_v47  ;;  %v22186_v47 = vld [vmem:[#allocation2 + $0x40] ss:$16 sps:$4 sm:$0xff]  }
 0x91b   : > { %13507 = vmatpush1.bf16.msra.mxu1 %v22123_v48  ;;  %13336 = vmatprep.subr.bf16.mxu0 %v22128_v49  ;;  %v22189_v48 = vld [vmem:[#allocation2 + $0x48] ss:$16 sps:$4 sm:$0xff]   ;;  %v22194_v49 = vld [vmem:[#allocation2 + $0x64] ss:$16 sps:$4 sm:$0xff]  }
 0x91c   : > { %13508 = vmatprep.subr.bf16.mxu1 %v22131_v16  ;;  %v22197_v16 = vld [vmem:[#allocation2 + $0x6c] ss:$16 sps:$4 sm:$0xff]  }
 0x91e   : > { %13337 = vmatpush1.bf16.msra.mxu0 %v22126_v50  ;;  %v22192_v50 = vld [vmem:[#allocation2 + $0x60] ss:$16 sps:$4 sm:$0xff]  }
 0x91f   : > { %13509 = vmatpush1.bf16.msra.mxu1 %v22129_v12  ;;  %13338 = vmatprep.subr.bf16.mxu0 %v22134_v52  ;;  %v22195_v12 = vld [vmem:[#allocation2 + $0x68] ss:$16 sps:$4 sm:$0xff]   ;;  %v22200_v52 = vld [vmem:[#allocation2 + $0x84] ss:$16 sps:$4 sm:$0xff]  }
 0x920   : > { %13510 = vmatprep.subr.bf16.mxu1 %v22137_v53  ;;  %v22203_v53 = vld [vmem:[#allocation2 + $0x8c] ss:$16 sps:$4 sm:$0xff]  }
 0x922   : > { %13339 = vmatpush1.bf16.msra.mxu0 %v22132_v55  ;;  %v22198_v55 = vld [vmem:[#allocation2 + $0x80] ss:$16 sps:$4 sm:$0xff]  }
 0x923   : > { %13511 = vmatpush1.bf16.msra.mxu1 %v22135_v57  ;;  %13340 = vmatprep.subr.bf16.mxu0 %v22140_v58  ;;  %v22201_v57 = vld [vmem:[#allocation2 + $0x88] ss:$16 sps:$4 sm:$0xff]   ;;  %v22206_v58 = vld [vmem:[#allocation2 + $0xa4] ss:$16 sps:$4 sm:$0xff]  }
 0x924   : > { %13512 = vmatprep.subr.bf16.mxu1 %v22143_v61  ;;  %v22209_v61 = vld [vmem:[#allocation2 + $0xac] ss:$16 sps:$4 sm:$0xff]  }
 0x926   : > { %13341 = vmatpush1.bf16.msra.mxu0 %v22138_v0  ;;  %v22204_v0 = vld [vmem:[#allocation2 + $0xa0] ss:$16 sps:$4 sm:$0xff]  }
 0x927   : > { %13513 = vmatpush1.bf16.msra.mxu1 %v22141_v62  ;;  %13342 = vmatprep.subr.bf16.mxu0 %v22146_v3  ;;  %v22207_v62 = vld [vmem:[#allocation2 + $0xa8] ss:$16 sps:$4 sm:$0xff]   ;;  %v22212_v3 = vld [vmem:[#allocation2 + $0xc4] ss:$16 sps:$4 sm:$0xff]  }
 0x928   : > { %13514 = vmatprep.subr.bf16.mxu1 %v22149_v14  ;;  %v22215_v14 = vld [vmem:[#allocation2 + $0xcc] ss:$16 sps:$4 sm:$0xff]  }
 0x92a   : > { %13343 = vmatpush1.bf16.msra.mxu0 %v22144_v15  ;;  %v22210_v15 = vld [vmem:[#allocation2 + $0xc0] ss:$16 sps:$4 sm:$0xff]  }
 0x92b   : > { %13515 = vmatpush1.bf16.msra.mxu1 %v22147_v4  ;;  %13344 = vmatprep.subr.bf16.mxu0 %v22152_v6  ;;  %v22213_v4 = vld [vmem:[#allocation2 + $0xc8] ss:$16 sps:$4 sm:$0xff]   ;;  %v22218_v6 = vld [vmem:[#allocation2 + $0xe4] ss:$16 sps:$4 sm:$0xff]  }
 0x92c   : > { %13516 = vmatprep.subr.bf16.mxu1 %v22155_v9  ;;  %v22221_v9 = vld [vmem:[#allocation2 + $0xec] ss:$16 sps:$4 sm:$0xff]  }
 0x92e   : > { %13345 = vmatpush1.bf16.msra.mxu0 %v22150_v17  ;;  %v22216_v17 = vld [vmem:[#allocation2 + $0xe0] ss:$16 sps:$4 sm:$0xff]  }
 0x92f   : > { %13517 = vmatpush1.bf16.msra.mxu1 %v22153_v19  ;;  %13346 = vmatprep.subr.bf16.mxu0 %v22158_v20  ;;  %v22219_v19 = vld [vmem:[#allocation2 + $0xe8] ss:$16 sps:$4 sm:$0xff]   ;;  %v22224_v20 = vld [vmem:[#allocation2 + $0x104] ss:$16 sps:$4 sm:$0xff]  }
 0x930   : > { %13518 = vmatprep.subr.bf16.mxu1 %v22161_v11  ;;  %v22227_v11 = vld [vmem:[#allocation2 + $0x10c] ss:$16 sps:$4 sm:$0xff]  }
 0x932   : > { %13347 = vmatpush1.bf16.msra.mxu0 %v22156_v21  ;;  %v22222_v21 = vld [vmem:[#allocation2 + $0x100] ss:$16 sps:$4 sm:$0xff]  }
 0x933   : > { %13519 = vmatpush1.bf16.msra.mxu1 %v22159_v23  ;;  %13348 = vmatprep.subr.bf16.mxu0 %v22164_v25  ;;  %v22225_v23 = vld [vmem:[#allocation2 + $0x108] ss:$16 sps:$4 sm:$0xff]   ;;  %v22230_v25 = vld [vmem:[#allocation2 + $0x124] ss:$16 sps:$4 sm:$0xff]  }
 0x934   : > { %13520 = vmatprep.subr.bf16.mxu1 %v22167_v28  ;;  %v22233_v28 = vld [vmem:[#allocation2 + $0x12c] ss:$16 sps:$4 sm:$0xff]  }
 0x936   : > { %13349 = vmatpush1.bf16.msra.mxu0 %v22162_v29  ;;  %v22228_v29 = vld [vmem:[#allocation2 + $0x120] ss:$16 sps:$4 sm:$0xff]  }
 0x937   : > { %13521 = vmatpush1.bf16.msra.mxu1 %v22165_v42  ;;  %13350 = vmatprep.subr.bf16.mxu0 %v22170_v34  ;;  %v22231_v42 = vld [vmem:[#allocation2 + $0x128] ss:$16 sps:$4 sm:$0xff]   ;;  %v22236_v34 = vld [vmem:[#allocation2 + $0x144] ss:$16 sps:$4 sm:$0xff]  }
 0x938   : > { %13522 = vmatprep.subr.bf16.mxu1 %v22173_v18  ;;  %v22234_v18 = vld [vmem:[#allocation2 + $0x140] ss:$16 sps:$4 sm:$0xff]  }
 0x93a   : > { %13351 = vmatpush1.bf16.msra.mxu0 %v22168_v33  ;;  %v22242_v33 = vld [vmem:[#allocation2 + $0x164] ss:$16 sps:$4 sm:$0xff]  }
 0x93b   : > { %13523 = vmatpush1.bf16.msra.mxu1 %v22171_v22  ;;  %15133 = vmatprep.subr.bf16.mxu0 %v22176_v37  ;;  %v22245_v22 = vld [vmem:[#allocation2 + $0x16c] ss:$16 sps:$4 sm:$0xff]   ;;  %v22240_v37 = vld [vmem:[#allocation2 + $0x160] ss:$16 sps:$4 sm:$0xff]  }
 0x93c   : > { %15305 = vmatprep.subr.bf16.mxu1 %v22179_v35  ;;  %v22251_v35 = vld [vmem:[#allocation2 + $0x18c] ss:$16 sps:$4 sm:$0xff]  }
 0x93d   : > { %19333 = vmatmul.mubr.msk.bf16.vlgmr.msra.gmra.mrb[16].mxu0 %vm26804_vm7, %v19332_v32 }
 0x93e   : > { %19353 = vmatmul.mubr.msk.bf16.vlgmr.msra.gmra.mrb[16].mxu1 %vm26804_vm7, %v19332_v32  ;;  %15134 = vmatpush1.bf16.msra.mxu0 %v22174_v36  ;;  %v22246_v36 = vld [vmem:[#allocation2 + $0x180] ss:$16 sps:$4 sm:$0xff]   ;;  %v22249_v32 = vld [vmem:[#allocation2 + $0x188] ss:$16 sps:$4 sm:$0xff]  }
 0x93f   : > { %15306 = vmatpush1.bf16.msra.mxu1 %v22177_v38  ;;  %15135 = vmatprep.subr.bf16.mxu0 %v22182_v39  ;;  %v22254_v38 = vld [vmem:[#allocation2 + $0x1a4] ss:$16 sps:$4 sm:$0xff]   ;;  %v22257_v39 = vld [vmem:[#allocation2 + $0x1ac] ss:$16 sps:$4 sm:$0xff]  }
 0x940   : > { %15307 = vmatprep.subr.bf16.mxu1 %v22185_v51  ;;  %v22252_v51 = vld [vmem:[#allocation2 + $0x1a0] ss:$16 sps:$4 sm:$0xff]  }
 0x942   : > { %15136 = vmatpush1.bf16.msra.mxu0 %v22180_v41  ;;  %v22255_v41 = vld [vmem:[#allocation2 + $0x1a8] ss:$16 sps:$4 sm:$0xff]  }
 0x943   : > { %15308 = vmatpush1.bf16.msra.mxu1 %v22183_v45  ;;  %15137 = vmatprep.subr.bf16.mxu0 %v22188_v44  ;;  %v22260_v45 = vld [vmem:[#allocation2 + $0x1c4] ss:$16 sps:$4 sm:$0xff]   ;;  %v22263_v44 = vld [vmem:[#allocation2 + $0x1cc] ss:$16 sps:$4 sm:$0xff]  }
 0x944   : > { %15309 = vmatprep.subr.bf16.mxu1 %v22191_v46  ;;  %v22258_v46 = vld [vmem:[#allocation2 + $0x1c0] ss:$16 sps:$4 sm:$0xff]  }
 0x946   : > { %15138 = vmatpush1.bf16.msra.mxu0 %v22186_v47  ;;  %v22261_v47 = vld [vmem:[#allocation2 + $0x1c8] ss:$16 sps:$4 sm:$0xff]  }
 0x947   : > { %15310 = vmatpush1.bf16.msra.mxu1 %v22189_v48  ;;  %15139 = vmatprep.subr.bf16.mxu0 %v22194_v49  ;;  %v22266_v48 = vld [vmem:[#allocation2 + $0x1e4] ss:$16 sps:$4 sm:$0xff]   ;;  %v22269_v49 = vld [vmem:[#allocation2 + $0x1ec] ss:$16 sps:$4 sm:$0xff]  }
 0x948   : > { %15311 = vmatprep.subr.bf16.mxu1 %v22197_v16  ;;  %v22264_v16 = vld [vmem:[#allocation2 + $0x1e0] ss:$16 sps:$4 sm:$0xff]  }
 0x94a   : > { %15140 = vmatpush1.bf16.msra.mxu0 %v22192_v50  ;;  %v22267_v50 = vld [vmem:[#allocation2 + $0x1e8] ss:$16 sps:$4 sm:$0xff]  }
 0x94b   : > { %15312 = vmatpush1.bf16.msra.mxu1 %v22195_v12  ;;  %15141 = vmatprep.subr.bf16.mxu0 %v22200_v52  ;;  %v22272_v12 = vld [vmem:[#allocation2 + $0x204] ss:$16 sps:$4 sm:$0xff]   ;;  %v22275_v52 = vld [vmem:[#allocation2 + $0x20c] ss:$16 sps:$4 sm:$0xff]  }
 0x94c   : > { %15313 = vmatprep.subr.bf16.mxu1 %v22203_v53  ;;  %v11889_v53 = vld [vmem:[%s29047_s30] sm:$0xf]  ;;  %s29051_s30 = sld [smem:[#allocation41_spill]] }
 0x94e   : > { %15142 = vmatpush1.bf16.msra.mxu0 %v22198_v55  ;;  %v11894_v55 = vrot.slane %v11889_v53, %v24892_v5 }
 0x94f   : > { %15314 = vmatpush1.bf16.msra.mxu1 %v22201_v57  ;;  %15143 = vmatprep.subr.bf16.mxu0 %v22206_v58  ;;  %v11902_v57 = vrot.slane %v11889_v53, %v24895_v7  ;;  %v11898_v58 = vrot.slane %v11889_v53, %v24898_v8 }
 0x950   : > { %15315 = vmatprep.subr.bf16.mxu1 %v22209_v61  ;;  %v11906_v61 = vrot.slane %v11889_v53, %v24901_v10 }
 0x952   : > { %15144 = vmatpush1.bf16.msra.mxu0 %v22204_v0 }
 0x953   : > { %15316 = vmatpush1.bf16.msra.mxu1 %v22207_v62  ;;  %15145 = vmatprep.subr.bf16.mxu0 %v22212_v3 }
 0x954   : > { %15317 = vmatprep.subr.bf16.mxu1 %v22215_v14 }
 0x956   : > { %15146 = vmatpush1.bf16.msra.mxu0 %v22210_v15 }
 0x957   : > { %15318 = vmatpush1.bf16.msra.mxu1 %v22213_v4  ;;  %15147 = vmatprep.subr.bf16.mxu0 %v22218_v6 }
 0x958   : > { %15319 = vmatprep.subr.bf16.mxu1 %v22221_v9 }
 0x95a   : > { %15148 = vmatpush1.bf16.msra.mxu0 %v22216_v17 }
 0x95b   : > { %15320 = vmatpush1.bf16.msra.mxu1 %v22219_v19  ;;  %15149 = vmatprep.subr.bf16.mxu0 %v22224_v20 }
 0x95c   : > { %15321 = vmatprep.subr.bf16.mxu1 %v22227_v11 }
 0x95e   : > { %15150 = vmatpush1.bf16.msra.mxu0 %v22222_v21 }
 0x95f   : > { %15322 = vmatpush1.bf16.msra.mxu1 %v22225_v23  ;;  %15151 = vmatprep.subr.bf16.mxu0 %v22230_v25 }
 0x960   : > { %15323 = vmatprep.subr.bf16.mxu1 %v22233_v28 }
 0x962   : > { %15152 = vmatpush1.bf16.msra.mxu0 %v22228_v29 }
 0x963   : > { %15324 = vmatpush1.bf16.msra.mxu1 %v22231_v42  ;;  %15153 = vmatprep.subr.bf16.mxu0 %v22236_v34 }
 0x964   : > { %15325 = vmatprep.subr.bf16.mxu1 %v22239_v56 }
 0x966   : > { %15154 = vmatpush1.bf16.msra.mxu0 %v22234_v18 }
 0x967   : > { %15326 = vmatpush1.bf16.msra.mxu1 %v22237_v31  ;;  %15155 = vmatprep.subr.bf16.mxu0 %v22242_v33 }
 0x968   : > { %15327 = vmatprep.subr.bf16.mxu1 %v22245_v22 }
 0x96a   : > { %15156 = vmatpush1.bf16.msra.mxu0 %v22240_v37 }
 0x96b   : > { %15328 = vmatpush1.bf16.msra.mxu1 %v22243_v26  ;;  %15157 = vmatprep.subr.bf16.mxu0 %v22248_v1 }
 0x96c   : > { %15329 = vmatprep.subr.bf16.mxu1 %v22251_v35 }
 0x96e   : > { %15158 = vmatpush1.bf16.msra.mxu0 %v22246_v36 }
 0x96f   : > { %15330 = vmatpush1.bf16.msra.mxu1 %v22249_v32  ;;  %15159 = vmatprep.subr.bf16.mxu0 %v22254_v38 }
 0x970   : > { %15331 = vmatprep.subr.bf16.mxu1 %v22257_v39 }
 0x972   : > { %15160 = vmatpush1.bf16.msra.mxu0 %v22252_v51 }
 0x973   : > { %15332 = vmatpush1.bf16.msra.mxu1 %v22255_v41  ;;  %15161 = vmatprep.subr.bf16.mxu0 %v22260_v45 }
 0x974   : > { %15333 = vmatprep.subr.bf16.mxu1 %v22263_v44 }
 0x976   : > { %15162 = vmatpush1.bf16.msra.mxu0 %v22258_v46 }
 0x977   : > { %15334 = vmatpush1.bf16.msra.mxu1 %v22261_v47  ;;  %15163 = vmatprep.subr.bf16.mxu0 %v22266_v48 }
 0x978   : > { %15335 = vmatprep.subr.bf16.mxu1 %v22269_v49 }
 0x97a   : > { %15164 = vmatpush1.bf16.msra.mxu0 %v22264_v16 }
 0x97b   : > { %15336 = vmatpush1.bf16.msra.mxu1 %v22267_v50  ;;  %15176 = vmatprep.subr.bf16.mxu0 %v22272_v12 }
 0x97c   : > { %15348 = vmatprep.subr.bf16.mxu1 %v22275_v52 }
 0xa10   : > { %v13354_v0 = vpop.f32.mrb[16].mxu0 }
 0xa11   : > { %v20205_v62 = vadd.f32 %v13354_v0, %v11894_v55  ;;  %v13526_v3 = vpop.f32.mrb[16].mxu1  ;;  %v13356_v14 = vpop.f32.mrb[17].mxu0 }
 0xa12   : > { %v20209_v15 = vadd.f32 %v13526_v3, %v11902_v57  ;;  %v20206_v4 = vadd.f32 %v13356_v14, %v11898_v58  ;;  %v13528_v6 = vpop.f32.mrb[17].mxu1  ;;  %v13358_v9 = vpop.f32.mrb[18].mxu0  ;;  %v22281_v3 = vld [vmem:[#allocation2 + $0x22c] ss:$16 sps:$4 sm:$0xff]   ;;  %v22276_v14 = vld [vmem:[#allocation2 + $0x220] ss:$16 sps:$4 sm:$0xff]  }
 0xa13   : > { %v13535_v17 = vmax.f32 %v20205_v62, 0.0  ;;  %v20210_v19 = vadd.f32 %v13528_v6, %v11906_v61  ;;  %v20207_v20 = vadd.f32 %v13358_v9, %v11894_v55  ;;  %v13530_v11 = vpop.f32.mrb[18].mxu1  ;;  %v13360_v21 = vpop.f32.mrb[19].mxu0  ;;  %v22278_v62 = vld [vmem:[#allocation2 + $0x224] ss:$16 sps:$4 sm:$0xff]  }
 0xa14   : > { %v13537_v23 = vmax.f32 %v20209_v15, 0.0  ;;  %v13536_v25 = vmax.f32 %v20206_v4, 0.0  ;;  %v20211_v28 = vadd.f32 %v13530_v11, %v11902_v57  ;;  %v20208_v29 = vadd.f32 %v13360_v21, %v11898_v58  ;;  %v13532_v42 = vpop.f32.mrb[19].mxu1  ;;  %v22270_v58 = vld [vmem:[#allocation2 + $0x200] ss:$16 sps:$4 sm:$0xff]  }
 0xa15   : > { %v13555_v34 = vrot.slane %v13535_v17, 1  ;;  %v13538_v56 = vmax.f32 %v20210_v19, 0.0  ;;  %v13539_v18 = vmax.f32 %v20207_v20, 0.0  ;;  %v20212_v31 = vadd.f32 %v13532_v42, %v11906_v61  ;;  %v22273_v61 = vld [vmem:[#allocation2 + $0x208] ss:$16 sps:$4 sm:$0xff]  }
 0xa16   : > { %v13543_v33 = vrot.slane %v13537_v23, 7  ;;  %v13556_v22 = vrot.slane %v13536_v25, 1  ;;  %v13541_v37 = vmax.f32 %v20211_v28, 0.0  ;;  %v13540_v26 = vmax.f32 %v20208_v29, 0.0  ;;  %v22279_v15 = vld [vmem:[#allocation2 + $0x228] ss:$16 sps:$4 sm:$0xff]  }
 0xa17   : > { %v13544_v1 = vrot.slane %v13538_v56, 7  ;;  %v13557_v35 = vrot.slane %v13539_v18, 1  ;;  %v28657_v36 = vpack.c.bf16 %v13539_v18, %v13535_v17  ;;  %v13542_v32 = vmax.f32 %v20212_v31, 0.0  ;;  %v22284_v4 = vld [vmem:[#allocation2 + $0x244] ss:$16 sps:$4 sm:$0xff]  }
 0xa18   : > { %v13545_v38 = vrot.slane %v13541_v37, 7  ;;  %v28659_v39 = vpack.c.bf16 %v13541_v37, %v13537_v23  ;;  %v13558_v51 = vrot.slane %v13540_v26, 1  ;;  %v13570_v41 = vpack.c.bf16 %v13540_v26, %v13536_v25  ;;  %v22287_v6 = vld [vmem:[#allocation2 + $0x24c] ss:$16 sps:$4 sm:$0xff]   ;;  %v22282_v9 = vld [vmem:[#allocation2 + $0x240] ss:$16 sps:$4 sm:$0xff]  }
 0xa19   : > { %v13559_v45 = vsel %vm7762_vm4, %v13555_v34, %v13557_v35  ;;  %v13561_v44 = vsel %vm7762_vm4, %v13557_v35, %v13555_v34  ;;  %v13546_v46 = vrot.slane %v13542_v32, 7  ;;  %v28665_v47 = vpack.c.bf16 %v13542_v32, %v13538_v56  ;;  %v22285_v17 = vld [vmem:[#allocation2 + $0x248] ss:$16 sps:$4 sm:$0xff]   ;;  %v22290_v19 = vld [vmem:[#allocation2 + $0x264] ss:$16 sps:$4 sm:$0xff]  }
 0xa1a   : > { %v28667_v48 = vpack.c.bf16 %v13561_v44, %v13559_v45  ;;  %v13547_v49 = vsel %vm5320_vm2, %v13543_v33, %v13545_v38  ;;  %v13549_v16 = vsel %vm5320_vm2, %v13545_v38, %v13543_v33  ;;  %v13560_v50 = vsel %vm7762_vm4, %v13556_v22, %v13558_v51  ;;  %v22293_v20 = vld [vmem:[#allocation2 + $0x26c] ss:$16 sps:$4 sm:$0xff]   ;;  %v22288_v11 = vld [vmem:[#allocation2 + $0x260] ss:$16 sps:$4 sm:$0xff]   ;;  %v22291_v21 = vld [vmem:[#allocation2 + $0x268] ss:$16 sps:$4 sm:$0xff]  }
 0xa1b   : > { %v19618_v12 = vpack.c.bf16 %v13547_v49, %v13549_v16  ;;  %v13562_v52 = vsel %vm7762_vm4, %v13558_v51, %v13556_v22  ;;  %v13548_v53 = vsel %vm5320_vm2, %v13544_v1, %v13546_v46  ;;  %v13550_v55 = vsel %vm5320_vm2, %v13546_v46, %v13544_v1  ;;  %v22296_v23 = vld [vmem:[#allocation2 + $0x284] ss:$16 sps:$4 sm:$0xff]   ;;  %v22299_v25 = vld [vmem:[#allocation2 + $0x28c] ss:$16 sps:$4 sm:$0xff]   ;;  %v22294_v28 = vld [vmem:[#allocation2 + $0x280] ss:$16 sps:$4 sm:$0xff]  }
 0xa1c   : > { %v19613_v57 = vpack.c.bf16 %v13548_v53, %v13550_v55  ;;  %v28681_v0 = vpack.c.bf16 %v13562_v52, %v13560_v50  ;;  %v22297_v29 = vld [vmem:[#allocation2 + $0x288] ss:$16 sps:$4 sm:$0xff]   ;;  %v22302_v42 = vld [vmem:[#allocation2 + $0x2a4] ss:$16 sps:$4 sm:$0xff]   ;;  %v22305_v34 = vld [vmem:[#allocation2 + $0x2ac] ss:$16 sps:$4 sm:$0xff]  }
 0xa1d   : > { %v22300_v56 = vld [vmem:[#allocation2 + $0x2a0] ss:$16 sps:$4 sm:$0xff]   ;;  %v22303_v18 = vld [vmem:[#allocation2 + $0x2a8] ss:$16 sps:$4 sm:$0xff]   ;;  %v22308_v31 = vld [vmem:[#allocation2 + $0x2c4] ss:$16 sps:$4 sm:$0xff]  }
 0xa1e   : > { %19614 = vmatprep.mubr.msk.bf16.mxu0 %vm25368_vm3, %v19613_v57  ;;  %19634 = vmatprep.mubr.msk.bf16.mxu1 %vm25368_vm3, %v19613_v57  ;;  %v22311_v33 = vld [vmem:[#allocation2 + $0x2cc] ss:$16 sps:$4 sm:$0xff]   ;;  %v22306_v22 = vld [vmem:[#allocation2 + $0x2c0] ss:$16 sps:$4 sm:$0xff]   ;;  %v22309_v37 = vld [vmem:[#allocation2 + $0x2c8] ss:$16 sps:$4 sm:$0xff]  }
 0xa1f   : > { %19619 = vmatmul.mubr.msk.bf16.vlgmr.msra.gmra.mrb[20].mxu0 %vm25368_vm3, %v19618_v12  ;;  %19639 = vmatmul.mubr.msk.bf16.vlgmr.msra.gmra.mrb[20].mxu1 %vm25368_vm3, %v19618_v12  ;;  %v22314_v26 = vld [vmem:[#allocation2 + $0x2e4] ss:$16 sps:$4 sm:$0xff]   ;;  %v22317_v1 = vld [vmem:[#allocation2 + $0x2ec] ss:$16 sps:$4 sm:$0xff]   ;;  %v22312_v35 = vld [vmem:[#allocation2 + $0x2e0] ss:$16 sps:$4 sm:$0xff]  }
 0xa20   : > { %15177 = vmatpush1.bf16.msra.mxu0 %v22270_v58  ;;  %15349 = vmatpush1.bf16.msra.mxu1 %v22273_v61  ;;  %v22315_v32 = vld [vmem:[#allocation2 + $0x2e8] ss:$16 sps:$4 sm:$0xff]   ;;  %v22320_v38 = vld [vmem:[#allocation2 + $0x304] ss:$16 sps:$4 sm:$0xff]   ;;  %v22323_v51 = vld [vmem:[#allocation2 + $0x30c] ss:$16 sps:$4 sm:$0xff]  }
 0xa21   : > { %15208 = vmatprep.mubr.bf16.mxu0 %v13570_v41  ;;  %15380 = vmatprep.mubr.bf16.mxu1 %v13570_v41  ;;  %v22318_v41 = vld [vmem:[#allocation2 + $0x300] ss:$16 sps:$4 sm:$0xff]   ;;  %v22321_v45 = vld [vmem:[#allocation2 + $0x308] ss:$16 sps:$4 sm:$0xff]   ;;  %v22326_v44 = vld [vmem:[#allocation2 + $0x324] ss:$16 sps:$4 sm:$0xff]  }
 0xa22   : > { %15178 = vmatprep.subr.bf16.mxu0 %v22278_v62  ;;  %15350 = vmatprep.subr.bf16.mxu1 %v22281_v3  ;;  %v22329_v46 = vld [vmem:[#allocation2 + $0x32c] ss:$16 sps:$4 sm:$0xff]   ;;  %v22324_v49 = vld [vmem:[#allocation2 + $0x320] ss:$16 sps:$4 sm:$0xff]   ;;  %v22327_v16 = vld [vmem:[#allocation2 + $0x328] ss:$16 sps:$4 sm:$0xff]  }
 0xa23   : > { %v22332_v50 = vld [vmem:[#allocation2 + $0x344] ss:$16 sps:$4 sm:$0xff]   ;;  %v22335_v12 = vld [vmem:[#allocation2 + $0x34c] ss:$16 sps:$4 sm:$0xff]   ;;  %v22330_v52 = vld [vmem:[#allocation2 + $0x340] ss:$16 sps:$4 sm:$0xff]  }
 0xa24   : > { %15179 = vmatpush1.bf16.msra.mxu0 %v22276_v14  ;;  %15351 = vmatpush1.bf16.msra.mxu1 %v22279_v15  ;;  %v22333_v53 = vld [vmem:[#allocation2 + $0x348] ss:$16 sps:$4 sm:$0xff]   ;;  %v22338_v55 = vld [vmem:[#allocation2 + $0x364] ss:$16 sps:$4 sm:$0xff]   ;;  %v22341_v57 = vld [vmem:[#allocation2 + $0x36c] ss:$16 sps:$4 sm:$0xff]  }
 0xa25   : > { %15180 = vmatprep.subr.bf16.mxu0 %v22284_v4  ;;  %15352 = vmatprep.subr.bf16.mxu1 %v22287_v6  ;;  %v22336_v58 = vld [vmem:[#allocation2 + $0x360] ss:$16 sps:$4 sm:$0xff]   ;;  %v22339_v61 = vld [vmem:[#allocation2 + $0x368] ss:$16 sps:$4 sm:$0xff]   ;;  %v22344_v62 = vld [vmem:[#allocation2 + $0x384] ss:$16 sps:$4 sm:$0xff]  }
 0xa26   : > { %v22347_v3 = vld [vmem:[#allocation2 + $0x38c] ss:$16 sps:$4 sm:$0xff]   ;;  %v22342_v14 = vld [vmem:[#allocation2 + $0x380] ss:$16 sps:$4 sm:$0xff]   ;;  %v22345_v15 = vld [vmem:[#allocation2 + $0x388] ss:$16 sps:$4 sm:$0xff]  }
 0xa27   : > { %v22350_v4 = vld [vmem:[#allocation2 + $0x3a4] ss:$16 sps:$4 sm:$0xff]   ;;  %v22353_v6 = vld [vmem:[#allocation2 + $0x3ac] ss:$16 sps:$4 sm:$0xff]  }
 0xa28   : > { %15181 = vmatpush1.bf16.msra.mxu0 %v22282_v9  ;;  %15353 = vmatpush1.bf16.msra.mxu1 %v22285_v17  ;;  %v22348_v9 = vld [vmem:[#allocation2 + $0x3a0] ss:$16 sps:$4 sm:$0xff]   ;;  %v22351_v17 = vld [vmem:[#allocation2 + $0x3a8] ss:$16 sps:$4 sm:$0xff]  }
 0xa29   : > { %15182 = vmatprep.subr.bf16.mxu0 %v22290_v19  ;;  %15354 = vmatprep.subr.bf16.mxu1 %v22293_v20  ;;  %v22356_v19 = vld [vmem:[#allocation2 + $0x3c4] ss:$16 sps:$4 sm:$0xff]   ;;  %v22359_v20 = vld [vmem:[#allocation2 + $0x3cc] ss:$16 sps:$4 sm:$0xff]  }
 0xa2c   : > { %15183 = vmatpush1.bf16.msra.mxu0 %v22288_v11  ;;  %15355 = vmatpush1.bf16.msra.mxu1 %v22291_v21  ;;  %v22354_v11 = vld [vmem:[#allocation2 + $0x3c0] ss:$16 sps:$4 sm:$0xff]   ;;  %v22357_v21 = vld [vmem:[#allocation2 + $0x3c8] ss:$16 sps:$4 sm:$0xff]  }
 0xa2d   : > { %15184 = vmatprep.subr.bf16.mxu0 %v22296_v23  ;;  %15356 = vmatprep.subr.bf16.mxu1 %v22299_v25  ;;  %v22362_v23 = vld [vmem:[#allocation2 + $0x3e4] ss:$16 sps:$4 sm:$0xff]   ;;  %v22365_v25 = vld [vmem:[#allocation2 + $0x3ec] ss:$16 sps:$4 sm:$0xff]  }
 0xa30   : > { %15185 = vmatpush1.bf16.msra.mxu0 %v22294_v28  ;;  %15357 = vmatpush1.bf16.msra.mxu1 %v22297_v29  ;;  %v22360_v28 = vld [vmem:[#allocation2 + $0x3e0] ss:$16 sps:$4 sm:$0xff]   ;;  %v22363_v29 = vld [vmem:[#allocation2 + $0x3e8] ss:$16 sps:$4 sm:$0xff]  }
 0xa31   : > { %15186 = vmatprep.subr.bf16.mxu0 %v22302_v42  ;;  %15358 = vmatprep.subr.bf16.mxu1 %v22305_v34  ;;  %v22368_v42 = vld [vmem:[#allocation2 + $0x404] ss:$16 sps:$4 sm:$0xff]   ;;  %v22371_v34 = vld [vmem:[#allocation2 + $0x40c] ss:$16 sps:$4 sm:$0xff]  }
 0xa34   : > { %15187 = vmatpush1.bf16.msra.mxu0 %v22300_v56  ;;  %15359 = vmatpush1.bf16.msra.mxu1 %v22303_v18  ;;  %v22366_v56 = vld [vmem:[#allocation2 + $0x400] ss:$16 sps:$4 sm:$0xff]   ;;  %v22369_v18 = vld [vmem:[#allocation2 + $0x408] ss:$16 sps:$4 sm:$0xff]  }
 0xa35   : > { %15188 = vmatprep.subr.bf16.mxu0 %v22308_v31  ;;  %15360 = vmatprep.subr.bf16.mxu1 %v22311_v33  ;;  %v22374_v31 = vld [vmem:[#allocation2 + $0x424] ss:$16 sps:$4 sm:$0xff]   ;;  %v22377_v33 = vld [vmem:[#allocation2 + $0x42c] ss:$16 sps:$4 sm:$0xff]  }
 0xa38   : > { %15189 = vmatpush1.bf16.msra.mxu0 %v22306_v22  ;;  %15361 = vmatpush1.bf16.msra.mxu1 %v22309_v37  ;;  %v22372_v22 = vld [vmem:[#allocation2 + $0x420] ss:$16 sps:$4 sm:$0xff]   ;;  %v22375_v37 = vld [vmem:[#allocation2 + $0x428] ss:$16 sps:$4 sm:$0xff]  }
 0xa39   : > { %15190 = vmatprep.subr.bf16.mxu0 %v22314_v26  ;;  %15362 = vmatprep.subr.bf16.mxu1 %v22317_v1  ;;  %v22380_v26 = vld [vmem:[#allocation2 + $0x444] ss:$16 sps:$4 sm:$0xff]   ;;  %v22383_v1 = vld [vmem:[#allocation2 + $0x44c] ss:$16 sps:$4 sm:$0xff]  }
 0xa3c   : > { %15191 = vmatpush1.bf16.msra.mxu0 %v22312_v35  ;;  %15363 = vmatpush1.bf16.msra.mxu1 %v22315_v32  ;;  %v22378_v35 = vld [vmem:[#allocation2 + $0x440] ss:$16 sps:$4 sm:$0xff]   ;;  %v22381_v32 = vld [vmem:[#allocation2 + $0x448] ss:$16 sps:$4 sm:$0xff]  }
 0xa3d   : > { %15192 = vmatprep.subr.bf16.mxu0 %v22320_v38  ;;  %15364 = vmatprep.subr.bf16.mxu1 %v22323_v51  ;;  %v22386_v38 = vld [vmem:[#allocation2 + $0x464] ss:$16 sps:$4 sm:$0xff]   ;;  %v22384_v51 = vld [vmem:[#allocation2 + $0x460] ss:$16 sps:$4 sm:$0xff]  }
 0xa40   : > { %15193 = vmatpush1.bf16.msra.mxu0 %v22318_v41  ;;  %15365 = vmatpush1.bf16.msra.mxu1 %v22321_v45  ;;  %v22387_v41 = vld [vmem:[#allocation2 + $0x468] ss:$16 sps:$4 sm:$0xff]   ;;  %v22392_v45 = vld [vmem:[#allocation2 + $0x484] ss:$16 sps:$4 sm:$0xff]  }
 0xa41   : > { %15194 = vmatprep.subr.bf16.mxu0 %v22326_v44  ;;  %15366 = vmatprep.subr.bf16.mxu1 %v22329_v46  ;;  %v22390_v44 = vld [vmem:[#allocation2 + $0x480] ss:$16 sps:$4 sm:$0xff]   ;;  %v22393_v46 = vld [vmem:[#allocation2 + $0x488] ss:$16 sps:$4 sm:$0xff]  }
 0xa44   : > { %15195 = vmatpush1.bf16.msra.mxu0 %v22324_v49  ;;  %15367 = vmatpush1.bf16.msra.mxu1 %v22327_v16  ;;  %v22398_v49 = vld [vmem:[#allocation2 + $0x4a4] ss:$16 sps:$4 sm:$0xff]   ;;  %v22401_v16 = vld [vmem:[#allocation2 + $0x4ac] ss:$16 sps:$4 sm:$0xff]  }
 0xa45   : > { %15196 = vmatprep.subr.bf16.mxu0 %v22332_v50  ;;  %15368 = vmatprep.subr.bf16.mxu1 %v22335_v12  ;;  %v22396_v50 = vld [vmem:[#allocation2 + $0x4a0] ss:$16 sps:$4 sm:$0xff]   ;;  %v22399_v12 = vld [vmem:[#allocation2 + $0x4a8] ss:$16 sps:$4 sm:$0xff]  }
 0xa48   : > { %15197 = vmatpush1.bf16.msra.mxu0 %v22330_v52  ;;  %15369 = vmatpush1.bf16.msra.mxu1 %v22333_v53  ;;  %v22404_v52 = vld [vmem:[#allocation2 + $0x4c4] ss:$16 sps:$4 sm:$0xff]   ;;  %v22407_v53 = vld [vmem:[#allocation2 + $0x4cc] ss:$16 sps:$4 sm:$0xff]  }
 0xa49   : > { %15198 = vmatprep.subr.bf16.mxu0 %v22338_v55  ;;  %15370 = vmatprep.subr.bf16.mxu1 %v22341_v57  ;;  %v22402_v55 = vld [vmem:[#allocation2 + $0x4c0] ss:$16 sps:$4 sm:$0xff]   ;;  %v22405_v57 = vld [vmem:[#allocation2 + $0x4c8] ss:$16 sps:$4 sm:$0xff]  }
 0xa4c   : > { %15199 = vmatpush1.bf16.msra.mxu0 %v22336_v58  ;;  %15371 = vmatpush1.bf16.msra.mxu1 %v22339_v61  ;;  %v22410_v58 = vld [vmem:[#allocation2 + $0x4e4] ss:$16 sps:$4 sm:$0xff]   ;;  %v22413_v61 = vld [vmem:[#allocation2 + $0x4ec] ss:$16 sps:$4 sm:$0xff]  }
 0xa4d   : > { %15200 = vmatprep.subr.bf16.mxu0 %v22344_v62  ;;  %15372 = vmatprep.subr.bf16.mxu1 %v22347_v3  ;;  %v22408_v62 = vld [vmem:[#allocation2 + $0x4e0] ss:$16 sps:$4 sm:$0xff]   ;;  %v22411_v3 = vld [vmem:[#allocation2 + $0x4e8] ss:$16 sps:$4 sm:$0xff]  }
 0xa50   : > { %15201 = vmatpush1.bf16.msra.mxu0 %v22342_v14  ;;  %15373 = vmatpush1.bf16.msra.mxu1 %v22345_v15  ;;  %v22416_v14 = vld [vmem:[#allocation2 + $0x504] ss:$16 sps:$4 sm:$0xff]   ;;  %v22419_v15 = vld [vmem:[#allocation2 + $0x50c] ss:$16 sps:$4 sm:$0xff]  }
 0xa51   : > { %15202 = vmatprep.subr.bf16.mxu0 %v22350_v4  ;;  %15374 = vmatprep.subr.bf16.mxu1 %v22353_v6  ;;  %v22414_v4 = vld [vmem:[#allocation2 + $0x500] ss:$16 sps:$4 sm:$0xff]   ;;  %v22417_v6 = vld [vmem:[#allocation2 + $0x508] ss:$16 sps:$4 sm:$0xff]  }
 0xa54   : > { %15203 = vmatpush1.bf16.msra.mxu0 %v22348_v9  ;;  %15375 = vmatpush1.bf16.msra.mxu1 %v22351_v17  ;;  %v22422_v9 = vld [vmem:[#allocation2 + $0x524] ss:$16 sps:$4 sm:$0xff]   ;;  %v22425_v17 = vld [vmem:[#allocation2 + $0x52c] ss:$16 sps:$4 sm:$0xff]  }
 0xa55   : > { %15204 = vmatprep.subr.bf16.mxu0 %v22356_v19  ;;  %15376 = vmatprep.subr.bf16.mxu1 %v22359_v20  ;;  %v22420_v19 = vld [vmem:[#allocation2 + $0x520] ss:$16 sps:$4 sm:$0xff]   ;;  %v22423_v20 = vld [vmem:[#allocation2 + $0x528] ss:$16 sps:$4 sm:$0xff]  }
 0xa58   : > { %15205 = vmatpush1.bf16.msra.mxu0 %v22354_v11  ;;  %15377 = vmatpush1.bf16.msra.mxu1 %v22357_v21  ;;  %v22428_v11 = vld [vmem:[#allocation2 + $0x544] ss:$16 sps:$4 sm:$0xff]   ;;  %v22431_v21 = vld [vmem:[#allocation2 + $0x54c] ss:$16 sps:$4 sm:$0xff]  }
 0xa59   : > { %15206 = vmatprep.subr.bf16.mxu0 %v22362_v23  ;;  %15378 = vmatprep.subr.bf16.mxu1 %v22365_v25  ;;  %v22426_v23 = vld [vmem:[#allocation2 + $0x540] ss:$16 sps:$4 sm:$0xff]   ;;  %v22429_v25 = vld [vmem:[#allocation2 + $0x548] ss:$16 sps:$4 sm:$0xff]  }
 0xa5c   : > { %15207 = vmatpush1.bf16.msra.mxu0 %v22360_v28  ;;  %15379 = vmatpush1.bf16.msra.mxu1 %v22363_v29  ;;  %v22434_v28 = vld [vmem:[#allocation2 + $0x564] ss:$16 sps:$4 sm:$0xff]   ;;  %v22437_v29 = vld [vmem:[#allocation2 + $0x56c] ss:$16 sps:$4 sm:$0xff]  }
 0xa5d   : > { %15219 = vmatprep.subr.bf16.mxu0 %v22368_v42  ;;  %15391 = vmatprep.subr.bf16.mxu1 %v22371_v34  ;;  %v22432_v42 = vld [vmem:[#allocation2 + $0x560] ss:$16 sps:$4 sm:$0xff]   ;;  %v22435_v34 = vld [vmem:[#allocation2 + $0x568] ss:$16 sps:$4 sm:$0xff]  }
 0xa5f   : > { %15209 = vmatmul.mubr.bf16.vlgmr.msra.gmra.mrb[20].mxu0 %v28657_v36  ;;  %15381 = vmatmul.mubr.bf16.vlgmr.msra.gmra.mrb[20].mxu1 %v28657_v36  ;;  %v22389_v36 = vld [vmem:[#allocation2 + $0x46c] ss:$16 sps:$4 sm:$0xff]  }
 0xa60   : > { %15220 = vmatpush1.bf16.msra.mxu0 %v22366_v56  ;;  %15251 = vmatprep.mubr.bf16.mxu0 %v28665_v47  ;;  %v22440_v56 = vld [vmem:[#allocation2 + $0x584] ss:$16 sps:$4 sm:$0xff]  }
 0xa61   : > { %15392 = vmatpush1.bf16.msra.mxu1 %v22369_v18  ;;  %15423 = vmatprep.mubr.bf16.mxu1 %v28665_v47  ;;  %v22395_v47 = vld [vmem:[#allocation2 + $0x48c] ss:$16 sps:$4 sm:$0xff]  }
 0xa62   : > { %15221 = vmatprep.subr.bf16.mxu0 %v22374_v31  ;;  %15393 = vmatprep.subr.bf16.mxu1 %v22377_v33  ;;  %v22443_v18 = vld [vmem:[#allocation2 + $0x58c] ss:$16 sps:$4 sm:$0xff]   ;;  %v22438_v31 = vld [vmem:[#allocation2 + $0x580] ss:$16 sps:$4 sm:$0xff]   ;;  %v22441_v33 = vld [vmem:[#allocation2 + $0x588] ss:$16 sps:$4 sm:$0xff]  }
 0xa64   : > { %15222 = vmatpush1.bf16.msra.mxu0 %v22372_v22  ;;  %v22446_v22 = vld [vmem:[#allocation2 + $0x5a4] ss:$16 sps:$4 sm:$0xff]  }
 0xa65   : > { %15394 = vmatpush1.bf16.msra.mxu1 %v22375_v37  ;;  %15223 = vmatprep.subr.bf16.mxu0 %v22380_v26  ;;  %v22449_v37 = vld [vmem:[#allocation2 + $0x5ac] ss:$16 sps:$4 sm:$0xff]   ;;  %v22444_v26 = vld [vmem:[#allocation2 + $0x5a0] ss:$16 sps:$4 sm:$0xff]  }
 0xa66   : > { %15395 = vmatprep.subr.bf16.mxu1 %v22383_v1  ;;  %v22447_v1 = vld [vmem:[#allocation2 + $0x5a8] ss:$16 sps:$4 sm:$0xff]  }
 0xa68   : > { %15224 = vmatpush1.bf16.msra.mxu0 %v22378_v35  ;;  %v22452_v35 = vld [vmem:[#allocation2 + $0x5c4] ss:$16 sps:$4 sm:$0xff]  }
 0xa69   : > { %15396 = vmatpush1.bf16.msra.mxu1 %v22381_v32  ;;  %15225 = vmatprep.subr.bf16.mxu0 %v22386_v38  ;;  %v22455_v32 = vld [vmem:[#allocation2 + $0x5cc] ss:$16 sps:$4 sm:$0xff]   ;;  %v22450_v38 = vld [vmem:[#allocation2 + $0x5c0] ss:$16 sps:$4 sm:$0xff]  }
 0xa6a   : > { %15397 = vmatprep.subr.bf16.mxu1 %v22389_v36  ;;  %v22453_v36 = vld [vmem:[#allocation2 + $0x5c8] ss:$16 sps:$4 sm:$0xff]  }
 0xa6c   : > { %15226 = vmatpush1.bf16.msra.mxu0 %v22384_v51  ;;  %v22458_v51 = vld [vmem:[#allocation2 + $0x5e4] ss:$16 sps:$4 sm:$0xff]  }
 0xa6d   : > { %15398 = vmatpush1.bf16.msra.mxu1 %v22387_v41  ;;  %15227 = vmatprep.subr.bf16.mxu0 %v22392_v45  ;;  %v22461_v41 = vld [vmem:[#allocation2 + $0x5ec] ss:$16 sps:$4 sm:$0xff]   ;;  %v22456_v45 = vld [vmem:[#allocation2 + $0x5e0] ss:$16 sps:$4 sm:$0xff]  }
 0xa6e   : > { %15399 = vmatprep.subr.bf16.mxu1 %v22395_v47  ;;  %v22459_v47 = vld [vmem:[#allocation2 + $0x5e8] ss:$16 sps:$4 sm:$0xff]  }
 0xa70   : > { %15228 = vmatpush1.bf16.msra.mxu0 %v22390_v44  ;;  %v22464_v44 = vld [vmem:[#allocation2 + $0x604] ss:$16 sps:$4 sm:$0xff]  }
 0xa71   : > { %15400 = vmatpush1.bf16.msra.mxu1 %v22393_v46  ;;  %15229 = vmatprep.subr.bf16.mxu0 %v22398_v49  ;;  %v22467_v46 = vld [vmem:[#allocation2 + $0x60c] ss:$16 sps:$4 sm:$0xff]   ;;  %v22462_v49 = vld [vmem:[#allocation2 + $0x600] ss:$16 sps:$4 sm:$0xff]  }
 0xa72   : > { %15401 = vmatprep.subr.bf16.mxu1 %v22401_v16  ;;  %v22465_v16 = vld [vmem:[#allocation2 + $0x608] ss:$16 sps:$4 sm:$0xff]  }
 0xa74   : > { %15230 = vmatpush1.bf16.msra.mxu0 %v22396_v50  ;;  %v22470_v50 = vld [vmem:[#allocation2 + $0x624] ss:$16 sps:$4 sm:$0xff]  }
 0xa75   : > { %15402 = vmatpush1.bf16.msra.mxu1 %v22399_v12  ;;  %15231 = vmatprep.subr.bf16.mxu0 %v22404_v52  ;;  %v22473_v12 = vld [vmem:[#allocation2 + $0x62c] ss:$16 sps:$4 sm:$0xff]   ;;  %v22468_v52 = vld [vmem:[#allocation2 + $0x620] ss:$16 sps:$4 sm:$0xff]  }
 0xa76   : > { %15403 = vmatprep.subr.bf16.mxu1 %v22407_v53  ;;  %v22471_v53 = vld [vmem:[#allocation2 + $0x628] ss:$16 sps:$4 sm:$0xff]  }
 0xa78   : > { %15232 = vmatpush1.bf16.msra.mxu0 %v22402_v55  ;;  %v22476_v55 = vld [vmem:[#allocation2 + $0x644] ss:$16 sps:$4 sm:$0xff]  }
 0xa79   : > { %15404 = vmatpush1.bf16.msra.mxu1 %v22405_v57  ;;  %15233 = vmatprep.subr.bf16.mxu0 %v22410_v58  ;;  %v22479_v57 = vld [vmem:[#allocation2 + $0x64c] ss:$16 sps:$4 sm:$0xff]   ;;  %v22474_v58 = vld [vmem:[#allocation2 + $0x640] ss:$16 sps:$4 sm:$0xff]  }
 0xa7a   : > { %15405 = vmatprep.subr.bf16.mxu1 %v22413_v61  ;;  %v22482_v61 = vld [vmem:[#allocation2 + $0x664] ss:$16 sps:$4 sm:$0xff]  }
 0xa7c   : > { %15234 = vmatpush1.bf16.msra.mxu0 %v22408_v62  ;;  %v22485_v62 = vld [vmem:[#allocation2 + $0x66c] ss:$16 sps:$4 sm:$0xff]  }
 0xa7d   : > { %15406 = vmatpush1.bf16.msra.mxu1 %v22411_v3  ;;  %15235 = vmatprep.subr.bf16.mxu0 %v22416_v14  ;;  %v22480_v3 = vld [vmem:[#allocation2 + $0x660] ss:$16 sps:$4 sm:$0xff]   ;;  %v22483_v14 = vld [vmem:[#allocation2 + $0x668] ss:$16 sps:$4 sm:$0xff]  }
 0xa7e   : > { %15407 = vmatprep.subr.bf16.mxu1 %v22419_v15  ;;  %v22488_v15 = vld [vmem:[#allocation2 + $0x684] ss:$16 sps:$4 sm:$0xff]  }
 0xa80   : > { %15236 = vmatpush1.bf16.msra.mxu0 %v22414_v4  ;;  %v22491_v4 = vld [vmem:[#allocation2 + $0x68c] ss:$16 sps:$4 sm:$0xff]  }
 0xa81   : > { %15408 = vmatpush1.bf16.msra.mxu1 %v22417_v6  ;;  %15237 = vmatprep.subr.bf16.mxu0 %v22422_v9  ;;  %v22489_v6 = vld [vmem:[#allocation2 + $0x688] ss:$16 sps:$4 sm:$0xff]   ;;  %v22494_v9 = vld [vmem:[#allocation2 + $0x6a4] ss:$16 sps:$4 sm:$0xff]  }
 0xa82   : > { %15409 = vmatprep.subr.bf16.mxu1 %v22425_v17  ;;  %v22497_v17 = vld [vmem:[#allocation2 + $0x6ac] ss:$16 sps:$4 sm:$0xff]  }
 0xa84   : > { %15238 = vmatpush1.bf16.msra.mxu0 %v22420_v19  ;;  %v22492_v19 = vld [vmem:[#allocation2 + $0x6a0] ss:$16 sps:$4 sm:$0xff]  }
 0xa85   : > { %15410 = vmatpush1.bf16.msra.mxu1 %v22423_v20  ;;  %15239 = vmatprep.subr.bf16.mxu0 %v22428_v11  ;;  %v22495_v20 = vld [vmem:[#allocation2 + $0x6a8] ss:$16 sps:$4 sm:$0xff]   ;;  %v22500_v11 = vld [vmem:[#allocation2 + $0x6c4] ss:$16 sps:$4 sm:$0xff]  }
 0xa86   : > { %15411 = vmatprep.subr.bf16.mxu1 %v22431_v21  ;;  %v22503_v21 = vld [vmem:[#allocation2 + $0x6cc] ss:$16 sps:$4 sm:$0xff]  }
 0xa88   : > { %15240 = vmatpush1.bf16.msra.mxu0 %v22426_v23  ;;  %v22498_v23 = vld [vmem:[#allocation2 + $0x6c0] ss:$16 sps:$4 sm:$0xff]  }
 0xa89   : > { %15412 = vmatpush1.bf16.msra.mxu1 %v22429_v25  ;;  %15241 = vmatprep.subr.bf16.mxu0 %v22434_v28  ;;  %v22501_v25 = vld [vmem:[#allocation2 + $0x6c8] ss:$16 sps:$4 sm:$0xff]   ;;  %v22506_v28 = vld [vmem:[#allocation2 + $0x6e4] ss:$16 sps:$4 sm:$0xff]  }
 0xa8a   : > { %15413 = vmatprep.subr.bf16.mxu1 %v22437_v29  ;;  %v22509_v29 = vld [vmem:[#allocation2 + $0x6ec] ss:$16 sps:$4 sm:$0xff]  }
 0xa8c   : > { %15242 = vmatpush1.bf16.msra.mxu0 %v22432_v42  ;;  %v22504_v42 = vld [vmem:[#allocation2 + $0x6e0] ss:$16 sps:$4 sm:$0xff]  }
 0xa8d   : > { %15414 = vmatpush1.bf16.msra.mxu1 %v22435_v34  ;;  %15243 = vmatprep.subr.bf16.mxu0 %v22440_v56  ;;  %v22507_v34 = vld [vmem:[#allocation2 + $0x6e8] ss:$16 sps:$4 sm:$0xff]   ;;  %v22512_v56 = vld [vmem:[#allocation2 + $0x704] ss:$16 sps:$4 sm:$0xff]  }
 0xa8e   : > { %15415 = vmatprep.subr.bf16.mxu1 %v22443_v18  ;;  %v22515_v18 = vld [vmem:[#allocation2 + $0x70c] ss:$16 sps:$4 sm:$0xff]  }
 0xa90   : > { %15244 = vmatpush1.bf16.msra.mxu0 %v22438_v31  ;;  %v22510_v31 = vld [vmem:[#allocation2 + $0x700] ss:$16 sps:$4 sm:$0xff]  }
 0xa91   : > { %15416 = vmatpush1.bf16.msra.mxu1 %v22441_v33  ;;  %15245 = vmatprep.subr.bf16.mxu0 %v22446_v22  ;;  %v22513_v33 = vld [vmem:[#allocation2 + $0x708] ss:$16 sps:$4 sm:$0xff]   ;;  %v22518_v22 = vld [vmem:[#allocation2 + $0x724] ss:$16 sps:$4 sm:$0xff]  }
 0xa92   : > { %15417 = vmatprep.subr.bf16.mxu1 %v22449_v37  ;;  %v22521_v37 = vld [vmem:[#allocation2 + $0x72c] ss:$16 sps:$4 sm:$0xff]  }
 0xa94   : > { %15246 = vmatpush1.bf16.msra.mxu0 %v22444_v26  ;;  %v22516_v26 = vld [vmem:[#allocation2 + $0x720] ss:$16 sps:$4 sm:$0xff]  }
 0xa95   : > { %15418 = vmatpush1.bf16.msra.mxu1 %v22447_v1  ;;  %15247 = vmatprep.subr.bf16.mxu0 %v22452_v35  ;;  %v22519_v1 = vld [vmem:[#allocation2 + $0x728] ss:$16 sps:$4 sm:$0xff]   ;;  %v22524_v35 = vld [vmem:[#allocation2 + $0x744] ss:$16 sps:$4 sm:$0xff]  }
 0xa96   : > { %15419 = vmatprep.subr.bf16.mxu1 %v22455_v32  ;;  %v22527_v32 = vld [vmem:[#allocation2 + $0x74c] ss:$16 sps:$4 sm:$0xff]  }
 0xa98   : > { %15248 = vmatpush1.bf16.msra.mxu0 %v22450_v38  ;;  %v22522_v38 = vld [vmem:[#allocation2 + $0x740] ss:$16 sps:$4 sm:$0xff]  }
 0xa99   : > { %15420 = vmatpush1.bf16.msra.mxu1 %v22453_v36  ;;  %15249 = vmatprep.subr.bf16.mxu0 %v22458_v51  ;;  %v22525_v36 = vld [vmem:[#allocation2 + $0x748] ss:$16 sps:$4 sm:$0xff]   ;;  %v22530_v51 = vld [vmem:[#allocation2 + $0x764] ss:$16 sps:$4 sm:$0xff]  }
 0xa9a   : > { %15421 = vmatprep.subr.bf16.mxu1 %v22461_v41  ;;  %v22533_v41 = vld [vmem:[#allocation2 + $0x76c] ss:$16 sps:$4 sm:$0xff]  }
 0xa9c   : > { %15250 = vmatpush1.bf16.msra.mxu0 %v22456_v45  ;;  %v22528_v45 = vld [vmem:[#allocation2 + $0x760] ss:$16 sps:$4 sm:$0xff]  }
 0xa9d   : > { %15422 = vmatpush1.bf16.msra.mxu1 %v22459_v47  ;;  %15262 = vmatprep.subr.bf16.mxu0 %v22464_v44  ;;  %v22531_v47 = vld [vmem:[#allocation2 + $0x768] ss:$16 sps:$4 sm:$0xff]   ;;  %v22536_v44 = vld [vmem:[#allocation2 + $0x784] ss:$16 sps:$4 sm:$0xff]  }
 0xa9e   : > { %15434 = vmatprep.subr.bf16.mxu1 %v22467_v46  ;;  %v22539_v46 = vld [vmem:[#allocation2 + $0x78c] ss:$16 sps:$4 sm:$0xff]  }
 0xa9f   : > { %15252 = vmatmul.mubr.bf16.vlgmr.msra.gmra.mrb[20].mxu0 %v28659_v39 }
 0xaa0   : > { %15424 = vmatmul.mubr.bf16.vlgmr.msra.gmra.mrb[20].mxu1 %v28659_v39  ;;  %15263 = vmatpush1.bf16.msra.mxu0 %v22462_v49  ;;  %v22477_v39 = vld [vmem:[#allocation2 + $0x648] ss:$16 sps:$4 sm:$0xff]   ;;  %v22534_v49 = vld [vmem:[#allocation2 + $0x780] ss:$16 sps:$4 sm:$0xff]  }
 0xaa1   : > { %19624 = vmatprep.mubr.msk.bf16.mxu0 %vm26804_vm7, %v28681_v0  ;;  %15435 = vmatpush1.bf16.msra.mxu1 %v22465_v16  ;;  %v22537_v16 = vld [vmem:[#allocation2 + $0x788] ss:$16 sps:$4 sm:$0xff]  }
 0xaa2   : > { %19644 = vmatprep.mubr.msk.bf16.mxu1 %vm26804_vm7, %v28681_v0  ;;  %15264 = vmatprep.subr.bf16.mxu0 %v22470_v50  ;;  %v22486_v0 = vld [vmem:[#allocation2 + $0x680] ss:$16 sps:$4 sm:$0xff]   ;;  %v22542_v50 = vld [vmem:[#allocation2 + $0x7a4] ss:$16 sps:$4 sm:$0xff]  }
 0xaa3   : > { %15436 = vmatprep.subr.bf16.mxu1 %v22473_v12  ;;  %v22545_v12 = vld [vmem:[#allocation2 + $0x7ac] ss:$16 sps:$4 sm:$0xff]  }
 0xaa4   : > { %15265 = vmatpush1.bf16.msra.mxu0 %v22468_v52  ;;  %v22540_v52 = vld [vmem:[#allocation2 + $0x7a0] ss:$16 sps:$4 sm:$0xff]  }
 0xaa5   : > { %15437 = vmatpush1.bf16.msra.mxu1 %v22471_v53  ;;  %15266 = vmatprep.subr.bf16.mxu0 %v22476_v55  ;;  %v22543_v53 = vld [vmem:[#allocation2 + $0x7a8] ss:$16 sps:$4 sm:$0xff]   ;;  %v22548_v55 = vld [vmem:[#allocation2 + $0x7c4] ss:$16 sps:$4 sm:$0xff]  }
 0xaa6   : > { %15438 = vmatprep.subr.bf16.mxu1 %v22479_v57  ;;  %v22551_v57 = vld [vmem:[#allocation2 + $0x7cc] ss:$16 sps:$4 sm:$0xff]  }
 0xaa8   : > { %15267 = vmatpush1.bf16.msra.mxu0 %v22474_v58  ;;  %v22546_v58 = vld [vmem:[#allocation2 + $0x7c0] ss:$16 sps:$4 sm:$0xff]  }
 0xaa9   : > { %15439 = vmatpush1.bf16.msra.mxu1 %v22477_v39  ;;  %15268 = vmatprep.subr.bf16.mxu0 %v22482_v61  ;;  %v22549_v39 = vld [vmem:[#allocation2 + $0x7c8] ss:$16 sps:$4 sm:$0xff]   ;;  %v22554_v61 = vld [vmem:[#allocation2 + $0x7e4] ss:$16 sps:$4 sm:$0xff]  }
 0xaaa   : > { %15440 = vmatprep.subr.bf16.mxu1 %v22485_v62  ;;  %v22557_v62 = vld [vmem:[#allocation2 + $0x7ec] ss:$16 sps:$4 sm:$0xff]  }
 0xaac   : > { %15269 = vmatpush1.bf16.msra.mxu0 %v22480_v3  ;;  %v22552_v3 = vld [vmem:[#allocation2 + $0x7e0] ss:$16 sps:$4 sm:$0xff]  }
 0xaad   : > { %15441 = vmatpush1.bf16.msra.mxu1 %v22483_v14  ;;  %15270 = vmatprep.subr.bf16.mxu0 %v22488_v15  ;;  %v22555_v14 = vld [vmem:[#allocation2 + $0x7e8] ss:$16 sps:$4 sm:$0xff]   ;;  %v22560_v15 = vld [vmem:[#allocation5 + $0x40] sm:$0xff]  }
 0xaae   : > { %15442 = vmatprep.subr.bf16.mxu1 %v22491_v4  ;;  %v22558_v4 = vld [vmem:[#allocation5 + $0xc0] sm:$0xff]  }
 0xab0   : > { %15271 = vmatpush1.bf16.msra.mxu0 %v22486_v0  ;;  %v22561_v0 = vld [vmem:[#allocation5] sm:$0xff]  }
 0xab1   : > { %15443 = vmatpush1.bf16.msra.mxu1 %v22489_v6  ;;  %15272 = vmatprep.subr.bf16.mxu0 %v22494_v9  ;;  %v22559_v6 = vld [vmem:[#allocation5 + $0x80] sm:$0xff]   ;;  %v22564_v9 = vld [vmem:[#allocation5 + $0x48] sm:$0xff]  }
 0xab2   : > { %15444 = vmatprep.subr.bf16.mxu1 %v22497_v17  ;;  %v22562_v17 = vld [vmem:[#allocation5 + $0xc8] sm:$0xff]  }
 0xab4   : > { %15273 = vmatpush1.bf16.msra.mxu0 %v22492_v19  ;;  %v22565_v19 = vld [vmem:[#allocation5 + $0x8] sm:$0xff]  }
 0xab5   : > { %15445 = vmatpush1.bf16.msra.mxu1 %v22495_v20  ;;  %15274 = vmatprep.subr.bf16.mxu0 %v22500_v11  ;;  %v22563_v20 = vld [vmem:[#allocation5 + $0x88] sm:$0xff]   ;;  %v22568_v11 = vld [vmem:[#allocation5 + $0x50] sm:$0xff]  }
 0xab6   : > { %15446 = vmatprep.subr.bf16.mxu1 %v22503_v21  ;;  %v22566_v21 = vld [vmem:[#allocation5 + $0xd0] sm:$0xff]  }
 0xab8   : > { %15275 = vmatpush1.bf16.msra.mxu0 %v22498_v23  ;;  %v22569_v23 = vld [vmem:[#allocation5 + $0x10] sm:$0xff]  }
 0xab9   : > { %15447 = vmatpush1.bf16.msra.mxu1 %v22501_v25  ;;  %15276 = vmatprep.subr.bf16.mxu0 %v22506_v28  ;;  %v22567_v25 = vld [vmem:[#allocation5 + $0x90] sm:$0xff]   ;;  %v22572_v28 = vld [vmem:[#allocation5 + $0x58] sm:$0xff]  }
 0xaba   : > { %15448 = vmatprep.subr.bf16.mxu1 %v22509_v29  ;;  %v22570_v29 = vld [vmem:[#allocation5 + $0xd8] sm:$0xff]  }
 0xabc   : > { %15277 = vmatpush1.bf16.msra.mxu0 %v22504_v42  ;;  %v22573_v42 = vld [vmem:[#allocation5 + $0x18] sm:$0xff]  }
 0xabd   : > { %15449 = vmatpush1.bf16.msra.mxu1 %v22507_v34  ;;  %15278 = vmatprep.subr.bf16.mxu0 %v22512_v56  ;;  %v22576_v34 = vld [vmem:[#allocation5 + $0x60] sm:$0xff]  }
 0xabe   : > { %15450 = vmatprep.subr.bf16.mxu1 %v22515_v18  ;;  %v22574_v56 = vld [vmem:[#allocation5 + $0xe0] sm:$0xff]  }
 0xabf   : > { %v22575_v18 = vld [vmem:[#allocation5 + $0xa0] sm:$0xff]  }
 0xac0   : > { %15279 = vmatpush1.bf16.msra.mxu0 %v22510_v31  ;;  %v22577_v31 = vld [vmem:[#allocation5 + $0x20] sm:$0xff]  }
 0xac1   : > { %15451 = vmatpush1.bf16.msra.mxu1 %v22513_v33  ;;  %15280 = vmatprep.subr.bf16.mxu0 %v22518_v22  ;;  %v22578_v33 = vld [vmem:[#allocation5 + $0xe8] sm:$0xff]  }
 0xac2   : > { %15452 = vmatprep.subr.bf16.mxu1 %v22521_v37  ;;  %v22579_v22 = vld [vmem:[#allocation5 + $0xa8] sm:$0xff]  }
 0xac3   : > { %v22580_v37 = vld [vmem:[#allocation5 + $0x68] sm:$0xff]  }
 0xac4   : > { %15281 = vmatpush1.bf16.msra.mxu0 %v22516_v26  ;;  %v22581_v26 = vld [vmem:[#allocation5 + $0x28] sm:$0xff]  }
 0xac5   : > { %15453 = vmatpush1.bf16.msra.mxu1 %v22519_v1  ;;  %15282 = vmatprep.subr.bf16.mxu0 %v22524_v35  ;;  %v22582_v1 = vld [vmem:[#allocation5 + $0xf0] sm:$0xff]  }
 0xac6   : > { %15454 = vmatprep.subr.bf16.mxu1 %v22527_v32  ;;  %v22583_v35 = vld [vmem:[#allocation5 + $0xb0] sm:$0xff]  }
 0xac7   : > { %v22584_v32 = vld [vmem:[#allocation5 + $0x70] sm:$0xff]  }
 0xac8   : > { %15283 = vmatpush1.bf16.msra.mxu0 %v22522_v38  ;;  %v22585_v38 = vld [vmem:[#allocation5 + $0x30] sm:$0xff]  }
 0xac9   : > { %15455 = vmatpush1.bf16.msra.mxu1 %v22525_v36  ;;  %15284 = vmatprep.subr.bf16.mxu0 %v22530_v51  ;;  %v22586_v36 = vld [vmem:[#allocation5 + $0xf8] sm:$0xff]  }
 0xaca   : > { %15456 = vmatprep.subr.bf16.mxu1 %v22533_v41  ;;  %v22587_v51 = vld [vmem:[#allocation5 + $0xb8] sm:$0xff]  }
 0xacb   : > { %v22588_v41 = vld [vmem:[#allocation5 + $0x78] sm:$0xff]  }
 0xacc   : > { %15285 = vmatpush1.bf16.msra.mxu0 %v22528_v45  ;;  %v22589_v45 = vld [vmem:[#allocation5 + $0x38] sm:$0xff]  }
 0xacd   : > { %15457 = vmatpush1.bf16.msra.mxu1 %v22531_v47  ;;  %15286 = vmatprep.subr.bf16.mxu0 %v22536_v44  ;;  %v22590_v47 = vld [vmem:[#allocation5 + $0x140] sm:$0xff]  }
 0xace   : > { %15458 = vmatprep.subr.bf16.mxu1 %v22539_v46  ;;  %v13831_v44 = vld [vmem:[%s28947_s12] sm:$0xf] }
 0xacf   : > { %v13836_v46 = vrot.slane %v13831_v44, %v24892_v5 }
 0xad0   : > { %15287 = vmatpush1.bf16.msra.mxu0 %v22534_v49  ;;  %v13844_v49 = vrot.slane %v13831_v44, %v24895_v7 }
 0xad1   : > { %15459 = vmatpush1.bf16.msra.mxu1 %v22537_v16  ;;  %15288 = vmatprep.subr.bf16.mxu0 %v22542_v50  ;;  %v13840_v16 = vrot.slane %v13831_v44, %v24898_v8  ;;  %v13848_v50 = vrot.slane %v13831_v44, %v24901_v10  ;;  %v22601_v44 = vld [vmem:[#allocation5 + $0x128] sm:$0xff]  }
 0xad2   : > { %15460 = vmatprep.subr.bf16.mxu1 %v22545_v12 }
 0xad4   : > { %15289 = vmatpush1.bf16.msra.mxu0 %v22540_v52 }
 0xad5   : > { %15461 = vmatpush1.bf16.msra.mxu1 %v22543_v53  ;;  %15290 = vmatprep.subr.bf16.mxu0 %v22548_v55 }
 0xad6   : > { %15462 = vmatprep.subr.bf16.mxu1 %v22551_v57 }
 0xad8   : > { %15291 = vmatpush1.bf16.msra.mxu0 %v22546_v58 }
 0xad9   : > { %15463 = vmatpush1.bf16.msra.mxu1 %v22549_v39  ;;  %15292 = vmatprep.subr.bf16.mxu0 %v22554_v61 }
 0xada   : > { %15464 = vmatprep.subr.bf16.mxu1 %v22557_v62 }
 0xadc   : > { %15293 = vmatpush1.bf16.msra.mxu0 %v22552_v3 }
 0xadd   : > { %15465 = vmatpush1.bf16.msra.mxu1 %v22555_v14  ;;  %19865 = vmatprep.subr.bf16.mxu0 %v22560_v15 }
 0xade   : > { %19887 = vmatprep.subr.bf16.mxu1 %v22558_v4 }
 0xadf   : > { %19629 = vmatmul.mubr.msk.bf16.vlgmr.msra.gmra.mrb[20].mxu0 %vm26804_vm7, %v28667_v48 }
 0xae0   : > { %19649 = vmatmul.mubr.msk.bf16.vlgmr.msra.gmra.mrb[20].mxu1 %vm26804_vm7, %v28667_v48  ;;  %19866 = vmatpush3.bf16.msra.mxu0 %v22561_v0  ;;  %v22571_v48 = vld [vmem:[#allocation5 + $0x98] sm:$0xff]  }
 0xae1   : > { %19888 = vmatpush3.bf16.msra.mxu1 %v22559_v6  ;;  %19867 = vmatprep.subr.bf16.mxu0 %v22564_v9 }
 0xae2   : > { %19889 = vmatprep.subr.bf16.mxu1 %v22562_v17 }
 0xae4   : > { %19868 = vmatpush3.bf16.msra.mxu0 %v22565_v19 }
 0xae5   : > { %19890 = vmatpush3.bf16.msra.mxu1 %v22563_v20  ;;  %19869 = vmatprep.subr.bf16.mxu0 %v22568_v11 }
 0xae6   : > { %19891 = vmatprep.subr.bf16.mxu1 %v22566_v21 }
 0xae8   : > { %19870 = vmatpush3.bf16.msra.mxu0 %v22569_v23 }
 0xae9   : > { %19892 = vmatpush3.bf16.msra.mxu1 %v22567_v25  ;;  %19871 = vmatprep.subr.bf16.mxu0 %v22572_v28 }
 0xaea   : > { %19893 = vmatprep.subr.bf16.mxu1 %v22570_v29 }
 0xaec   : > { %19872 = vmatpush3.bf16.msra.mxu0 %v22573_v42 }
 0xaed   : > { %19894 = vmatpush3.bf16.msra.mxu1 %v22571_v48  ;;  %19873 = vmatprep.subr.bf16.mxu0 %v22576_v34 }
 0xaee   : > { %19895 = vmatprep.subr.bf16.mxu1 %v22574_v56 }
 0xaf0   : > { %19874 = vmatpush3.bf16.msra.mxu0 %v22577_v31 }
 0xaf1   : > { %19896 = vmatpush3.bf16.msra.mxu1 %v22575_v18  ;;  %19875 = vmatprep.subr.bf16.mxu0 %v22580_v37 }
 0xaf2   : > { %19897 = vmatprep.subr.bf16.mxu1 %v22578_v33 }
 0xaf4   : > { %19876 = vmatpush3.bf16.msra.mxu0 %v22581_v26  ;;  %v22591_v26 = vld [vmem:[#allocation5 + $0x100] sm:$0xff]  }
 0xaf5   : > { %19898 = vmatpush3.bf16.msra.mxu1 %v22579_v22  ;;  %19877 = vmatprep.subr.bf16.mxu0 %v22584_v32  ;;  %v22594_v32 = vld [vmem:[#allocation5 + $0x150] sm:$0xff]  }
 0xaf6   : > { %19899 = vmatprep.subr.bf16.mxu1 %v22582_v1  ;;  %v22592_v1 = vld [vmem:[#allocation5 + $0x148] sm:$0xff]  }
 0xaf8   : > { %19878 = vmatpush3.bf16.msra.mxu0 %v22585_v38  ;;  %v22595_v38 = vld [vmem:[#allocation5 + $0x110] sm:$0xff]  }
 0xaf9   : > { %19900 = vmatpush3.bf16.msra.mxu1 %v22583_v35  ;;  %19879 = vmatprep.subr.bf16.mxu0 %v22588_v41  ;;  %v22593_v35 = vld [vmem:[#allocation5 + $0x108] sm:$0xff]   ;;  %v22598_v41 = vld [vmem:[#allocation5 + $0x160] sm:$0xff]  }
 0xafa   : > { %19901 = vmatprep.subr.bf16.mxu1 %v22586_v36  ;;  %v22596_v36 = vld [vmem:[#allocation5 + $0x158] sm:$0xff]  }
 0xafc   : > { %19880 = vmatpush3.bf16.msra.mxu0 %v22589_v45  ;;  %v22599_v45 = vld [vmem:[#allocation5 + $0x120] sm:$0xff]  }
 0xafd   : > { %19902 = vmatpush3.bf16.msra.mxu1 %v22587_v51  ;;  %19909 = vmatprep.subr.bf16.mxu0 %v22590_v47  ;;  %v22597_v51 = vld [vmem:[#allocation5 + $0x118] sm:$0xff]   ;;  %v22600_v47 = vld [vmem:[#allocation5 + $0x168] sm:$0xff]  }
 0xbb2   : > { %v15296_v12 = vpop.f32.mrb[20].mxu0 }
 0xbb3   : > { %v20213_v52 = vadd.f32 %v15296_v12, %v13836_v46  ;;  %v15468_v53 = vpop.f32.mrb[20].mxu1  ;;  %v15298_v55 = vpop.f32.mrb[21].mxu0  ;;  %v22606_v12 = vld [vmem:[#allocation7 + $0x40] sm:$0xff]  }
 0xbb4   : > { %v20217_v57 = vadd.f32 %v15468_v53, %v13844_v49  ;;  %v20214_v58 = vadd.f32 %v15298_v55, %v13840_v16  ;;  %v15470_v39 = vpop.f32.mrb[21].mxu1  ;;  %v15300_v61 = vpop.f32.mrb[22].mxu0  ;;  %v22608_v53 = vld [vmem:[#allocation7 + $0x80] sm:$0xff]   ;;  %v22987_v55 = vmov 0.0   ;;  %19931 = vmatprep.subr.bf16.mxu1 %v22606_v12 }
 0xbb5   : > { %v15477_v62 = vadd.f32 %v20213_v52, %v28244_v43  ;;  %v20218_v3 = vadd.f32 %v15470_v39, %v13848_v50  ;;  %v20215_v14 = vadd.f32 %v15300_v61, %v13836_v46  ;;  %v15472_v15 = vpop.f32.mrb[22].mxu1  ;;  %v15302_v5 = vpop.f32.mrb[23].mxu0  ;;  %v22602_v46 = vld [vmem:[#allocation5 + $0x170] sm:$0xff]   ;;  %v22607_v52 = vld [vmem:[#allocation7] sm:$0xff]   ;;  %v22610_v39 = vld [vmem:[#allocation7 + $0x8] sm:$0xff]  }
 0xbb6   : > { %v15479_v7 = vadd.f32 %v20217_v57, %v28010_v54  ;;  %v15478_v8 = vadd.f32 %v20214_v58, %v28038_v24  ;;  %v20219_v4 = vadd.f32 %v15472_v15, %v13844_v49  ;;  %v20216_v10 = vadd.f32 %v15302_v5, %v13840_v16  ;;  %v15474_v0 = vpop.f32.mrb[23].mxu1  ;;  %v22603_v49 = vld [vmem:[#allocation5 + $0x130] sm:$0xff]   ;;  %v22604_v16 = vld [vmem:[#allocation5 + $0x178] sm:$0xff]   ;;  %v22609_v57 = vld [vmem:[#allocation7 + $0x48] sm:$0xff]  }
 0xbb7   : > { %v15480_v6 = vadd.f32 %v20218_v3, %v28012_v60  ;;  %v15481_v9 = vadd.f32 %v20215_v14, %v28236_v40  ;;  %v20220_v17 = vadd.f32 %v15474_v0, %v13848_v50  ;;  %v15485_v11 = vmax.f32 %v15477_v62, 0.0  ;;  %v22605_v50 = vld [vmem:[#allocation5 + $0x138] sm:$0xff]   ;;  %v22611_v58 = vld [vmem:[#allocation7 + $0x88] sm:$0xff]   ;;  %v22612_v61 = vld [vmem:[#allocation7 + $0x50] sm:$0xff]  }
 0xbb8   : > { %v15487_v19 = vmax.f32 %v15479_v7, 0.0  ;;  %v15483_v20 = vadd.f32 %v20219_v4, %v28014_v63  ;;  %v15482_v43 = vadd.f32 %v20216_v10, %v28026_v13  ;;  %v15486_v25 = vmax.f32 %v15478_v8, 0.0  ;;  %v22614_v62 = vld [vmem:[#allocation7 + $0x90] sm:$0xff]   ;;  %v22615_v14 = vld [vmem:[#allocation7 + $0x58] sm:$0xff]   ;;  %v22618_v7 = vld [vmem:[#allocation7 + $0x60] sm:$0xff]  }
 0xbb9   : > { %v15488_v21 = vmax.f32 %v15480_v6, 0.0  ;;  %v15489_v23 = vmax.f32 %v15481_v9, 0.0  ;;  %v15484_v54 = vadd.f32 %v20220_v17, %v28016_v2  ;;  %v22613_v3 = vld [vmem:[#allocation7 + $0x10] sm:$0xff]   ;;  %v22617_v15 = vld [vmem:[#allocation7 + $0x98] sm:$0xff]   ;;  %v22620_v8 = vld [vmem:[#allocation7 + $0xa0] sm:$0xff]  }
 0xbba   : > { %v15491_v24 = vmax.f32 %v15483_v20, 0.0  ;;  %v15490_v28 = vmax.f32 %v15482_v43, 0.0  ;;  %v15493_v60 = vrot.slane %v15487_v19, 7  ;;  %v22616_v5 = vld [vmem:[#allocation7 + $0x18] sm:$0xff]   ;;  %v22619_v4 = vld [vmem:[#allocation7 + $0x20] sm:$0xff]   ;;  %v22621_v10 = vld [vmem:[#allocation7 + $0x68] sm:$0xff]  }
 0xbbb   : > { %v28724_v29 = vpack.c.bf16 %v15489_v23, %v15485_v11  ;;  %v15492_v42 = vmax.f32 %v15484_v54, 0.0  ;;  %v15494_v63 = vrot.slane %v15488_v21, 7  ;;  %v22622_v0 = vld [vmem:[#allocation7 + $0x28] sm:$0xff]   ;;  %v22624_v9 = vld [vmem:[#allocation7 + $0x70] sm:$0xff]   ;;  %v22627_v20 = vld [vmem:[#allocation7 + $0x78] sm:$0xff]  }
 0xbbc   : > { %v15495_v48 = vrot.slane %v15491_v24, 7  ;;  %v28726_v40 = vpack.c.bf16 %v15491_v24, %v15487_v19  ;;  %v28728_v34 = vpack.c.bf16 %v15490_v28, %v15486_v25  ;;  %v22623_v6 = vld [vmem:[#allocation7 + $0xa8] sm:$0xff]   ;;  %v22625_v17 = vld [vmem:[#allocation7 + $0x30] sm:$0xff]   ;;  %v22628_v43 = vld [vmem:[#allocation7 + $0x38] sm:$0xff]  }
 0xbbd   : > { %v15496_v56 = vrot.slane %v15492_v42, 7  ;;  %v28730_v13 = vpack.c.bf16 %v15492_v42, %v15488_v21  ;;  %v22626_v19 = vld [vmem:[#allocation7 + $0xb0] sm:$0xff]   ;;  %v22629_v11 = vld [vmem:[#allocation7 + $0xb8] sm:$0xff]   ;;  %v22630_v21 = vld [vmem:[#allocation8 + $0x40] sm:$0xff]  }
 0xbbe   : > { %v15497_v18 = vsel %vm5320_vm2, %v15493_v60, %v15495_v48  ;;  %v15499_v2 = vsel %vm5320_vm2, %v15495_v48, %v15493_v60  ;;  %15975 = vmatprep.mubr.bf16.mxu1 %v28728_v34  ;;  %v22631_v23 = vld [vmem:[#allocation8 + $0xc0] sm:$0xff]  }
 0xbbf   : > { %v19707_v31 = vpack.c.bf16 %v15497_v18, %v15499_v2  ;;  %15976 = vmatmul.mubr.bf16.vlgmr.msra.gmra.mrb[24].mxu1 %v28724_v29  ;;  %v15498_v33 = vsel %vm5320_vm2, %v15494_v63, %v15496_v56  ;;  %v15500_v22 = vsel %vm5320_vm2, %v15496_v56, %v15494_v63  ;;  %v19650_v63 = vld [vmem:[%s28949_s14] ss:$0 sm:$0xff] }
 0xbc0   : > { %v19702_v37 = vpack.c.bf16 %v15498_v33, %v15500_v22  ;;  %19932 = vmatpush3.bf16.msra.mxu1 %v22607_v52 }
 0xbc1   : > { %19933 = vmatprep.subr.bf16.mxu1 %v22609_v57 }
 0xbc2   : > { %19703 = vmatprep.mubr.msk.bf16.mxu0 %vm25368_vm3, %v19702_v37 }
 0xbc3   : > { %19708 = vmatmul.mubr.msk.bf16.vlgmr.msra.gmra.mrb[24].mxu0 %vm25368_vm3, %v19707_v31 }
 0xbc4   : > { %19910 = vmatpush3.bf16.msra.mxu0 %v22591_v26  ;;  %16016 = vmatprep.mubr.bf16.mxu0 %v28730_v13 }
 0xbc5   : > { %19911 = vmatprep.subr.bf16.mxu0 %v22592_v1  ;;  %19934 = vmatpush3.bf16.msra.mxu1 %v22610_v39 }
 0xbc6   : > { %19935 = vmatprep.subr.bf16.mxu1 %v22612_v61  ;;  %v22632_v61 = vld [vmem:[#allocation8] sm:$0xff]  }
 0xbc8   : > { %19912 = vmatpush3.bf16.msra.mxu0 %v22593_v35 }
 0xbc9   : > { %19913 = vmatprep.subr.bf16.mxu0 %v22594_v32  ;;  %19936 = vmatpush3.bf16.msra.mxu1 %v22613_v3 }
 0xbca   : > { %19937 = vmatprep.subr.bf16.mxu1 %v22615_v14 }
 0xbcc   : > { %19914 = vmatpush3.bf16.msra.mxu0 %v22595_v38 }
 0xbcd   : > { %19915 = vmatprep.subr.bf16.mxu0 %v22596_v36  ;;  %19938 = vmatpush3.bf16.msra.mxu1 %v22616_v5  ;;  %v22635_v5 = vld [vmem:[#allocation8 + $0xc8] sm:$0xff]  }
 0xbce   : > { %19939 = vmatprep.subr.bf16.mxu1 %v22618_v7  ;;  %v22636_v7 = vld [vmem:[#allocation8 + $0x8] sm:$0xff]  }
 0xbd0   : > { %19916 = vmatpush3.bf16.msra.mxu0 %v22597_v51 }
 0xbd1   : > { %19917 = vmatprep.subr.bf16.mxu0 %v22598_v41  ;;  %19940 = vmatpush3.bf16.msra.mxu1 %v22619_v4  ;;  %v22638_v4 = vld [vmem:[#allocation8 + $0x50] sm:$0xff]  }
 0xbd2   : > { %19941 = vmatprep.subr.bf16.mxu1 %v22621_v10  ;;  %v22639_v10 = vld [vmem:[#allocation8 + $0xd0] sm:$0xff]  }
 0xbd4   : > { %19918 = vmatpush3.bf16.msra.mxu0 %v22599_v45 }
 0xbd5   : > { %19919 = vmatprep.subr.bf16.mxu0 %v22600_v47  ;;  %19942 = vmatpush3.bf16.msra.mxu1 %v22622_v0  ;;  %v22640_v0 = vld [vmem:[#allocation8 + $0x10] sm:$0xff]  }
 0xbd6   : > { %19943 = vmatprep.subr.bf16.mxu1 %v22624_v9  ;;  %v22642_v9 = vld [vmem:[#allocation8 + $0x58] sm:$0xff]  }
 0xbd8   : > { %19920 = vmatpush3.bf16.msra.mxu0 %v22601_v44 }
 0xbd9   : > { %19921 = vmatprep.subr.bf16.mxu0 %v22602_v46  ;;  %19944 = vmatpush3.bf16.msra.mxu1 %v22625_v17  ;;  %v22643_v17 = vld [vmem:[#allocation8 + $0xd8] sm:$0xff]  }
 0xbda   : > { %19945 = vmatprep.subr.bf16.mxu1 %v22627_v20  ;;  %v22645_v20 = vld [vmem:[#allocation8 + $0x98] sm:$0xff]  }
 0xbdc   : > { %19922 = vmatpush3.bf16.msra.mxu0 %v22603_v49 }
 0xbdd   : > { %19923 = vmatprep.subr.bf16.mxu0 %v22604_v16  ;;  %19946 = vmatpush3.bf16.msra.mxu1 %v22628_v43  ;;  %v22648_v43 = vld [vmem:[#allocation8 + $0x20] sm:$0xff]  }
 0xbde   : > { %19962 = vmatprep.subr.bf16.mxu1 %v22630_v21  ;;  %v22650_v21 = vld [vmem:[#allocation8 + $0x68] sm:$0xff]  }
 0xbe0   : > { %19924 = vmatpush3.bf16.msra.mxu0 %v22605_v50 }
 0xbe1   : > { %20079 = vmatprep.subr.bf16.mxu0 %v22987_v55 }
 0xbe3   : > { %16017 = vmatmul.mubr.bf16.vlgmr.msra.gmra.mrb[28].mxu0 %v28726_v40 }
 0xbe4   : > { %20080 = vmatpush3.bf16.msra.mxu0 %v22608_v53  ;;  %20095 = vmatprep.mubr.msk.bf16.mxu0 %vm22988_vm8, %v22987_v55 }
 0xbe5   : > { %20081 = vmatprep.subr.bf16.mxu0 %v22987_v55 }
 0xbe8   : > { %20082 = vmatpush3.bf16.msra.mxu0 %v22611_v58 }
 0xbe9   : > { %20083 = vmatprep.subr.bf16.mxu0 %v22987_v55 }
 0xbec   : > { %20084 = vmatpush3.bf16.msra.mxu0 %v22614_v62  ;;  %v22633_v62 = vld [vmem:[#allocation8 + $0x80] sm:$0xff]  }
 0xbed   : > { %20085 = vmatprep.subr.bf16.mxu0 %v22987_v55 }
 0xbf0   : > { %20086 = vmatpush3.bf16.msra.mxu0 %v22617_v15  ;;  %v22634_v15 = vld [vmem:[#allocation8 + $0x48] sm:$0xff]  }
 0xbf1   : > { %20087 = vmatprep.subr.bf16.mxu0 %v22987_v55 }
 0xbf4   : > { %20088 = vmatpush3.bf16.msra.mxu0 %v22620_v8  ;;  %v22637_v8 = vld [vmem:[#allocation8 + $0x88] sm:$0xff]  }
 0xbf5   : > { %20089 = vmatprep.subr.bf16.mxu0 %v22987_v55 }
 0xbf8   : > { %20090 = vmatpush3.bf16.msra.mxu0 %v22623_v6  ;;  %v22641_v6 = vld [vmem:[#allocation8 + $0x90] sm:$0xff]  }
 0xbf9   : > { %20091 = vmatprep.subr.bf16.mxu0 %v22987_v55 }
 0xbfc   : > { %20092 = vmatpush3.bf16.msra.mxu0 %v22626_v19  ;;  %v22644_v19 = vld [vmem:[#allocation8 + $0x18] sm:$0xff]  }
 0xbfd   : > { %20093 = vmatprep.subr.bf16.mxu0 %v22987_v55 }
 0xc00   : > { %20094 = vmatpush3.bf16.msra.mxu0 %v22629_v11  ;;  %v22649_v11 = vld [vmem:[#allocation8 + $0xa0] sm:$0xff]  }
 0xc01   : > { %19984 = vmatprep.subr.bf16.mxu0 %v22631_v23  ;;  %v22651_v23 = vld [vmem:[#allocation8 + $0xe8] sm:$0xff]  }
 0xc92   : > { %v19903_v54 = vpop.f32.mrb[24].mxu1 }
 0xc93   : > { %v19904_v25 = vpop.f32.mrb[25].mxu1 }
 0xc94   : > { %v19905_v24 = vadd.f32 %v19904_v25, %v19903_v54  ;;  %v19906_v28 = vpop.f32.mrb[26].mxu1  ;;  %v22652_v54 = vld [vmem:[#allocation8 + $0x28] sm:$0xff]  }
 0xc95   : > { %v19907_v42 = vpop.f32.mrb[27].mxu1  ;;  %v22653_v25 = vld [vmem:[#allocation8 + $0xa8] sm:$0xff]  }
 0xc96   : > { %v19881_v60 = vpop.f32.mrb[24].mxu0  ;;  %v19908_v48 = vadd.f32 %v19907_v42, %v19906_v28  ;;  %v22655_v28 = vld [vmem:[#allocation8 + $0xf0] sm:$0xff]  }
 0xc97   : > { %v19882_v56 = vpop.f32.mrb[25].mxu0  ;;  %v22656_v42 = vld [vmem:[#allocation8 + $0x30] sm:$0xff]  }
 0xc98   : > { %v19883_v18 = vadd.f32 %v19882_v56, %v19881_v60  ;;  %v19884_v2 = vpop.f32.mrb[26].mxu0  ;;  %v22657_v60 = vld [vmem:[#allocation8 + $0xb0] sm:$0xff]   ;;  %v22660_v56 = vld [vmem:[#allocation8 + $0x38] sm:$0xff]  }
 0xc99   : > { %v19885_v31 = vpop.f32.mrb[27].mxu0 }
 0xc9a   : > { %v15937_v33 = vadd.f32 %v19883_v18, %v19650_v63  ;;  %v19886_v22 = vadd.f32 %v19885_v31, %v19884_v2  ;;  %v22661_v18 = vld [vmem:[#allocation8 + $0xb8] sm:$0xff]   ;;  %v22662_v2 = vld [vmem:[#allocation10 + $0x40] sm:$0xff]  }
 0xc9b   : > { %v22663_v31 = vld [vmem:[#allocation10] sm:$0xff]  }
 0xc9c   : > { %v15940_v37 = vadd.f32 %v19886_v22, %v19650_v63  ;;  %v15978_v26 = vadd.f32 %v19905_v24, %v15937_v33  ;;  %v22654_v24 = vld [vmem:[#allocation8 + $0x70] sm:$0xff]   ;;  %v22659_v63 = vld [vmem:[#allocation8 + $0xf8] sm:$0xff]   ;;  %v22664_v33 = vld [vmem:[#allocation10 + $0x80] sm:$0xff]  }
 0xc9d   : > { %v22665_v22 = vld [vmem:[#allocation10 + $0x48] sm:$0xff]  }
 0xc9e   : > { %v15981_v1 = vadd.f32 %v19908_v48, %v15940_v37  ;;  %v22658_v48 = vld [vmem:[#allocation8 + $0x78] sm:$0xff]   ;;  %v22667_v37 = vld [vmem:[#allocation10 + $0x88] sm:$0xff]  }
 0xcb6   : > { %v19925_v35 = vpop.f32.mrb[28].mxu0 }
 0xcb7   : > { %v19926_v32 = vpop.f32.mrb[29].mxu0 }
 0xcb8   : > { %v19927_v38 = vadd.f32 %v19926_v32, %v19925_v35  ;;  %v19928_v36 = vpop.f32.mrb[30].mxu0  ;;  %v22671_v35 = vld [vmem:[#allocation10 + $0x58] sm:$0xff]  }
 0xcb9   : > { %v19929_v51 = vpop.f32.mrb[31].mxu0  ;;  %v22672_v32 = vld [vmem:[#allocation10 + $0x18] sm:$0xff]  }
 0xcba   : > { %v16019_v41 = vadd.f32 %v19927_v38, %v15978_v26  ;;  %v19930_v45 = vadd.f32 %v19929_v51, %v19928_v36  ;;  %v22666_v26 = vld [vmem:[#allocation10 + $0x8] sm:$0xff]   ;;  %v22673_v38 = vld [vmem:[#allocation10 + $0x98] sm:$0xff]   ;;  %v22674_v36 = vld [vmem:[#allocation10 + $0x60] sm:$0xff]  }
 0xcbb   : > { %v22675_v51 = vld [vmem:[#allocation10 + $0x20] sm:$0xff]  }
 0xcbc   : > { %v16025_v47 = vmax.f32 %v16019_v41, 0.0  ;;  %v16022_v44 = vadd.f32 %v19930_v45, %v15981_v1  ;;  %v22668_v1 = vld [vmem:[#allocation10 + $0x50] sm:$0xff]   ;;  %v22676_v41 = vld [vmem:[#allocation10 + $0xa0] sm:$0xff]   ;;  %v22677_v45 = vld [vmem:[#allocation10 + $0x68] sm:$0xff]  }
 0xcbe   : > { %v16026_v46 = vmax.f32 %v16022_v44, 0.0  ;;  %v16027_v49 = vrot.slane %v16025_v47, 7  ;;  %v16033_v16 = vrot.slane %v16025_v47, 1  ;;  %v22679_v44 = vld [vmem:[#allocation10 + $0xa8] sm:$0xff]  }
 0xcc0   : > { %v16028_v50 = vrot.slane %v16026_v46, 7  ;;  %v16034_v12 = vrot.slane %v16026_v46, 1  ;;  %v16040_v52 = vpack.c.bf16 %v16026_v46, %v16025_v47  ;;  %v22678_v47 = vld [vmem:[#allocation10 + $0x28] sm:$0xff]   ;;  %v22680_v46 = vld [vmem:[#allocation10 + $0x70] sm:$0xff]  }
 0xcc2   : > { %v16029_v53 = vsel %vm5320_vm2, %v16027_v49, %v16028_v50  ;;  %v16030_v57 = vsel %vm5320_vm2, %v16028_v50, %v16027_v49  ;;  %v16035_v58 = vsel %vm7762_vm4, %v16033_v16, %v16034_v12  ;;  %v16036_v39 = vsel %vm7762_vm4, %v16034_v12, %v16033_v16  ;;  %16273 = vmatprep.mubr.bf16.mxu1 %v16040_v52  ;;  %v22681_v49 = vld [vmem:[#allocation10 + $0x30] sm:$0xff]   ;;  %v22683_v50 = vld [vmem:[#allocation10 + $0x78] sm:$0xff]  }
 0xcc3   : > { %v19737_v3 = vpack.c.bf16 %v16029_v53, %v16030_v57  ;;  %v19742_v14 = vpack.c.bf16 %v16036_v39, %v16035_v58  ;;  %v22682_v16 = vld [vmem:[#allocation10 + $0xb0] sm:$0xff]   ;;  %v22684_v12 = vld [vmem:[#allocation10 + $0x38] sm:$0xff]   ;;  %v22686_v53 = vld [vmem:[#allocation11 + $0x40] sm:$0xff]  }
 0xcc4   : > { %v22685_v52 = vld [vmem:[#allocation10 + $0xb8] sm:$0xff]   ;;  %v19709_v39 = vld [vmem:[%s28951_s16] ss:$0 sm:$0xff] }
 0xcc5   : > { %19738 = vmatmul.mubr.msk.bf16.vlgmr.msra.gmra.mrb[28].mxu1 %vm25368_vm3, %v19737_v3  ;;  %20096 = vmatmul.mubr.msk.bf16.vlgmr.msra.gmra.mrb[32].mxu0 %vm26804_vm7, %v19742_v14 }
 0xcc6   : > { %19963 = vmatpush3.bf16.msra.mxu1 %v22632_v61  ;;  %19985 = vmatpush3.bf16.msra.mxu0 %v22633_v62 }
 0xcc7   : > { %16618 = vmatprep.mubr.bf16.mxu1 %v28728_v34  ;;  %16659 = vmatprep.mubr.bf16.mxu0 %v28730_v13  ;;  %v22646_v34 = vld [vmem:[#allocation8 + $0x60] sm:$0xff]  }
 0xcc8   : > { %19964 = vmatprep.subr.bf16.mxu1 %v22634_v15  ;;  %19986 = vmatprep.subr.bf16.mxu0 %v22635_v5  ;;  %v22647_v13 = vld [vmem:[#allocation8 + $0xe0] sm:$0xff]  }
 0xcca   : > { %19965 = vmatpush3.bf16.msra.mxu1 %v22636_v7  ;;  %19987 = vmatpush3.bf16.msra.mxu0 %v22637_v8 }
 0xccb   : > { %19966 = vmatprep.subr.bf16.mxu1 %v22638_v4  ;;  %19988 = vmatprep.subr.bf16.mxu0 %v22639_v10 }
 0xcce   : > { %19967 = vmatpush3.bf16.msra.mxu1 %v22640_v0  ;;  %19989 = vmatpush3.bf16.msra.mxu0 %v22641_v6 }
 0xccf   : > { %19968 = vmatprep.subr.bf16.mxu1 %v22642_v9  ;;  %19990 = vmatprep.subr.bf16.mxu0 %v22643_v17 }
 0xcd2   : > { %19969 = vmatpush3.bf16.msra.mxu1 %v22644_v19  ;;  %19991 = vmatpush3.bf16.msra.mxu0 %v22645_v20  ;;  %v19744_v19 = vld [vmem:[%s28953_s18] ss:$0 sm:$0xff] }
 0xcd3   : > { %19970 = vmatprep.subr.bf16.mxu1 %v22646_v34  ;;  %19992 = vmatprep.subr.bf16.mxu0 %v22647_v13 }
 0xcd6   : > { %19971 = vmatpush3.bf16.msra.mxu1 %v22648_v43  ;;  %19993 = vmatpush3.bf16.msra.mxu0 %v22649_v11 }
 0xcd7   : > { %19972 = vmatprep.subr.bf16.mxu1 %v22650_v21  ;;  %19994 = vmatprep.subr.bf16.mxu0 %v22651_v23 }
 0xcda   : > { %19973 = vmatpush3.bf16.msra.mxu1 %v22652_v54  ;;  %19995 = vmatpush3.bf16.msra.mxu0 %v22653_v25 }
 0xcdb   : > { %19974 = vmatprep.subr.bf16.mxu1 %v22654_v24  ;;  %19996 = vmatprep.subr.bf16.mxu0 %v22655_v28 }
 0xcde   : > { %19975 = vmatpush3.bf16.msra.mxu1 %v22656_v42  ;;  %19997 = vmatpush3.bf16.msra.mxu0 %v22657_v60 }
 0xcdf   : > { %19976 = vmatprep.subr.bf16.mxu1 %v22658_v48  ;;  %19998 = vmatprep.subr.bf16.mxu0 %v22659_v63 }
 0xce2   : > { %19977 = vmatpush3.bf16.msra.mxu1 %v22660_v56  ;;  %19999 = vmatpush3.bf16.msra.mxu0 %v22661_v18 }
 0xce3   : > { %20099 = vmatprep.subr.bf16.mxu0 %v22987_v55  ;;  %20006 = vmatprep.subr.bf16.mxu1 %v22662_v2 }
 0xce5   : > { %16619 = vmatmul.mubr.bf16.vlgmr.msra.gmra.mrb[32].mxu1 %v28724_v29  ;;  %16660 = vmatmul.mubr.bf16.vlgmr.msra.gmra.mrb[36].mxu0 %v28726_v40  ;;  %v22670_v29 = vld [vmem:[#allocation10 + $0x90] sm:$0xff]  }
 0xce6   : > { %20115 = vmatprep.mubr.msk.bf16.mxu0 %vm22988_vm8, %v22987_v55  ;;  %20100 = vmatpush3.bf16.msra.mxu0 %v22664_v33  ;;  %v22669_v40 = vld [vmem:[#allocation10 + $0x10] sm:$0xff]  }
 0xce7   : > { %20007 = vmatpush3.bf16.msra.mxu1 %v22663_v31  ;;  %20101 = vmatprep.subr.bf16.mxu0 %v22987_v55 }
 0xce8   : > { %20008 = vmatprep.subr.bf16.mxu1 %v22665_v22 }
 0xcea   : > { %20102 = vmatpush3.bf16.msra.mxu0 %v22667_v37 }
 0xceb   : > { %20009 = vmatpush3.bf16.msra.mxu1 %v22666_v26  ;;  %20103 = vmatprep.subr.bf16.mxu0 %v22987_v55 }
 0xcec   : > { %20010 = vmatprep.subr.bf16.mxu1 %v22668_v1 }
 0xcee   : > { %20104 = vmatpush3.bf16.msra.mxu0 %v22670_v29 }
 0xcef   : > { %20011 = vmatpush3.bf16.msra.mxu1 %v22669_v40  ;;  %20105 = vmatprep.subr.bf16.mxu0 %v22987_v55 }
 0xcf0   : > { %20012 = vmatprep.subr.bf16.mxu1 %v22671_v35 }
 0xcf2   : > { %20106 = vmatpush3.bf16.msra.mxu0 %v22673_v38  ;;  %v22688_v38 = vld [vmem:[#allocation11 + $0x80] sm:$0xff]  }
 0xcf3   : > { %20013 = vmatpush3.bf16.msra.mxu1 %v22672_v32  ;;  %20107 = vmatprep.subr.bf16.mxu0 %v22987_v55  ;;  %v22687_v32 = vld [vmem:[#allocation11] sm:$0xff]  }
 0xcf4   : > { %20014 = vmatprep.subr.bf16.mxu1 %v22674_v36 }
 0xcf6   : > { %20108 = vmatpush3.bf16.msra.mxu0 %v22676_v41  ;;  %v22689_v41 = vld [vmem:[#allocation11 + $0x48] sm:$0xff]  }
 0xcf7   : > { %20015 = vmatpush3.bf16.msra.mxu1 %v22675_v51  ;;  %20109 = vmatprep.subr.bf16.mxu0 %v22987_v55 }
 0xcf8   : > { %20016 = vmatprep.subr.bf16.mxu1 %v22677_v45  ;;  %v22690_v45 = vld [vmem:[#allocation11 + $0x8] sm:$0xff]  }
 0xcfa   : > { %20110 = vmatpush3.bf16.msra.mxu0 %v22679_v44  ;;  %v22692_v44 = vld [vmem:[#allocation11 + $0x50] sm:$0xff]  }
 0xcfb   : > { %20017 = vmatpush3.bf16.msra.mxu1 %v22678_v47  ;;  %20111 = vmatprep.subr.bf16.mxu0 %v22987_v55  ;;  %v22691_v47 = vld [vmem:[#allocation11 + $0x88] sm:$0xff]  }
 0xcfc   : > { %20018 = vmatprep.subr.bf16.mxu1 %v22680_v46  ;;  %v22693_v46 = vld [vmem:[#allocation11 + $0x10] sm:$0xff]  }
 0xcfe   : > { %20112 = vmatpush3.bf16.msra.mxu0 %v22682_v16  ;;  %v22695_v16 = vld [vmem:[#allocation11 + $0x58] sm:$0xff]  }
 0xcff   : > { %20019 = vmatpush3.bf16.msra.mxu1 %v22681_v49  ;;  %20113 = vmatprep.subr.bf16.mxu0 %v22987_v55  ;;  %v22694_v49 = vld [vmem:[#allocation11 + $0x90] sm:$0xff]  }
 0xd00   : > { %20020 = vmatprep.subr.bf16.mxu1 %v22683_v50  ;;  %v22696_v50 = vld [vmem:[#allocation11 + $0x18] sm:$0xff]  }
 0xd02   : > { %20114 = vmatpush3.bf16.msra.mxu0 %v22685_v52  ;;  %v22698_v52 = vld [vmem:[#allocation11 + $0x60] sm:$0xff]  }
 0xd03   : > { %20021 = vmatpush3.bf16.msra.mxu1 %v22684_v12  ;;  %20119 = vmatprep.subr.bf16.mxu0 %v22987_v55  ;;  %v22697_v12 = vld [vmem:[#allocation11 + $0x98] sm:$0xff]  }
 0xd04   : > { %20037 = vmatprep.subr.bf16.mxu1 %v22686_v53  ;;  %v22699_v53 = vld [vmem:[#allocation11 + $0x20] sm:$0xff]  }
 0xd98   : > { %v19947_v57 = vpop.f32.mrb[28].mxu1  ;;  %v16316_v58 = vpop.f32.mrb[32].mxu0 }
 0xd99   : > { %v19948_v61 = vpop.f32.mrb[29].mxu1  ;;  %v20097_v62 = vpop.f32.mrb[33].mxu0 }
 0xd9a   : > { %v19949_v3 = vadd.f32 %v19948_v61, %v19947_v57  ;;  %v19950_v14 = vpop.f32.mrb[30].mxu1  ;;  %v16319_v15 = vpop.f32.mrb[34].mxu0  ;;  %v22700_v57 = vld [vmem:[#allocation11 + $0xa0] sm:$0xff]   ;;  %v22703_v61 = vld [vmem:[#allocation11 + $0xa8] sm:$0xff]   ;;  %v22704_v62 = vld [vmem:[#allocation11 + $0x70] sm:$0xff]  }
 0xd9b   : > { %v19951_v5 = vpop.f32.mrb[31].mxu1  ;;  %v20098_v7 = vpop.f32.mrb[35].mxu0 }
 0xd9c   : > { %v16276_v8 = vadd.f32 %v19949_v3, %v19709_v39  ;;  %v19952_v4 = vadd.f32 %v19951_v5, %v19950_v14  ;;  %v22705_v3 = vld [vmem:[#allocation11 + $0x30] sm:$0xff]   ;;  %v22708_v5 = vld [vmem:[#allocation11 + $0x38] sm:$0xff]  }
 0xd9d   : > { %v22706_v14 = vld [vmem:[#allocation11 + $0xb0] sm:$0xff]   ;;  %v22709_v7 = vld [vmem:[#allocation11 + $0xb8] sm:$0xff]  }
 0xd9e   : > { %v16317_v10 = vadd.f32 %v16316_v58, %v16276_v8  ;;  %v16279_v0 = vadd.f32 %v19952_v4, %v19709_v39  ;;  %v22701_v58 = vld [vmem:[#allocation11 + $0x68] sm:$0xff]  }
 0xd9f   : > { %v22702_v39 = vld [vmem:[#allocation11 + $0x28] sm:$0xff]  }
 0xda0   : > { %v16320_v6 = vadd.f32 %v16319_v15, %v16279_v0  ;;  %v22707_v15 = vld [vmem:[#allocation11 + $0x78] sm:$0xff]  }
 0xdb8   : > { %v19978_v9 = vpop.f32.mrb[32].mxu1  ;;  %v20000_v17 = vpop.f32.mrb[36].mxu0 }
 0xdb9   : > { %v19979_v20 = vpop.f32.mrb[33].mxu1  ;;  %v20001_v34 = vpop.f32.mrb[37].mxu0 }
 0xdba   : > { %v19980_v13 = vadd.f32 %v19979_v20, %v19978_v9  ;;  %v20002_v43 = vadd.f32 %v20001_v34, %v20000_v17  ;;  %v19981_v11 = vpop.f32.mrb[34].mxu1  ;;  %v20003_v21 = vpop.f32.mrb[38].mxu0 }
 0xdbb   : > { %v19982_v23 = vpop.f32.mrb[35].mxu1  ;;  %v20004_v54 = vpop.f32.mrb[39].mxu0 }
 0xdbc   : > { %v16621_v25 = vadd.f32 %v19980_v13, %v19744_v19  ;;  %v19983_v24 = vadd.f32 %v19982_v23, %v19981_v11  ;;  %v20005_v28 = vadd.f32 %v20004_v54, %v20003_v21 }
 0xdbe   : > { %v16662_v42 = vadd.f32 %v20002_v43, %v16621_v25  ;;  %v16624_v60 = vadd.f32 %v19983_v24, %v19744_v19 }
 0xdc0   : > { %v16668_v48 = vadd.f32 %v16662_v42, %v16317_v10  ;;  %v16665_v63 = vadd.f32 %v20005_v28, %v16624_v60  ;;  %v19777_v10 = vld [vmem:[%s28955_s20] ss:$0 sm:$0xff] }
 0xdc2   : > { %v28794_v56 = vmax.f32 %v16668_v48, 0.0  ;;  %v16669_v18 = vadd.f32 %v16665_v63, %v16320_v6 }
 0xdc4   : > { %v28796_v2 = vmax.f32 %v16669_v18, 0.0  ;;  %v16672_v31 = vrot.slane %v28794_v56, 7  ;;  %v16678_v33 = vrot.slane %v28794_v56, 1 }
 0xdc6   : > { %v16673_v22 = vrot.slane %v28796_v2, 7  ;;  %v16679_v37 = vrot.slane %v28796_v2, 1  ;;  %v16685_v26 = vpack.c.bf16 %v28796_v2, %v28794_v56 }
 0xdc8   : > { %16918 = vmatprep.mubr.bf16.mxu1 %v16685_v26  ;;  %v16674_v1 = vsel %vm5320_vm2, %v16672_v31, %v16673_v22  ;;  %v16675_v29 = vsel %vm5320_vm2, %v16673_v22, %v16672_v31  ;;  %v16680_v40 = vsel %vm7762_vm4, %v16678_v33, %v16679_v37  ;;  %v16681_v35 = vsel %vm7762_vm4, %v16679_v37, %v16678_v33 }
 0xdc9   : > { %v19805_v36 = vpack.c.bf16 %v16674_v1, %v16675_v29  ;;  %v19810_v51 = vpack.c.bf16 %v16681_v35, %v16680_v40  ;;  %v19812_v29 = vld [vmem:[%s28957_s22] ss:$0 sm:$0xff] }
 0xdcb   : > { %19806 = vmatmul.mubr.msk.bf16.vlgmr.msra.gmra.mrb[36].mxu1 %vm25368_vm3, %v19805_v36  ;;  %20116 = vmatmul.mubr.msk.bf16.vlgmr.msra.gmra.mrb[40].mxu0 %vm26804_vm7, %v19810_v51 }
 0xdcc   : > { %20038 = vmatpush3.bf16.msra.mxu1 %v22687_v32  ;;  %20120 = vmatpush3.bf16.msra.mxu0 %v22688_v38 }
 0xdcd   : > { %20039 = vmatprep.subr.bf16.mxu1 %v22689_v41  ;;  %20121 = vmatprep.subr.bf16.mxu0 %v22987_v55 }
 0xdce   : > { %20135 = vmatprep.mubr.msk.bf16.mxu0 %vm22988_vm8, %v22987_v55 }
 0xdd0   : > { %20040 = vmatpush3.bf16.msra.mxu1 %v22690_v45  ;;  %20122 = vmatpush3.bf16.msra.mxu0 %v22691_v47 }
 0xdd1   : > { %20041 = vmatprep.subr.bf16.mxu1 %v22692_v44  ;;  %20123 = vmatprep.subr.bf16.mxu0 %v22987_v55 }
 0xdd4   : > { %20042 = vmatpush3.bf16.msra.mxu1 %v22693_v46  ;;  %20124 = vmatpush3.bf16.msra.mxu0 %v22694_v49 }
 0xdd5   : > { %20043 = vmatprep.subr.bf16.mxu1 %v22695_v16  ;;  %20125 = vmatprep.subr.bf16.mxu0 %v22987_v55 }
 0xdd8   : > { %20044 = vmatpush3.bf16.msra.mxu1 %v22696_v50  ;;  %20126 = vmatpush3.bf16.msra.mxu0 %v22697_v12  ;;  %v17271_v12 = vld [vmem:[%s28958_s23] sm:$0x3] }
 0xdd9   : > { %20127 = vmatprep.subr.bf16.mxu0 %v22987_v55  ;;  %20045 = vmatprep.subr.bf16.mxu1 %v22698_v52  ;;  %v22710_v52 = vld [vmem:[%s29048_s7] sm:$0xff]   ;;  %s875_s7 = scalar_lea.vmem [#allocation13], %s17578_s3  ;;  %s22989_s3 = smov [#allocation13]  }
 0xdda   : > { %s17443_s1 = sshll.u32 %s875_s7, 4  ;;  %s22900_s2 = sshll.u32 %s22989_s3, 4  ;;  %s28895_s1 = int_to_ptr.vmem [resolvable:$true] %s17443_s1  ;;  %s22901_s2 = int_to_ptr.vmem [resolvable:$false] %s22900_s2 }
 0xddb   : > { %s22896_s8 = scalar_lea.vmem %s28895_s1, 64  ;;  %s22902_s0 = scalar_lea.vmem %s22901_s2, 128 }
 0xddc   : > { %20046 = vmatpush3.bf16.msra.mxu1 %v22699_v53  ;;  %20128 = vmatpush3.bf16.msra.mxu0 %v22700_v57  ;;  %v22713_v53 = vld [vmem:[%s29049_s29 + $0x18] sm:$0xff]   ;;  %v22714_v57 = vld [vmem:[%s29049_s29 + $0x20] sm:$0xff]   ;;  %p22897_p13 = scmp.ne.s32.totalorder %s28895_s1, %s22896_s8  ;;  %p22903_p5 = scmp.lt.s32.totalorder %s28895_s1, %s22901_s2 }
 0xddd   : > { %20129 = vmatprep.subr.bf16.mxu0 %v22987_v55  ;;  %20047 = vmatprep.subr.bf16.mxu1 %v22701_v58  ;;  %v22715_v58 = vld [vmem:[%s29049_s29 + $0x28] sm:$0xff]   ;;  %p22904_p0 = scmp.lt.s32.totalorder %s22902_s0, %s22896_s8 }
 0xdde   : > { %p22898_p6 = pnand %p22897_p13, %p29054_p1 }
 0xddf   : > { %p22905_p10 = por %p22904_p0, %p22903_p5 }
 0xde0   : > { %20048 = vmatpush3.bf16.msra.mxu1 %v22702_v39  ;;  %20130 = vmatpush3.bf16.msra.mxu0 %v22703_v61  ;;  %v22716_v39 = vld [vmem:[%s29049_s29 + $0x30] sm:$0xff]   ;;  %v22717_v61 = vld [vmem:[%s29049_s29 + $0x38] sm:$0xff]   ;;  %p22899_p9 = pneg %p22898_p6 }
 0xde1   : > { %20131 = vmatprep.subr.bf16.mxu0 %v22987_v55  ;;  %20049 = vmatprep.subr.bf16.mxu1 %v22704_v62 }
 0xde2   : > { %p22906_p2 = pnand %p22905_p10, %p22899_p9 }
 0xde4   : > { %20050 = vmatpush3.bf16.msra.mxu1 %v22705_v3  ;;  %20132 = vmatpush3.bf16.msra.mxu0 %v22706_v14 }
 0xde5   : > { %20133 = vmatprep.subr.bf16.mxu0 %v22987_v55  ;;  %20051 = vmatprep.subr.bf16.mxu1 %v22707_v15 }
 0xde8   : > { %20052 = vmatpush3.bf16.msra.mxu1 %v22708_v5  ;;  %20134 = vmatpush3.bf16.msra.mxu0 %v22709_v7  ;;  %v19848_v7 = vld [vmem:[%s29051_s30] ss:$0 sm:$0xff] }
 0xde9   : > { %20139 = vmatprep.subr.bf16.mxu1 %v22987_v55 }
 0xe9e   : > { %v20022_v8 = vpop.f32.mrb[36].mxu1  ;;  %v16961_v4 = vpop.f32.mrb[40].mxu0 }
 0xe9f   : > { %v20023_v0 = vpop.f32.mrb[37].mxu1  ;;  %v20117_v6 = vpop.f32.mrb[41].mxu0 }
 0xea0   : > { %v20024_v9 = vadd.f32 %v20023_v0, %v20022_v8  ;;  %v20025_v17 = vpop.f32.mrb[38].mxu1  ;;  %v16964_v19 = vpop.f32.mrb[42].mxu0 }
 0xea1   : > { %v20026_v20 = vpop.f32.mrb[39].mxu1  ;;  %v20118_v34 = vpop.f32.mrb[43].mxu0 }
 0xea2   : > { %v16921_v13 = vadd.f32 %v20024_v9, %v19777_v10  ;;  %v20027_v43 = vadd.f32 %v20026_v20, %v20025_v17 }
 0xea4   : > { %v16962_v11 = vadd.f32 %v16961_v4, %v16921_v13  ;;  %v16924_v21 = vadd.f32 %v20027_v43, %v19777_v10 }
 0xea6   : > { %v16968_v23 = vmax.f32 %v16962_v11, 0.0  ;;  %v16965_v54 = vadd.f32 %v16964_v19, %v16924_v21 }
 0xea8   : > { %v16969_v25 = vmax.f32 %v16965_v54, 0.0  ;;  %v16970_v24 = vrot.slane %v16968_v23, 7  ;;  %v16976_v28 = vrot.slane %v16968_v23, 1 }
 0xeaa   : > { %v16971_v42 = vrot.slane %v16969_v25, 7  ;;  %v16977_v60 = vrot.slane %v16969_v25, 1  ;;  %v16983_v48 = vpack.c.bf16 %v16969_v25, %v16968_v23 }
 0xeac   : > { %17216 = vmatprep.mubr.bf16.mxu1 %v16983_v48  ;;  %v16972_v63 = vsel %vm5320_vm2, %v16970_v24, %v16971_v42  ;;  %v16973_v18 = vsel %vm5320_vm2, %v16971_v42, %v16970_v24  ;;  %v16978_v31 = vsel %vm7762_vm4, %v16976_v28, %v16977_v60  ;;  %v16979_v33 = vsel %vm7762_vm4, %v16977_v60, %v16976_v28 }
 0xead   : > { %v19840_v22 = vpack.c.bf16 %v16972_v63, %v16973_v18  ;;  %v19845_v37 = vpack.c.bf16 %v16979_v33, %v16978_v31 }
 0xeaf   : > { %19841 = vmatmul.mubr.msk.bf16.vlgmr.msra.gmra.mrb[40].mxu1 %vm25368_vm3, %v19840_v22  ;;  %20136 = vmatmul.mubr.msk.bf16.vlgmr.msra.gmra.mrb[44].mxu0 %vm26804_vm7, %v19845_v37 }
 0xeb0   : > { %20141 = vmatprep.mubr.msk.bf16.mxu1 %vm22988_vm8, %v22987_v55 }
 0xf82   : > { %v20053_v26 = vpop.f32.mrb[40].mxu1  ;;  %v17259_v1 = vpop.f32.mrb[44].mxu0 }
 0xf83   : > { %v20054_v40 = vpop.f32.mrb[41].mxu1  ;;  %v20137_v59 = vpop.f32.mrb[45].mxu0 }
 0xf84   : > { %v20055_v35 = vadd.f32 %v20054_v40, %v20053_v26  ;;  %v20056_v32 = vpop.f32.mrb[42].mxu1  ;;  %v17262_v38 = vpop.f32.mrb[46].mxu0 }
 0xf85   : > { %v20057_v36 = vpop.f32.mrb[43].mxu1  ;;  %v20138_v27 = vpop.f32.mrb[47].mxu0 }
 0xf86   : > { %v17219_v51 = vadd.f32 %v20055_v35, %v19812_v29  ;;  %v20058_v41 = vadd.f32 %v20057_v36, %v20056_v32 }
 0xf88   : > { %v17260_v30 = vadd.f32 %v17259_v1, %v17219_v51  ;;  %v17222_v45 = vadd.f32 %v20058_v41, %v19812_v29 }
 0xf8a   : > { %v17266_v47 = vadd.f32 %v17260_v30, %v28794_v56  ;;  %v17263_v44 = vadd.f32 %v17262_v38, %v17222_v45  ;;  %v22711_v56 = vld [vmem:[%s29049_s29 + $0x8] sm:$0xff]  }
 0xf8c   : > { %v17267_v46 = vadd.f32 %v17263_v44, %v28796_v2  ;;  %v17268_v49 = vmax.f32 %v17266_v47, 0.0  ;;  %v22712_v2 = vld [vmem:[%s29049_s29 + $0x10] sm:$0xff]  }
 0xf8e   : > { %v17269_v16 = vmax.f32 %v17267_v46, 0.0 }
 0xf90   : > { %v17270_v50 = vpack.c.bf16 %v17269_v16, %v17268_v49 }
 0xf92   : > { %20140 = vmatpush3.bf16.msra.mxu1 %v17270_v50 }
 0xf93   : > { %20145 = vmatprep.subr.bf16.mxu1 %v22987_v55 }
 0xf95   : > { %20142 = vmatmul.mubr.msk.bf16.vlgmr.msra.gmra.mrb[44].mxu1 %vm17272_vm9, %v17271_v12 }
 0xf96   : > { %20146 = vmatpush3.bf16.msra.mxu1 %v22710_v52  ;;  %20161 = vmatprep.mubr.msk.bf16.mxu1 %vm22988_vm8, %v22987_v55 }
 0xf97   : > { %20147 = vmatprep.subr.bf16.mxu1 %v22987_v55 }
 0xf9a   : > { %20148 = vmatpush3.bf16.msra.mxu1 %v22711_v56 }
 0xf9b   : > { %20149 = vmatprep.subr.bf16.mxu1 %v22987_v55 }
 0xf9e   : > { %20150 = vmatpush3.bf16.msra.mxu1 %v22712_v2 }
 0xf9f   : > { %20151 = vmatprep.subr.bf16.mxu1 %v22987_v55 }
 0xfa2   : > { %20152 = vmatpush3.bf16.msra.mxu1 %v22713_v53 }
 0xfa3   : > { %20153 = vmatprep.subr.bf16.mxu1 %v22987_v55 }
 0xfa6   : > { %20154 = vmatpush3.bf16.msra.mxu1 %v22714_v57 }
 0xfa7   : > { %20155 = vmatprep.subr.bf16.mxu1 %v22987_v55 }
 0xfaa   : > { %20156 = vmatpush3.bf16.msra.mxu1 %v22715_v58 }
 0xfab   : > { %20157 = vmatprep.subr.bf16.mxu1 %v22987_v55 }
 0xfae   : > { %20158 = vmatpush3.bf16.msra.mxu1 %v22716_v39 }
 0xfaf   : > { %20159 = vmatprep.subr.bf16.mxu1 %v22987_v55 }
 0xfb2   : > { %20160 = vmatpush3.bf16.msra.mxu1 %v22717_v61 }
0x1068   : > { %v17310_v62 = vpop.f32.mrb[44].mxu1 }
0x1069   : > { %v17316_v3 = vpack.c.bf16 %v17310_v62, %v17310_v62  ;;  %v20143_v14 = vpop.f32.mrb[45].mxu1 }
0x106a   : > { %v17313_v15 = vpop.f32.mrb[46].mxu1 }
0x106b   : > { %v20144_v5 = vpop.f32.mrb[47].mxu1  ;;  %20162 = vmatmul.mubr.bf16.vlgmr.msra.gmra.mrb[48].mxu1 %v17316_v3 }
0x113e   : > { %v17422_v55 = vpop.f32.mrb[48].mxu1 }
0x113f   : > { %v17423_v8 = vadd.f32 %v19848_v7, %v17422_v55  ;;  %v20163_v4 = vpop.f32.mrb[49].mxu1 }
0x1140   : > { %v17425_v10 = vpop.f32.mrb[50].mxu1 }
0x1141   : > { %17428 = vst [vmem:[%s875_s7] sm:$0xf] %v17423_v8  ;;  %v20164_v0 = vpop.f32.mrb[51].mxu1 }
0x1142   : > { %22909 = shalt.err (!%p22906_p2)
}
0x1143   : > { %s22910_s25 = scalar_lea.hbm %s28893_s5, 64  ;;  %s22914_s7 = scalar_lea.hbm %s29053_s4, 128 }
0x1144   : > { %p22911_p3 = scmp.ne.s32.totalorder %s28893_s5, %s22910_s25  ;;  %p22915_p7 = scmp.lt.u32.totalorder %s28893_s5, %s29053_s4 }
0x1145   : > { %p22916_p8 = scmp.lt.u32.totalorder %s22914_s7, %s22910_s25  ;;  %p22918_p13 = scmp.lt.u32.totalorder %s22910_s25, %s28893_s5 }
0x1146   : > { %p22912_p4 = pnand %p22911_p3, %p29054_p1 }
0x1147   : > { %p22917_p11 = por %p22916_p8, %p22915_p7 }
0x1148   : > { %p22913_p12 = pneg %p22912_p4 }
0x1149   : > { %p22919_p6 = por %p22918_p13, %p22917_p11 }
0x114b   : > { %p22920_p9 = pnand %p22919_p6, %p22913_p12 }
0x114d   : > { %22923 = shalt.err (!%p22920_p9)
}
0x114e   : > { %20446 = dma.vmem_to_hbm [thread:$0]  (%p29054_p1), %s28895_s1, 64, %s28893_s5, %s17430_s28  }
0x114f PF: > { %s29055_s8 = sld [smem:[#allocation22_spill]]  ;;  %s29056_s3 = sld [smem:[#allocation19_spill]] }
0x1150   : > { %s29057_s2 = sld [smem:[#allocation26_spill]] }
0x1155   : > { %p20483_p5 = scmp.ge.s32.totalorder %s29055_s8, 2  ;;  %s17455_s0 = sand.u32 1, %s29056_s3  }
0x1156   : > { %p29058_p0 = scmp.ne.s32.totalorder %s29057_s2, 0  ;;  %s17456_s30 = scalar_lea.sflag [#allocation4], %s17455_s0 }
0x1158   : > { %p20468_p10 = pnand %p20483_p5, %p29058_p0 }
0x115a   : > { %22957 = dma.done.wait (!%p20468_p10), %s17456_s30, 64  }
0x115b   : > { %22959 = vsyncadd (!%p20468_p10), %s17456_s30, 4294967232  ;;  %s29059_s28 = sld [smem:[#allocation23_spill]]  ;;  %s29060_s27 = sld [smem:[#allocation20_spill]] }
0x115c   : > { %s29061_s3 = sld [smem:[#allocation21_spill]]  ;;  %s29062_s7 = sld [smem:[#allocation24_spill]] }
0x1161   : > { %p40_p2 = scmp.ge.s32.totalorder %s29059_s28, 4  }
0x1163   :  { %42 = sbr.rel (!%p40_p2) target bundleno = 24 (0x18), region = 184 }
0x116a   :  { %17461 = vsyncpa [#allocation3], 1 }
0x116b   :  { %17463 = vsyncpa [#allocation3 + $0x1], 1 }
0x116c   :  { %17464 = vsyncpa [#allocation6], 1 }
0x116d   :  { %17465 = vsyncpa [#allocation9], 1 }
0x116e   :  { %17466 = vsyncpa [#allocation12], 1 }
0x116f   :  { %17467 = vsyncpa [#allocation4], 1 }
0x1170   :  { %17469 = vsyncpa [#allocation4 + $0x1], 1 }

</bundles_post_ra>
